<compile_context>
chip_gen: v7x
topology: tpu7x:2x2x1
jax: 0.10.0
libtpu: 0.0.40
codegen_flags: <defaults>
</compile_context>

<pallas_src>
import jax
import jax.numpy as jnp
from jax import lax
from jax.experimental import pallas as pl
from jax.experimental.pallas import tpu as pltpu

# ---- sizes (small, synthetic) ----
N = 256         # number of nodes (src nodes == dst nodes: graph is not a block)
D = 32          # node_feats
H = 4           # n_heads
F = 8           # out_feats
HF = H * F
NEG_SLOPE = 0.2
EPS = 1e-9

# MXU-input dtype: bf16 gives 2-4x MXU throughput on v5e/v6e/v7x and halves the
# adjacency DMA / VMEM staging.  Accumulation stays f32 (preferred_element_type)
# and all element-wise math stays f32.
MXU_DTYPE = jnp.bfloat16


def gipa_kernel(feat_dst_ref, feat_src_ref, adj_ref,
                w_src_cat_ref, w_dst_cat_ref, w_agg_ref, pnorm_ref,
                scale_ref, offset_ref, bias_ref, out_ref):
    f32 = jnp.float32

    # --- fused node projections (bf16 MXU inputs, f32 accumulation) ---
    # src side: feat_src @ [src_fc | attn_src_fc]  -> (N, H*F + H)
    src_proj = jnp.dot(feat_src_ref[...], w_src_cat_ref[...],
                       preferred_element_type=f32)
    feat_src_fc = src_proj[:, :HF]                                 # (N, H*F) f32
    attn_src_t = src_proj[:, HF:].T                                # (H, N): src -> lanes
    fsfc_mxu = feat_src_fc.astype(MXU_DTYPE)                       # message-matmul RHS

    # dst side: feat_dst @ [attn_dst_fc | dst_fc]  -> (TD, H + H*F)
    # (computed exactly once per dst tile: there is no reduction axis anymore)
    dst_proj = jnp.dot(feat_dst_ref[...], w_dst_cat_ref[...],
                       preferred_element_type=f32)
    attn_dst = dst_proj[:, :H]                                     # (TD, H)
    feat_dst_fc = dst_proj[:, H:]                                  # (TD, H*F)

    adj_f = adj_ref[...].astype(f32)                               # (TD, N), upcast once

    # --- per-head edge attention + message matmul ---
    # e_h[v,u] = leaky_relu(attn_dst[v,h] + attn_src[u,h]); a_h = adj * e_h is
    # built fused per head (no (TD, H*N) e_all / replicated-adj intermediates).
    # The RHS of every message matmul is the full 32-lane feat_src_fc (same MXU
    # work as a block-diagonal matmul, but with no block-diag construction);
    # only the head's own F columns of the product are kept.
    msg_parts = []
    for h in range(H):
        e_h = attn_dst[:, h:h + 1] + attn_src_t[h:h + 1, :]        # (TD, N)
        e_h = jnp.where(e_h >= 0, e_h, NEG_SLOPE * e_h)            # leaky_relu(0.2)
        a_h = (adj_f * e_h).astype(MXU_DTYPE)                      # mask to edges
        m_h = jnp.dot(a_h, fsfc_mxu, preferred_element_type=f32)   # (TD, H*F)
        msg_parts.append(m_h[:, h * F:(h + 1) * F])                # keep head-h cols
    msg = jnp.concatenate(msg_parts, axis=1)                       # (TD, H*F)

    # --- epilogue: per-(node, head) normalization over F + agg_fc + residual ---
    # mean / E[x^2] via one resident block-averaging matrix P (kept in f32: the
    # matmuls are tiny and the MXU is otherwise idle here) instead of the
    # slice / mean / broadcast / concat chain.
    p = pnorm_ref[...]                                             # (H*F, H*F)
    mean_b = jnp.dot(msg, p, preferred_element_type=f32)           # (TD, H*F)
    ex2_b = jnp.dot(msg * msg, p, preferred_element_type=f32)      # (TD, H*F)
    var_b = jnp.maximum(ex2_b - mean_b * mean_b, 0.0) + EPS        # unbiased=False
    hn = (msg - mean_b) * scale_ref[...] * lax.rsqrt(var_b) + offset_ref[...]

    agg = jnp.dot(hn.astype(MXU_DTYPE), w_agg_ref[...],
                  preferred_element_type=f32)                      # (TD, H*F)
    # dst_fc residual + fused (agg_fc.bias + dst_fc.bias); one store per tile.
    # (The (TD, 32) output block is below 128 lanes -> masked stores; tiny
    #  absolute cost at this problem size.)
    out_ref[...] = agg + feat_dst_fc + bias_ref[...]


def _num_dst_tiles(n):
    """2 dst tiles on v7x (2 TensorCores/chip) so the 'parallel' dst axis keeps
    both cores busy; 1 tile on single-TC v5e/v6e (no per-step overhead and no
    redundant revisit of the resident src-side blocks)."""
    try:
        kind = jax.devices()[0].device_kind.lower()
    except Exception:
        kind = ""
    tiles = 2 if ("v7" in kind or "7x" in kind) else 1
    if n % (tiles * 8) != 0:
        tiles = 1
    return tiles


def gipa_forward(feat, adj, params, *, num_dst_tiles=None):
    """params = (w_src, w_asrc, w_adst, w_dst, b_dst, scale, offset, w_agg, b_agg);
    weights pre-transposed to (in_features, out_features)."""
    w_src, w_asrc, w_adst, w_dst, b_dst, scale, offset, w_agg, b_agg = params
    n, d = feat.shape
    if num_dst_tiles is None:
        num_dst_tiles = _num_dst_tiles(n)
    td = n // num_dst_tiles
    assert n % num_dst_tiles == 0 and td % 8 == 0

    # wrapper-side packing: fused projection weights, MXU-dtype inputs/weights
    # (halves their DMA; the 0/1 adjacency is exact in bf16), flattened
    # scale/offset, a single combined output bias (dst_fc.b + agg_fc.b), and
    # the resident block-diagonal averaging matrix P for the epilogue stats.
    w_src_cat = jnp.concatenate([w_src, w_asrc], axis=1).astype(MXU_DTYPE)  # (D, HF+H)
    w_dst_cat = jnp.concatenate([w_adst, w_dst], axis=1).astype(MXU_DTYPE)  # (D, H+HF)
    w_agg_m = w_agg.astype(MXU_DTYPE)                                       # (HF, HF)
    feat_m = feat.astype(MXU_DTYPE)                                         # (N, D)
    adj_m = adj.astype(MXU_DTYPE)                                           # (N, N)
    pnorm = jnp.kron(jnp.eye(H, dtype=jnp.float32),
                     jnp.full((F, F), 1.0 / F, dtype=jnp.float32))          # (HF, HF)
    scale_flat = scale.reshape(1, HF).astype(jnp.float32)
    offset_flat = offset.reshape(1, HF).astype(jnp.float32)
    bias = (b_dst + b_agg).reshape(1, HF).astype(jnp.float32)

    grid = (num_dst_tiles,)                                                 # dst tiles only
    out = pl.pallas_call(
        gipa_kernel,
        out_shape=jax.ShapeDtypeStruct((n, HF), jnp.float32),
        grid_spec=pltpu.PrefetchScalarGridSpec(
            num_scalar_prefetch=0,
            grid=grid,
            in_specs=[
                pl.BlockSpec((td, d), lambda i: (i, 0)),        # feat: dst-node rows
                pl.BlockSpec((n, d), lambda i: (0, 0)),         # feat: all src rows (resident)
                pl.BlockSpec((td, n), lambda i: (i, 0)),        # adjacency rows (bf16)
                pl.BlockSpec((d, HF + H), lambda i: (0, 0)),    # fused [src_fc | attn_src_fc]
                pl.BlockSpec((d, H + HF), lambda i: (0, 0)),    # fused [attn_dst_fc | dst_fc]
                pl.BlockSpec((HF, HF), lambda i: (0, 0)),       # agg_fc weight
                pl.BlockSpec((HF, HF), lambda i: (0, 0)),       # block-averaging P (f32)
                pl.BlockSpec((1, HF), lambda i: (0, 0)),        # scale  (1, H*F)
                pl.BlockSpec((1, HF), lambda i: (0, 0)),        # offset (1, H*F)
                pl.BlockSpec((1, HF), lambda i: (0, 0)),        # combined bias
            ],
            out_specs=pl.BlockSpec((td, HF), lambda i: (i, 0)),
        ),
        compiler_params=pltpu.CompilerParams(
            # dst axis "parallel": sharded across the 2 TensorCores on v7x,
            # harmless with a single grid step on v5e/v6e.
            dimension_semantics=("parallel",),
        ),
    )(feat_m, feat_m, adj_m, w_src_cat, w_dst_cat, w_agg_m, pnorm,
      scale_flat, offset_flat, bias)
    return out.reshape(n, H, F)


def reference(feat, adj, params, matmul_dtype=jnp.float32):
    """Pure-JAX re-implementation of the torch forward.  `matmul_dtype` lets us
    build a precision-matched reference (bf16 matmul inputs, f32 accumulation)
    in addition to the strict f32 one."""
    w_src, w_asrc, w_adst, w_dst, b_dst, scale, offset, w_agg, b_agg = params
    n = feat.shape[0]
    hp = lax.Precision.HIGHEST
    c = lambda x: x.astype(matmul_dtype)
    dot = lambda a, b: jnp.dot(c(a), c(b), precision=hp,
                               preferred_element_type=jnp.float32)
    feat_src_fc = dot(feat, w_src).reshape(n, H, F)
    attn_src = dot(feat, w_asrc)                                   # (N, H)
    attn_dst = dot(feat, w_adst)                                   # (N, H)
    e = attn_dst[:, None, :] + attn_src[None, :, :]                # (N_dst, N_src, H)
    e = jnp.where(e >= 0, e, NEG_SLOPE * e)
    a = adj.astype(jnp.float32)[:, :, None] * e                    # (N, N, H)
    msg = jnp.einsum('vuh,uhf->vhf', c(a), c(feat_src_fc),
                     precision=hp, preferred_element_type=jnp.float32)
    mean = msg.mean(-1, keepdims=True)
    var = ((msg - mean) ** 2).mean(-1, keepdims=True) + EPS        # unbiased=False
    hn = (msg - mean) * scale * lax.rsqrt(var) + offset
    agg = dot(hn.reshape(n, HF), w_agg) + b_agg
    dst = dot(feat, w_dst) + b_dst
    return (agg + dst).reshape(n, H, F)


def xavier_normal(key, fan_in, fan_out, gain):
    std = gain * jnp.sqrt(2.0 / (fan_in + fan_out))
    # weight stored pre-transposed as (fan_in, fan_out)
    return std * jax.random.normal(key, (fan_in, fan_out), dtype=jnp.float32)


if __name__ == "__main__":
    key = jax.random.PRNGKey(0)
    keys = jax.random.split(key, 10)
    gain = jnp.sqrt(2.0)  # nn.init.calculate_gain('relu')

    # deterministic synthetic parameters (shapes per GIPAConv.__init__)
    w_src = xavier_normal(keys[0], D, HF, gain)               # src_fc.weight^T
    w_asrc = xavier_normal(keys[1], D, H, gain)               # attn_src_fc.weight^T
    w_adst = xavier_normal(keys[2], D, H, gain)               # attn_dst_fc.weight^T
    w_dst = xavier_normal(keys[3], D, HF, gain)               # dst_fc.weight^T
    b_dst = 0.1 * jax.random.normal(keys[4], (1, HF), dtype=jnp.float32)
    scale = jnp.ones((1, H, F), dtype=jnp.float32)            # self.scale
    offset = jnp.zeros((1, H, F), dtype=jnp.float32)          # self.offset
    w_agg = xavier_normal(keys[5], HF, HF, gain)              # agg_fc.weight^T
    b_agg = 0.1 * jax.random.normal(keys[6], (1, HF), dtype=jnp.float32)
    params = (w_src, w_asrc, w_adst, w_dst, b_dst, scale, offset, w_agg, b_agg)

    # synthetic inputs
    feat = jax.random.normal(keys[7], (N, D), dtype=jnp.float32)
    adj = (jax.random.uniform(keys[8], (N, N)) < 0.3).astype(jnp.float32)  # adj[v,u]: edge u->v

    out = gipa_forward(feat, adj, params)
    out = jax.block_until_ready(out)
    assert out.shape == (N, H, F)

    # Structural check: precision-matched reference (same bf16 matmul inputs,
    # f32 accumulation) — tight tolerance, catches any indexing/formula bug.
    ref_matched = reference(feat, adj, params, matmul_dtype=MXU_DTYPE)
    assert jnp.allclose(out, ref_matched, atol=1e-2, rtol=1e-2), \
        "Pallas kernel mismatch vs matched-precision reference"

    # Fidelity check vs the strict f32 module semantics — looser tolerance that
    # bounds the deviation introduced by the bf16 MXU inputs.
    ref_f32 = reference(feat, adj, params, matmul_dtype=jnp.float32)
    assert jnp.allclose(out, ref_f32, atol=1.5e-1, rtol=5e-2), \
        "Pallas kernel mismatch vs f32 reference"

    print("KERNEL_OK")
</pallas_src>

<mosaic_0001>
module attributes {stable_mosaic.version = 11 : i64} {
  func.func @gipa_kernel(%arg0: i32, %arg1: memref<256x32xbf16, #tpu.memory_space<vmem>>, %arg2: memref<256x32xbf16, #tpu.memory_space<vmem>>, %arg3: memref<256x256xbf16, #tpu.memory_space<vmem>>, %arg4: memref<32x36xbf16, #tpu.memory_space<vmem>>, %arg5: memref<32x36xbf16, #tpu.memory_space<vmem>>, %arg6: memref<32x32xbf16, #tpu.memory_space<vmem>>, %arg7: memref<32x32xf32, #tpu.memory_space<vmem>>, %arg8: memref<1x32xf32, #tpu.memory_space<vmem>>, %arg9: memref<1x32xf32, #tpu.memory_space<vmem>>, %arg10: memref<1x32xf32, #tpu.memory_space<vmem>>, %arg11: memref<256x32xf32, #tpu.memory_space<vmem>>) attributes {dimension_semantics = [#tpu.dimension_semantics<parallel>], iteration_bounds = array<i64: 1>, scalar_prefetch = 0 : i64, scratch_operands = 0 : i64, tpu.core_type = #tpu.core_type<tc>, window_params = [{transform_indices = @transform_0, window_bounds = array<i64: 256, 32>}, {pipeline_mode = #tpu.pipeline_mode<synchronous>, transform_indices = @transform_1, window_bounds = array<i64: 256, 32>}, {transform_indices = @transform_2, window_bounds = array<i64: 256, 256>}, {pipeline_mode = #tpu.pipeline_mode<synchronous>, transform_indices = @transform_3, window_bounds = array<i64: 32, 36>}, {pipeline_mode = #tpu.pipeline_mode<synchronous>, transform_indices = @transform_4, window_bounds = array<i64: 32, 36>}, {pipeline_mode = #tpu.pipeline_mode<synchronous>, transform_indices = @transform_5, window_bounds = array<i64: 32, 32>}, {pipeline_mode = #tpu.pipeline_mode<synchronous>, transform_indices = @transform_6, window_bounds = array<i64: 32, 32>}, {pipeline_mode = #tpu.pipeline_mode<synchronous>, transform_indices = @transform_7, window_bounds = array<i64: 1, 32>}, {pipeline_mode = #tpu.pipeline_mode<synchronous>, transform_indices = @transform_8, window_bounds = array<i64: 1, 32>}, {pipeline_mode = #tpu.pipeline_mode<synchronous>, transform_indices = @transform_9, window_bounds = array<i64: 1, 32>}, {transform_indices = @transform_10, window_bounds = array<i64: 256, 32>}]} {
    %c0 = arith.constant 0 : index
    %c0_0 = arith.constant 0 : index
    %0 = vector.load %arg2[%c0, %c0_0] : memref<256x32xbf16, #tpu.memory_space<vmem>>, vector<256x32xbf16>
    %c0_1 = arith.constant 0 : index
    %c0_2 = arith.constant 0 : index
    %1 = vector.load %arg4[%c0_1, %c0_2] : memref<32x36xbf16, #tpu.memory_space<vmem>>, vector<32x36xbf16>
    %cst = arith.constant dense<0.000000e+00> : vector<256x36xf32>
    %2 = tpu.matmul %0, %1, %cst {dimension_numbers = #tpu.dot_dimension_numbers<[1], [0], [0], [1], [0, 0, 1, 1], [], []>} : vector<256x32xbf16>, vector<32x36xbf16>, vector<256x36xf32> -> vector<256x36xf32>
    %3 = vector.extract_strided_slice %2 {offsets = [0, 0], sizes = [256, 32], strides = [1, 1]} : vector<256x36xf32> to vector<256x32xf32>
    %4 = vector.extract_strided_slice %2 {offsets = [0, 32], sizes = [256, 4], strides = [1, 1]} : vector<256x36xf32> to vector<256x4xf32>
    %5 = tpu.transpose %4, [1, 0] : vector<256x4xf32> -> vector<4x256xf32>
    %6 = arith.truncf %3 : vector<256x32xf32> to vector<256x32xbf16>
    %c0_3 = arith.constant 0 : index
    %c0_4 = arith.constant 0 : index
    %7 = vector.load %arg1[%c0_3, %c0_4] : memref<256x32xbf16, #tpu.memory_space<vmem>>, vector<256x32xbf16>
    %c0_5 = arith.constant 0 : index
    %c0_6 = arith.constant 0 : index
    %8 = vector.load %arg5[%c0_5, %c0_6] : memref<32x36xbf16, #tpu.memory_space<vmem>>, vector<32x36xbf16>
    %cst_7 = arith.constant dense<0.000000e+00> : vector<256x36xf32>
    %9 = tpu.matmul %7, %8, %cst_7 {dimension_numbers = #tpu.dot_dimension_numbers<[1], [0], [0], [1], [0, 0, 1, 1], [], []>} : vector<256x32xbf16>, vector<32x36xbf16>, vector<256x36xf32> -> vector<256x36xf32>
    %10 = vector.extract_strided_slice %9 {offsets = [0, 0], sizes = [256, 4], strides = [1, 1]} : vector<256x36xf32> to vector<256x4xf32>
    %11 = vector.extract_strided_slice %9 {offsets = [0, 4], sizes = [256, 32], strides = [1, 1]} : vector<256x36xf32> to vector<256x32xf32>
    %c0_8 = arith.constant 0 : index
    %c0_9 = arith.constant 0 : index
    %12 = vector.load %arg3[%c0_8, %c0_9] : memref<256x256xbf16, #tpu.memory_space<vmem>>, vector<256x256xbf16>
    %13 = arith.extf %12 : vector<256x256xbf16> to vector<256x256xf32>
    %14 = vector.extract_strided_slice %10 {offsets = [0, 0], sizes = [256, 1], strides = [1, 1]} : vector<256x4xf32> to vector<256x1xf32>
    %15 = vector.extract_strided_slice %5 {offsets = [0, 0], sizes = [1, 256], strides = [1, 1]} : vector<4x256xf32> to vector<1x256xf32>
    %16 = vector.broadcast %14 : vector<256x1xf32> to vector<256x256xf32>
    %17 = vector.broadcast %15 : vector<1x256xf32> to vector<256x256xf32>
    %18 = arith.addf %16, %17 : vector<256x256xf32>
    %cst_10 = arith.constant 0.000000e+00 : f32
    %19 = vector.broadcast %cst_10 : f32 to vector<256x256xf32>
    %20 = arith.cmpf oge, %18, %19 : vector<256x256xf32>
    %cst_11 = arith.constant 2.000000e-01 : f32
    %21 = vector.broadcast %cst_11 : f32 to vector<256x256xf32>
    %22 = arith.mulf %21, %18 : vector<256x256xf32>
    %23 = arith.select %20, %18, %22 : vector<256x256xi1>, vector<256x256xf32>
    %24 = arith.mulf %13, %23 : vector<256x256xf32>
    %25 = arith.truncf %24 : vector<256x256xf32> to vector<256x256xbf16>
    %cst_12 = arith.constant dense<0.000000e+00> : vector<256x32xf32>
    %26 = tpu.matmul %25, %6, %cst_12 {dimension_numbers = #tpu.dot_dimension_numbers<[1], [0], [0], [1], [0, 0, 1, 1], [], []>} : vector<256x256xbf16>, vector<256x32xbf16>, vector<256x32xf32> -> vector<256x32xf32>
    %27 = vector.extract_strided_slice %26 {offsets = [0, 0], sizes = [256, 8], strides = [1, 1]} : vector<256x32xf32> to vector<256x8xf32>
    %28 = vector.extract_strided_slice %10 {offsets = [0, 1], sizes = [256, 1], strides = [1, 1]} : vector<256x4xf32> to vector<256x1xf32>
    %29 = vector.extract_strided_slice %5 {offsets = [1, 0], sizes = [1, 256], strides = [1, 1]} : vector<4x256xf32> to vector<1x256xf32>
    %30 = vector.broadcast %28 : vector<256x1xf32> to vector<256x256xf32>
    %31 = vector.broadcast %29 : vector<1x256xf32> to vector<256x256xf32>
    %32 = arith.addf %30, %31 : vector<256x256xf32>
    %cst_13 = arith.constant 0.000000e+00 : f32
    %33 = vector.broadcast %cst_13 : f32 to vector<256x256xf32>
    %34 = arith.cmpf oge, %32, %33 : vector<256x256xf32>
    %cst_14 = arith.constant 2.000000e-01 : f32
    %35 = vector.broadcast %cst_14 : f32 to vector<256x256xf32>
    %36 = arith.mulf %35, %32 : vector<256x256xf32>
    %37 = arith.select %34, %32, %36 : vector<256x256xi1>, vector<256x256xf32>
    %38 = arith.mulf %13, %37 : vector<256x256xf32>
    %39 = arith.truncf %38 : vector<256x256xf32> to vector<256x256xbf16>
    %cst_15 = arith.constant dense<0.000000e+00> : vector<256x32xf32>
    %40 = tpu.matmul %39, %6, %cst_15 {dimension_numbers = #tpu.dot_dimension_numbers<[1], [0], [0], [1], [0, 0, 1, 1], [], []>} : vector<256x256xbf16>, vector<256x32xbf16>, vector<256x32xf32> -> vector<256x32xf32>
    %41 = vector.extract_strided_slice %40 {offsets = [0, 8], sizes = [256, 8], strides = [1, 1]} : vector<256x32xf32> to vector<256x8xf32>
    %42 = vector.extract_strided_slice %10 {offsets = [0, 2], sizes = [256, 1], strides = [1, 1]} : vector<256x4xf32> to vector<256x1xf32>
    %43 = vector.extract_strided_slice %5 {offsets = [2, 0], sizes = [1, 256], strides = [1, 1]} : vector<4x256xf32> to vector<1x256xf32>
    %44 = vector.broadcast %42 : vector<256x1xf32> to vector<256x256xf32>
    %45 = vector.broadcast %43 : vector<1x256xf32> to vector<256x256xf32>
    %46 = arith.addf %44, %45 : vector<256x256xf32>
    %cst_16 = arith.constant 0.000000e+00 : f32
    %47 = vector.broadcast %cst_16 : f32 to vector<256x256xf32>
    %48 = arith.cmpf oge, %46, %47 : vector<256x256xf32>
    %cst_17 = arith.constant 2.000000e-01 : f32
    %49 = vector.broadcast %cst_17 : f32 to vector<256x256xf32>
    %50 = arith.mulf %49, %46 : vector<256x256xf32>
    %51 = arith.select %48, %46, %50 : vector<256x256xi1>, vector<256x256xf32>
    %52 = arith.mulf %13, %51 : vector<256x256xf32>
    %53 = arith.truncf %52 : vector<256x256xf32> to vector<256x256xbf16>
    %cst_18 = arith.constant dense<0.000000e+00> : vector<256x32xf32>
    %54 = tpu.matmul %53, %6, %cst_18 {dimension_numbers = #tpu.dot_dimension_numbers<[1], [0], [0], [1], [0, 0, 1, 1], [], []>} : vector<256x256xbf16>, vector<256x32xbf16>, vector<256x32xf32> -> vector<256x32xf32>
    %55 = vector.extract_strided_slice %54 {offsets = [0, 16], sizes = [256, 8], strides = [1, 1]} : vector<256x32xf32> to vector<256x8xf32>
    %56 = vector.extract_strided_slice %10 {offsets = [0, 3], sizes = [256, 1], strides = [1, 1]} : vector<256x4xf32> to vector<256x1xf32>
    %57 = vector.extract_strided_slice %5 {offsets = [3, 0], sizes = [1, 256], strides = [1, 1]} : vector<4x256xf32> to vector<1x256xf32>
    %58 = vector.broadcast %56 : vector<256x1xf32> to vector<256x256xf32>
    %59 = vector.broadcast %57 : vector<1x256xf32> to vector<256x256xf32>
    %60 = arith.addf %58, %59 : vector<256x256xf32>
    %cst_19 = arith.constant 0.000000e+00 : f32
    %61 = vector.broadcast %cst_19 : f32 to vector<256x256xf32>
    %62 = arith.cmpf oge, %60, %61 : vector<256x256xf32>
    %cst_20 = arith.constant 2.000000e-01 : f32
    %63 = vector.broadcast %cst_20 : f32 to vector<256x256xf32>
    %64 = arith.mulf %63, %60 : vector<256x256xf32>
    %65 = arith.select %62, %60, %64 : vector<256x256xi1>, vector<256x256xf32>
    %66 = arith.mulf %13, %65 : vector<256x256xf32>
    %67 = arith.truncf %66 : vector<256x256xf32> to vector<256x256xbf16>
    %cst_21 = arith.constant dense<0.000000e+00> : vector<256x32xf32>
    %68 = tpu.matmul %67, %6, %cst_21 {dimension_numbers = #tpu.dot_dimension_numbers<[1], [0], [0], [1], [0, 0, 1, 1], [], []>} : vector<256x256xbf16>, vector<256x32xbf16>, vector<256x32xf32> -> vector<256x32xf32>
    %69 = vector.extract_strided_slice %68 {offsets = [0, 24], sizes = [256, 8], strides = [1, 1]} : vector<256x32xf32> to vector<256x8xf32>
    %70 = tpu.concatenate %27, %41, %55, %69 in 1 : vector<256x8xf32>, vector<256x8xf32>, vector<256x8xf32>, vector<256x8xf32> -> vector<256x32xf32>
    %c0_22 = arith.constant 0 : index
    %c0_23 = arith.constant 0 : index
    %71 = vector.load %arg7[%c0_22, %c0_23] : memref<32x32xf32, #tpu.memory_space<vmem>>, vector<32x32xf32>
    %cst_24 = arith.constant dense<0.000000e+00> : vector<256x32xf32>
    %72 = tpu.matmul %70, %71, %cst_24 {dimension_numbers = #tpu.dot_dimension_numbers<[1], [0], [0], [1], [0, 0, 1, 1], [], []>} : vector<256x32xf32>, vector<32x32xf32>, vector<256x32xf32> -> vector<256x32xf32>
    %73 = arith.mulf %70, %70 : vector<256x32xf32>
    %cst_25 = arith.constant dense<0.000000e+00> : vector<256x32xf32>
    %74 = tpu.matmul %73, %71, %cst_25 {dimension_numbers = #tpu.dot_dimension_numbers<[1], [0], [0], [1], [0, 0, 1, 1], [], []>} : vector<256x32xf32>, vector<32x32xf32>, vector<256x32xf32> -> vector<256x32xf32>
    %75 = arith.mulf %72, %72 : vector<256x32xf32>
    %76 = arith.subf %74, %75 : vector<256x32xf32>
    %cst_26 = arith.constant 0.000000e+00 : f32
    %77 = vector.broadcast %cst_26 : f32 to vector<256x32xf32>
    %78 = arith.maximumf %76, %77 : vector<256x32xf32>
    %cst_27 = arith.constant 9.99999971E-10 : f32
    %79 = vector.broadcast %cst_27 : f32 to vector<256x32xf32>
    %80 = arith.addf %78, %79 : vector<256x32xf32>
    %81 = arith.subf %70, %72 : vector<256x32xf32>
    %c0_28 = arith.constant 0 : index
    %c0_29 = arith.constant 0 : index
    %82 = vector.load %arg8[%c0_28, %c0_29] : memref<1x32xf32, #tpu.memory_space<vmem>>, vector<1x32xf32>
    %83 = vector.broadcast %82 : vector<1x32xf32> to vector<256x32xf32>
    %84 = arith.mulf %81, %83 : vector<256x32xf32>
    %85 = math.rsqrt %80 : vector<256x32xf32>
    %86 = arith.mulf %84, %85 : vector<256x32xf32>
    %c0_30 = arith.constant 0 : index
    %c0_31 = arith.constant 0 : index
    %87 = vector.load %arg9[%c0_30, %c0_31] : memref<1x32xf32, #tpu.memory_space<vmem>>, vector<1x32xf32>
    %88 = vector.broadcast %87 : vector<1x32xf32> to vector<256x32xf32>
    %89 = arith.addf %86, %88 : vector<256x32xf32>
    %90 = arith.truncf %89 : vector<256x32xf32> to vector<256x32xbf16>
    %c0_32 = arith.constant 0 : index
    %c0_33 = arith.constant 0 : index
    %91 = vector.load %arg6[%c0_32, %c0_33] : memref<32x32xbf16, #tpu.memory_space<vmem>>, vector<32x32xbf16>
    %cst_34 = arith.constant dense<0.000000e+00> : vector<256x32xf32>
    %92 = tpu.matmul %90, %91, %cst_34 {dimension_numbers = #tpu.dot_dimension_numbers<[1], [0], [0], [1], [0, 0, 1, 1], [], []>} : vector<256x32xbf16>, vector<32x32xbf16>, vector<256x32xf32> -> vector<256x32xf32>
    %93 = arith.addf %92, %11 : vector<256x32xf32>
    %c0_35 = arith.constant 0 : index
    %c0_36 = arith.constant 0 : index
    %94 = vector.load %arg10[%c0_35, %c0_36] : memref<1x32xf32, #tpu.memory_space<vmem>>, vector<1x32xf32>
    %95 = vector.broadcast %94 : vector<1x32xf32> to vector<256x32xf32>
    %96 = arith.addf %93, %95 : vector<256x32xf32>
    %c0_37 = arith.constant 0 : index
    %c0_38 = arith.constant 0 : index
    %97 = vector.load %arg11[%c0_37, %c0_38] : memref<256x32xf32, #tpu.memory_space<vmem>>, vector<256x32xf32>
    tpu.vector_store %arg11[%c0_37, %c0_38], %96 {strides = array<i32>} : memref<256x32xf32, #tpu.memory_space<vmem>>, vector<256x32xf32>,
    return
  }
  func.func @transform_0(%arg0: i32) -> (i32, i32) {
    %c0_i32 = arith.constant 0 : i32
    %c0_i32_0 = arith.constant 0 : i32
    return %arg0, %c0_i32 : i32, i32
  }
  func.func @transform_1(%arg0: i32) -> (i32, i32) {
    %c0_i32 = arith.constant 0 : i32
    %c0_i32_0 = arith.constant 0 : i32
    %c0_i32_1 = arith.constant 0 : i32
    return %c0_i32, %c0_i32_0 : i32, i32
  }
  func.func @transform_2(%arg0: i32) -> (i32, i32) {
    %c0_i32 = arith.constant 0 : i32
    %c0_i32_0 = arith.constant 0 : i32
    return %arg0, %c0_i32 : i32, i32
  }
  func.func @transform_3(%arg0: i32) -> (i32, i32) {
    %c0_i32 = arith.constant 0 : i32
    %c0_i32_0 = arith.constant 0 : i32
    %c0_i32_1 = arith.constant 0 : i32
    return %c0_i32, %c0_i32_0 : i32, i32
  }
  func.func @transform_4(%arg0: i32) -> (i32, i32) {
    %c0_i32 = arith.constant 0 : i32
    %c0_i32_0 = arith.constant 0 : i32
    %c0_i32_1 = arith.constant 0 : i32
    return %c0_i32, %c0_i32_0 : i32, i32
  }
  func.func @transform_5(%arg0: i32) -> (i32, i32) {
    %c0_i32 = arith.constant 0 : i32
    %c0_i32_0 = arith.constant 0 : i32
    %c0_i32_1 = arith.constant 0 : i32
    return %c0_i32, %c0_i32_0 : i32, i32
  }
  func.func @transform_6(%arg0: i32) -> (i32, i32) {
    %c0_i32 = arith.constant 0 : i32
    %c0_i32_0 = arith.constant 0 : i32
    %c0_i32_1 = arith.constant 0 : i32
    return %c0_i32, %c0_i32_0 : i32, i32
  }
  func.func @transform_7(%arg0: i32) -> (i32, i32) {
    %c0_i32 = arith.constant 0 : i32
    %c0_i32_0 = arith.constant 0 : i32
    %c0_i32_1 = arith.constant 0 : i32
    return %c0_i32, %c0_i32_0 : i32, i32
  }
  func.func @transform_8(%arg0: i32) -> (i32, i32) {
    %c0_i32 = arith.constant 0 : i32
    %c0_i32_0 = arith.constant 0 : i32
    %c0_i32_1 = arith.constant 0 : i32
    return %c0_i32, %c0_i32_0 : i32, i32
  }
  func.func @transform_9(%arg0: i32) -> (i32, i32) {
    %c0_i32 = arith.constant 0 : i32
    %c0_i32_0 = arith.constant 0 : i32
    %c0_i32_1 = arith.constant 0 : i32
    return %c0_i32, %c0_i32_0 : i32, i32
  }
  func.func @transform_10(%arg0: i32) -> (i32, i32) {
    %c0_i32 = arith.constant 0 : i32
    %c0_i32_0 = arith.constant 0 : i32
    return %arg0, %c0_i32 : i32, i32
  }
}

</mosaic_0001>

<bundles_post_ra>
// kernel: tpu_custom_call.1
= control target key start
LH: loop header
LB: loop body
LE: loop exit
PB: predicated region body
PF: predicated region fallthrough
CT: control target
= control target key end

     0   :  { %vm10416_vm0 = vcmask 261120   ;;  %v10242_v34 = vmov 1   ;;  %v10248_v35 = vmov 0   ;;  %s6299_s18 = smov 96   ;;  %s10217_s3 = inlined_call_operand.vmem [shape: bf16[32,36], index: 3, kind: input, shape index: {}]   ;;  %s10218_s1 = inlined_call_operand.vmem [shape: bf16[256,32], index: 1, kind: input, shape index: {}]   ;;  %s10219_s4 = inlined_call_operand.vmem [shape: bf16[32,36], index: 4, kind: input, shape index: {}]   ;;  %s10220_s0 = inlined_call_operand.vmem [shape: bf16[256,32], index: 0, kind: input, shape index: {}]   ;;  %s10221_s2 = inlined_call_operand.vmem [shape: bf16[256,256], index: 2, kind: input, shape index: {}]   ;;  %s10222_s6 = inlined_call_operand.vmem [shape: f32[32,32], index: 6, kind: input, shape index: {}]   ;;  %s10223_s5 = inlined_call_operand.vmem [shape: bf16[32,32], index: 5, kind: input, shape index: {}]   ;;  %s10224_s7 = inlined_call_operand.vmem [shape: f32[1,32], index: 7, kind: input, shape index: {}]   ;;  %s10225_s8 = inlined_call_operand.vmem [shape: f32[1,32], index: 8, kind: input, shape index: {}]   ;;  %s10226_s9 = inlined_call_operand.vmem [shape: f32[1,32], index: 9, kind: input, shape index: {}]   ;;  %s10227_s10 = inlined_call_operand.vmem [shape: f32[256,32], index: 10, kind: output, shape index: {}]  }
   0x1   :  { %v6195_v0 = vld [vmem:[%s10217_s3] sm:$0xff]   ;;  %v6196_v1 = vld [vmem:[%s10217_s3 + $0x8] sm:$0xff]   ;;  %v6201_v6 = vld [vmem:[%s10218_s1 + $0x50] sm:$0xff]   ;;  %6108 = vset.pattern.permute.xlu0 %v10242_v34  ;;  %6107 = vset.pattern.permute.xlu1 %v10248_v35 }
   0x2   :  { %5861 = vmatprep.subr.bf16.mxu0 %v6195_v0  ;;  %6097 = vmatprep.subr.bf16.mxu1 %v6195_v0  ;;  %v6197_v2 = vld [vmem:[%s10218_s1] sm:$0xff]   ;;  %v6199_v4 = vld [vmem:[%s10218_s1 + $0x8] sm:$0xff]   ;;  %v6202_v7 = vld [vmem:[%s10218_s1 + $0x10] sm:$0xff]  }
   0x3   :  { %5862 = vmatpush3.bf16.msra.mxu0 %v6195_v0  ;;  %6099 = vmatpush3.bf16.msra.mxu1 %v6195_v0  ;;  %v6198_v3 = vld [vmem:[%s10218_s1 + $0x40] sm:$0xff]   ;;  %v6200_v5 = vld [vmem:[%s10218_s1 + $0x48] sm:$0xff]   ;;  %v6203_v8 = vld [vmem:[%s10218_s1 + $0x58] sm:$0xff]  }
   0x4   :  { %5863 = vmatprep.subr.bf16.mxu0 %v6196_v1  ;;  %6098 = vmatprep.subr.bf16.mxu1 %v6196_v1  ;;  %v6204_v9 = vld [vmem:[%s10218_s1 + $0x18] sm:$0xff]   ;;  %v6205_v10 = vld [vmem:[%s10218_s1 + $0x60] sm:$0xff]   ;;  %v6214_v13 = vld [vmem:[%s10219_s4 + $0x8] sm:$0xff]  }
   0x5   :  { %5865 = vmatprep.mubr.msk.bf16.mxu0 %vm10416_vm0, %v6197_v2  ;;  %5881 = vmatprep.mubr.msk.bf16.mxu1 %vm10416_vm0, %v6198_v3  ;;  %v6206_v11 = vld [vmem:[%s10218_s1 + $0x20] sm:$0xff]   ;;  %v6207_v14 = vld [vmem:[%s10218_s1 + $0x68] sm:$0xff]   ;;  %v6209_v16 = vld [vmem:[%s10218_s1 + $0x70] sm:$0xff]  }
   0x6   :  { %v6213_v12 = vld [vmem:[%s10219_s4] sm:$0xff]   ;;  %v6208_v15 = vld [vmem:[%s10218_s1 + $0x28] sm:$0xff]   ;;  %v6210_v17 = vld [vmem:[%s10218_s1 + $0x30] sm:$0xff]  }
   0x7   :  { %5864 = vmatpush3.bf16.msra.mxu0 %v6196_v1  ;;  %6100 = vmatpush3.bf16.msra.mxu1 %v6196_v1  ;;  %v6211_v18 = vld [vmem:[%s10218_s1 + $0x78] sm:$0xff]   ;;  %v6215_v20 = vld [vmem:[%s10220_s0] sm:$0xff]   ;;  %v6216_v21 = vld [vmem:[%s10220_s0 + $0x8] sm:$0xff]  }
   0x8   :  { %5897 = vmatprep.subr.bf16.mxu1 %v6213_v12  ;;  %v6212_v19 = vld [vmem:[%s10218_s1 + $0x38] sm:$0xff]   ;;  %v6217_v22 = vld [vmem:[%s10220_s0 + $0x10] sm:$0xff]   ;;  %v6219_v24 = vld [vmem:[%s10220_s0 + $0x20] sm:$0xff]   ;;  %s6302_s1 = smov 124  }
   0x9   :  { %v6218_v23 = vld [vmem:[%s10220_s0 + $0x18] sm:$0xff]   ;;  %v6220_v25 = vld [vmem:[%s10220_s0 + $0x28] sm:$0xff]   ;;  %v6221_v26 = vld [vmem:[%s10220_s0 + $0x30] sm:$0xff]  }
   0xa   :  { %5866 = vmatmul.mubr.msk.bf16.vlgmr.msra.gmra.mrb[0].mxu0 %vm10416_vm0, %v6199_v4  ;;  %5882 = vmatmul.mubr.msk.bf16.vlgmr.msra.gmra.mrb[0].mxu1 %vm10416_vm0, %v6200_v5  ;;  %v6222_v27 = vld [vmem:[%s10220_s0 + $0x38] sm:$0xff]   ;;  %v6223_v28 = vld [vmem:[%s10220_s0 + $0x40] sm:$0xff]   ;;  %v6224_v29 = vld [vmem:[%s10220_s0 + $0x48] sm:$0xff]  }
   0xb   :  { %5885 = vmatprep.mubr.msk.bf16.mxu1 %vm10416_vm0, %v6201_v6  ;;  %5869 = vmatprep.mubr.msk.bf16.mxu0 %vm10416_vm0, %v6202_v7  ;;  %v6225_v30 = vld [vmem:[%s10220_s0 + $0x50] sm:$0xff]   ;;  %v6226_v31 = vld [vmem:[%s10220_s0 + $0x58] sm:$0xff]   ;;  %v6227_v32 = vld [vmem:[%s10220_s0 + $0x60] sm:$0xff]  }
   0xc   :  { %5898 = vmatpush3.bf16.msra.mxu1 %v6213_v12  ;;  %v6228_v33 = vld [vmem:[%s10220_s0 + $0x68] sm:$0xff]   ;;  %v6229_v36 = vld [vmem:[%s10220_s0 + $0x70] sm:$0xff]   ;;  %v6230_v37 = vld [vmem:[%s10220_s0 + $0x78] sm:$0xff]  }
   0xd   :  { %5899 = vmatprep.subr.bf16.mxu1 %v6214_v13 }
  0x10   :  { %5900 = vmatpush3.bf16.msra.mxu1 %v6214_v13 }
  0x12   :  { %5886 = vmatmul.mubr.msk.bf16.gmra.mrb[4].mxu1 %vm10416_vm0, %v6203_v8  ;;  %5870 = vmatmul.mubr.msk.bf16.gmra.mrb[4].mxu0 %vm10416_vm0, %v6204_v9 }
  0x13   :  { %5889 = vmatprep.mubr.msk.bf16.mxu1 %vm10416_vm0, %v6205_v10  ;;  %5873 = vmatprep.mubr.msk.bf16.mxu0 %vm10416_vm0, %v6206_v11 }
  0x1a   :  { %5890 = vmatmul.mubr.msk.bf16.gmra.mrb[8].mxu1 %vm10416_vm0, %v6207_v14  ;;  %5874 = vmatmul.mubr.msk.bf16.gmra.mrb[8].mxu0 %vm10416_vm0, %v6208_v15 }
  0x1b   :  { %5893 = vmatprep.mubr.msk.bf16.mxu1 %vm10416_vm0, %v6209_v16  ;;  %5877 = vmatprep.mubr.msk.bf16.mxu0 %vm10416_vm0, %v6210_v17 }
  0x22   :  { %5894 = vmatmul.mubr.msk.bf16.gmra.mrb[12].mxu1 %vm10416_vm0, %v6211_v18  ;;  %5878 = vmatmul.mubr.msk.bf16.gmra.mrb[12].mxu0 %vm10416_vm0, %v6212_v19 }
  0x23   :  { %5901 = vmatprep.mubr.msk.bf16.mxu1 %vm10416_vm0, %v6215_v20 }
  0x2a   :  { %5902 = vmatmul.mubr.msk.bf16.vlgmr.msra.gmra.mrb[16].mxu1 %vm10416_vm0, %v6216_v21 }
  0x2b   :  { %5905 = vmatprep.mubr.msk.bf16.mxu1 %vm10416_vm0, %v6217_v22 }
  0x32   :  { %5906 = vmatmul.mubr.msk.bf16.gmra.mrb[20].mxu1 %vm10416_vm0, %v6218_v23 }
  0x33   :  { %5909 = vmatprep.mubr.msk.bf16.mxu1 %vm10416_vm0, %v6219_v24 }
  0x3a   :  { %5910 = vmatmul.mubr.msk.bf16.gmra.mrb[24].mxu1 %vm10416_vm0, %v6220_v25 }
  0x3b   :  { %5913 = vmatprep.mubr.msk.bf16.mxu1 %vm10416_vm0, %v6221_v26 }
  0x42   :  { %5914 = vmatmul.mubr.msk.bf16.gmra.mrb[28].mxu1 %vm10416_vm0, %v6222_v27 }
  0x43   :  { %5917 = vmatprep.mubr.msk.bf16.mxu1 %vm10416_vm0, %v6223_v28 }
  0x4a   :  { %5918 = vmatmul.mubr.msk.bf16.gmra.mrb[32].mxu1 %vm10416_vm0, %v6224_v29 }
  0x4b   :  { %5921 = vmatprep.mubr.msk.bf16.mxu1 %vm10416_vm0, %v6225_v30 }
  0x52   :  { %5922 = vmatmul.mubr.msk.bf16.gmra.mrb[36].mxu1 %vm10416_vm0, %v6226_v31 }
  0x53   :  { %5925 = vmatprep.mubr.msk.bf16.mxu1 %vm10416_vm0, %v6227_v32 }
  0x5a   :  { %5926 = vmatmul.mubr.msk.bf16.gmra.mrb[40].mxu1 %vm10416_vm0, %v6228_v33 }
  0x5b   :  { %5929 = vmatprep.mubr.msk.bf16.mxu1 %vm10416_vm0, %v6229_v36 }
  0x62   :  { %5930 = vmatmul.mubr.msk.bf16.gmra.mrb[44].mxu1 %vm10416_vm0, %v6230_v37 }
  0xdd   :  { %v5867_v38 = vpop.f32.mrb[0].mxu0  ;;  %v5883_v39 = vpop.f32.mrb[0].mxu1 }
  0xde   :  { %442 = vrot.lane.b32.xlu0 %v5883_v39, %s6299_s18  ;;  %v311_v40 = vpop.f32.mrb[1].mxu1  ;;  %410 = vrot.lane.b32.xlu1 %v5867_v38, %s6299_s18  ;;  %v247_v41 = vpop.f32.mrb[1].mxu0 }
  0xdf   :  { %v5868_v42 = vpop.f32.mrb[2].mxu0  ;;  %v5884_v43 = vpop.f32.mrb[2].mxu1 }
  0xe0   :  { %v6502_v44 = vpack.c.bf16 %v5868_v42, %v5867_v38  ;;  %v6504_v45 = vpack.c.bf16 %v5884_v43, %v5883_v39  ;;  %v250_v46 = vpop.f32.mrb[3].mxu0  ;;  %v314_v47 = vpop.f32.mrb[3].mxu1 }
  0xe1   :  { %v6506_v48 = vpack.c.bf16 %v250_v46, %v247_v41  ;;  %v6508_v49 = vpack.c.bf16 %v314_v47, %v311_v40 }
  0xe2   :  { %10550 = vst [vmem:[#allocation2_spill] sm:$0xff] %v6502_v44  ;;  %10551 = vst [vmem:[#allocation3_spill] sm:$0xff] %v6504_v45  ;;  %438 = vrot.lane.b32.xlu0 %v311_v40, %s6299_s18  ;;  %412 = vrot.lane.b32.xlu1 %v5868_v42, %s6299_s18 }
  0xe3   :  { %10552 = vst [vmem:[#allocation4_spill] sm:$0xff] %v6506_v48  ;;  %5323 = vmatprep.subr.bf16.mxu0 %v6508_v49  ;;  %5435 = vmatprep.subr.bf16.mxu1 %v6508_v49 }
  0xe4   :  { %5324 = vmatpush3.bf16.msra.mxu0 %v6506_v48  ;;  %5436 = vmatpush3.bf16.msra.mxu1 %v6506_v48 }
  0xe5   :  { %v5887_v50 = vpop.f32.mrb[4].mxu1  ;;  %5325 = vmatprep.subr.bf16.mxu0 %v6504_v45  ;;  %5437 = vmatprep.subr.bf16.mxu1 %v6504_v45  ;;  %v5871_v51 = vpop.f32.mrb[4].mxu0 }
  0xe6   :  { %v327_v52 = vpop.f32.mrb[5].mxu1  ;;  %406 = vrot.lane.b32.xlu0 %v247_v41, %s6299_s18  ;;  %440 = vrot.lane.b32.xlu1 %v314_v47, %s6299_s18  ;;  %v263_v53 = vpop.f32.mrb[5].mxu0 }
  0xe7   :  { %v5888_v54 = vpop.f32.mrb[6].mxu1  ;;  %v5872_v55 = vpop.f32.mrb[6].mxu0 }
  0xe8   :  { %v6520_v56 = vpack.c.bf16 %v5888_v54, %v5887_v50  ;;  %v6522_v57 = vpack.c.bf16 %v5872_v55, %v5871_v51  ;;  %v330_v58 = vpop.f32.mrb[7].mxu1  ;;  %5326 = vmatpush3.bf16.msra.mxu0 %v6502_v44  ;;  %5438 = vmatpush3.bf16.msra.mxu1 %v6502_v44  ;;  %v266_v59 = vpop.f32.mrb[7].mxu0 }
  0xe9   :  { %v6526_v60 = vpack.c.bf16 %v330_v58, %v327_v52  ;;  %v6528_v61 = vpack.c.bf16 %v266_v59, %v263_v53 }
  0xea   :  { %10553 = vst [vmem:[#allocation5_spill] sm:$0xff] %v6520_v56  ;;  %10554 = vst [vmem:[#allocation6_spill] sm:$0xff] %v6522_v57  ;;  %444 = vrot.lane.b32.xlu0 %v5884_v43, %s6299_s18  ;;  %408 = vrot.lane.b32.xlu1 %v250_v46, %s6299_s18 }
  0xeb   :  { %10555 = vst [vmem:[#allocation7_spill] sm:$0xff] %v6526_v60  ;;  %10556 = vst [vmem:[#allocation8_spill] sm:$0xff] %v6528_v61  ;;  %5327 = vmatprep.subr.bf16.mxu0 %v6526_v60  ;;  %5439 = vmatprep.subr.bf16.mxu1 %v6526_v60 }
  0xec   :  { %5328 = vmatpush3.bf16.msra.mxu0 %v6528_v61  ;;  %5440 = vmatpush3.bf16.msra.mxu1 %v6528_v61 }
  0xed   :  { %v5891_v62 = vpop.f32.mrb[8].mxu1  ;;  %v5875_v63 = vpop.f32.mrb[8].mxu0  ;;  %5329 = vmatprep.subr.bf16.mxu0 %v6520_v56  ;;  %5441 = vmatprep.subr.bf16.mxu1 %v6520_v56 }
  0xee   :  { %v343_v0 = vpop.f32.mrb[9].mxu1  ;;  %450 = vrot.lane.b32.xlu0 %v5887_v50, %s6299_s18  ;;  %418 = vrot.lane.b32.xlu1 %v5871_v51, %s6299_s18  ;;  %v279_v1 = vpop.f32.mrb[9].mxu0 }
  0xef   :  { %v5892_v2 = vpop.f32.mrb[10].mxu1  ;;  %v5876_v3 = vpop.f32.mrb[10].mxu0 }
  0xf0   :  { %v6540_v4 = vpack.c.bf16 %v5892_v2, %v5891_v62  ;;  %v6542_v5 = vpack.c.bf16 %v5876_v3, %v5875_v63  ;;  %v346_v6 = vpop.f32.mrb[11].mxu1  ;;  %5330 = vmatpush3.bf16.msra.mxu0 %v6522_v57  ;;  %5442 = vmatpush3.bf16.msra.mxu1 %v6522_v57  ;;  %v282_v7 = vpop.f32.mrb[11].mxu0 }
  0xf1   :  { %v6546_v8 = vpack.c.bf16 %v346_v6, %v343_v0  ;;  %v6548_v9 = vpack.c.bf16 %v282_v7, %v279_v1 }
  0xf2   :  { %10557 = vst [vmem:[#allocation9_spill] sm:$0xff] %v6540_v4  ;;  %10558 = vst [vmem:[#allocation10_spill] sm:$0xff] %v6542_v5  ;;  %446 = vrot.lane.b32.xlu0 %v327_v52, %s6299_s18  ;;  %414 = vrot.lane.b32.xlu1 %v263_v53, %s6299_s18 }
  0xf3   :  { %10559 = vst [vmem:[#allocation11_spill] sm:$0xff] %v6546_v8  ;;  %10560 = vst [vmem:[#allocation12_spill] sm:$0xff] %v6548_v9  ;;  %5331 = vmatprep.subr.bf16.mxu0 %v6546_v8  ;;  %5443 = vmatprep.subr.bf16.mxu1 %v6546_v8 }
  0xf4   :  { %5332 = vmatpush3.bf16.msra.mxu0 %v6548_v9  ;;  %5444 = vmatpush3.bf16.msra.mxu1 %v6548_v9 }
  0xf5   :  { %v5895_v10 = vpop.f32.mrb[12].mxu1  ;;  %v5879_v11 = vpop.f32.mrb[12].mxu0  ;;  %5333 = vmatprep.subr.bf16.mxu0 %v6540_v4  ;;  %5445 = vmatprep.subr.bf16.mxu1 %v6540_v4 }
  0xf6   :  { %v359_v12 = vpop.f32.mrb[13].mxu1  ;;  %452 = vrot.lane.b32.xlu0 %v5888_v54, %s6299_s18  ;;  %420 = vrot.lane.b32.xlu1 %v5872_v55, %s6299_s18  ;;  %v295_v13 = vpop.f32.mrb[13].mxu0 }
  0xf7   :  { %v5896_v14 = vpop.f32.mrb[14].mxu1  ;;  %v5880_v15 = vpop.f32.mrb[14].mxu0 }
  0xf8   :  { %v6560_v16 = vpack.c.bf16 %v5896_v14, %v5895_v10  ;;  %v6562_v17 = vpack.c.bf16 %v5880_v15, %v5879_v11  ;;  %v362_v18 = vpop.f32.mrb[15].mxu1  ;;  %5334 = vmatpush3.bf16.msra.mxu0 %v6542_v5  ;;  %5446 = vmatpush3.bf16.msra.mxu1 %v6542_v5  ;;  %v298_v19 = vpop.f32.mrb[15].mxu0 }
  0xf9   :  { %v6566_v20 = vpack.c.bf16 %v362_v18, %v359_v12  ;;  %v6568_v21 = vpack.c.bf16 %v298_v19, %v295_v13 }
  0xfa   :  { %10561 = vst [vmem:[#allocation13_spill] sm:$0xff] %v6560_v16  ;;  %10562 = vst [vmem:[#allocation14_spill] sm:$0xff] %v6562_v17  ;;  %448 = vrot.lane.b32.xlu0 %v330_v58, %s6299_s18  ;;  %416 = vrot.lane.b32.xlu1 %v266_v59, %s6299_s18 }
  0xfb   :  { %10563 = vst [vmem:[#allocation15_spill] sm:$0xff] %v6566_v20  ;;  %10564 = vst [vmem:[#allocation16_spill] sm:$0xff] %v6568_v21  ;;  %5335 = vmatprep.subr.bf16.mxu0 %v6566_v20  ;;  %5447 = vmatprep.subr.bf16.mxu1 %v6566_v20 }
  0xfc   :  { %5336 = vmatpush3.bf16.msra.mxu0 %v6568_v21  ;;  %5448 = vmatpush3.bf16.msra.mxu1 %v6568_v21 }
  0xfd   :  { %5337 = vmatprep.subr.bf16.mxu0 %v6560_v16  ;;  %5449 = vmatprep.subr.bf16.mxu1 %v6560_v16  ;;  %v6578_v22 = vpop.f32.mrb[16].mxu1 }
  0xfe   :  { %10565 = vst [vmem:[#allocation17_spill] sm:$0xff] %v6578_v22  ;;  %458 = vrot.lane.b32.xlu0 %v5891_v62, %s6299_s18  ;;  %426 = vrot.lane.b32.xlu1 %v5875_v63, %s6299_s18  ;;  %v6582_v23 = vpop.f32.mrb[17].mxu1 }
  0xff   :  { %10566 = vst [vmem:[#allocation18_spill] sm:$0xff] %v6582_v23  ;;  %v6584_v24 = vpop.f32.mrb[18].mxu1 }
 0x100   :  { %10567 = vst [vmem:[#allocation19_spill] sm:$0xff] %v6584_v24  ;;  %5338 = vmatpush3.bf16.msra.mxu0 %v6562_v17  ;;  %5450 = vmatpush3.bf16.msra.mxu1 %v6562_v17  ;;  %v6588_v25 = vpop.f32.mrb[19].mxu1 }
 0x101   :  { %10568 = vst [vmem:[#allocation20_spill] sm:$0xff] %v6588_v25  ;;  %5547 = vmatprep.subr.bf16.mxu0 %v6508_v49  ;;  %5659 = vmatprep.subr.bf16.mxu1 %v6508_v49 }
 0x102   :  { %454 = vrot.lane.b32.xlu0 %v343_v0, %s6299_s18  ;;  %422 = vrot.lane.b32.xlu1 %v279_v1, %s6299_s18 }
 0x105   :  { %v6594_v26 = vpop.f32.mrb[20].mxu1 }
 0x106   :  { %10569 = vst [vmem:[#allocation21_spill] sm:$0xff] %v6594_v26  ;;  %460 = vrot.lane.b32.xlu0 %v5892_v2, %s6299_s18  ;;  %428 = vrot.lane.b32.xlu1 %v5876_v3, %s6299_s18  ;;  %v6598_v27 = vpop.f32.mrb[21].mxu1 }
 0x107   :  { %10570 = vst [vmem:[#allocation22_spill] sm:$0xff] %v6598_v27  ;;  %v6600_v28 = vpop.f32.mrb[22].mxu1 }
 0x108   :  { %10571 = vst [vmem:[#allocation23_spill] sm:$0xff] %v6600_v28  ;;  %v6602_v29 = vpop.f32.mrb[23].mxu1 }
 0x109   :  { %10572 = vst [vmem:[#allocation24_spill] sm:$0xff] %v6602_v29 }
 0x10a   :  { %456 = vrot.lane.b32.xlu0 %v346_v6, %s6299_s18  ;;  %424 = vrot.lane.b32.xlu1 %v282_v7, %s6299_s18 }
 0x10d   :  { %v6606_v30 = vpop.f32.mrb[24].mxu1 }
 0x10e   :  { %10573 = vst [vmem:[#allocation25_spill] sm:$0xff] %v6606_v30  ;;  %466 = vrot.lane.b32.xlu0 %v5895_v10, %s6299_s18  ;;  %434 = vrot.lane.b32.xlu1 %v5879_v11, %s6299_s18  ;;  %v6610_v31 = vpop.f32.mrb[25].mxu1 }
 0x10f   :  { %10574 = vst [vmem:[#allocation26_spill] sm:$0xff] %v6610_v31  ;;  %v6612_v32 = vpop.f32.mrb[26].mxu1 }
 0x110   :  { %10575 = vst [vmem:[#allocation27_spill] sm:$0xff] %v6612_v32  ;;  %v6614_v33 = vpop.f32.mrb[27].mxu1 }
 0x111   :  { %10576 = vst [vmem:[#allocation28_spill] sm:$0xff] %v6614_v33 }
 0x112   :  { %462 = vrot.lane.b32.xlu0 %v359_v12, %s6299_s18  ;;  %430 = vrot.lane.b32.xlu1 %v295_v13, %s6299_s18 }
 0x115   :  { %v6618_v36 = vpop.f32.mrb[28].mxu1 }
 0x116   :  { %10577 = vst [vmem:[#allocation29_spill] sm:$0xff] %v6618_v36  ;;  %468 = vrot.lane.b32.xlu0 %v5896_v14, %s6299_s18  ;;  %436 = vrot.lane.b32.xlu1 %v5880_v15, %s6299_s18  ;;  %v6622_v37 = vpop.f32.mrb[29].mxu1 }
 0x117   :  { %10578 = vst [vmem:[#allocation30_spill] sm:$0xff] %v6622_v37  ;;  %v6624_v38 = vpop.f32.mrb[30].mxu1 }
 0x118   :  { %10579 = vst [vmem:[#allocation31_spill] sm:$0xff] %v6624_v38  ;;  %v6626_v39 = vpop.f32.mrb[31].mxu1 }
 0x119   :  { %10580 = vst [vmem:[#allocation32_spill] sm:$0xff] %v6626_v39 }
 0x11a   :  { %464 = vrot.lane.b32.xlu0 %v362_v18, %s6299_s18  ;;  %432 = vrot.lane.b32.xlu1 %v298_v19, %s6299_s18 }
 0x11d   :  { %v6630_v40 = vpop.f32.mrb[32].mxu1 }
 0x11e   :  { %10581 = vst [vmem:[#allocation33_spill] sm:$0xff] %v6630_v40  ;;  %1705 = vperm.xlu0 %6108, %v6578_v22   ;;  %1027 = vperm.xlu1 %6107, %v6578_v22   ;;  %v6634_v41 = vpop.f32.mrb[33].mxu1 }
 0x11f   :  { %10582 = vst [vmem:[#allocation34_spill] sm:$0xff] %v6634_v41  ;;  %v6636_v42 = vpop.f32.mrb[34].mxu1 }
 0x120   :  { %10583 = vst [vmem:[#allocation35_spill] sm:$0xff] %v6636_v42  ;;  %v6638_v43 = vpop.f32.mrb[35].mxu1 }
 0x121   :  { %10584 = vst [vmem:[#allocation36_spill] sm:$0xff] %v6638_v43 }
 0x122   :  { %6109 = vset.pattern.permute.xlu0 %v10248_v35  ;;  %6110 = vset.pattern.permute.xlu1 %v10242_v34 }
 0x123   :  { %1697 = vperm.xlu1 %6110, %v6582_v23   ;;  %1017 = vperm.xlu0 %6109, %v6582_v23  }
 0x125   :  { %v6644_v46 = vpop.f32.mrb[36].mxu1 }
 0x126   :  { %10585 = vst [vmem:[#allocation37_spill] sm:$0xff] %v6644_v46  ;;  %v6646_v47 = vpop.f32.mrb[37].mxu1 }
 0x127   :  { %10586 = vst [vmem:[#allocation38_spill] sm:$0xff] %v6646_v47  ;;  %6111 = vset.pattern.permute.xlu1 %v10248_v35  ;;  %6114 = vset.pattern.permute.xlu0 %v10242_v34  ;;  %v6650_v49 = vpop.f32.mrb[38].mxu1 }
 0x128   :  { %10587 = vst [vmem:[#allocation39_spill] sm:$0xff] %v6650_v49  ;;  %1032 = vperm.xlu1 %6111, %v6584_v24   ;;  %1701 = vperm.xlu0 %6114, %v6588_v25   ;;  %v6654_v50 = vpop.f32.mrb[39].mxu1 }
 0x129   :  { %10588 = vst [vmem:[#allocation40_spill] sm:$0xff] %v6654_v50 }
 0x12c   :  { %6112 = vset.pattern.permute.xlu1 %v10242_v34  ;;  %1721 = vperm.xlu0 %6114, %v6594_v26  }
 0x12d   :  { %1709 = vperm.xlu1 %6112, %v6584_v24   ;;  %v6659_v51 = vpop.f32.mrb[40].mxu1  ;;  %v10616_v24 = vmov 0  }
 0x12e   :  { %10589 = vst [vmem:[#allocation41_spill] sm:$0xff] %v6659_v51  ;;  %v6661_v52 = vpop.f32.mrb[41].mxu1 }
 0x12f   :  { %10590 = vst [vmem:[#allocation42_spill] sm:$0xff] %v6661_v52  ;;  %v6663_v53 = vpop.f32.mrb[42].mxu1 }
 0x130   :  { %10591 = vst [vmem:[#allocation43_spill] sm:$0xff] %v6663_v53  ;;  %6115 = vset.pattern.permute.xlu0 %v10248_v35  ;;  %v6666_v54 = vpop.f32.mrb[43].mxu1 }
 0x131   :  { %10592 = vst [vmem:[#allocation44_spill] sm:$0xff] %v6666_v54  ;;  %6113 = vset.pattern.permute.xlu1 %v10248_v35  ;;  %1037 = vperm.xlu0 %6115, %v6598_v27  }
 0x132   :  { %1022 = vperm.xlu1 %6113, %v6588_v25  }
 0x135   :  { %6120 = vset.pattern.permute.xlu0 %v10242_v34  ;;  %v6726_v12 = vpop.f32.mrb[44].mxu1 }
 0x136   :  { %1047 = vperm.xlu1 %6113, %v6594_v26   ;;  %1717 = vperm.xlu0 %6120, %v6602_v29   ;;  %10593 = vst [vmem:[#allocation45_spill] sm:$0xff] %v6726_v12  ;;  %v6730_v14 = vpop.f32.mrb[45].mxu1 }
 0x137   :  { %10594 = vst [vmem:[#allocation46_spill] sm:$0xff] %v6730_v14 }
 0x13a   :  { %6116 = vset.pattern.permute.xlu1 %v10242_v34  ;;  %6122 = vset.pattern.permute.xlu0 %v10248_v35 }
 0x13b   :  { %1713 = vperm.xlu1 %6116, %v6598_v27   ;;  %1057 = vperm.xlu0 %6122, %v6610_v31  }
 0x13f   :  { %6117 = vset.pattern.permute.xlu1 %v10248_v35  ;;  %6123 = vset.pattern.permute.xlu0 %v10242_v34 }
 0x140   :  { %1052 = vperm.xlu1 %6117, %v6600_v28   ;;  %1729 = vperm.xlu0 %6123, %v6610_v31  }
 0x144   :  { %6118 = vset.pattern.permute.xlu1 %v10242_v34  ;;  %6124 = vset.pattern.permute.xlu0 %v10248_v35 }
 0x145   :  { %1725 = vperm.xlu1 %6118, %v6600_v28   ;;  %1072 = vperm.xlu0 %6124, %v6612_v32  }
 0x149   :  { %6119 = vset.pattern.permute.xlu1 %v10248_v35  ;;  %1077 = vperm.xlu0 %6124, %v6622_v37  }
 0x14a   :  { %1042 = vperm.xlu1 %6119, %v6602_v29  }
 0x14d   :  { %6129 = vset.pattern.permute.xlu0 %v10242_v34 }
 0x14e   :  { %1067 = vperm.xlu1 %6119, %v6606_v30   ;;  %1745 = vperm.xlu0 %6129, %v6622_v37  }
 0x150   :  { %v6692_v55 = vpop.permute.xlu1 %410  ;;  %v443_v58 = vpop.permute.xlu0 %442 }
 0x152   :  { %6121 = vset.pattern.permute.xlu1 %v10242_v34  ;;  %6130 = vset.pattern.permute.xlu0 %v10248_v35 }
 0x153   :  { %1737 = vperm.xlu1 %6121, %v6606_v30   ;;  %1092 = vperm.xlu0 %6130, %v6624_v38  }
 0x154   :  { %v6698_v59 = vpop.permute.xlu1 %412  ;;  %v439_v62 = vpop.permute.xlu0 %438 }
 0x157   :  { %1741 = vperm.xlu1 %6121, %v6612_v32   ;;  %1097 = vperm.xlu0 %6130, %v6634_v41  }
 0x158   :  { %v441_v63 = vpop.permute.xlu1 %440  ;;  %v6708_v0 = vpop.permute.xlu0 %406 }
 0x15b   :  { %6125 = vset.pattern.permute.xlu1 %v10248_v35  ;;  %6135 = vset.pattern.permute.xlu0 %v10242_v34 }
 0x15c   :  { %1062 = vperm.xlu1 %6125, %v6614_v33   ;;  %1761 = vperm.xlu0 %6135, %v6634_v41   ;;  %v6711_v1 = vpop.permute.xlu1 %408  ;;  %v445_v2 = vpop.permute.xlu0 %444 }
 0x160   :  { %6126 = vset.pattern.permute.xlu1 %v10242_v34  ;;  %1777 = vperm.xlu0 %6135, %v6646_v47   ;;  %v6715_v3 = vpop.permute.xlu1 %418  ;;  %v451_v6 = vpop.permute.xlu0 %450 }
 0x161   :  { %1733 = vperm.xlu1 %6126, %v6614_v33  }
 0x164   :  { %v6719_v7 = vpop.permute.xlu1 %414  ;;  %v447_v10 = vpop.permute.xlu0 %446 }
 0x165   :  { %6127 = vset.pattern.permute.xlu1 %v10248_v35 }
 0x166   :  { %1087 = vperm.xlu1 %6127, %v6618_v36  }
 0x168   :  { %v6724_v11 = vpop.permute.xlu1 %420  ;;  %v453_v13 = vpop.permute.xlu0 %452 }
 0x16a   :  { %6128 = vset.pattern.permute.xlu1 %v10242_v34 }
 0x16b   :  { %1753 = vperm.xlu1 %6128, %v6618_v36  }
 0x16c   :  { %v6732_v15 = vpop.permute.xlu1 %416  ;;  %v449_v18 = vpop.permute.xlu0 %448 }
 0x16f   :  { %1757 = vperm.xlu1 %6128, %v6624_v38  }
 0x170   :  { %v6736_v19 = vpop.permute.xlu1 %426  ;;  %v459_v38 = vpop.permute.xlu0 %458 }
 0x173   :  { %6131 = vset.pattern.permute.xlu1 %v10248_v35 }
 0x174   :  { %1082 = vperm.xlu1 %6131, %v6626_v39   ;;  %v6740_v32 = vpop.permute.xlu1 %422  ;;  %v455_v17 = vpop.permute.xlu0 %454 }
 0x178   :  { %6132 = vset.pattern.permute.xlu1 %v10242_v34 }
 0x179   :  { %1749 = vperm.xlu1 %6132, %v6626_v39  }
 0x17d   :  { %6133 = vset.pattern.permute.xlu1 %v10248_v35 }
 0x17e   :  { %1107 = vperm.xlu1 %6133, %v6630_v40   ;;  %534 = vxpose.xlu0.b32.start [1/16] (narrow) %v439_v62, 8  ;;  %v6745_v62 = vpop.permute.xlu1 %428 }
 0x182   :  { %6134 = vset.pattern.permute.xlu1 %v10242_v34  ;;  %535 = vxpose.xlu0.b32.cont [2/16] (narrow) %v441_v63, 8  ;;  %v461_v63 = vpop.permute.xlu0 %460 }
 0x183   :  { %1769 = vperm.xlu1 %6134, %v6630_v40  }
 0x186   :  { %536 = vxpose.xlu0.b32.cont [3/16] (narrow) %v443_v58, 8  ;;  %v6749_v58 = vpop.permute.xlu1 %424 }
 0x187   :  { %1773 = vperm.xlu1 %6134, %v6636_v42  }
 0x18a   :  { %537 = vxpose.xlu0.b32.cont [4/16] (narrow) %v445_v2, 8  ;;  %v457_v2 = vpop.permute.xlu0 %456  ;;  %v6753_v16 = vpop.permute.xlu1 %434 }
 0x18b   :  { %6136 = vset.pattern.permute.xlu1 %v10248_v35 }
 0x18c   :  { %1102 = vperm.xlu1 %6136, %v6638_v43  }
 0x18e   :  { %538 = vxpose.xlu0.b32.cont [5/16] (narrow) %v447_v10, 8  ;;  %v467_v10 = vpop.permute.xlu0 %466  ;;  %v6757_v21 = vpop.permute.xlu1 %430 }
 0x190   :  { %6137 = vset.pattern.permute.xlu1 %v10242_v34 }
 0x191   :  { %1765 = vperm.xlu1 %6137, %v6638_v43  }
 0x192   :  { %539 = vxpose.xlu0.b32.cont [6/16] (narrow) %v449_v18, 8  ;;  %v6760_v18 = vpop.f32.mrb[46].mxu1  ;;  %v6764_v20 = vpop.permute.xlu1 %436 }
 0x193   :  { %10595 = vst [vmem:[#allocation47_spill] sm:$0xff] %v6760_v18  ;;  %v6788_v8 = vpop.f32.mrb[47].mxu1 }
 0x194   :  { %10604 = vst [vmem:[#allocation56_spill] sm:$0xff] %v6788_v8 }
 0x195   :  { %6138 = vset.pattern.permute.xlu1 %v10248_v35 }
 0x196   :  { %540 = vxpose.xlu0.b32.cont [7/16] (narrow) %v451_v6, 8  ;;  %1122 = vperm.xlu1 %6138, %v6654_v50   ;;  %v463_v6 = vpop.permute.xlu0 %462 }
 0x19a   :  { %541 = vxpose.xlu0.b32.cont [8/16] (narrow) %v453_v13, 8  ;;  %6140 = vset.pattern.permute.xlu1 %v10242_v34  ;;  %v469_v13 = vpop.permute.xlu0 %468 }
 0x19b   :  { %1781 = vperm.xlu1 %6140, %v6654_v50  }
 0x19e   :  { %542 = vxpose.xlu0.b32.cont [9/16] (narrow) %v455_v17, 8  ;;  %v6768_v17 = vpop.permute.xlu1 %432 }
 0x19f   :  { %6141 = vset.pattern.permute.xlu1 %v10248_v35 }
 0x1a0   :  { %1127 = vperm.xlu1 %6141, %v6644_v46  }
 0x1a2   :  { %543 = vxpose.xlu0.b32.cont [10/16] (narrow) %v457_v2, 8  ;;  %v465_v2 = vpop.permute.xlu0 %464  ;;  %v6772_v5 = vpop.permute.xlu1 %1027 }
 0x1a3   :  { %10596 = vst [vmem:[#allocation48_spill] sm:$0xff] %v6772_v5 }
 0x1a4   :  { %6142 = vset.pattern.permute.xlu1 %v10242_v34 }
 0x1a5   :  { %1785 = vperm.xlu1 %6142, %v6644_v46  }
 0x1a6   :  { %544 = vxpose.xlu0.b32.cont [11/16] (narrow) %v459_v38, 8  ;;  %v6774_v34 = vpop.permute.xlu0 %1705  ;;  %v6776_v4 = vpop.permute.xlu1 %1697 }
 0x1a7   :  { %10597 = vst [vmem:[#allocation49_spill] sm:$0xff] %v6774_v34  ;;  %10598 = vst [vmem:[#allocation50_spill] sm:$0xff] %v6776_v4 }
 0x1a9   :  { %1789 = vperm.xlu1 %6142, %v6650_v49  }
 0x1aa   :  { %545 = vxpose.xlu0.b32.cont [12/16] (narrow) %v461_v63, 8  ;;  %v6778_v38 = vpop.permute.xlu0 %1017  ;;  %v6780_v63 = vpop.permute.xlu1 %1032 }
 0x1ab   :  { %10599 = vst [vmem:[#allocation51_spill] sm:$0xff] %v6778_v38  ;;  %10600 = vst [vmem:[#allocation52_spill] sm:$0xff] %v6780_v63 }
 0x1ad   :  { %6143 = vset.pattern.permute.xlu1 %v10248_v35 }
 0x1ae   :  { %546 = vxpose.xlu0.b32.cont [13/16] (narrow) %v463_v6, 8  ;;  %1142 = vperm.xlu1 %6143, %v6666_v54   ;;  %v6782_v9 = vpop.permute.xlu0 %1701  ;;  %v6784_v35 = vpop.permute.xlu1 %1709 }
 0x1af   :  { %10601 = vst [vmem:[#allocation53_spill] sm:$0xff] %v6782_v9  ;;  %10602 = vst [vmem:[#allocation54_spill] sm:$0xff] %v6784_v35 }
 0x1b2   :  { %547 = vxpose.xlu0.b32.cont [14/16] (narrow) %v465_v2, 8  ;;  %v6786_v6 = vpop.permute.xlu0 %1721  ;;  %v6790_v57 = vpop.permute.xlu1 %1022 }
 0x1b3   :  { %10603 = vst [vmem:[#allocation55_spill] sm:$0xff] %v6786_v6  ;;  %10605 = vst [vmem:[#allocation57_spill] sm:$0xff] %v6790_v57 }
 0x1b6   :  { %548 = vxpose.xlu0.b32.cont [15/16] (narrow) %v467_v10, 8  ;;  %v6792_v2 = vpop.permute.xlu0 %1037  ;;  %v6794_v28 = vpop.permute.xlu1 %1047 }
 0x1b7   :  { %10606 = vst [vmem:[#allocation58_spill] sm:$0xff] %v6792_v2  ;;  %10607 = vst [vmem:[#allocation59_spill] sm:$0xff] %v6794_v28 }
 0x1ba   :  { %549 = vxpose.xlu0.b32.end [16/16] (narrow) %v469_v13, 8  ;;  %v6796_v10 = vpop.permute.xlu0 %1717  ;;  %v6798_v56 = vpop.permute.xlu1 %1713 }
 0x1bb   :  { %10608 = vst [vmem:[#allocation60_spill] sm:$0xff] %v6796_v10  ;;  %10609 = vst [vmem:[#allocation61_spill] sm:$0xff] %v6798_v56 }
 0x1be   :  { %v6800_v13 = vpop.permute.xlu0 %1057 }
 0x1bf   :  { %10610 = vst [vmem:[#allocation62_spill] sm:$0xff] %v6800_v13  ;;  %v6803_v61 = vpop.permute.xlu1 %1052 }
 0x1c0   :  { %10611 = vst [vmem:[#allocation63_spill] sm:$0xff] %v6803_v61 }
 0x1c2   :  { %v6805_v60 = vpop.permute.xlu0 %1729 }
 0x1c3   :  { %10612 = vst [vmem:[#allocation64_spill] sm:$0xff] %v6805_v60 }
 0x1c4   :  { %v6808_v44 = vpop.permute.xlu1 %1725 }
 0x1c5   :  { %10613 = vst [vmem:[#allocation65_spill] sm:$0xff] %v6808_v44 }
 0x1c6   :  { %v6810_v45 = vpop.permute.xlu0 %1072 }
 0x1c7   :  { %10614 = vst [vmem:[#allocation66_spill] sm:$0xff] %v6810_v45 }
 0x1ca   :  { %v6813_v48 = vpop.permute.xlu0 %1077 }
 0x1cb   :  { %10615 = vst [vmem:[#allocation67_spill] sm:$0xff] %v6813_v48 }
 0x1d7   :  { %502 = vxpose.xlu1.b32.start [1/16] (narrow) %v6708_v0, 8  ;;  %v6818_v0 = vpop.permute.xlu1 %1042 }
 0x1d8   :  { %10617 = vst [vmem:[#allocation68_spill] sm:$0xff] %v6818_v0 }
 0x1db   :  { %503 = vxpose.xlu1.b32.cont [2/16] (narrow) %v6711_v1, 8  ;;  %v6822_v1 = vpop.permute.xlu0 %1745  ;;  %v6824_v46 = vpop.permute.xlu1 %1067 }
 0x1dc   :  { %10618 = vst [vmem:[#allocation69_spill] sm:$0xff] %v6822_v1  ;;  %10619 = vst [vmem:[#allocation70_spill] sm:$0xff] %v6824_v46 }
 0x1df   :  { %504 = vxpose.xlu1.b32.cont [3/16] (narrow) %v6692_v55, 8  ;;  %v6828_v55 = vpop.permute.xlu0 %1092 }
 0x1e0   :  { %10620 = vst [vmem:[#allocation71_spill] sm:$0xff] %v6828_v55 }
 0x1e3   :  { %6139 = vset.pattern.permute.xlu0 %v10616_v24  ;;  %505 = vxpose.xlu1.b32.cont [4/16] (narrow) %v6698_v59, 8  ;;  %v6832_v59 = vpop.permute.xlu1 %1737 }
 0x1e4   :  { %1112 = vperm.xlu0 %6139, %v6636_v42   ;;  %10621 = vst [vmem:[#allocation72_spill] sm:$0xff] %v6832_v59  ;;  %v6834_v42 = vpop.permute.xlu0 %1097 }
 0x1e5   :  { %10622 = vst [vmem:[#allocation73_spill] sm:$0xff] %v6834_v42 }
 0x1e7   :  { %506 = vxpose.xlu1.b32.cont [5/16] (narrow) %v6719_v7, 8  ;;  %v10623_v7 = vmov 1   ;;  %v6839_v12 = vpop.permute.xlu1 %1741 }
 0x1e8   :  { %1117 = vperm.xlu0 %6139, %v6646_v47   ;;  %10624 = vst [vmem:[#allocation74_spill] sm:$0xff] %v6839_v12 }
 0x1eb   :  { %507 = vxpose.xlu1.b32.cont [6/16] (narrow) %v6732_v15, 8  ;;  %v6842_v15 = vpop.permute.xlu0 %1761 }
 0x1ec   :  { %1132 = vperm.xlu0 %6139, %v6650_v49   ;;  %10625 = vst [vmem:[#allocation75_spill] sm:$0xff] %v6842_v15  ;;  %v6846_v49 = vpop.permute.xlu1 %1062 }
 0x1ed   :  { %10626 = vst [vmem:[#allocation76_spill] sm:$0xff] %v6846_v49 }
 0x1ef   :  { %508 = vxpose.xlu1.b32.cont [7/16] (narrow) %v6715_v3, 8  ;;  %v1175_v3 = vlaneseq }
 0x1f0   :  { %1137 = vperm.xlu0 %6139, %v6661_v52  }
 0x1f3   :  { %509 = vxpose.xlu1.b32.cont [8/16] (narrow) %v6724_v11, 8  ;;  %v6850_v11 = vpop.permute.xlu0 %1777 }
 0x1f4   :  { %6144 = vset.pattern.permute.xlu0 %v10623_v7  ;;  %10627 = vst [vmem:[#allocation77_spill] sm:$0xff] %v6850_v11 }
 0x1f5   :  { %1793 = vperm.xlu0 %6144, %v6661_v52   ;;  %v6853_v52 = vshrl.u32 %v1175_v3, 7 }
 0x1f7   :  { %510 = vxpose.xlu1.b32.cont [9/16] (narrow) %v6740_v32, 8  ;;  %v6856_v32 = vpop.permute.xlu1 %1733 }
 0x1f8   :  { %10628 = vst [vmem:[#allocation78_spill] sm:$0xff] %v6856_v32  ;;  %v10637_v32 = vmov 2  }
 0x1f9   :  { %1809 = vperm.xlu0 %6144, %v6730_v14  }
 0x1fb   :  { %511 = vxpose.xlu1.b32.cont [10/16] (narrow) %v6749_v58, 8  ;;  %v10285_v58 = vsub.s32 0, %v6853_v52  ;;  %v6869_v3 = vpop.permute.xlu1 %1087 }
 0x1fc   :  { %10630 = vst [vmem:[#allocation80_spill] sm:$0xff] %v6869_v3 }
 0x1fd   :  { %6149 = vset.pattern.permute.xlu0 %v10616_v24 }
 0x1fe   :  { %1152 = vperm.xlu0 %6149, %v6663_v53   ;;  %v6860_v15 = vpop.trf.xlu0 }
 0x1ff   :  { %512 = vxpose.xlu1.b32.cont [11/16] (narrow) %v6736_v19, 8  ;;  %v6867_v19 = vrot.slane %v6860_v15, %v10285_v58  ;;  %v6879_v11 = vpop.permute.xlu1 %1753 }
 0x200   :  { %10631 = vst [vmem:[#allocation81_spill] sm:$0xff] %v6879_v11 }
 0x201   :  { %10629 = vst [vmem:[#allocation79_spill] sm:$0xff] %v6867_v19 }
 0x202   :  { %1157 = vperm.xlu0 %6149, %v6730_v14   ;;  %v10286_v14 = vmov 2  }
 0x203   :  { %513 = vxpose.xlu1.b32.cont [12/16] (narrow) %v6745_v62, 8  ;;  %v10292_v62 = vsub.s32 1, %v6853_v52 }
 0x205   :  { %v6884_v58 = vrot.slane %v6860_v15, %v10292_v62 }
 0x206   :  { %1172 = vperm.xlu0 %6149, %v6760_v18   ;;  %v1184_v18 = vadd.f32 %v6867_v19, %v6778_v38 }
 0x207   :  { %514 = vxpose.xlu1.b32.cont [13/16] (narrow) %v6757_v21, 8  ;;  %v1186_v21 = vadd.f32 %v6867_v19, %v6790_v57  ;;  %10632 = vst [vmem:[#allocation82_spill] sm:$0xff] %v6884_v58  ;;  %v6896_v57 = vld [vmem:[%s10221_s2 + $0x8] sm:$0xff]  ;;  %v1833_v62 = vadd.f32 %v6884_v58, %v6776_v4  ;;  %v1835_v1 = vadd.f32 %v6884_v58, %v6782_v9 }
 0x208   :  { %vm1248_vm1 = vcmp.ge.f32.partialorder %v1184_v18, 0.0  ;;  %v6910_v12 = vunpack.c.h.bf16 %v6896_v57 }
 0x209   :  { %v1314_v38 = vmul.f32 0.2, %v1186_v21  ;;  %vm1250_vm2 = vcmp.ge.f32.partialorder %v1186_v21, 0.0  ;;  %vm1897_vm3 = vcmp.ge.f32.partialorder %v1833_v62, 0.0  ;;  %v1961_v47 = vmul.f32 0.2, %v1833_v62 }
 0x20a   :  { %6153 = vset.pattern.permute.xlu0 %v10286_v14  ;;  %v10293_v14 = vmov 3   ;;  %10635 = vst [vmem:[#allocation85_spill] sm:$0xff] %v6910_v12  ;;  %vm1899_vm4 = vcmp.ge.f32.partialorder %v1835_v1, 0.0 }
 0x20b   :  { %515 = vxpose.xlu1.b32.cont [14/16] (narrow) %v6768_v17, 8  ;;  %2346 = vperm.xlu0 %6153, %v6582_v23   ;;  %v6890_v17 = vld [vmem:[%s10221_s2] sm:$0xff]  ;;  %v1312_v23 = vmul.f32 0.2, %v1184_v18  ;;  %v1378_v59 = vsel %vm1250_vm2, %v1186_v21, %v1314_v38 }
 0x20d   :  { %v1376_v11 = vsel %vm1248_vm1, %v1184_v18, %v1312_v23  ;;  %v1442_v23 = vmul.f32 %v1378_v59, %v6910_v12  ;;  %v2025_v18 = vsel %vm1897_vm3, %v1833_v62, %v1961_v47  ;;  %v10639_v47 = vmov 3   ;;  %v6954_v62 = vld [vmem:[%s10221_s2 + $0x10] sm:$0xff] }
 0x20f   :  { %6156 = vset.pattern.permute.xlu0 %v10293_v14  ;;  %v6901_v14 = vunpack.c.h.bf16 %v6890_v17  ;;  %516 = vxpose.xlu1.b32.cont [15/16] (narrow) %v6753_v16, 8  ;;  %v1963_v16 = vmul.f32 0.2, %v1835_v1 }
 0x210   :  { %2999 = vperm.xlu0 %6156, %v6588_v25   ;;  %v6905_v25 = vpop.permute.xlu1 %1757 }
 0x211   :  { %10633 = vst [vmem:[#allocation83_spill] sm:$0xff] %v6901_v14  ;;  %10634 = vst [vmem:[#allocation84_spill] sm:$0xff] %v6905_v25  ;;  %v1440_v4 = vmul.f32 %v1376_v11, %v6901_v14  ;;  %v2027_v25 = vsel %vm1899_vm4, %v1835_v1, %v1963_v16  ;;  %v2089_v38 = vmul.f32 %v2025_v18, %v6901_v14  ;;  %v6959_v16 = vld [vmem:[%s10221_s2 + $0x18] sm:$0xff]  ;;  %v6969_v18 = vld [vmem:[%s10221_s2 + $0x28] sm:$0xff]  ;;  %v6993_v14 = vunpack.c.l.bf16 %v6890_v17 }
 0x212   :  { %10645 = vst [vmem:[#allocation93_spill] sm:$0xff] %v6959_v16  ;;  %10647 = vst [vmem:[#allocation95_spill] sm:$0xff] %v6969_v18  ;;  %v7014_v17 = vunpack.c.l.bf16 %v6896_v57  ;;  %v7034_v57 = vld [vmem:[%s10221_s2 + $0x78] sm:$0xff] }
 0x213   :  { %517 = vxpose.xlu1.b32.end [16/16] (narrow) %v6764_v20, 8  ;;  %v1504_v9 = vpack.c.bf16 %v1442_v23, %v1440_v4  ;;  %v2091_v20 = vmul.f32 %v2027_v25, %v6910_v12  ;;  %v6964_v23 = vld [vmem:[%s10221_s2 + $0x20] sm:$0xff]  ;;  %v6990_v12 = vld [vmem:[%s10221_s2 + $0x48] sm:$0xff]  ;;  %10652 = vst [vmem:[#allocation100_spill] sm:$0xff] %v6993_v14  ;;  %10661 = vst [vmem:[#allocation109_spill] sm:$0xff] %v7034_v57 }
 0x214   :  { %3003 = vperm.xlu0 %6156, %v6578_v22   ;;  %v6916_v22 = vpop.permute.xlu1 %1082  ;;  %10646 = vst [vmem:[#allocation94_spill] sm:$0xff] %v6964_v23  ;;  %10651 = vst [vmem:[#allocation99_spill] sm:$0xff] %v6990_v12  ;;  %v7061_v14 = vld [vmem:[%s10221_s2 + $0x90] sm:$0xff] }
 0x215   :  { %10636 = vst [vmem:[#allocation86_spill] sm:$0xff] %v6916_v22  ;;  %1567 = vmatprep.mubr.bf16.mxu0 %v1504_v9  ;;  %v2153_v21 = vpack.c.bf16 %v2091_v20, %v2089_v38  ;;  %v6974_v38 = vld [vmem:[%s10221_s2 + $0x30] sm:$0xff]  ;;  %v6980_v20 = vld [vmem:[%s10221_s2 + $0x38] sm:$0xff]  ;;  %10657 = vst [vmem:[#allocation105_spill] sm:$0xff] %v7014_v17 }
 0x216   :  { %10648 = vst [vmem:[#allocation96_spill] sm:$0xff] %v6974_v38  ;;  %10649 = vst [vmem:[#allocation97_spill] sm:$0xff] %v6980_v20  ;;  %v7056_v17 = vld [vmem:[%s10221_s2 + $0x88] sm:$0xff] }
 0x217   :  { %2216 = vmatprep.mubr.bf16.mxu1 %v2153_v21  ;;  %v6985_v21 = vld [vmem:[%s10221_s2 + $0x40] sm:$0xff]  ;;  %10667 = vst [vmem:[#allocation115_spill] sm:$0xff] %v7056_v17  ;;  %10668 = vst [vmem:[#allocation116_spill] sm:$0xff] %v7061_v14 }
 0x218   :  { %3015 = vperm.xlu0 %6156, %v6602_v29   ;;  %v6922_v11 = vpop.permute.xlu1 %1749  ;;  %10650 = vst [vmem:[#allocation98_spill] sm:$0xff] %v6985_v21  ;;  %v7051_v29 = vld [vmem:[%s10221_s2 + $0x80] sm:$0xff] }
 0x219   :  { %10638 = vst [vmem:[#allocation87_spill] sm:$0xff] %v6922_v11  ;;  %10666 = vst [vmem:[#allocation114_spill] sm:$0xff] %v7051_v29 }
 0x21c   :  { %6161 = vset.pattern.permute.xlu0 %v10637_v32  ;;  %v6927_v4 = vpop.permute.xlu1 %1107 }
 0x21d   :  { %2362 = vperm.xlu0 %6161, %v6598_v27   ;;  %10640 = vst [vmem:[#allocation88_spill] sm:$0xff] %v6927_v4  ;;  %v7046_v27 = vunpack.c.h.bf16 %v6974_v38  ;;  %v7065_v38 = vunpack.c.h.bf16 %v6980_v20 }
 0x21f   :  { %10665 = vst [vmem:[#allocation113_spill] sm:$0xff] %v7046_v27  ;;  %10669 = vst [vmem:[#allocation117_spill] sm:$0xff] %v7065_v38  ;;  %v7068_v27 = vunpack.c.h.bf16 %v6985_v21  ;;  %v7089_v21 = vld [vmem:[%s10221_s2 + $0xa8] sm:$0xff] }
 0x220   :  { %v6930_v9 = vpop.permute.xlu1 %1769  ;;  %10675 = vst [vmem:[#allocation123_spill] sm:$0xff] %v7089_v21 }
 0x221   :  { %2378 = vperm.xlu0 %6161, %v6610_v31   ;;  %10641 = vst [vmem:[#allocation89_spill] sm:$0xff] %v6930_v9  ;;  %v7029_v31 = vld [vmem:[%s10221_s2 + $0x70] sm:$0xff]  ;;  %10670 = vst [vmem:[#allocation118_spill] sm:$0xff] %v7068_v27  ;;  %v7109_v27 = vunpack.c.h.bf16 %v7051_v29  ;;  %v7131_v29 = vunpack.c.h.bf16 %v7089_v21  ;;  %v7152_v21 = vadd.f32 %v6867_v19, %v6794_v28  ;;  %v7223_v28 = vadd.f32 %v6884_v58, %v6808_v44 }
 0x222   :  { %10660 = vst [vmem:[#allocation108_spill] sm:$0xff] %v7029_v31  ;;  %v7102_v20 = vunpack.c.h.bf16 %v7029_v31 }
 0x223   :  { %10681 = vst [vmem:[#allocation129_spill] sm:$0xff] %v7109_v27  ;;  %10689 = vst [vmem:[#allocation136_spill] sm:$0xff] %v7131_v29  ;;  %vm1260_vm13 = vcmp.ge.f32.partialorder %v7152_v21, 0.0  ;;  %vm1911_vm1 = vcmp.ge.f32.partialorder %v7223_v28, 0.0 }
 0x224   :  { %v6934_v25 = vpop.permute.xlu1 %1773  ;;  %10679 = vst [vmem:[#allocation127_spill] sm:$0xff] %v7102_v20 }
 0x225   :  { %6164 = vset.pattern.permute.xlu0 %v10639_v47  ;;  %10642 = vst [vmem:[#allocation90_spill] sm:$0xff] %v6934_v25 }
 0x226   :  { %3019 = vperm.xlu0 %6164, %v6594_v26   ;;  %v7043_v26 = vunpack.c.h.bf16 %v6969_v18  ;;  %v7071_v18 = vunpack.c.h.bf16 %v6990_v12 }
 0x228   :  { %v6940_v1 = vpop.permute.xlu1 %1102  ;;  %10664 = vst [vmem:[#allocation112_spill] sm:$0xff] %v7043_v26  ;;  %10671 = vst [vmem:[#allocation119_spill] sm:$0xff] %v7071_v18  ;;  %v7106_v18 = vunpack.c.h.bf16 %v7034_v57 }
 0x229   :  { %10643 = vst [vmem:[#allocation91_spill] sm:$0xff] %v6940_v1 }
 0x22a   :  { %3031 = vperm.xlu0 %6164, %v6614_v33   ;;  %v7037_v33 = vunpack.c.h.bf16 %v6959_v16  ;;  %v7079_v16 = vld [vmem:[%s10221_s2 + $0x98] sm:$0xff]  ;;  %10680 = vst [vmem:[#allocation128_spill] sm:$0xff] %v7106_v18  ;;  %v7273_v18 = vadd.f32 %v6884_v58, %v6922_v11 }
 0x22b   :  { %10673 = vst [vmem:[#allocation121_spill] sm:$0xff] %v7079_v16  ;;  %v7125_v20 = vunpack.c.h.bf16 %v7079_v16  ;;  %v7160_v16 = vadd.f32 %v6867_v19, %v6800_v13  ;;  %v7180_v13 = vadd.f32 %v6867_v19, %v6916_v22  ;;  %v7202_v22 = vadd.f32 %v6884_v58, %v6774_v34  ;;  %v10697_v34 = vld [vmem:[#allocation72_spill] sm:$0xff] }
 0x22c   :  { %v6945_v59 = vpop.permute.xlu1 %1765  ;;  %10662 = vst [vmem:[#allocation110_spill] sm:$0xff] %v7037_v33 }
 0x22d   :  { %10644 = vst [vmem:[#allocation92_spill] sm:$0xff] %v6945_v59  ;;  %10687 = vst [vmem:[#allocation134_spill] sm:$0xff] %v7125_v20  ;;  %v7262_v20 = vmul.f32 0.2, %v7152_v21  ;;  %v7268_v27 = vmul.f32 0.2, %v7160_v16 }
 0x22e   :  { %3035 = vperm.xlu0 %6164, %v6606_v30   ;;  %v7024_v30 = vld [vmem:[%s10221_s2 + $0x68] sm:$0xff]  ;;  %vm1901_vm9 = vcmp.ge.f32.partialorder %v7202_v22, 0.0  ;;  %vm1264_vm2 = vcmp.ge.f32.partialorder %v7160_v16, 0.0 }
 0x22f   :  { %10659 = vst [vmem:[#allocation107_spill] sm:$0xff] %v7024_v30  ;;  %v7099_v12 = vunpack.c.h.bf16 %v7024_v30  ;;  %v10684_v30 = vsub.s32 2, %v6853_v52  ;;  %10701 = vst [vmem:[#allocation143_spill] sm:$0xff] %v7268_v27 }
 0x231   :  { %6145 = vset.pattern.permute.xlu1 %v10623_v7  ;;  %10678 = vst [vmem:[#allocation126_spill] sm:$0xff] %v7099_v12  ;;  %v7120_v12 = vrot.slane %v6860_v15, %v10684_v30  ;;  %v7143_v30 = vadd.f32 %v6867_v19, %v6792_v2  ;;  %v7164_v2 = vadd.f32 %v6867_v19, %v6846_v49 }
 0x232   :  { %3047 = vperm.xlu0 %6164, %v6626_v39   ;;  %1797 = vperm.xlu1 %6145, %v6666_v54   ;;  %v6995_v39 = vpop.permute.xlu1 %1122  ;;  %v7185_v49 = vadd.f32 %v6867_v19, %v6869_v3  ;;  %v7206_v3 = vadd.f32 %v6884_v58, %v6784_v35  ;;  %v10696_v35 = vld [vmem:[#allocation38_spill] sm:$0xff] }
 0x233   :  { %10653 = vst [vmem:[#allocation101_spill] sm:$0xff] %v6995_v39  ;;  %10685 = vst [vmem:[#allocation132_spill] sm:$0xff] %v7120_v12  ;;  %v7147_v12 = vadd.f32 %v6867_v19, %v6818_v0  ;;  %v7168_v0 = vadd.f32 %v6867_v19, %v6824_v46  ;;  %v7189_v46 = vadd.f32 %v6867_v19, %v6828_v55  ;;  %vm1256_vm7 = vcmp.ge.f32.partialorder %v7143_v30, 0.0 }
 0x234   :  { %10690 = vst [vmem:[#allocation137_spill] sm:$0xff] %v7185_v49  ;;  %v7210_v55 = vadd.f32 %v6884_v58, %v6798_v56  ;;  %v10694_v56 = vld [vmem:[#allocation78_spill] sm:$0xff]  ;;  %vm1903_vm10 = vcmp.ge.f32.partialorder %v7206_v3, 0.0  ;;  %vm1266_vm3 = vcmp.ge.f32.partialorder %v7164_v2, 0.0 }
 0x235   :  { %10691 = vst [vmem:[#allocation138_spill] sm:$0xff] %v7189_v46  ;;  %v7231_v29 = vadd.f32 %v6884_v58, %v10694_v56  ;;  %vm1258_vm8 = vcmp.ge.f32.partialorder %v7147_v12, 0.0 }
 0x236   :  { %6171 = vset.pattern.permute.xlu0 %v10637_v32  ;;  %6146 = vset.pattern.permute.xlu1 %v10616_v24  ;;  %v7122_v31 = vpop.permute.xlu1 %1781  ;;  %vm1905_vm11 = vcmp.ge.f32.partialorder %v7210_v55, 0.0 }
 0x237   :  { %2394 = vperm.xlu0 %6171, %v6622_v37   ;;  %1147 = vperm.xlu1 %6146, %v6659_v51   ;;  %v7019_v37 = vunpack.c.h.bf16 %v6954_v62  ;;  %10686 = vst [vmem:[#allocation133_spill] sm:$0xff] %v7122_v31  ;;  %vm1915_vm0 = vcmp.ge.f32.partialorder %v7231_v29, 0.0 }
 0x239   :  { %10658 = vst [vmem:[#allocation106_spill] sm:$0xff] %v7019_v37 }
 0x23b   :  { %2410 = vperm.xlu0 %6171, %v6634_v41   ;;  %6147 = vset.pattern.permute.xlu1 %v10623_v7  ;;  %v7006_v41 = vld [vmem:[%s10221_s2 + $0x58] sm:$0xff] }
 0x23c   :  { %1801 = vperm.xlu1 %6147, %v6659_v51   ;;  %10655 = vst [vmem:[#allocation103_spill] sm:$0xff] %v7006_v41 }
 0x23f   :  { %6174 = vset.pattern.permute.xlu0 %v10639_v47 }
 0x240   :  { %3051 = vperm.xlu0 %6174, %v6618_v36   ;;  %1805 = vperm.xlu1 %6147, %v6663_v53   ;;  %v7011_v36 = vld [vmem:[%s10221_s2 + $0x60] sm:$0xff]  ;;  %v7040_v53 = vunpack.c.h.bf16 %v6964_v23 }
 0x241   :  { %10656 = vst [vmem:[#allocation104_spill] sm:$0xff] %v7011_v36 }
 0x242   :  { %10663 = vst [vmem:[#allocation111_spill] sm:$0xff] %v7040_v53 }
 0x244   :  { %3063 = vperm.xlu0 %6174, %v6638_v43   ;;  %v7001_v43 = vld [vmem:[%s10221_s2 + $0x50] sm:$0xff]  ;;  %6148 = vset.pattern.permute.xlu1 %v10616_v24 }
 0x245   :  { %10654 = vst [vmem:[#allocation102_spill] sm:$0xff] %v7001_v43  ;;  %v7074_v23 = vunpack.c.h.bf16 %v7001_v43  ;;  %v7093_v43 = vunpack.c.h.bf16 %v7006_v41  ;;  %1162 = vperm.xlu1 %6148, %v6788_v8   ;;  %v7112_v41 = vunpack.c.h.bf16 %v7056_v17  ;;  %v7139_v17 = vadd.f32 %v6867_v19, %v6780_v63 }
 0x246   :  { %v7251_v63 = vmul.f32 0.2, %v7143_v30 }
 0x247   :  { %10672 = vst [vmem:[#allocation120_spill] sm:$0xff] %v7074_v23  ;;  %10676 = vst [vmem:[#allocation124_spill] sm:$0xff] %v7093_v43  ;;  %v7096_v23 = vunpack.c.h.bf16 %v7011_v36  ;;  %v7115_v36 = vunpack.c.h.bf16 %v7061_v14  ;;  %v7135_v14 = vadd.f32 %v6867_v19, %v6772_v5  ;;  %vm1254_vm6 = vcmp.ge.f32.partialorder %v7139_v17, 0.0  ;;  %v10706_v43 = vld [vmem:[#allocation42_spill] sm:$0xff] }
 0x248   :  { %3067 = vperm.xlu0 %6174, %v6630_v40   ;;  %v7084_v40 = vld [vmem:[%s10221_s2 + $0xa0] sm:$0xff]  ;;  %10682 = vst [vmem:[#allocation130_spill] sm:$0xff] %v7112_v41  ;;  %v1318_v56 = vmul.f32 0.2, %v7139_v17  ;;  %v10702_v41 = vld [vmem:[#allocation45_spill] sm:$0xff] }
 0x249   :  { %10674 = vst [vmem:[#allocation122_spill] sm:$0xff] %v7084_v40  ;;  %10677 = vst [vmem:[#allocation125_spill] sm:$0xff] %v7096_v23  ;;  %v7128_v57 = vunpack.c.h.bf16 %v7084_v40  ;;  %v7156_v40 = vadd.f32 %v6867_v19, %v6803_v61  ;;  %v7176_v61 = vadd.f32 %v6867_v19, %v6813_v48  ;;  %6150 = vset.pattern.permute.xlu1 %v10623_v7  ;;  %vm1252_vm5 = vcmp.ge.f32.partialorder %v7135_v14, 0.0 }
 0x24a   :  { %10683 = vst [vmem:[#allocation131_spill] sm:$0xff] %v7115_v36  ;;  %v7197_v48 = vadd.f32 %v6867_v19, %v6927_v4  ;;  %1813 = vperm.xlu1 %6150, %v6788_v8   ;;  %v7219_v4 = vadd.f32 %v6884_v58, %v6786_v6  ;;  %v7238_v6 = vadd.f32 %v6884_v58, %v10697_v34  ;;  %v7243_v44 = vmul.f32 0.2, %v7135_v14  ;;  %v10699_v34 = vld [vmem:[#allocation69_spill] sm:$0xff] }
 0x24b   :  { %10688 = vst [vmem:[#allocation135_spill] sm:$0xff] %v7128_v57  ;;  %v7227_v57 = vadd.f32 %v6884_v58, %v6805_v60  ;;  %v10698_v60 = vld [vmem:[#allocation74_spill] sm:$0xff]  ;;  %v7259_v5 = vadd.f32 %v6884_v58, %v10699_v34  ;;  %v7279_v34 = vmul.f32 0.2, %v7168_v0  ;;  %v10707_v8 = vld [vmem:[#allocation81_spill] sm:$0xff]  ;;  %vm1262_vm14 = vcmp.ge.f32.partialorder %v7156_v40, 0.0 }
 0x24c   :  { %3079 = vperm.xlu0 %6174, %v6654_v50   ;;  %v7172_v50 = vadd.f32 %v6867_v19, %v6810_v45  ;;  %v7193_v45 = vadd.f32 %v6867_v19, %v6834_v42  ;;  %10693 = vst [vmem:[#allocation140_spill] sm:$0xff] %v7197_v48  ;;  %v7214_v42 = vadd.f32 %v6884_v58, %v6796_v10  ;;  %v7233_v10 = vpop.permute.xlu1 %1127  ;;  %v7292_v11 = vmul.f32 0.2, %v7176_v61 }
 0x24d   :  { %10695 = vst [vmem:[#allocation141_spill] sm:$0xff] %v7233_v10  ;;  %v7247_v36 = vadd.f32 %v6884_v58, %v10698_v60  ;;  %v7265_v60 = vmul.f32 0.2, %v7156_v40  ;;  %10704 = vst [vmem:[#allocation145_spill] sm:$0xff] %v7279_v34  ;;  %v7287_v38 = vadd.f32 %v6884_v58, %v10707_v8  ;;  %v7298_v34 = vmul.f32 0.2, %v7185_v49 }
 0x24e   :  { %10692 = vst [vmem:[#allocation139_spill] sm:$0xff] %v7193_v45  ;;  %6151 = vset.pattern.permute.xlu1 %v10616_v24  ;;  %v7276_v24 = vmul.f32 0.2, %v7164_v2  ;;  %v7282_v23 = vmul.f32 0.2, %v7172_v50  ;;  %10708 = vst [vmem:[#allocation147_spill] sm:$0xff] %v7292_v11 }
 0x24f   :  { %10700 = vst [vmem:[#allocation142_spill] sm:$0xff] %v7265_v60  ;;  %1167 = vperm.xlu1 %6151, %v10702_v41   ;;  %10710 = vst [vmem:[#allocation149_spill] sm:$0xff] %v7298_v34  ;;  %v7305_v8 = vmul.f32 0.2, %v7189_v46  ;;  %v7308_v27 = vmul.f32 0.2, %v7193_v45 }
 0x250   :  { %6181 = vset.pattern.permute.xlu0 %v10637_v32  ;;  %10703 = vst [vmem:[#allocation144_spill] sm:$0xff] %v7276_v24  ;;  %10705 = vst [vmem:[#allocation146_spill] sm:$0xff] %v7282_v23  ;;  %v7295_v24 = vmul.f32 0.2, %v7180_v13  ;;  %v10711_v23 = vld [vmem:[#allocation84_spill] sm:$0xff]  ;;  %v7313_v11 = vpop.permute.xlu1 %1785  ;;  %v10716_v34 = vld [vmem:[#allocation75_spill] sm:$0xff] }
 0x251   :  { %2426 = vperm.xlu0 %6181, %v10696_v35   ;;  %v7254_v35 = vmul.f32 0.2, %v7147_v12  ;;  %10712 = vst [vmem:[#allocation150_spill] sm:$0xff] %v7305_v8  ;;  %10713 = vst [vmem:[#allocation151_spill] sm:$0xff] %v7308_v27  ;;  %v7311_v60 = vmul.f32 0.2, %v7197_v48  ;;  %v7322_v8 = vadd.f32 %v6884_v58, %v10716_v34 }
 0x252   :  { %10709 = vst [vmem:[#allocation148_spill] sm:$0xff] %v7295_v24  ;;  %10715 = vst [vmem:[#allocation153_spill] sm:$0xff] %v7313_v11  ;;  %vm1907_vm12 = vcmp.ge.f32.partialorder %v7214_v42, 0.0  ;;  %v7327_v27 = vmul.f32 0.2, %v7210_v55  ;;  %v10717_v24 = vld [vmem:[#allocation77_spill] sm:$0xff] }
 0x253   :  { %10714 = vst [vmem:[#allocation152_spill] sm:$0xff] %v7311_v60  ;;  %6152 = vset.pattern.permute.xlu1 %v10623_v7  ;;  %v1967_v60 = vmul.f32 0.2, %v7206_v3  ;;  %v7330_v48 = vmul.f32 0.2, %v7214_v42  ;;  %v7336_v7 = vadd.f32 %v6884_v58, %v10717_v24  ;;  %v10721_v49 = vld [vmem:[#allocation37_spill] sm:$0xff] }
 0x254   :  { %1817 = vperm.xlu1 %6152, %v10702_v41   ;;  %v7339_v34 = vmul.f32 0.2, %v7219_v4  ;;  %v7342_v45 = vmul.f32 0.2, %v7223_v28  ;;  %v7345_v46 = vmul.f32 0.2, %v7227_v57 }
 0x255   :  { %2442 = vperm.xlu0 %6181, %v10706_v43   ;;  %v7302_v43 = vadd.f32 %v6884_v58, %v10711_v23  ;;  %v1965_v23 = vmul.f32 0.2, %v7202_v22  ;;  %v7351_v41 = vmul.f32 0.2, %v7231_v29  ;;  %v7354_v24 = vmul.f32 0.2, %v7238_v6 }
 0x256   :  { %10718 = vst [vmem:[#allocation154_spill] sm:$0xff] %v7339_v34  ;;  %10719 = vst [vmem:[#allocation155_spill] sm:$0xff] %v7342_v45  ;;  %v7357_v34 = vmul.f32 0.2, %v7247_v36  ;;  %v7361_v45 = vadd.f32 %v6884_v58, %v6930_v9  ;;  %vm1909_vm15 = vcmp.ge.f32.partialorder %v7219_v4, 0.0  ;;  %vm1913_vm4 = vcmp.ge.f32.partialorder %v7227_v57, 0.0 }
 0x257   :  { %10720 = vst [vmem:[#allocation156_spill] sm:$0xff] %v7345_v46  ;;  %10722 = vst [vmem:[#allocation157_spill] sm:$0xff] %v7351_v41  ;;  %v7369_v46 = vmul.f32 0.2, %v7273_v18  ;;  %v7372_v41 = vmul.f32 0.2, %v7287_v38 }
 0x258   :  { %10723 = vst [vmem:[#allocation158_spill] sm:$0xff] %v7354_v24  ;;  %10724 = vst [vmem:[#allocation159_spill] sm:$0xff] %v7357_v34  ;;  %v7376_v34 = vadd.f32 %v6884_v58, %v6934_v25  ;;  %v7381_v9 = vmul.f32 0.2, %v7302_v43  ;;  %v7384_v24 = vmul.f32 0.2, %v7322_v8  ;;  %v1380_v25 = vsel %vm1252_vm5, %v7135_v14, %v7243_v44 }
 0x259   :  { %6184 = vset.pattern.permute.xlu0 %v10639_v47  ;;  %10726 = vst [vmem:[#allocation161_spill] sm:$0xff] %v7369_v46  ;;  %10727 = vst [vmem:[#allocation162_spill] sm:$0xff] %v7372_v41  ;;  %v10730_v46 = vld [vmem:[#allocation47_spill] sm:$0xff]  ;;  %v1382_v41 = vsel %vm1254_vm6, %v7139_v17, %v1318_v56  ;;  %v2029_v44 = vsel %vm1901_vm9, %v7202_v22, %v1965_v23  ;;  %v2031_v56 = vsel %vm1903_vm10, %v7206_v3, %v1967_v60 }
 0x25a   :  { %3083 = vperm.xlu0 %6184, %v10721_v49   ;;  %v7366_v49 = vmul.f32 0.2, %v7259_v5  ;;  %10728 = vst [vmem:[#allocation163_spill] sm:$0xff] %v7384_v24  ;;  %1821 = vperm.xlu1 %6152, %v10730_v46   ;;  %v7400_v24 = vadd.f32 %v6867_v19, %v6940_v1  ;;  %v7404_v46 = vadd.f32 %v6884_v58, %v6945_v59  ;;  %v7414_v14 = vmul.f32 0.2, %v7336_v7 }
 0x25b   :  { %v7418_v17 = vadd.f32 %v6867_v19, %v6995_v39  ;;  %v7422_v59 = vadd.f32 %v6884_v58, %v7122_v31  ;;  %v7429_v22 = vmul.f32 0.2, %v7361_v45  ;;  %v7433_v60 = vadd.f32 %v6884_v58, %v7313_v11 }
 0x25c   :  { %10725 = vst [vmem:[#allocation160_spill] sm:$0xff] %v7366_v49  ;;  %v7386_v49 = vpop.permute.xlu1 %1789  ;;  %v7436_v3 = vmul.f32 %v1380_v25, %v7019_v37  ;;  %v7439_v23 = vmul.f32 %v1382_v41, %v7037_v33  ;;  %v7443_v31 = vmul.f32 %v2029_v44, %v7019_v37  ;;  %v1384_v11 = vsel %vm1256_vm7, %v7143_v30, %v7251_v63 }
 0x25d   :  { %10729 = vst [vmem:[#allocation164_spill] sm:$0xff] %v7386_v49  ;;  %v1386_v25 = vsel %vm1258_vm8, %v7147_v12, %v7254_v35  ;;  %v10731_v41 = vsub.s32 3, %v6853_v52  ;;  %vm1268_vm5 = vcmp.ge.f32.partialorder %v7168_v0, 0.0  ;;  %vm1270_vm6 = vcmp.ge.f32.partialorder %v7172_v50, 0.0  ;;  %v10733_v35 = vld [vmem:[#allocation20_spill] sm:$0xff] }
 0x25e   :  { %3095 = vperm.xlu0 %6184, %v6666_v54   ;;  %v7426_v54 = vadd.f32 %v6867_v19, %v7233_v10  ;;  %6154 = vset.pattern.permute.xlu1 %v10637_v32  ;;  %v7446_v10 = vmul.f32 %v2031_v56, %v7037_v33  ;;  %vm1917_vm9 = vcmp.ge.f32.partialorder %v7238_v6, 0.0  ;;  %v7465_v44 = vmul.f32 0.2, %v7376_v34 }
 0x25f   :  { %v7459_v39 = vrot.slane %v6860_v15, %v10731_v41  ;;  %v7468_v63 = vmul.f32 0.2, %v7400_v24  ;;  %v7471_v30 = vmul.f32 0.2, %v7404_v46  ;;  %2350 = vperm.xlu1 %6154, %v10733_v35   ;;  %vm1919_vm7 = vcmp.ge.f32.partialorder %v7247_v36, 0.0 }
 0x260   :  { %v7476_v12 = vmul.f32 0.2, %v7418_v17  ;;  %v7479_v15 = vmul.f32 0.2, %v7422_v59  ;;  %v7482_v56 = vmul.f32 0.2, %v7426_v54  ;;  %v7484_v41 = vpop.permute.xlu1 %1142  ;;  %v2033_v35 = vsel %vm1905_vm11, %v7210_v55, %v7327_v27 }
 0x261   :  { %10732 = vst [vmem:[#allocation165_spill] sm:$0xff] %v7459_v39  ;;  %10734 = vst [vmem:[#allocation166_spill] sm:$0xff] %v7484_v41  ;;  %v7492_v33 = vunpack.c.l.bf16 %v6954_v62  ;;  %v7495_v37 = vmul.f32 %v1384_v11, %v7040_v53  ;;  %v7498_v39 = vmul.f32 %v1386_v25, %v7043_v26  ;;  %v2035_v1 = vsel %vm1907_vm12, %v7214_v42, %v7330_v48  ;;  %v10739_v62 = vld [vmem:[#allocation93_spill] sm:$0xff]  ;;  %v10742_v55 = vld [vmem:[#allocation142_spill] sm:$0xff] }
 0x262   :  { %3099 = vperm.xlu0 %6184, %v6659_v51   ;;  %v7505_v51 = vmul.f32 0.2, %v7433_v60  ;;  %v7512_v11 = vunpack.c.l.bf16 %v10739_v62  ;;  %vm1272_vm8 = vcmp.ge.f32.partialorder %v7176_v61, 0.0  ;;  %v7517_v25 = vadd.f32 %v6884_v58, %v7386_v49  ;;  %v10743_v58 = vld [vmem:[#allocation18_spill] sm:$0xff] }
 0x263   :  { %10735 = vst [vmem:[#allocation167_spill] sm:$0xff] %v7492_v33  ;;  %10736 = vst [vmem:[#allocation168_spill] sm:$0xff] %v7495_v37  ;;  %6155 = vset.pattern.permute.xlu1 %v10639_v47  ;;  %v7521_v48 = vmul.f32 %v2033_v35, %v7040_v53  ;;  %v1388_v42 = vsel %vm1260_vm13, %v7152_v21, %v7262_v20  ;;  %v1390_v62 = vsel %vm1262_vm14, %v7156_v40, %v10742_v55  ;;  %v10745_v53 = vld [vmem:[#allocation94_spill] sm:$0xff]  ;;  %v10748_v40 = vld [vmem:[#allocation155_spill] sm:$0xff] }
 0x264   :  { %10737 = vst [vmem:[#allocation169_spill] sm:$0xff] %v7498_v39  ;;  %10738 = vst [vmem:[#allocation170_spill] sm:$0xff] %v7505_v51  ;;  %vm1274_vm10 = vcmp.ge.f32.partialorder %v7180_v13, 0.0  ;;  %vm1921_vm11 = vcmp.ge.f32.partialorder %v7259_v5, 0.0  ;;  %v7533_v27 = vpop.trf.xlu1  ;;  %2995 = vperm.xlu1 %6155, %v10743_v58   ;;  %v7537_v35 = vmul.f32 %v2035_v1, %v7043_v26  ;;  %v7540_v49 = vunpack.c.l.bf16 %v10745_v53  ;;  %v10747_v20 = vld [vmem:[#allocation154_spill] sm:$0xff]  ;;  %v10750_v1 = vld [vmem:[#allocation95_spill] sm:$0xff] }
 0x265   :  { %10740 = vst [vmem:[#allocation93_spill] sm:$0xff] %v7512_v11  ;;  %10741 = vst [vmem:[#allocation171_spill] sm:$0xff] %v7521_v48  ;;  %v2037_v21 = vsel %vm1909_vm15, %v7219_v4, %v10747_v20  ;;  %v2039_v55 = vsel %vm1911_vm1, %v7223_v28, %v10748_v40  ;;  %v10749_v11 = vld [vmem:[#allocation137_spill] sm:$0xff]  ;;  %vm1923_vm13 = vcmp.ge.f32.partialorder %v7273_v18, 0.0  ;;  %v7556_v26 = vunpack.c.l.bf16 %v10750_v1  ;;  %v10753_v20 = vld [vmem:[#allocation144_spill] sm:$0xff] }
 0x266   :  { %10744 = vst [vmem:[#allocation142_spill] sm:$0xff] %v7537_v35  ;;  %10746 = vst [vmem:[#allocation18_spill] sm:$0xff] %v7540_v49  ;;  %vm1276_vm12 = vcmp.ge.f32.partialorder %v10749_v11, 0.0  ;;  %6189 = vset.pattern.permute.xlu0 %v10637_v32  ;;  %v10752_v49 = vld [vmem:[#allocation143_spill] sm:$0xff]  ;;  %v1394_v28 = vsel %vm1266_vm3, %v7164_v2, %v10753_v20  ;;  %v10754_v40 = vld [vmem:[#allocation138_spill] sm:$0xff]  ;;  %vm1925_vm15 = vcmp.ge.f32.partialorder %v7287_v38, 0.0 }
 0x267   :  { %10751 = vst [vmem:[#allocation94_spill] sm:$0xff] %v7556_v26  ;;  %v1392_v4 = vsel %vm1264_vm2, %v7160_v16, %v10752_v49  ;;  %vm1278_vm14 = vcmp.ge.f32.partialorder %v10754_v40, 0.0  ;;  %vm1927_vm1 = vcmp.ge.f32.partialorder %v7302_v43, 0.0  ;;  %v10755_v53 = vld [vmem:[#allocation46_spill] sm:$0xff]  ;;  %v10756_v1 = vld [vmem:[#allocation113_spill] sm:$0xff]  ;;  %v10760_v49 = vld [vmem:[#allocation156_spill] sm:$0xff] }
 0x268   :  { %2458 = vperm.xlu0 %6189, %v10755_v53   ;;  %v7571_v26 = vmul.f32 %v1388_v42, %v10756_v1  ;;  %v10758_v37 = vld [vmem:[#allocation117_spill] sm:$0xff]  ;;  %v2041_v16 = vsel %vm1913_vm4, %v7227_v57, %v10760_v49  ;;  %v7585_v33 = vmul.f32 0.2, %v7517_v25  ;;  %v10763_v53 = vsub.s32 0, %v6853_v52  ;;  %6157 = vset.pattern.permute.xlu1 %v10637_v32  ;;  %v10766_v49 = vld [vmem:[#allocation118_spill] sm:$0xff] }
 0x269   :  { %v7574_v39 = vmul.f32 %v1390_v62, %v10758_v37  ;;  %v10761_v2 = vld [vmem:[#allocation157_spill] sm:$0xff]  ;;  %v7593_v62 = vmul.f32 %v2037_v21, %v10756_v1  ;;  %v7596_v51 = vmul.f32 %v2039_v55, %v10758_v37  ;;  %v7600_v57 = vadd.f32 %v6867_v19, %v7484_v41  ;;  %v10769_v55 = vld [vmem:[#allocation96_spill] sm:$0xff] }
 0x26a   :  { %10757 = vst [vmem:[#allocation154_spill] sm:$0xff] %v7571_v26  ;;  %v2043_v20 = vsel %vm1915_vm0, %v7231_v29, %v10761_v2  ;;  %10762 = vst [vmem:[#allocation137_spill] sm:$0xff] %v7585_v33  ;;  %v7590_v42 = vrot.slane %v7533_v27, %v10763_v53  ;;  %v7606_v2 = vmul.f32 %v1392_v4, %v10766_v49  ;;  %v10767_v53 = vld [vmem:[#allocation119_spill] sm:$0xff]  ;;  %vm1282_vm0 = vcmp.ge.f32.partialorder %v7400_v24, 0.0  ;;  %v10768_v21 = vld [vmem:[#allocation17_spill] sm:$0xff] }
 0x26b   :  { %10759 = vst [vmem:[#allocation155_spill] sm:$0xff] %v7574_v39  ;;  %10764 = vst [vmem:[#allocation95_spill] sm:$0xff] %v7593_v62  ;;  %v7609_v33 = vmul.f32 %v1394_v28, %v10767_v53  ;;  %2354 = vperm.xlu1 %6157, %v10768_v21   ;;  %v7614_v37 = vunpack.c.l.bf16 %v10769_v55  ;;  %v10771_v1 = vld [vmem:[#allocation97_spill] sm:$0xff]  ;;  %v7620_v41 = vmul.f32 %v2041_v16, %v10766_v49  ;;  %v10774_v4 = vld [vmem:[#allocation139_spill] sm:$0xff]  ;;  %vm1929_vm3 = vcmp.ge.f32.partialorder %v7322_v8, 0.0 }
 0x26c   :  { %10765 = vst [vmem:[#allocation143_spill] sm:$0xff] %v7596_v51  ;;  %v7617_v19 = vunpack.c.l.bf16 %v10771_v1  ;;  %v7623_v29 = vmul.f32 %v2043_v20, %v10767_v53  ;;  %vm1280_vm2 = vcmp.ge.f32.partialorder %v10774_v4, 0.0  ;;  %6192 = vset.pattern.permute.xlu0 %v10639_v47  ;;  %v10775_v55 = vld [vmem:[#allocation145_spill] sm:$0xff]  ;;  %v10777_v20 = vld [vmem:[#allocation158_spill] sm:$0xff]  ;;  %vm1931_vm4 = vcmp.ge.f32.partialorder %v7404_v46, 0.0  ;;  %v10778_v49 = vld [vmem:[#allocation51_spill] sm:$0xff] }
 0x26d   :  { %10770 = vst [vmem:[#allocation144_spill] sm:$0xff] %v7614_v37  ;;  %10773 = vst [vmem:[#allocation156_spill] sm:$0xff] %v7620_v41  ;;  %v1396_v1 = vsel %vm1268_vm5, %v7168_v0, %v10775_v55  ;;  %v2045_v53 = vsel %vm1917_vm9, %v7238_v6, %v10777_v20  ;;  %v1183_v28 = vadd.f32 %v7590_v42, %v10778_v49  ;;  %v10779_v37 = vld [vmem:[#allocation57_spill] sm:$0xff]  ;;  %v10780_v39 = vld [vmem:[#allocation56_spill] sm:$0xff]  ;;  %v7655_v6 = vmul.f32 0.2, %v7600_v57 }
 0x26e   :  { %10772 = vst [vmem:[#allocation138_spill] sm:$0xff] %v7617_v19  ;;  %v10776_v19 = vld [vmem:[#allocation146_spill] sm:$0xff]  ;;  %v1185_v26 = vadd.f32 %v7590_v42, %v10779_v37  ;;  %3111 = vperm.xlu0 %6192, %v10780_v39   ;;  %v10781_v55 = vld [vmem:[#allocation159_spill] sm:$0xff]  ;;  %v10787_v62 = vld [vmem:[#allocation120_spill] sm:$0xff]  ;;  %vm1935_vm5 = vcmp.ge.f32.partialorder %v7376_v34, 0.0  ;;  %vm1933_vm9 = vcmp.ge.f32.partialorder %v7361_v45, 0.0 }
 0x26f   :  { %v1398_v16 = vsel %vm1270_vm6, %v7172_v50, %v10776_v19  ;;  %v2047_v50 = vsel %vm1919_vm7, %v7247_v36, %v10781_v55  ;;  %v10782_v49 = vld [vmem:[#allocation98_spill] sm:$0xff]  ;;  %v10784_v37 = vld [vmem:[#allocation99_spill] sm:$0xff]  ;;  %v7669_v51 = vmul.f32 %v1396_v1, %v10787_v62  ;;  %v10788_v36 = vld [vmem:[#allocation124_spill] sm:$0xff]  ;;  %v7675_v35 = vmul.f32 %v2045_v53, %v10787_v62 }
 0x270   :  { %v7660_v20 = vunpack.c.l.bf16 %v10782_v49  ;;  %v7663_v48 = vunpack.c.l.bf16 %v10784_v37  ;;  %v10786_v39 = vld [vmem:[#allocation19_spill] sm:$0xff]  ;;  %v7672_v55 = vmul.f32 %v1398_v16, %v10788_v36  ;;  %v7679_v49 = vmul.f32 %v2047_v50, %v10788_v36  ;;  %v10789_v37 = vld [vmem:[#allocation102_spill] sm:$0xff]  ;;  %v10794_v53 = vld [vmem:[#allocation45_spill] sm:$0xff] }
 0x271   :  { %2358 = vperm.xlu1 %6157, %v10786_v39   ;;  %v7682_v19 = vunpack.c.l.bf16 %v10789_v37  ;;  %v10793_v0 = vld [vmem:[#allocation147_spill] sm:$0xff]  ;;  %v1311_v16 = vmul.f32 0.2, %v1183_v28  ;;  %v1313_v41 = vmul.f32 0.2, %v1185_v26  ;;  %v10795_v62 = vld [vmem:[#allocation148_spill] sm:$0xff] }
 0x272   :  { %10783 = vst [vmem:[#allocation157_spill] sm:$0xff] %v7660_v20  ;;  %10785 = vst [vmem:[#allocation17_spill] sm:$0xff] %v7663_v48  ;;  %v10791_v48 = vld [vmem:[#allocation103_spill] sm:$0xff]  ;;  %v1400_v1 = vsel %vm1272_vm8, %v7176_v61, %v10793_v0  ;;  %3115 = vperm.xlu0 %6192, %v10794_v53   ;;  %v1402_v50 = vsel %vm1274_vm10, %v7180_v13, %v10795_v62  ;;  %v10796_v36 = vld [vmem:[#allocation160_spill] sm:$0xff]  ;;  %vm1247_vm7 = vcmp.ge.f32.partialorder %v1183_v28, 0.0  ;;  %vm1249_vm8 = vcmp.ge.f32.partialorder %v1185_v26, 0.0 }
 0x273   :  { %10790 = vst [vmem:[#allocation96_spill] sm:$0xff] %v7682_v19  ;;  %v7685_v20 = vunpack.c.l.bf16 %v10791_v48  ;;  %v2049_v48 = vsel %vm1921_vm11, %v7259_v5, %v10796_v36  ;;  %v10797_v37 = vld [vmem:[#allocation140_spill] sm:$0xff]  ;;  %v10798_v61 = vld [vmem:[#allocation161_spill] sm:$0xff]  ;;  %vm1290_vm10 = vcmp.ge.f32.partialorder %v7418_v17, 0.0  ;;  %v10800_v5 = vsub.s32 1, %v6853_v52  ;;  %v10801_v36 = vld [vmem:[#allocation150_spill] sm:$0xff] }
 0x274   :  { %vm1284_vm6 = vcmp.ge.f32.partialorder %v10797_v37, 0.0  ;;  %v2051_v0 = vsel %vm1923_vm13, %v7273_v18, %v10798_v61  ;;  %v10799_v53 = vld [vmem:[#allocation149_spill] sm:$0xff]  ;;  %v10802_v18 = vld [vmem:[#allocation162_spill] sm:$0xff]  ;;  %vm1939_vm11 = vcmp.ge.f32.partialorder %v7422_v59, 0.0  ;;  %vm1292_vm13 = vcmp.ge.f32.partialorder %v7426_v54, 0.0 }
 0x275   :  { %10792 = vst [vmem:[#allocation97_spill] sm:$0xff] %v7685_v20  ;;  %v1404_v13 = vsel %vm1276_vm12, %v10749_v11, %v10799_v53  ;;  %v7714_v62 = vrot.slane %v7533_v27, %v10800_v5  ;;  %6158 = vset.pattern.permute.xlu1 %v10639_v47  ;;  %v1406_v20 = vsel %vm1278_vm14, %v10754_v40, %v10801_v36  ;;  %v10803_v5 = vld [vmem:[#allocation125_spill] sm:$0xff]  ;;  %v10804_v40 = vld [vmem:[#allocation126_spill] sm:$0xff]  ;;  %vm1937_vm12 = vcmp.ge.f32.partialorder %v7336_v7, 0.0 }
 0x276   :  { %v2053_v61 = vsel %vm1925_vm15, %v7287_v38, %v10802_v18  ;;  %v2055_v11 = vsel %vm1927_vm1, %v7302_v43, %v7381_v9  ;;  %3007 = vperm.xlu1 %6158, %v10786_v39   ;;  %v7734_v19 = vmul.f32 %v1400_v1, %v10803_v5  ;;  %v7737_v36 = vmul.f32 %v1402_v50, %v10804_v40  ;;  %v10805_v1 = vld [vmem:[#allocation127_spill] sm:$0xff]  ;;  %v10806_v50 = vld [vmem:[#allocation128_spill] sm:$0xff] }
 0x277   :  { %v7740_v38 = vmul.f32 %v2049_v48, %v10803_v5  ;;  %v1375_v43 = vsel %vm1247_vm7, %v1183_v28, %v1311_v16  ;;  %v1377_v9 = vsel %vm1249_vm8, %v1185_v26, %v1313_v41  ;;  %4754 = vrot.lane.b32.xlu0 %v10743_v58, %s6302_s1  ;;  %v7748_v18 = vmul.f32 %v2051_v0, %v10804_v40  ;;  %v10808_v58 = vld [vmem:[#allocation50_spill] sm:$0xff]  ;;  %v10809_v0 = vld [vmem:[#allocation151_spill] sm:$0xff] }
 0x278   :  { %v7751_v53 = vmul.f32 %v1404_v13, %v10805_v1  ;;  %v7754_v39 = vmul.f32 %v1406_v20, %v10806_v50  ;;  %v7757_v48 = vmul.f32 %v2053_v61, %v10805_v1  ;;  %v7760_v28 = vmul.f32 %v2055_v11, %v10806_v50  ;;  %v10810_v13 = vld [vmem:[#allocation163_spill] sm:$0xff]  ;;  %v10811_v11 = vld [vmem:[#allocation53_spill] sm:$0xff] }
 0x279   :  { %v1410_v26 = vsel %vm1282_vm0, %v7400_v24, %v7468_v63  ;;  %v1832_v41 = vadd.f32 %v7714_v62, %v10808_v58  ;;  %v1408_v20 = vsel %vm1280_vm2, %v10774_v4, %v10809_v0  ;;  %v2057_v61 = vsel %vm1929_vm3, %v7322_v8, %v10810_v13  ;;  %v10812_v24 = vld [vmem:[#allocation100_spill] sm:$0xff]  ;;  %v10813_v50 = vld [vmem:[#allocation105_spill] sm:$0xff] }
 0x27a   :  { %10807 = vst [vmem:[#allocation139_spill] sm:$0xff] %v7757_v48  ;;  %v1834_v1 = vadd.f32 %v7714_v62, %v10811_v11  ;;  %v1439_v63 = vmul.f32 %v1375_v43, %v10812_v24  ;;  %v1441_v58 = vmul.f32 %v1377_v9, %v10813_v50  ;;  %6159 = vset.pattern.permute.xlu1 %v10637_v32  ;;  %v10814_v4 = vld [vmem:[#allocation24_spill] sm:$0xff]  ;;  %v10817_v43 = vld [vmem:[#allocation107_spill] sm:$0xff]  ;;  %v10819_v11 = vld [vmem:[#allocation130_spill] sm:$0xff]  ;;  %vm1941_vm15 = vcmp.ge.f32.partialorder %v7433_v60, 0.0 }
 0x27b   :  { %v2059_v16 = vsel %vm1931_vm4, %v7404_v46, %v7471_v30  ;;  %2366 = vperm.xlu1 %6159, %v10814_v4   ;;  %4758 = vrot.lane.b32.xlu0 %v10768_v21, %s6302_s1  ;;  %v10815_v0 = vld [vmem:[#allocation104_spill] sm:$0xff]  ;;  %v7796_v9 = vunpack.c.l.bf16 %v10817_v43  ;;  %v7799_v5 = vmul.f32 %v1410_v26, %v10819_v11  ;;  %v10820_v8 = vld [vmem:[#allocation129_spill] sm:$0xff]  ;;  %vm1896_vm14 = vcmp.ge.f32.partialorder %v1832_v41, 0.0  ;;  %v10830_v4 = vld [vmem:[#allocation134_spill] sm:$0xff] }
 0x27c   :  { %v7793_v13 = vunpack.c.l.bf16 %v10815_v0  ;;  %v7809_v0 = vmul.f32 %v1408_v20, %v10820_v8  ;;  %v7812_v43 = vmul.f32 %v2057_v61, %v10820_v8  ;;  %v7815_v26 = vmul.f32 %v2059_v16, %v10819_v11  ;;  %v10824_v20 = vld [vmem:[#allocation22_spill] sm:$0xff]  ;;  %v10825_v61 = vld [vmem:[#allocation108_spill] sm:$0xff] }
 0x27d   :  { %10818 = vst [vmem:[#allocation146_spill] sm:$0xff] %v7796_v9  ;;  %v2063_v46 = vsel %vm1935_vm5, %v7376_v34, %v7465_v44  ;;  %vm1898_vm1 = vcmp.ge.f32.partialorder %v1834_v1, 0.0  ;;  %v1960_v30 = vmul.f32 0.2, %v1832_v41  ;;  %v1962_v21 = vmul.f32 0.2, %v1834_v1 }
 0x27e   :  { %10816 = vst [vmem:[#allocation145_spill] sm:$0xff] %v7793_v13  ;;  %10821 = vst [vmem:[#allocation158_spill] sm:$0xff] %v7809_v0  ;;  %v1503_v40 = vpack.c.bf16 %v1441_v58, %v1439_v63  ;;  %v7826_v8 = vunpack.c.l.bf16 %v10825_v61  ;;  %v10827_v11 = vld [vmem:[#allocation152_spill] sm:$0xff]  ;;  %v2061_v44 = vsel %vm1933_vm9, %v7361_v45, %v7429_v22  ;;  %v10828_v58 = vld [vmem:[#allocation109_spill] sm:$0xff]  ;;  %v7843_v48 = vmul.f32 %v2063_v46, %v10830_v4 }
 0x27f   :  { %10822 = vst [vmem:[#allocation51_spill] sm:$0xff] %v7812_v43  ;;  %10823 = vst [vmem:[#allocation57_spill] sm:$0xff] %v7815_v26  ;;  %6160 = vset.pattern.permute.xlu1 %v10639_v47  ;;  %4762 = vrot.lane.b32.xlu0 %v10824_v20, %s6302_s1  ;;  %v1412_v34 = vsel %vm1284_vm6, %v10797_v37, %v10827_v11  ;;  %v2024_v63 = vsel %vm1896_vm14, %v1832_v41, %v1960_v30  ;;  %v7840_v61 = vunpack.c.l.bf16 %v10828_v58  ;;  %v10832_v11 = vld [vmem:[#allocation48_spill] sm:$0xff]  ;;  %v10835_v41 = vld [vmem:[#allocation114_spill] sm:$0xff] }
 0x280   :  { %10826 = vst [vmem:[#allocation159_spill] sm:$0xff] %v7826_v8  ;;  %1568 = vmatmul.mubr.bf16.vlgmr.msra.gmra.mrb[16].mxu0 %v1503_v40  ;;  %3011 = vperm.xlu1 %6160, %v10824_v20   ;;  %10831 = vst [vmem:[#allocation99_spill] sm:$0xff] %v7843_v48  ;;  %v1418_v37 = vsel %vm1290_vm10, %v7418_v17, %v7476_v12  ;;  %v1187_v16 = vadd.f32 %v7590_v42, %v10832_v11  ;;  %v10833_v22 = vld [vmem:[#allocation4_spill] sm:$0xff]  ;;  %v7857_v30 = vunpack.c.l.bf16 %v10835_v41  ;;  %v10842_v11 = vld [vmem:[#allocation21_spill] sm:$0xff] }
 0x281   :  { %10829 = vst [vmem:[#allocation98_spill] sm:$0xff] %v7840_v61  ;;  %v2026_v45 = vsel %vm1898_vm1, %v1834_v1, %v1962_v21  ;;  %5548 = vmatpush3.bf16.msra.mxu0 %v10833_v22  ;;  %v10834_v40 = vpack.c.bf16 %v7439_v23, %v7436_v3  ;;  %v2067_v46 = vsel %vm1939_vm11, %v7422_v59, %v7479_v15  ;;  %v10837_v17 = vld [vmem:[#allocation52_spill] sm:$0xff]  ;;  %v10838_v1 = vld [vmem:[#allocation3_spill] sm:$0xff]  ;;  %v10841_v59 = vld [vmem:[#allocation49_spill] sm:$0xff]  ;;  %vm1943_vm0 = vcmp.ge.f32.partialorder %v7517_v25, 0.0 }
 0x282   :  { %10836 = vst [vmem:[#allocation102_spill] sm:$0xff] %v7857_v30  ;;  %v1189_v12 = vadd.f32 %v7590_v42, %v10837_v17  ;;  %v2088_v20 = vmul.f32 %v2024_v63, %v10812_v24  ;;  %5549 = vmatprep.subr.bf16.mxu0 %v10838_v1  ;;  %v10839_v21 = vld [vmem:[#allocation131_spill] sm:$0xff]  ;;  %v2065_v3 = vsel %vm1937_vm12, %v7336_v7, %v7414_v14  ;;  %v7877_v23 = vld [vmem:[%s10221_s2 + $0xb0] sm:$0xff]  ;;  %vm1298_vm2 = vcmp.ge.f32.partialorder %v7600_v57, 0.0  ;;  %v10844_v7 = vld [vmem:[#allocation54_spill] sm:$0xff] }
 0x283   :  { %1575 = vmatprep.mubr.bf16.mxu0 %v10834_v40  ;;  %v7868_v58 = vmul.f32 %v2061_v44, %v10839_v21  ;;  %v1836_v15 = vadd.f32 %v7714_v62, %v10841_v59  ;;  %v2090_v63 = vmul.f32 %v2026_v45, %v10813_v50  ;;  %4766 = vrot.lane.b32.xlu0 %v10842_v11, %s6302_s1  ;;  %v10845_v41 = vld [vmem:[#allocation136_spill] sm:$0xff]  ;;  %v1315_v44 = vmul.f32 0.2, %v1187_v16  ;;  %v10848_v50 = vld [vmem:[#allocation2_spill] sm:$0xff]  ;;  %v10854_v48 = vld [vmem:[#allocation7_spill] sm:$0xff] }
 0x284   :  { %v7887_v40 = vmul.f32 %v1412_v34, %v10839_v21  ;;  %v1838_v14 = vadd.f32 %v7714_v62, %v10844_v7  ;;  %6162 = vset.pattern.permute.xlu1 %v10637_v32  ;;  %v7897_v17 = vmul.f32 %v1418_v37, %v10845_v41  ;;  %v7900_v59 = vmul.f32 %v2067_v46, %v10845_v41  ;;  %v7905_v34 = vld [vmem:[%s10221_s2 + $0xb8] sm:$0xff]  ;;  %v10849_v7 = vld [vmem:[#allocation135_spill] sm:$0xff]  ;;  %v10852_v45 = vld [vmem:[#allocation58_spill] sm:$0xff] }
 0x285   :  { %10840 = vst [vmem:[#allocation103_spill] sm:$0xff] %v7868_v58  ;;  %v2152_v21 = vpack.c.bf16 %v2090_v63, %v2088_v20  ;;  %5550 = vmatpush3.bf16.msra.mxu0 %v10848_v50  ;;  %2370 = vperm.xlu1 %6162, %v10842_v11   ;;  %v7910_v24 = vmul.f32 %v2065_v3, %v10849_v7  ;;  %v7913_v37 = vunpack.c.h.bf16 %v7877_v23  ;;  %v10853_v41 = vld [vmem:[#allocation68_spill] sm:$0xff]  ;;  %vm1251_vm3 = vcmp.ge.f32.partialorder %v1187_v16, 0.0  ;;  %v10855_v63 = vld [vmem:[#allocation26_spill] sm:$0xff]  ;;  %v10866_v26 = vld [vmem:[#allocation25_spill] sm:$0xff] }
 0x286   :  { %10843 = vst [vmem:[#allocation147_spill] sm:$0xff] %v7887_v40  ;;  %10846 = vst [vmem:[#allocation148_spill] sm:$0xff] %v7897_v17  ;;  %v1191_v46 = vadd.f32 %v7590_v42, %v10852_v45  ;;  %v1193_v17 = vadd.f32 %v7590_v42, %v10853_v41  ;;  %v1317_v58 = vmul.f32 0.2, %v1189_v12  ;;  %5551 = vmatprep.subr.bf16.mxu0 %v10854_v48  ;;  %vm1253_vm4 = vcmp.ge.f32.partialorder %v1189_v12, 0.0  ;;  %v10857_v45 = vld [vmem:[#allocation61_spill] sm:$0xff] }
 0x287   :  { %10847 = vst [vmem:[#allocation160_spill] sm:$0xff] %v7900_v59  ;;  %10850 = vst [vmem:[#allocation140_spill] sm:$0xff] %v7910_v24  ;;  %v1964_v20 = vmul.f32 0.2, %v1836_v15  ;;  %2217 = vmatmul.mubr.bf16.vlgmr.msra.gmra.mrb[48].mxu1 %v2152_v21  ;;  %4770 = vrot.lane.b32.xlu0 %v10855_v63, %s6302_s1  ;;  %v7923_v3 = vunpack.c.h.bf16 %v7905_v34  ;;  %v7929_v11 = vsel %vm1292_vm13, %v7426_v54, %v7482_v56  ;;  %vm1900_vm5 = vcmp.ge.f32.partialorder %v1836_v15, 0.0  ;;  %v10859_v4 = vld [vmem:[#allocation60_spill] sm:$0xff] }
 0x288   :  { %10851 = vst [vmem:[#allocation161_spill] sm:$0xff] %v7913_v37  ;;  %v1840_v41 = vadd.f32 %v7714_v62, %v10857_v45  ;;  %v1966_v7 = vmul.f32 0.2, %v1838_v14  ;;  %5660 = vmatpush3.bf16.msra.mxu1 %v10833_v22  ;;  %v10858_v21 = vpack.c.bf16 %v7446_v10, %v7443_v31  ;;  %v1842_v43 = vadd.f32 %v7714_v62, %v10859_v4  ;;  %v10860_v56 = vld [vmem:[#allocation8_spill] sm:$0xff]  ;;  %v10861_v45 = vld [vmem:[#allocation170_spill] sm:$0xff]  ;;  %v10862_v40 = vld [vmem:[#allocation5_spill] sm:$0xff] }
 0x289   :  { %10856 = vst [vmem:[#allocation149_spill] sm:$0xff] %v7923_v3  ;;  %vm1902_vm6 = vcmp.ge.f32.partialorder %v1838_v14, 0.0  ;;  %5661 = vmatprep.subr.bf16.mxu1 %v10838_v1  ;;  %v1379_v54 = vsel %vm1251_vm3, %v1187_v16, %v1315_v44  ;;  %5552 = vmatpush3.bf16.msra.mxu0 %v10860_v56  ;;  %v7948_v22 = vsel %vm1941_vm15, %v7433_v60, %v10861_v45  ;;  %vm1255_vm9 = vcmp.ge.f32.partialorder %v1191_v46, 0.0  ;;  %v10863_v4 = vld [vmem:[#allocation23_spill] sm:$0xff]  ;;  %v10865_v44 = vld [vmem:[#allocation93_spill] sm:$0xff] }
 0x28a   :  { %2224 = vmatprep.mubr.bf16.mxu1 %v10858_v21  ;;  %v1319_v31 = vmul.f32 0.2, %v1191_v46  ;;  %v1321_v10 = vmul.f32 0.2, %v1193_v17  ;;  %v1381_v21 = vsel %vm1253_vm4, %v1189_v12, %v1317_v58  ;;  %5553 = vmatprep.subr.bf16.mxu0 %v10862_v40  ;;  %vm1257_vm7 = vcmp.ge.f32.partialorder %v1193_v17, 0.0  ;;  %v10864_v1 = vld [vmem:[#allocation167_spill] sm:$0xff] }
 0x28b   :  { %2374 = vperm.xlu1 %6162, %v10863_v4   ;;  %v1443_v16 = vmul.f32 %v1379_v54, %v10864_v1  ;;  %v1445_v24 = vmul.f32 %v1381_v21, %v10865_v44  ;;  %v2028_v59 = vsel %vm1900_vm5, %v1836_v15, %v1964_v20  ;;  %4774 = vrot.lane.b32.xlu0 %v10866_v26, %s6302_s1  ;;  %v10867_v60 = vld [vmem:[#allocation59_spill] sm:$0xff]  ;;  %v1968_v30 = vmul.f32 0.2, %v1840_v41  ;;  %v10868_v20 = vld [vmem:[#allocation6_spill] sm:$0xff] }
 0x28c   :  { %v7960_v45 = vadd.f32 %v7590_v42, %v10867_v60  ;;  %5662 = vmatpush3.bf16.msra.mxu1 %v10848_v50  ;;  %v2030_v12 = vsel %vm1902_vm6, %v1838_v14, %v1966_v7  ;;  %v2092_v58 = vmul.f32 %v2028_v59, %v10864_v1  ;;  %vm1904_vm8 = vcmp.ge.f32.partialorder %v1840_v41, 0.0  ;;  %v7971_v60 = vld [vmem:[%s10221_s2 + $0xc8] sm:$0xff]  ;;  %v10887_v1 = vld [vmem:[#allocation12_spill] sm:$0xff] }
 0x28d   :  { %v1970_v54 = vmul.f32 0.2, %v1842_v43  ;;  %5663 = vmatprep.subr.bf16.mxu1 %v10854_v48  ;;  %v1505_v21 = vpack.c.bf16 %v1445_v24, %v1443_v16  ;;  %v2094_v15 = vmul.f32 %v2030_v12, %v10865_v44  ;;  %5554 = vmatpush3.bf16.msra.mxu0 %v10868_v20  ;;  %v10869_v0 = vld [vmem:[#allocation63_spill] sm:$0xff]  ;;  %vm1906_vm10 = vcmp.ge.f32.partialorder %v1842_v43, 0.0  ;;  %v10873_v12 = vld [vmem:[#allocation137_spill] sm:$0xff]  ;;  %v10882_v44 = vld [vmem:[#allocation116_spill] sm:$0xff] }
 0x28e   :  { %v1197_v50 = vadd.f32 %v7590_v42, %v10869_v0  ;;  %v10870_v14 = vld [vmem:[#allocation11_spill] sm:$0xff]  ;;  %v1383_v59 = vsel %vm1255_vm9, %v1191_v46, %v1319_v31  ;;  %v1385_v48 = vsel %vm1257_vm7, %v1193_v17, %v1321_v10  ;;  %v2071_v0 = vsel %vm1943_vm0, %v7517_v25, %v10873_v12  ;;  %v10875_v10 = vld [vmem:[#allocation65_spill] sm:$0xff]  ;;  %v10881_v12 = vld [vmem:[#allocation94_spill] sm:$0xff] }
 0x28f   :  { %5555 = vmatprep.subr.bf16.mxu0 %v10870_v14  ;;  %6163 = vset.pattern.permute.xlu1 %v10639_v47  ;;  %v2154_v24 = vpack.c.bf16 %v2094_v15, %v2092_v58  ;;  %v10871_v7 = vld [vmem:[#allocation115_spill] sm:$0xff]  ;;  %v1426_v46 = vsel %vm1298_vm2, %v7600_v57, %v7655_v6  ;;  %v1846_v58 = vadd.f32 %v7714_v62, %v10875_v10  ;;  %v10877_v15 = vld [vmem:[#allocation168_spill] sm:$0xff]  ;;  %v8001_v25 = vunpack.c.h.bf16 %v7971_v60  ;;  %v10880_v57 = vld [vmem:[#allocation18_spill] sm:$0xff] }
 0x290   :  { %1576 = vmatmul.mubr.bf16.gmra.mrb[20].mxu0 %v1505_v21  ;;  %3023 = vperm.xlu1 %6163, %v10863_v4   ;;  %v7981_v16 = vunpack.c.l.bf16 %v10871_v7  ;;  %v10874_v17 = vld [vmem:[#allocation55_spill] sm:$0xff]  ;;  %v10876_v21 = vld [vmem:[#allocation169_spill] sm:$0xff]  ;;  %v2032_v4 = vsel %vm1904_vm8, %v1840_v41, %v1968_v30  ;;  %v1447_v6 = vmul.f32 %v1383_v59, %v10880_v57  ;;  %v2034_v10 = vsel %vm1906_vm10, %v1842_v43, %v1970_v54 }
 0x291   :  { %v1844_v31 = vadd.f32 %v7714_v62, %v10874_v17  ;;  %5664 = vmatpush3.bf16.msra.mxu1 %v10860_v56  ;;  %v10878_v7 = vpack.c.bf16 %v10876_v21, %v10877_v15  ;;  %10879 = vst [vmem:[#allocation162_spill] sm:$0xff] %v8001_v25  ;;  %v1449_v17 = vmul.f32 %v1385_v48, %v10881_v12  ;;  %v8008_v56 = vunpack.c.l.bf16 %v10882_v44  ;;  %v10885_v30 = vld [vmem:[#allocation171_spill] sm:$0xff]  ;;  %v10890_v54 = vld [vmem:[#allocation9_spill] sm:$0xff] }
 0x292   :  { %10872 = vst [vmem:[#allocation150_spill] sm:$0xff] %v7981_v16  ;;  %2225 = vmatmul.mubr.bf16.gmra.mrb[52].mxu1 %v2154_v24  ;;  %5665 = vmatprep.subr.bf16.mxu1 %v10862_v40  ;;  %v1323_v21 = vmul.f32 0.2, %v7960_v45  ;;  %v1325_v15 = vmul.f32 0.2, %v1197_v50  ;;  %v8017_v40 = vmul.f32 %v7929_v11, %v7913_v37  ;;  %v8020_v59 = vmul.f32 %v2071_v0, %v7923_v3  ;;  %v10891_v11 = vld [vmem:[#allocation30_spill] sm:$0xff] }
 0x293   :  { %1583 = vmatprep.mubr.bf16.mxu0 %v10878_v7  ;;  %10883 = vst [vmem:[#allocation50_spill] sm:$0xff] %v8008_v56  ;;  %v10884_v7 = vld [vmem:[#allocation142_spill] sm:$0xff]  ;;  %5556 = vmatpush3.bf16.msra.mxu0 %v10887_v1  ;;  %vm1259_vm11 = vcmp.ge.f32.partialorder %v7960_v45, 0.0  ;;  %vm1261_vm12 = vcmp.ge.f32.partialorder %v1197_v50, 0.0  ;;  %v2096_v43 = vmul.f32 %v2032_v4, %v10880_v57  ;;  %v2098_v44 = vmul.f32 %v2034_v10, %v10881_v12  ;;  %v10930_v3 = vld [vmem:[#allocation73_spill] sm:$0xff]  ;;  %v10961_v16 = vld [vmem:[#allocation164_spill] sm:$0xff] }
 0x294   :  { %v10886_v41 = vpack.c.bf16 %v10884_v7, %v10885_v30  ;;  %10888 = vst [vmem:[#allocation151_spill] sm:$0xff] %v8017_v40  ;;  %10889 = vst [vmem:[#allocation163_spill] sm:$0xff] %v8020_v59  ;;  %5557 = vmatprep.subr.bf16.mxu0 %v10890_v54  ;;  %v1972_v48 = vmul.f32 0.2, %v1844_v31  ;;  %v1974_v24 = vmul.f32 0.2, %v1846_v58  ;;  %v8026_v7 = vpop.permute.xlu0 %1112  ;;  %4778 = vrot.lane.b32.xlu0 %v10891_v11, %s6302_s1 }
 0x295   :  { %5666 = vmatpush3.bf16.msra.mxu1 %v10868_v20  ;;  %v8033_v0 = vmul.f32 %v7948_v22, %v7913_v37  ;;  %v8036_v30 = vmul.f32 %v1426_v46, %v8001_v25  ;;  %v10894_v4 = vld [vmem:[#allocation62_spill] sm:$0xff]  ;;  %vm1908_vm13 = vcmp.ge.f32.partialorder %v1844_v31, 0.0  ;;  %vm1910_vm14 = vcmp.ge.f32.partialorder %v1846_v58, 0.0  ;;  %6165 = vset.pattern.permute.xlu1 %v10637_v32  ;;  %v10895_v20 = vld [vmem:[#allocation76_spill] sm:$0xff]  ;;  %v10901_v25 = vld [vmem:[#allocation15_spill] sm:$0xff] }
 0x296   :  { %2232 = vmatprep.mubr.bf16.mxu1 %v10886_v41  ;;  %v1199_v10 = vadd.f32 %v7590_v42, %v10894_v4  ;;  %5667 = vmatprep.subr.bf16.mxu1 %v10870_v14  ;;  %v1507_v41 = vpack.c.bf16 %v1449_v17, %v1447_v6  ;;  %v1201_v12 = vadd.f32 %v7590_v42, %v10895_v20  ;;  %v10896_v57 = vld [vmem:[#allocation10_spill] sm:$0xff]  ;;  %v10897_v37 = vld [vmem:[#allocation28_spill] sm:$0xff]  ;;  %v10898_v4 = vld [vmem:[#allocation121_spill] sm:$0xff] }
 0x297   :  { %10892 = vst [vmem:[#allocation53_spill] sm:$0xff] %v8033_v0  ;;  %10893 = vst [vmem:[#allocation104_spill] sm:$0xff] %v8036_v30  ;;  %5558 = vmatpush3.bf16.msra.mxu0 %v10896_v57  ;;  %v1387_v22 = vsel %vm1259_vm11, %v7960_v45, %v1323_v21  ;;  %v1389_v46 = vsel %vm1261_vm12, %v1197_v50, %v1325_v15  ;;  %2382 = vperm.xlu1 %6165, %v10897_v37   ;;  %v8051_v30 = vunpack.c.l.bf16 %v10898_v4  ;;  %v10900_v14 = vld [vmem:[#allocation64_spill] sm:$0xff]  ;;  %v10902_v20 = vld [vmem:[#allocation122_spill] sm:$0xff] }
 0x298   :  { %v1848_v6 = vadd.f32 %v7714_v62, %v10900_v14  ;;  %1584 = vmatmul.mubr.bf16.gmra.mrb[24].mxu0 %v1507_v41  ;;  %v2156_v17 = vpack.c.bf16 %v2098_v44, %v2096_v43  ;;  %5559 = vmatprep.subr.bf16.mxu0 %v10901_v25  ;;  %v8057_v40 = vunpack.c.l.bf16 %v10902_v20  ;;  %v10904_v21 = vld [vmem:[#allocation78_spill] sm:$0xff]  ;;  %v10905_v15 = vld [vmem:[#allocation155_spill] sm:$0xff]  ;;  %v2036_v41 = vsel %vm1908_vm13, %v1844_v31, %v1972_v48 }
 0x299   :  { %10899 = vst [vmem:[#allocation107_spill] sm:$0xff] %v8051_v30  ;;  %v1850_v50 = vadd.f32 %v7714_v62, %v10904_v21  ;;  %5668 = vmatpush3.bf16.msra.mxu1 %v10887_v1  ;;  %v10906_v4 = vld [vmem:[#allocation154_spill] sm:$0xff]  ;;  %v2038_v43 = vsel %vm1910_vm14, %v1846_v58, %v1974_v24  ;;  %v10908_v44 = vld [vmem:[#allocation123_spill] sm:$0xff]  ;;  %v10910_v20 = vsub.s32 2, %v6853_v52  ;;  %v10912_v1 = vld [vmem:[#allocation144_spill] sm:$0xff]  ;;  %v10915_v31 = vsub.s32 3, %v6853_v52 }
 0x29a   :  { %10903 = vst [vmem:[#allocation22_spill] sm:$0xff] %v8057_v40  ;;  %v10907_v37 = vpack.c.bf16 %v10905_v15, %v10906_v4  ;;  %v8070_v14 = vunpack.c.l.bf16 %v10908_v44  ;;  %2233 = vmatmul.mubr.bf16.gmra.mrb[56].mxu1 %v2156_v17  ;;  %5669 = vmatprep.subr.bf16.mxu1 %v10890_v54  ;;  %v1451_v21 = vmul.f32 %v1387_v22, %v10912_v1  ;;  %v10913_v0 = vld [vmem:[#allocation138_spill] sm:$0xff]  ;;  %v1327_v4 = vmul.f32 0.2, %v1199_v10  ;;  %v8092_v44 = vpop.permute.xlu0 %1117  ;;  %v10918_v54 = vld [vmem:[#allocation143_spill] sm:$0xff] }
 0x29b   :  { %v8075_v45 = vrot.slane %v7533_v27, %v10910_v20  ;;  %v1453_v15 = vmul.f32 %v1389_v46, %v10913_v0  ;;  %v8086_v58 = vrot.slane %v7533_v27, %v10915_v31  ;;  %v10917_v48 = vld [vmem:[#allocation70_spill] sm:$0xff]  ;;  %v1329_v17 = vmul.f32 0.2, %v1201_v12  ;;  %v10919_v22 = vld [vmem:[#allocation95_spill] sm:$0xff]  ;;  %v10921_v46 = vld [vmem:[#allocation16_spill] sm:$0xff]  ;;  %6166 = vset.pattern.permute.xlu1 %v10639_v47 }
 0x29c   :  { %1591 = vmatprep.mubr.bf16.mxu0 %v10907_v37  ;;  %10909 = vst [vmem:[#allocation108_spill] sm:$0xff] %v8070_v14  ;;  %v8081_v37 = vunpack.c.l.bf16 %v7877_v23  ;;  %v8090_v24 = vadd.f32 %v7590_v42, %v10917_v48  ;;  %v10920_v20 = vpack.c.bf16 %v10918_v54, %v10919_v22  ;;  %5560 = vmatpush3.bf16.msra.mxu0 %v10921_v46  ;;  %vm1263_vm15 = vcmp.ge.f32.partialorder %v1199_v10, 0.0  ;;  %v10922_v23 = vld [vmem:[#allocation13_spill] sm:$0xff]  ;;  %v10923_v31 = vld [vmem:[#allocation66_spill] sm:$0xff] }
 0x29d   :  { %10911 = vst [vmem:[#allocation152_spill] sm:$0xff] %v8075_v45  ;;  %10916 = vst [vmem:[#allocation48_spill] sm:$0xff] %v8086_v58  ;;  %vm1265_vm1 = vcmp.ge.f32.partialorder %v1201_v12, 0.0  ;;  %v2100_v52 = vmul.f32 %v2036_v41, %v10912_v1  ;;  %v2102_v27 = vmul.f32 %v2038_v43, %v10913_v0  ;;  %5561 = vmatprep.subr.bf16.mxu0 %v10922_v23  ;;  %v1976_v58 = vmul.f32 0.2, %v1848_v6  ;;  %v10925_v22 = vld [vmem:[#allocation29_spill] sm:$0xff] }
 0x29e   :  { %10914 = vst [vmem:[#allocation109_spill] sm:$0xff] %v8081_v37  ;;  %2240 = vmatprep.mubr.bf16.mxu1 %v10920_v20  ;;  %v1205_v48 = vadd.f32 %v7590_v42, %v10923_v31  ;;  %v10924_v37 = vld [vmem:[#allocation67_spill] sm:$0xff]  ;;  %v1978_v54 = vmul.f32 0.2, %v1850_v50  ;;  %5670 = vmatpush3.bf16.msra.mxu1 %v10896_v57  ;;  %v10926_v20 = vld [vmem:[#allocation86_spill] sm:$0xff]  ;;  %vm1912_vm0 = vcmp.ge.f32.partialorder %v1848_v6, 0.0  ;;  %v1509_v43 = vpack.c.bf16 %v1453_v15, %v1451_v21  ;;  %v8139_v30 = vpop.permute.xlu0 %1132 }
 0x29f   :  { %v8105_v59 = vadd.f32 %v7590_v42, %v10924_v37  ;;  %4782 = vrot.lane.b32.xlu0 %v10925_v22, %s6302_s1  ;;  %v8112_v41 = vadd.f32 %v7590_v42, %v10926_v20  ;;  %vm1914_vm2 = vcmp.ge.f32.partialorder %v1850_v50, 0.0  ;;  %5671 = vmatprep.subr.bf16.mxu1 %v10901_v25  ;;  %v10927_v37 = vld [vmem:[#allocation80_spill] sm:$0xff]  ;;  %v10928_v0 = vld [vmem:[#allocation71_spill] sm:$0xff]  ;;  %v10929_v1 = vld [vmem:[#allocation14_spill] sm:$0xff]  ;;  %v1391_v20 = vsel %vm1263_vm15, %v1199_v10, %v1327_v4 }
 0x2a0   :  { %v8118_v31 = vadd.f32 %v7590_v42, %v10927_v37  ;;  %v8122_v57 = vadd.f32 %v7590_v42, %v10928_v0  ;;  %5562 = vmatpush3.bf16.msra.mxu0 %v10929_v1  ;;  %v1393_v14 = vsel %vm1265_vm1, %v1201_v12, %v1329_v17  ;;  %v8129_v25 = vadd.f32 %v7590_v42, %v10930_v3  ;;  %v10931_v21 = vld [vmem:[#allocation91_spill] sm:$0xff]  ;;  %v10932_v37 = vld [vmem:[#allocation72_spill] sm:$0xff]  ;;  %v10933_v45 = vld [vmem:[#allocation74_spill] sm:$0xff] }
 0x2a1   :  { %v8133_v15 = vadd.f32 %v7590_v42, %v10931_v21  ;;  %v1852_v40 = vadd.f32 %v7714_v62, %v10932_v37  ;;  %1592 = vmatmul.mubr.bf16.gmra.mrb[28].mxu0 %v1509_v43  ;;  %v2158_v0 = vpack.c.bf16 %v2102_v27, %v2100_v52  ;;  %v1854_v56 = vadd.f32 %v7714_v62, %v10933_v45  ;;  %v10936_v17 = vld [vmem:[#allocation88_spill] sm:$0xff]  ;;  %v10937_v45 = vld [vmem:[#allocation157_spill] sm:$0xff]  ;;  %v10945_v37 = vld [vmem:[#allocation166_spill] sm:$0xff] }
 0x2a2   :  { %5672 = vmatpush3.bf16.msra.mxu1 %v10921_v46  ;;  %v10934_v3 = vpack.c.bf16 %v7609_v33, %v7606_v2  ;;  %v2040_v12 = vsel %vm1912_vm0, %v1848_v6, %v1976_v58  ;;  %v2042_v10 = vsel %vm1914_vm2, %v1850_v50, %v1978_v54  ;;  %v8148_v4 = vunpack.c.l.bf16 %v7905_v34  ;;  %v10938_v27 = vld [vmem:[#allocation17_spill] sm:$0xff]  ;;  %3027 = vperm.xlu1 %6166, %v10855_v63  }
 0x2a3   :  { %v8152_v52 = vadd.f32 %v7590_v42, %v10936_v17  ;;  %2241 = vmatmul.mubr.bf16.gmra.mrb[60].mxu1 %v2158_v0  ;;  %5673 = vmatprep.subr.bf16.mxu1 %v10922_v23  ;;  %v1455_v46 = vmul.f32 %v1391_v20, %v10937_v45  ;;  %v1457_v43 = vmul.f32 %v1393_v14, %v10938_v27  ;;  %v8158_v33 = vunpack.c.l.bf16 %v7971_v60  ;;  %v10940_v2 = vld [vmem:[#allocation101_spill] sm:$0xff]  ;;  %v10942_v23 = vld [vmem:[#allocation156_spill] sm:$0xff]  ;;  %v10944_v20 = vld [vmem:[#allocation34_spill] sm:$0xff] }
 0x2a4   :  { %1599 = vmatprep.mubr.bf16.mxu0 %v10934_v3  ;;  %10935 = vst [vmem:[#allocation4_spill] sm:$0xff] %v8148_v4  ;;  %v8162_v6 = vadd.f32 %v7590_v42, %v10940_v2  ;;  %v10941_v34 = vld [vmem:[#allocation141_spill] sm:$0xff]  ;;  %v1331_v58 = vmul.f32 0.2, %v8090_v24  ;;  %v1333_v54 = vmul.f32 0.2, %v1205_v48  ;;  %v10943_v21 = vpack.c.bf16 %v7623_v29, %v10942_v23  ;;  %4786 = vrot.lane.b32.xlu0 %v10944_v20, %s6302_s1 }
 0x2a5   :  { %10939 = vst [vmem:[#allocation114_spill] sm:$0xff] %v8158_v33  ;;  %v8166_v50 = vadd.f32 %v7590_v42, %v10941_v34  ;;  %vm1267_vm3 = vcmp.ge.f32.partialorder %v8090_v24, 0.0  ;;  %vm1269_vm4 = vcmp.ge.f32.partialorder %v1205_v48, 0.0  ;;  %v2104_v60 = vmul.f32 %v2040_v12, %v10937_v45  ;;  %v10947_v3 = vld [vmem:[#allocation69_spill] sm:$0xff]  ;;  %v10948_v12 = vld [vmem:[#allocation87_spill] sm:$0xff]  ;;  %v10954_v20 = vld [vmem:[#allocation90_spill] sm:$0xff] }
 0x2a6   :  { %2248 = vmatprep.mubr.bf16.mxu1 %v10943_v21  ;;  %v2106_v14 = vmul.f32 %v2042_v10, %v10938_v27  ;;  %v8180_v0 = vadd.f32 %v7590_v42, %v10945_v37  ;;  %v8184_v29 = vadd.f32 %v7714_v62, %v10947_v3  ;;  %v1980_v17 = vmul.f32 0.2, %v1852_v40  ;;  %5674 = vmatpush3.bf16.msra.mxu1 %v10929_v1  ;;  %v10949_v34 = vld [vmem:[#allocation81_spill] sm:$0xff]  ;;  %v10950_v21 = vld [vmem:[#allocation84_spill] sm:$0xff]  ;;  %v8197_v3 = vpop.permute.xlu0 %1137 }
 0x2a7   :  { %v1982_v2 = vmul.f32 0.2, %v1854_v56  ;;  %v1858_v10 = vadd.f32 %v7714_v62, %v10948_v12  ;;  %vm1916_vm5 = vcmp.ge.f32.partialorder %v1852_v40, 0.0  ;;  %vm1918_vm6 = vcmp.ge.f32.partialorder %v1854_v56, 0.0  ;;  %v10951_v12 = vld [vmem:[#allocation75_spill] sm:$0xff]  ;;  %6167 = vset.pattern.permute.xlu1 %v10637_v32 }
 0x2a8   :  { %10946 = vst [vmem:[#allocation52_spill] sm:$0xff] %v8180_v0  ;;  %v1511_v63 = vpack.c.bf16 %v1457_v43, %v1455_v46  ;;  %v8191_v23 = vadd.f32 %v7714_v62, %v10949_v34  ;;  %v8195_v37 = vadd.f32 %v7714_v62, %v10950_v21  ;;  %v1395_v1 = vsel %vm1267_vm3, %v8090_v24, %v1331_v58  ;;  %v10952_v46 = vld [vmem:[#allocation92_spill] sm:$0xff]  ;;  %v10953_v34 = vld [vmem:[#allocation89_spill] sm:$0xff] }
 0x2a9   :  { %v1397_v27 = vsel %vm1269_vm4, %v1205_v48, %v1333_v54  ;;  %v8205_v45 = vadd.f32 %v7714_v62, %v10951_v12  ;;  %v8209_v43 = vadd.f32 %v7714_v62, %v10952_v46  ;;  %v8213_v21 = vadd.f32 %v7714_v62, %v10953_v34  ;;  %v10955_v24 = vld [vmem:[#allocation77_spill] sm:$0xff]  ;;  %2386 = vperm.xlu1 %6167, %v10866_v26  }
 0x2aa   :  { %1600 = vmatmul.mubr.bf16.gmra.mrb[32].mxu0 %v1511_v63  ;;  %v2160_v33 = vpack.c.bf16 %v2106_v14, %v2104_v60  ;;  %v8217_v4 = vadd.f32 %v7714_v62, %v10954_v20  ;;  %v8221_v48 = vadd.f32 %v7714_v62, %v10955_v24  ;;  %v10956_v58 = vpack.c.bf16 %v7672_v55, %v7669_v51  ;;  %v10957_v46 = vld [vmem:[#allocation133_spill] sm:$0xff]  ;;  %v10959_v20 = vld [vmem:[#allocation96_spill] sm:$0xff] }
 0x2ab   :  { %v2044_v54 = vsel %vm1916_vm5, %v1852_v40, %v1980_v17  ;;  %v2046_v12 = vsel %vm1918_vm6, %v1854_v56, %v1982_v2  ;;  %v8230_v63 = vadd.f32 %v7714_v62, %v10957_v46  ;;  %v10958_v60 = vld [vmem:[#allocation153_spill] sm:$0xff]  ;;  %v1459_v34 = vmul.f32 %v1395_v1, %v10959_v20  ;;  %v10964_v1 = vld [vmem:[#allocation79_spill] sm:$0xff] }
 0x2ac   :  { %1607 = vmatprep.mubr.bf16.mxu0 %v10956_v58  ;;  %v8234_v14 = vadd.f32 %v7714_v62, %v10958_v60  ;;  %2249 = vmatmul.mubr.bf16.gmra.mrb[64].mxu1 %v2160_v33  ;;  %v10960_v24 = vld [vmem:[#allocation97_spill] sm:$0xff]  ;;  %v8240_v51 = vadd.f32 %v7714_v62, %v10961_v16  ;;  %vm1271_vm9 = vcmp.ge.f32.partialorder %v8105_v59, 0.0  ;;  %v1335_v55 = vmul.f32 0.2, %v8105_v59 }
 0x2ad   :  { %v1461_v22 = vmul.f32 %v1397_v27, %v10960_v24  ;;  %v1337_v56 = vmul.f32 0.2, %v8112_v41  ;;  %v10962_v40 = vpack.c.bf16 %v7679_v49, %v7675_v35  ;;  %vm1273_vm7 = vcmp.ge.f32.partialorder %v8112_v41, 0.0  ;;  %v8260_v49 = vpop.permute.xlu0 %1793  ;;  %v10963_v2 = vld [vmem:[#allocation33_spill] sm:$0xff] }
 0x2ae   :  { %vm1275_vm8 = vcmp.ge.f32.partialorder %v8118_v31, 0.0  ;;  %v2108_v27 = vmul.f32 %v2044_v54, %v10959_v20  ;;  %v2110_v16 = vmul.f32 %v2046_v12, %v10960_v24  ;;  %vm1277_vm10 = vcmp.ge.f32.partialorder %v8122_v57, 0.0  ;;  %4790 = vrot.lane.b32.xlu0 %v10963_v2, %s6302_s1 }
 0x2af   :  { %2256 = vmatprep.mubr.bf16.mxu1 %v10962_v40  ;;  %v1984_v33 = vmul.f32 0.2, %v8184_v29  ;;  %v1986_v17 = vmul.f32 0.2, %v1858_v10  ;;  %v8258_v35 = vadd.f32 %v7590_v42, %v8026_v7  ;;  %vm1920_vm11 = vcmp.ge.f32.partialorder %v8184_v29, 0.0 }
 0x2b0   :  { %vm1922_vm12 = vcmp.ge.f32.partialorder %v1858_v10, 0.0  ;;  %v8267_v26 = vadd.f32 %v10964_v1, %v8026_v7  ;;  %v1513_v58 = vpack.c.bf16 %v1461_v22, %v1459_v34  ;;  %v1339_v54 = vmul.f32 0.2, %v8118_v31  ;;  %v10965_v34 = vld [vmem:[#allocation27_spill] sm:$0xff] }
 0x2b1   :  { %v1341_v12 = vmul.f32 0.2, %v8122_v57  ;;  %v1399_v46 = vsel %vm1271_vm9, %v8105_v59, %v1335_v55  ;;  %v1401_v60 = vsel %vm1273_vm7, %v8112_v41, %v1337_v56  ;;  %v8278_v40 = vmul.f32 0.2, %v8129_v25  ;;  %2390 = vperm.xlu1 %6167, %v10965_v34  }
 0x2b2   :  { %v8281_v24 = vmul.f32 0.2, %v8133_v15  ;;  %v8284_v7 = vmul.f32 0.2, %v8152_v52  ;;  %1608 = vmatmul.mubr.bf16.gmra.mrb[36].mxu0 %v1513_v58  ;;  %v2162_v22 = vpack.c.bf16 %v2110_v16, %v2108_v27  ;;  %v8288_v20 = vmul.f32 0.2, %v8162_v6 }
 0x2b3   :  { %v8291_v59 = vmul.f32 0.2, %v8166_v50  ;;  %v10967_v41 = vpack.c.bf16 %v7737_v36, %v7734_v19  ;;  %v2048_v55 = vsel %vm1920_vm11, %v8184_v29, %v1984_v33  ;;  %v2050_v56 = vsel %vm1922_vm12, %v1858_v10, %v1986_v17  ;;  %v10968_v27 = vld [vmem:[#allocation38_spill] sm:$0xff]  ;;  %v8318_v33 = vpop.permute.xlu0 %1809 }
 0x2b4   :  { %4794 = vrot.lane.b32.xlu0 %v10968_v27, %s6302_s1  ;;  %v8303_v16 = vmul.f32 0.2, %v8180_v0  ;;  %v8307_v58 = vadd.f32 %v7590_v42, %v8092_v44  ;;  %2257 = vmatmul.mubr.bf16.gmra.mrb[68].mxu1 %v2162_v22  ;;  %v1463_v19 = vmul.f32 %v1399_v46, %v7793_v13  ;;  %v1465_v36 = vmul.f32 %v1401_v60, %v7796_v9  ;;  %v10971_v27 = vld [vmem:[#allocation37_spill] sm:$0xff] }
 0x2b5   :  { %10966 = vst [vmem:[#allocation3_spill] sm:$0xff] %v8291_v59  ;;  %1615 = vmatprep.mubr.bf16.mxu0 %v10967_v41  ;;  %vm1924_vm13 = vcmp.ge.f32.partialorder %v8191_v23, 0.0  ;;  %vm1926_vm14 = vcmp.ge.f32.partialorder %v8195_v37, 0.0  ;;  %v1988_v29 = vmul.f32 0.2, %v8191_v23  ;;  %v8316_v10 = vadd.f32 %v10964_v1, %v8092_v44  ;;  %6168 = vset.pattern.permute.xlu1 %v10639_v47 }
 0x2b6   :  { %10969 = vst [vmem:[#allocation49_spill] sm:$0xff] %v8303_v16  ;;  %v10970_v17 = vpack.c.bf16 %v7748_v18, %v7740_v38  ;;  %vm1279_vm15 = vcmp.ge.f32.partialorder %v8129_v25, 0.0  ;;  %vm1281_vm1 = vcmp.ge.f32.partialorder %v8133_v15, 0.0  ;;  %v1990_v46 = vmul.f32 0.2, %v8195_v37  ;;  %3039 = vperm.xlu1 %6168, %v10965_v34  }
 0x2b7   :  { %v8327_v60 = vmul.f32 0.2, %v8205_v45  ;;  %v2112_v22 = vmul.f32 %v2048_v55, %v7793_v13  ;;  %v2114_v44 = vmul.f32 %v2050_v56, %v7796_v9  ;;  %v8333_v41 = vmul.f32 0.2, %v8209_v43  ;;  %v8371_v0 = vpop.permute.xlu0 %1152 }
 0x2b8   :  { %2264 = vmatprep.mubr.bf16.mxu1 %v10970_v17  ;;  %v8336_v38 = vmul.f32 0.2, %v8213_v21  ;;  %v8339_v18 = vmul.f32 0.2, %v8217_v4  ;;  %v1229_v17 = vadd.f32 %v7590_v42, %v8139_v30  ;;  %4798 = vrot.lane.b32.xlu0 %v10971_v27, %s6302_s1  ;;  %vm1928_vm0 = vcmp.ge.f32.partialorder %v8205_v45, 0.0 }
 0x2b9   :  { %vm1930_vm2 = vcmp.ge.f32.partialorder %v8209_v43, 0.0  ;;  %v8349_v55 = vmul.f32 0.2, %v8221_v48  ;;  %v8352_v56 = vmul.f32 0.2, %v8230_v63  ;;  %v1230_v13 = vadd.f32 %v10964_v1, %v8139_v30 }
 0x2ba   :  { %v1515_v9 = vpack.c.bf16 %v1465_v36, %v1463_v19  ;;  %vm1285_vm3 = vcmp.ge.f32.partialorder %v8258_v35, 0.0  ;;  %vm1286_vm4 = vcmp.ge.f32.partialorder %v8267_v26, 0.0  ;;  %v1403_v34 = vsel %vm1275_vm8, %v8118_v31, %v1339_v54  ;;  %v8367_v19 = vpop.permute.xlu1 %1797  ;;  %6169 = vset.pattern.permute.xlu1 %v10637_v32 }
 0x2bb   :  { %10972 = vst [vmem:[#allocation21_spill] sm:$0xff] %v8352_v56  ;;  %v1405_v27 = vsel %vm1277_vm10, %v8122_v57, %v1341_v12  ;;  %v1349_v16 = vmul.f32 0.2, %v8258_v35  ;;  %v1350_v2 = vmul.f32 0.2, %v8267_v26  ;;  %vm1287_vm5 = vcmp.ge.f32.partialorder %v8307_v58, 0.0 }
 0x2bc   :  { %1616 = vmatmul.mubr.bf16.gmra.mrb[40].mxu0 %v1515_v9  ;;  %v2164_v30 = vpack.c.bf16 %v2114_v44, %v2112_v22  ;;  %v1351_v36 = vmul.f32 0.2, %v8307_v58  ;;  %v1352_v59 = vmul.f32 0.2, %v8316_v10  ;;  %v10973_v31 = vpack.c.bf16 %v7754_v39, %v7751_v53  ;;  %v10974_v56 = vld [vmem:[#allocation42_spill] sm:$0xff]  ;;  %v10975_v53 = vld [vmem:[#allocation139_spill] sm:$0xff] }
 0x2bd   :  { %v2052_v57 = vsel %vm1924_vm13, %v8191_v23, %v1988_v29  ;;  %v2054_v9 = vsel %vm1926_vm14, %v8195_v37, %v1990_v46  ;;  %v1357_v54 = vmul.f32 0.2, %v1229_v17  ;;  %v1358_v12 = vmul.f32 0.2, %v1230_v13  ;;  %4802 = vrot.lane.b32.xlu0 %v10974_v56, %s6302_s1  ;;  %v10977_v46 = vld [vmem:[#allocation32_spill] sm:$0xff] }
 0x2be   :  { %1623 = vmatprep.mubr.bf16.mxu0 %v10973_v31  ;;  %2265 = vmatmul.mubr.bf16.gmra.mrb[72].mxu1 %v2164_v30  ;;  %v1467_v22 = vmul.f32 %v1403_v34, %v7826_v8  ;;  %v1469_v44 = vmul.f32 %v1405_v27, %v7840_v61  ;;  %v8387_v39 = vmul.f32 0.2, %v8234_v14  ;;  %vm1288_vm6 = vcmp.ge.f32.partialorder %v8316_v10, 0.0 }
 0x2bf   :  { %vm1293_vm9 = vcmp.ge.f32.partialorder %v1229_v17, 0.0  ;;  %vm1294_vm7 = vcmp.ge.f32.partialorder %v1230_v13, 0.0  ;;  %v10976_v23 = vpack.c.bf16 %v7760_v28, %v10975_v53  ;;  %v8395_v37 = vmul.f32 0.2, %v8240_v51  ;;  %2398 = vperm.xlu1 %6169, %v10977_v46   ;;  %v943_v53 = vld [vmem:[%s10221_s2 + $0xc0] sm:$0xff] }
 0x2c0   :  { %v1231_v34 = vadd.f32 %v7590_v42, %v8197_v3  ;;  %v2116_v27 = vmul.f32 %v2052_v57, %v7826_v8  ;;  %v2118_v29 = vmul.f32 %v2054_v9, %v7840_v61  ;;  %v8405_v30 = vsel %vm1285_vm3, %v8258_v35, %v1349_v16  ;;  %v8417_v9 = vpop.permute.xlu1 %1147  ;;  %v10978_v16 = vld [vmem:[#allocation41_spill] sm:$0xff]  ;;  %v8442_v8 = vpop.permute.xlu0 %1157 }
 0x2c1   :  { %2272 = vmatprep.mubr.bf16.mxu1 %v10976_v23  ;;  %v1414_v28 = vsel %vm1286_vm4, %v8267_v26, %v1350_v2  ;;  %v8413_v31 = vsel %vm1287_vm5, %v8307_v58, %v1351_v36  ;;  %v1232_v57 = vadd.f32 %v10964_v1, %v8197_v3  ;;  %vm1283_vm8 = vcmp.ge.f32.partialorder %v8152_v52, 0.0  ;;  %4806 = vrot.lane.b32.xlu0 %v10978_v16, %s6302_s1  ;;  %v10979_v36 = vld [vmem:[#allocation82_spill] sm:$0xff] }
 0x2c2   :  { %vm1932_vm10 = vcmp.ge.f32.partialorder %v8213_v21, 0.0  ;;  %vm1934_vm11 = vcmp.ge.f32.partialorder %v8217_v4, 0.0  ;;  %v8428_v35 = vsel %vm1288_vm6, %v8316_v10, %v1352_v59  ;;  %v8431_v2 = vsel %vm1293_vm9, %v1229_v17, %v1357_v54 }
 0x2c3   :  { %v8434_v3 = vsel %vm1294_vm7, %v1230_v13, %v1358_v12  ;;  %v1517_v26 = vpack.c.bf16 %v1469_v44, %v1467_v22  ;;  %v1880_v58 = vadd.f32 %v7714_v62, %v8260_v49  ;;  %v1881_v23 = vadd.f32 %v10979_v36, %v8260_v49  ;;  %6170 = vset.pattern.permute.xlu1 %v10639_v47  ;;  %v10981_v22 = vld [vmem:[#allocation158_spill] sm:$0xff] }
 0x2c4   :  { %v1407_v59 = vsel %vm1279_vm15, %v8129_v25, %v8278_v40  ;;  %v1409_v13 = vsel %vm1281_vm1, %v8133_v15, %v8281_v24  ;;  %vm1295_vm12 = vcmp.ge.f32.partialorder %v1231_v34, 0.0  ;;  %v1888_v10 = vadd.f32 %v7714_v62, %v8318_v33  ;;  %3043 = vperm.xlu1 %6170, %v10891_v11   ;;  %v10983_v44 = vld [vmem:[#allocation102_spill] sm:$0xff] }
 0x2c5   :  { %1624 = vmatmul.mubr.bf16.gmra.mrb[44].mxu0 %v1517_v26  ;;  %v2166_v17 = vpack.c.bf16 %v2118_v29, %v2116_v27  ;;  %v8455_v49 = vunpack.c.h.bf16 %v943_v53  ;;  %v1359_v54 = vmul.f32 0.2, %v1231_v34  ;;  %v1360_v12 = vmul.f32 0.2, %v1232_v57  ;;  %v10984_v27 = vld [vmem:[#allocation150_spill] sm:$0xff] }
 0x2c6   :  { %v10982_v25 = vpack.c.bf16 %v7799_v5, %v10981_v22  ;;  %v2056_v15 = vsel %vm1928_vm0, %v8205_v45, %v8327_v60  ;;  %v2058_v24 = vsel %vm1930_vm2, %v8209_v43, %v8333_v41  ;;  %vm1296_vm13 = vcmp.ge.f32.partialorder %v1232_v57, 0.0  ;;  %v10985_v26 = vld [vmem:[#allocation46_spill] sm:$0xff]  ;;  %v8475_v45 = vpop.permute.xlu1 %1801  ;;  %v945_v43 = vld [vmem:[%s10221_s2 + $0xd0] sm:$0xff]  ;;  %v10986_v41 = vld [vmem:[#allocation57_spill] sm:$0xff] }
 0x2c7   :  { %10980 = vst [vmem:[#allocation54_spill] sm:$0xff] %v8455_v49  ;;  %v1889_v40 = vadd.f32 %v10979_v36, %v8318_v33  ;;  %2273 = vmatmul.mubr.bf16.gmra.mrb[76].mxu1 %v2166_v17  ;;  %v1471_v5 = vmul.f32 %v1407_v59, %v10983_v44  ;;  %v1473_v29 = vmul.f32 %v1409_v13, %v10984_v27  ;;  %vm1944_vm14 = vcmp.ge.f32.partialorder %v1880_v58, 0.0  ;;  %v10987_v22 = vld [vmem:[#allocation51_spill] sm:$0xff]  ;;  %v10989_v17 = vld [vmem:[#allocation134_spill] sm:$0xff]  ;;  %v946_v13 = vld [vmem:[%s10221_s2 + $0xd8] sm:$0xff] }
 0x2c8   :  { %1631 = vmatprep.mubr.bf16.mxu0 %v10982_v25  ;;  %4810 = vrot.lane.b32.xlu0 %v10985_v26, %s6302_s1  ;;  %v2008_v11 = vmul.f32 0.2, %v1880_v58  ;;  %v2009_v60 = vmul.f32 0.2, %v1881_v23  ;;  %v10988_v33 = vpack.c.bf16 %v10986_v41, %v10987_v22  ;;  %v1478_v59 = vmul.f32 %v1414_v28, %v10989_v17  ;;  %v1173_v41 = vpop.permute.xlu0 %1172  ;;  %v10990_v22 = vld [vmem:[#allocation29_spill] sm:$0xff]  ;;  %v10992_v17 = vld [vmem:[#allocation147_spill] sm:$0xff] }
 0x2c9   :  { %vm1945_vm15 = vcmp.ge.f32.partialorder %v1881_v23, 0.0  ;;  %v2016_v25 = vmul.f32 0.2, %v1888_v10  ;;  %v2120_v46 = vmul.f32 %v2056_v15, %v10983_v44  ;;  %v2122_v61 = vmul.f32 %v2058_v24, %v10984_v27  ;;  %6172 = vset.pattern.permute.xlu1 %v10637_v32 }
 0x2ca   :  { %2280 = vmatprep.mubr.bf16.mxu1 %v10988_v33  ;;  %v8490_v26 = vsel %vm1295_vm12, %v1231_v34, %v1359_v54  ;;  %v8493_v16 = vsel %vm1296_vm13, %v1232_v57, %v1360_v12  ;;  %vm1952_vm1 = vcmp.ge.f32.partialorder %v1888_v10, 0.0  ;;  %v8496_v28 = vunpack.c.l.bf16 %v943_v53  ;;  %2402 = vperm.xlu1 %6172, %v10990_v22   ;;  %v10991_v34 = vld [vmem:[#allocation45_spill] sm:$0xff]  ;;  %v8504_v57 = vpop.permute.xlu1 %1805 }
 0x2cb   :  { %vm1289_vm0 = vcmp.ge.f32.partialorder %v8162_v6, 0.0  ;;  %vm1936_vm2 = vcmp.ge.f32.partialorder %v8221_v48, 0.0  ;;  %vm1938_vm3 = vcmp.ge.f32.partialorder %v8230_v63, 0.0  ;;  %v2017_v15 = vmul.f32 0.2, %v1889_v40 }
 0x2cc   :  { %v1519_v24 = vpack.c.bf16 %v1473_v29, %v1471_v5  ;;  %4814 = vrot.lane.b32.xlu0 %v10991_v34, %s6302_s1  ;;  %v8506_v54 = vunpack.c.h.bf16 %v945_v43  ;;  %v8508_v12 = vunpack.c.h.bf16 %v946_v13  ;;  %v8511_v53 = vsel %vm1944_vm14, %v1880_v58, %v2008_v11  ;;  %v8529_v58 = vld [vmem:[%s10221_s2 + $0xe0] sm:$0xff]  ;;  %v11007_v34 = vld [vmem:[#allocation148_spill] sm:$0xff] }
 0x2cd   :  { %v8514_v33 = vsel %vm1945_vm15, %v1881_v23, %v2009_v60  ;;  %vm1953_vm4 = vcmp.ge.f32.partialorder %v1889_v40, 0.0  ;;  %v1522_v5 = vpack.c.bf16 %v1478_v59, %v10992_v17  ;;  %v8518_v29 = vsel %vm1952_vm1, %v1888_v10, %v2016_v25  ;;  %v8534_v23 = vld [vmem:[%s10221_s2 + $0xe8] sm:$0xff] }
 0x2ce   :  { %10993 = vst [vmem:[#allocation2_spill] sm:$0xff] %v8518_v29  ;;  %v8522_v22 = vadd.f32 %v7590_v42, %v8371_v0  ;;  %1632 = vmatmul.mubr.bf16.gmra.mrb[48].mxu0 %v1519_v24  ;;  %v2168_v27 = vpack.c.bf16 %v2122_v61, %v2120_v46  ;;  %v8524_v44 = vunpack.c.l.bf16 %v945_v43  ;;  %v8538_v10 = vadd.f32 %v10964_v1, %v8371_v0  ;;  %v10995_v60 = vld [vmem:[#allocation107_spill] sm:$0xff] }
 0x2cf   :  { %1639 = vmatprep.mubr.bf16.mxu0 %v1522_v5  ;;  %v1411_v61 = vsel %vm1283_vm8, %v8152_v52, %v8284_v7  ;;  %v2060_v46 = vsel %vm1932_vm10, %v8213_v21, %v8336_v38  ;;  %v2062_v43 = vsel %vm1934_vm11, %v8217_v4, %v8339_v18  ;;  %v8552_v11 = vsel %vm1953_vm4, %v1889_v40, %v2017_v15  ;;  %v2347_v21 = vpop.permute.xlu0 %2346  ;;  %v10997_v38 = vld [vmem:[#allocation99_spill] sm:$0xff]  ;;  %v11004_v15 = vld [vmem:[#allocation50_spill] sm:$0xff] }
 0x2d0   :  { %10994 = vst [vmem:[#allocation58_spill] sm:$0xff] %v8552_v11  ;;  %v1239_v0 = vadd.f32 %v7590_v42, %v8442_v8  ;;  %2281 = vmatmul.mubr.bf16.gmra.mrb[80].mxu1 %v2168_v27  ;;  %v1477_v17 = vmul.f32 %v8405_v30, %v10995_v60  ;;  %v8558_v52 = vunpack.c.l.bf16 %v946_v13  ;;  %v8562_v7 = vadd.f32 %v10964_v1, %v8442_v8  ;;  %v10998_v59 = vld [vmem:[#allocation103_spill] sm:$0xff]  ;;  %v8570_v27 = vpop.permute.xlu1 %1162 }
 0x2d1   :  { %v10999_v25 = vpack.c.bf16 %v10997_v38, %v10998_v59  ;;  %v11000_v4 = vld [vmem:[#allocation135_spill] sm:$0xff]  ;;  %v8573_v30 = vunpack.c.h.bf16 %v8529_v58  ;;  %v8576_v13 = vunpack.c.h.bf16 %v8534_v23  ;;  %v1245_v8 = vadd.f32 %v7590_v42, %v1173_v41 }
 0x2d2   :  { %10996 = vst [vmem:[#allocation68_spill] sm:$0xff] %v8558_v52  ;;  %v1480_v18 = vmul.f32 %v8428_v35, %v11000_v4  ;;  %v11001_v40 = vld [vmem:[#allocation31_spill] sm:$0xff]  ;;  %v1475_v24 = vmul.f32 %v1411_v61, %v11004_v15  ;;  %v2124_v5 = vmul.f32 %v2060_v46, %v11004_v15  ;;  %v2126_v38 = vmul.f32 %v2062_v43, %v10995_v60  ;;  %v11005_v46 = vld [vmem:[#allocation152_spill] sm:$0xff] }
 0x2d3   :  { %2288 = vmatprep.mubr.bf16.mxu1 %v10999_v25  ;;  %2406 = vperm.xlu1 %6172, %v11001_v40   ;;  %11002 = vst [vmem:[#allocation7_spill] sm:$0xff] %v8573_v30  ;;  %11003 = vst [vmem:[#allocation26_spill] sm:$0xff] %v8576_v13  ;;  %vm1291_vm5 = vcmp.ge.f32.partialorder %v8166_v50, 0.0  ;;  %vm1301_vm6 = vcmp.ge.f32.partialorder %v8522_v22, 0.0  ;;  %vm1302_vm9 = vcmp.ge.f32.partialorder %v8538_v10, 0.0  ;;  %v1246_v59 = vadd.f32 %v10964_v1, %v1173_v41  ;;  %v11006_v60 = vld [vmem:[#allocation132_spill] sm:$0xff] }
 0x2d4   :  { %v1365_v35 = vmul.f32 0.2, %v8522_v22  ;;  %vm1940_vm7 = vcmp.ge.f32.partialorder %v8234_v14, 0.0  ;;  %vm1942_vm8 = vcmp.ge.f32.partialorder %v8240_v51, 0.0  ;;  %v1366_v61 = vmul.f32 0.2, %v8538_v10 }
 0x2d5   :  { %vm1303_vm10 = vcmp.ge.f32.partialorder %v1239_v0, 0.0  ;;  %v2481_v25 = vadd.f32 %v11005_v46, %v2347_v21  ;;  %v1521_v43 = vpack.c.bf16 %v1477_v17, %v1475_v24  ;;  %vm1304_vm11 = vcmp.ge.f32.partialorder %v8562_v7, 0.0  ;;  %v8599_v17 = vpop.permute.xlu1 %1813  ;;  %v11014_v30 = vld [vmem:[#allocation108_spill] sm:$0xff] }
 0x2d6   :  { %v1367_v4 = vmul.f32 0.2, %v1239_v0  ;;  %v2482_v15 = vadd.f32 %v11006_v60, %v2347_v21  ;;  %v1524_v56 = vpack.c.bf16 %v11007_v34, %v1480_v18  ;;  %v1368_v41 = vmul.f32 0.2, %v8562_v7  ;;  %v11008_v18 = vld [vmem:[#allocation21_spill] sm:$0xff]  ;;  %v11011_v60 = vld [vmem:[#allocation140_spill] sm:$0xff] }
 0x2d7   :  { %6173 = vset.pattern.permute.xlu1 %v10639_v47  ;;  %vm1309_vm12 = vcmp.ge.f32.partialorder %v1245_v8, 0.0  ;;  %1640 = vmatmul.mubr.bf16.gmra.mrb[52].mxu0 %v1521_v43  ;;  %v2170_v29 = vpack.c.bf16 %v2126_v38, %v2124_v5  ;;  %v1883_v11 = vadd.f32 %v10979_v36, %v8367_v19  ;;  %vm1310_vm13 = vcmp.ge.f32.partialorder %v1246_v59, 0.0 }
 0x2d8   :  { %3055 = vperm.xlu1 %6173, %v11001_v40   ;;  %1647 = vmatprep.mubr.bf16.mxu0 %v1524_v56  ;;  %v1417_v34 = vsel %vm1289_vm0, %v8162_v6, %v8288_v20  ;;  %v2064_v21 = vsel %vm1936_vm2, %v8221_v48, %v8349_v55  ;;  %v2066_v24 = vsel %vm1938_vm3, %v8230_v63, %v11008_v18  ;;  %v1373_v5 = vmul.f32 0.2, %v1245_v8  ;;  %v11009_v56 = vld [vmem:[#allocation22_spill] sm:$0xff]  ;;  %v11010_v20 = vld [vmem:[#allocation160_spill] sm:$0xff]  ;;  %v11013_v48 = vld [vmem:[#allocation149_spill] sm:$0xff] }
 0x2d9   :  { %v1374_v38 = vmul.f32 0.2, %v1246_v59  ;;  %vm2545_vm14 = vcmp.ge.f32.partialorder %v2481_v25, 0.0  ;;  %2289 = vmatmul.mubr.bf16.gmra.mrb[84].mxu1 %v2170_v29  ;;  %v1479_v43 = vmul.f32 %v8413_v31, %v11009_v56  ;;  %vm2546_vm15 = vcmp.ge.f32.partialorder %v2482_v15, 0.0 }
 0x2da   :  { %v2609_v40 = vmul.f32 0.2, %v2481_v25  ;;  %v2610_v6 = vmul.f32 0.2, %v2482_v15  ;;  %v11012_v46 = vpack.c.bf16 %v11010_v20, %v11011_v60  ;;  %v1486_v55 = vmul.f32 %v8434_v3, %v11013_v48  ;;  %v11017_v20 = vld [vmem:[#allocation151_spill] sm:$0xff] }
 0x2db   :  { %v2011_v52 = vmul.f32 0.2, %v1883_v11  ;;  %v1481_v63 = vmul.f32 %v1417_v34, %v11014_v30  ;;  %v2128_v18 = vmul.f32 %v2064_v21, %v11009_v56  ;;  %v2130_v29 = vmul.f32 %v2066_v24, %v11014_v30  ;;  %v8638_v34 = vpop.permute.xlu1 %1167  ;;  %v11016_v21 = vld [vmem:[#allocation52_spill] sm:$0xff]  ;;  %v3000_v56 = vpop.permute.xlu0 %2999 }
 0x2dc   :  { %2296 = vmatprep.mubr.bf16.mxu1 %v11012_v46  ;;  %6175 = vset.pattern.permute.xlu1 %v10637_v32  ;;  %v8627_v31 = vsel %vm1301_vm6, %v8522_v22, %v1365_v35  ;;  %v8632_v60 = vsel %vm1302_vm9, %v8538_v10, %v1366_v61  ;;  %v8635_v3 = vsel %vm1303_vm10, %v1239_v0, %v1367_v4  ;;  %vm1947_vm1 = vcmp.ge.f32.partialorder %v1883_v11, 0.0  ;;  %v11015_v46 = vld [vmem:[#allocation36_spill] sm:$0xff] }
 0x2dd   :  { %2414 = vperm.xlu1 %6175, %v11015_v46   ;;  %vm1297_vm0 = vcmp.ge.f32.partialorder %v11016_v21, 0.0  ;;  %v8644_v22 = vsel %vm1304_vm11, %v8562_v7, %v1368_v41  ;;  %v8647_v35 = vsel %vm1309_vm12, %v1245_v8, %v1373_v5  ;;  %v8650_v10 = vsel %vm1310_vm13, %v1246_v59, %v1374_v38  ;;  %v11018_v41 = vld [vmem:[#allocation3_spill] sm:$0xff]  ;;  %v11021_v5 = vld [vmem:[#allocation4_spill] sm:$0xff]  ;;  %v11022_v38 = vld [vmem:[#allocation34_spill] sm:$0xff] }
 0x2de   :  { %v1523_v0 = vpack.c.bf16 %v1481_v63, %v1479_v43  ;;  %v2673_v4 = vsel %vm2545_vm14, %v2481_v25, %v2609_v40  ;;  %v8654_v61 = vsel %vm2546_vm15, %v2482_v15, %v2610_v6  ;;  %v1882_v24 = vadd.f32 %v7714_v62, %v8367_v19  ;;  %v11024_v43 = vld [vmem:[#allocation48_spill] sm:$0xff]  ;;  %v11025_v6 = vld [vmem:[#allocation165_spill] sm:$0xff] }
 0x2df   :  { %v1526_v48 = vpack.c.bf16 %v1486_v55, %v11017_v20  ;;  %v2172_v7 = vpack.c.bf16 %v2130_v29, %v2128_v18  ;;  %v1236_v8 = vadd.f32 %v10964_v1, %v8417_v9  ;;  %v1419_v59 = vsel %vm1291_vm5, %v8166_v50, %v11018_v41  ;;  %v11026_v55 = vld [vmem:[#allocation163_spill] sm:$0xff]  ;;  %v11027_v63 = vld [vmem:[#allocation53_spill] sm:$0xff]  ;;  %v11029_v29 = vld [vmem:[#allocation162_spill] sm:$0xff] }
 0x2e0   :  { %1648 = vmatmul.mubr.bf16.gmra.mrb[56].mxu0 %v1523_v0  ;;  %v2075_v40 = vsel %vm1947_vm1, %v1883_v11, %v2011_v52  ;;  %v2068_v19 = vsel %vm1940_vm7, %v8234_v14, %v8387_v39  ;;  %v2070_v15 = vsel %vm1942_vm8, %v8240_v51, %v8395_v37  ;;  %v1887_v25 = vadd.f32 %v10979_v36, %v8504_v57  ;;  %v11020_v11 = vld [vmem:[#allocation100_spill] sm:$0xff]  ;;  %v8691_v37 = vpop.permute.xlu1 %1817 }
 0x2e1   :  { %1655 = vmatprep.mubr.bf16.mxu0 %v1526_v48  ;;  %6176 = vset.pattern.permute.xlu1 %v10639_v47  ;;  %v8678_v50 = vunpack.c.l.bf16 %v8529_v58  ;;  %v8681_v52 = vmul.f32 %v2673_v4, %v11020_v11  ;;  %v1485_v14 = vmul.f32 %v8431_v2, %v11021_v5  ;;  %v1885_v39 = vadd.f32 %v10979_v36, %v8475_v45 }
 0x2e2   :  { %2297 = vmatmul.mubr.bf16.gmra.mrb[88].mxu1 %v2172_v7  ;;  %3059 = vperm.xlu1 %6176, %v11022_v38   ;;  %v8689_v51 = vunpack.c.l.bf16 %v8534_v23  ;;  %v8694_v58 = vadd.f32 %v11024_v43, %v3000_v56  ;;  %v8697_v48 = vadd.f32 %v11025_v6, %v3000_v56  ;;  %v11028_v18 = vpack.c.bf16 %v11026_v55, %v11027_v63  ;;  %v11030_v23 = vld [vmem:[#allocation109_spill] sm:$0xff] }
 0x2e3   :  { %11019 = vst [vmem:[#allocation61_spill] sm:$0xff] %v8678_v50  ;;  %v1488_v2 = vmul.f32 %v8493_v16, %v8455_v49  ;;  %v2139_v0 = vmul.f32 %v2075_v40, %v11029_v29  ;;  %v1364_v4 = vmul.f32 0.2, %v1236_v8  ;;  %v1483_v20 = vmul.f32 %v1419_v59, %v11030_v23  ;;  %v11031_v40 = vld [vmem:[#allocation104_spill] sm:$0xff] }
 0x2e4   :  { %11023 = vst [vmem:[#allocation60_spill] sm:$0xff] %v8689_v51  ;;  %2304 = vmatprep.mubr.bf16.mxu1 %v11028_v18  ;;  %v2132_v7 = vmul.f32 %v2068_v19, %v11030_v23  ;;  %v2134_v41 = vmul.f32 %v2070_v15, %v11021_v5  ;;  %v2010_v38 = vmul.f32 0.2, %v1882_v24  ;;  %vm1300_vm2 = vcmp.ge.f32.partialorder %v1236_v8, 0.0  ;;  %v8711_v16 = vpop.permute.xlu1 %1821  ;;  %v11032_v18 = vld [vmem:[#allocation33_spill] sm:$0xff] }
 0x2e5   :  { %v2137_v56 = vmul.f32 %v8514_v33, %v8455_v49  ;;  %v2015_v30 = vmul.f32 0.2, %v1887_v25  ;;  %vm1946_vm3 = vcmp.ge.f32.partialorder %v1882_v24, 0.0  ;;  %v1525_v55 = vpack.c.bf16 %v1485_v14, %v1483_v20  ;;  %v11033_v49 = vld [vmem:[#allocation49_spill] sm:$0xff] }
 0x2e6   :  { %v2013_v63 = vmul.f32 0.2, %v1885_v39  ;;  %vm1951_vm4 = vcmp.ge.f32.partialorder %v1887_v25, 0.0  ;;  %6177 = vset.pattern.permute.xlu1 %v10637_v32  ;;  %v1235_v59 = vadd.f32 %v7590_v42, %v8417_v9  ;;  %vm1949_vm5 = vcmp.ge.f32.partialorder %v1885_v39, 0.0 }
 0x2e7   :  { %v1528_v19 = vpack.c.bf16 %v11031_v40, %v1488_v2  ;;  %v2177_v15 = vpack.c.bf16 %v2139_v0, %v2137_v56  ;;  %2418 = vperm.xlu1 %6177, %v11032_v18   ;;  %v2174_v33 = vpack.c.bf16 %v2134_v41, %v2132_v7  ;;  %v1884_v14 = vadd.f32 %v7714_v62, %v8475_v45  ;;  %v11035_v40 = vld [vmem:[#allocation35_spill] sm:$0xff] }
 0x2e8   :  { %1656 = vmatmul.mubr.bf16.gmra.mrb[60].mxu0 %v1525_v55  ;;  %v1428_v20 = vsel %vm1300_vm2, %v1236_v8, %v1364_v4  ;;  %v1242_v29 = vadd.f32 %v10964_v1, %v8570_v27  ;;  %v1886_v9 = vadd.f32 %v7714_v62, %v8504_v57  ;;  %v1425_v2 = vsel %vm1297_vm0, %v11016_v21, %v11033_v49  ;;  %v3004_v8 = vpop.permute.xlu0 %3003 }
 0x2e9   :  { %1663 = vmatprep.mubr.bf16.mxu0 %v1528_v19  ;;  %v2074_v0 = vsel %vm1946_vm3, %v1882_v24, %v2010_v38  ;;  %v2079_v7 = vsel %vm1951_vm4, %v1887_v25, %v2015_v30  ;;  %vm3196_vm6 = vcmp.ge.f32.partialorder %v8694_v58, 0.0  ;;  %v3260_v45 = vmul.f32 0.2, %v8694_v58  ;;  %v8737_v24 = vpop.permute.xlu1 %2350  ;;  %v11034_v25 = vld [vmem:[#allocation114_spill] sm:$0xff] }
 0x2ea   :  { %2305 = vmatmul.mubr.bf16.gmra.mrb[92].mxu1 %v2174_v33  ;;  %v1487_v4 = vmul.f32 %v8490_v26, %v8496_v28  ;;  %v2077_v57 = vsel %vm1949_vm5, %v1885_v39, %v2013_v63  ;;  %vm1299_vm9 = vcmp.ge.f32.partialorder %v1235_v59, 0.0  ;;  %v1363_v41 = vmul.f32 0.2, %v1235_v59 }
 0x2eb   :  { %2312 = vmatprep.mubr.bf16.mxu1 %v2177_v15  ;;  %v1492_v49 = vmul.f32 %v1428_v20, %v8506_v54  ;;  %v2143_v21 = vmul.f32 %v2079_v7, %v8508_v12  ;;  %v2012_v30 = vmul.f32 0.2, %v1884_v14  ;;  %v1489_v38 = vmul.f32 %v1425_v2, %v11034_v25  ;;  %2422 = vperm.xlu1 %6177, %v11035_v40  }
 0x2ec   :  { %v2138_v56 = vmul.f32 %v2074_v0, %v11034_v25  ;;  %v1370_v55 = vmul.f32 0.2, %v1242_v29  ;;  %v2014_v26 = vmul.f32 0.2, %v1886_v9  ;;  %v1494_v39 = vmul.f32 %v8632_v60, %v8508_v12  ;;  %v3016_v60 = vpop.permute.xlu0 %3015 }
 0x2ed   :  { %vm1306_vm7 = vcmp.ge.f32.partialorder %v1242_v29, 0.0  ;;  %v2141_v63 = vmul.f32 %v2077_v57, %v8506_v54  ;;  %vm1950_vm8 = vcmp.ge.f32.partialorder %v1886_v9, 0.0  ;;  %v1527_v19 = vpack.c.bf16 %v1489_v38, %v1487_v4  ;;  %v8753_v57 = vpop.permute.xlu1 %2995 }
 0x2ee   :  { %v2136_v15 = vmul.f32 %v8511_v53, %v8496_v28  ;;  %v1891_v18 = vadd.f32 %v10979_v36, %v8599_v17  ;;  %v1530_v33 = vpack.c.bf16 %v1494_v39, %v1492_v49  ;;  %v1241_v20 = vadd.f32 %v7590_v42, %v8570_v27 }
 0x2ef   :  { %v2179_v2 = vpack.c.bf16 %v2143_v21, %v2141_v63  ;;  %v1427_v0 = vsel %vm1299_vm9, %v1235_v59, %v1363_v41  ;;  %vm3197_vm10 = vcmp.ge.f32.partialorder %v8697_v48, 0.0  ;;  %vm1948_vm11 = vcmp.ge.f32.partialorder %v1884_v14, 0.0  ;;  %6178 = vset.pattern.permute.xlu1 %v10639_v47 }
 0x2f0   :  { %1664 = vmatmul.mubr.bf16.gmra.mrb[64].mxu0 %v1527_v19  ;;  %v2176_v7 = vpack.c.bf16 %v2138_v56, %v2136_v15  ;;  %v1434_v4 = vsel %vm1306_vm7, %v1242_v29, %v1370_v55  ;;  %v3261_v53 = vmul.f32 0.2, %v8697_v48  ;;  %v8757_v38 = vadd.f32 %v11024_v43, %v3004_v8  ;;  %3071 = vperm.xlu1 %6178, %v11035_v40  }
 0x2f1   :  { %1671 = vmatprep.mubr.bf16.mxu0 %v1530_v33  ;;  %v1890_v27 = vadd.f32 %v7714_v62, %v8599_v17  ;;  %v2078_v59 = vsel %vm1950_vm8, %v1886_v9, %v2014_v26  ;;  %v3324_v41 = vsel %vm3196_vm6, %v8694_v58, %v3260_v45  ;;  %v2019_v29 = vmul.f32 0.2, %v1891_v18  ;;  %v11036_v9 = vld [vmem:[#allocation7_spill] sm:$0xff]  ;;  %v11037_v26 = vld [vmem:[#allocation68_spill] sm:$0xff] }
 0x2f2   :  { %2313 = vmatmul.mubr.bf16.gmra.mrb[96].mxu1 %v2176_v7  ;;  %v1491_v49 = vmul.f32 %v1427_v0, %v8524_v44  ;;  %v1498_v21 = vmul.f32 %v1434_v4, %v8576_v13  ;;  %v1369_v56 = vmul.f32 0.2, %v1241_v20  ;;  %vm1955_vm12 = vcmp.ge.f32.partialorder %v1891_v18, 0.0  ;;  %v11038_v7 = vld [vmem:[#allocation58_spill] sm:$0xff] }
 0x2f3   :  { %2320 = vmatprep.mubr.bf16.mxu1 %v2179_v2  ;;  %v2076_v17 = vsel %vm1948_vm11, %v1884_v14, %v2012_v30  ;;  %v1496_v55 = vmul.f32 %v8644_v22, %v11036_v9  ;;  %vm1305_vm13 = vcmp.ge.f32.partialorder %v1241_v20, 0.0  ;;  %v1493_v58 = vmul.f32 %v8627_v31, %v11037_v26  ;;  %v949_v22 = vld [vmem:[%s10221_s2 + $0xf0] sm:$0xff]  ;;  %v2363_v31 = vpop.permute.xlu0 %2362 }
 0x2f4   :  { %v2142_v45 = vmul.f32 %v2078_v59, %v11037_v26  ;;  %v1244_v39 = vadd.f32 %v10964_v1, %v8638_v34  ;;  %v8780_v63 = vsel %vm3197_vm10, %v8697_v48, %v3261_v53  ;;  %v8783_v19 = vadd.f32 %v11025_v6, %v3004_v8  ;;  %6179 = vset.pattern.permute.xlu1 %v10637_v32  ;;  %v950_v48 = vld [vmem:[%s10221_s2 + $0xf8] sm:$0xff]  ;;  %v8794_v8 = vpop.permute.xlu1 %2354  ;;  %v11039_v59 = vld [vmem:[#allocation40_spill] sm:$0xff] }
 0x2f5   :  { %v2018_v14 = vmul.f32 0.2, %v1890_v27  ;;  %v1532_v30 = vpack.c.bf16 %v1498_v21, %v1496_v55  ;;  %vm1954_vm14 = vcmp.ge.f32.partialorder %v1890_v27, 0.0  ;;  %v1529_v15 = vpack.c.bf16 %v1493_v58, %v1491_v49  ;;  %2430 = vperm.xlu1 %6179, %v11039_v59  }
 0x2f6   :  { %v2140_v33 = vmul.f32 %v2076_v17, %v8524_v44  ;;  %v2083_v1 = vsel %vm1955_vm12, %v1891_v18, %v2019_v29  ;;  %v1243_v2 = vadd.f32 %v7590_v42, %v8638_v34  ;;  %v1433_v0 = vsel %vm1305_vm13, %v1241_v20, %v1369_v56  ;;  %v11040_v20 = vld [vmem:[#allocation105_spill] sm:$0xff] }
 0x2f7   :  { %v2145_v4 = vmul.f32 %v11038_v7, %v11036_v9  ;;  %v2147_v53 = vmul.f32 %v2083_v1, %v8576_v13  ;;  %v3140_v18 = vadd.f32 %v11024_v43, %v3016_v60  ;;  %v1372_v49 = vmul.f32 0.2, %v1244_v39  ;;  %v11042_v7 = vld [vmem:[#allocation38_spill] sm:$0xff] }
 0x2f8   :  { %1672 = vmatmul.mubr.bf16.gmra.mrb[68].mxu0 %v1529_v15  ;;  %v2178_v29 = vpack.c.bf16 %v2142_v45, %v2140_v33  ;;  %v8804_v21 = vunpack.c.h.bf16 %v949_v22  ;;  %vm1308_vm15 = vcmp.ge.f32.partialorder %v1244_v39, 0.0  ;;  %v2082_v42 = vsel %vm1954_vm14, %v1890_v27, %v2018_v14  ;;  %v2379_v27 = vpop.permute.xlu0 %2378  ;;  %v11041_v14 = vld [vmem:[#allocation2_spill] sm:$0xff] }
 0x2f9   :  { %1679 = vmatprep.mubr.bf16.mxu0 %v1532_v30  ;;  %v2181_v17 = vpack.c.bf16 %v2147_v53, %v2145_v4  ;;  %v8807_v34 = vunpack.c.h.bf16 %v950_v48  ;;  %v8810_v56 = vmul.f32 %v3324_v41, %v11040_v20  ;;  %vm3198_vm1 = vcmp.ge.f32.partialorder %v8757_v38, 0.0  ;;  %6180 = vset.pattern.permute.xlu1 %v10639_v47  ;;  %v8826_v4 = vpop.permute.xlu1 %2358 }
 0x2fa   :  { %v3262_v55 = vmul.f32 0.2, %v8757_v38  ;;  %2321 = vmatmul.mubr.bf16.gmra.mrb[100].mxu1 %v2178_v29  ;;  %v1497_v58 = vmul.f32 %v1433_v0, %v8689_v51  ;;  %vm3199_vm0 = vcmp.ge.f32.partialorder %v8783_v19, 0.0  ;;  %v3263_v45 = vmul.f32 0.2, %v8783_v19  ;;  %3075 = vperm.xlu1 %6180, %v11042_v7  }
 0x2fb   :  { %v3141_v30 = vadd.f32 %v11025_v6, %v3016_v60  ;;  %v1371_v15 = vmul.f32 0.2, %v1243_v2  ;;  %2328 = vmatprep.mubr.bf16.mxu1 %v2181_v17  ;;  %v1495_v41 = vmul.f32 %v8635_v3, %v8678_v50  ;;  %v2144_v33 = vmul.f32 %v11041_v14, %v8678_v50 }
 0x2fc   :  { %v2146_v1 = vmul.f32 %v2082_v42, %v8689_v51  ;;  %v1436_v0 = vsel %vm1308_vm15, %v1244_v39, %v1372_v49  ;;  %v3268_v60 = vmul.f32 0.2, %v3140_v18  ;;  %vm1307_vm2 = vcmp.ge.f32.partialorder %v1243_v2, 0.0  ;;  %v11044_v49 = vld [vmem:[#allocation152_spill] sm:$0xff] }
 0x2fd   :  { %v1500_v53 = vmul.f32 %v1436_v0, %v8804_v21  ;;  %v1502_v29 = vmul.f32 %v8650_v10, %v8807_v34  ;;  %vm3204_vm3 = vcmp.ge.f32.partialorder %v3140_v18, 0.0  ;;  %v1531_v3 = vpack.c.bf16 %v1497_v58, %v1495_v41 }
 0x2fe   :  { %v2180_v17 = vpack.c.bf16 %v2146_v1, %v2144_v33  ;;  %v8831_v9 = vunpack.c.l.bf16 %v949_v22  ;;  %v8836_v39 = vsel %vm3198_vm1, %v8757_v38, %v3262_v55  ;;  %v2489_v42 = vadd.f32 %v11044_v49, %v2363_v31  ;;  %6182 = vset.pattern.permute.xlu1 %v10637_v32 }
 0x2ff   :  { %v1534_v14 = vpack.c.bf16 %v1502_v29, %v1500_v53  ;;  %v8839_v7 = vunpack.c.l.bf16 %v950_v48  ;;  %v1893_v0 = vadd.f32 %v10979_v36, %v8691_v37  ;;  %v1895_v10 = vadd.f32 %v10979_v36, %v8711_v16  ;;  %v11046_v48 = vld [vmem:[#allocation132_spill] sm:$0xff]  ;;  %v3020_v36 = vpop.permute.xlu0 %3019 }
 0x300   :  { %11043 = vst [vmem:[#allocation8_spill] sm:$0xff] %v8831_v9  ;;  %1680 = vmatmul.mubr.bf16.gmra.mrb[72].mxu0 %v1531_v3  ;;  %v1435_v58 = vsel %vm1307_vm2, %v1243_v2, %v1371_v15  ;;  %v2483_v22 = vadd.f32 %v11044_v49, %v8737_v24  ;;  %v8850_v38 = vsel %vm3199_vm0, %v8783_v19, %v3263_v45  ;;  %vm3205_vm4 = vcmp.ge.f32.partialorder %v3141_v30, 0.0  ;;  %v11047_v45 = vld [vmem:[#allocation37_spill] sm:$0xff] }
 0x301   :  { %11045 = vst [vmem:[#allocation170_spill] sm:$0xff] %v8839_v7  ;;  %v8852_v55 = vsel %vm3204_vm3, %v3140_v18, %v3268_v60  ;;  %v8855_v41 = vadd.f32 %v11046_v48, %v2363_v31  ;;  %1687 = vmatprep.mubr.bf16.mxu0 %v1534_v14  ;;  %v3269_v33 = vmul.f32 0.2, %v3141_v30  ;;  %v1892_v2 = vadd.f32 %v7714_v62, %v8691_v37  ;;  %v8864_v18 = vpop.permute.xlu1 %3007 }
 0x302   :  { %2329 = vmatmul.mubr.bf16.gmra.mrb[104].mxu1 %v2180_v17  ;;  %v1894_v15 = vadd.f32 %v7714_v62, %v8711_v16  ;;  %v1499_v19 = vmul.f32 %v1435_v58, %v8831_v9  ;;  %2434 = vperm.xlu1 %6182, %v11047_v45   ;;  %vm2553_vm5 = vcmp.ge.f32.partialorder %v2489_v42, 0.0  ;;  %v2617_v31 = vmul.f32 0.2, %v2489_v42 }
 0x303   :  { %v8867_v1 = vadd.f32 %v11044_v49, %v2379_v27  ;;  %v8870_v60 = vadd.f32 %v11046_v48, %v2379_v27  ;;  %v2021_v53 = vmul.f32 0.2, %v1893_v0  ;;  %v2023_v37 = vmul.f32 0.2, %v1895_v10  ;;  %v11048_v27 = vld [vmem:[#allocation39_spill] sm:$0xff] }
 0x304   :  { %v1501_v29 = vmul.f32 %v8647_v35, %v8839_v7  ;;  %v2611_v62 = vmul.f32 0.2, %v2483_v22  ;;  %vm1957_vm6 = vcmp.ge.f32.partialorder %v1893_v0, 0.0  ;;  %vm1959_vm9 = vcmp.ge.f32.partialorder %v1895_v10, 0.0 }
 0x305   :  { %v2484_v16 = vadd.f32 %v11046_v48, %v8737_v24  ;;  %vm2547_vm7 = vcmp.ge.f32.partialorder %v2483_v22, 0.0  ;;  %v8877_v3 = vsel %vm3205_vm4, %v3141_v30, %v3269_v33  ;;  %v2020_v17 = vmul.f32 0.2, %v1892_v2  ;;  %v3032_v30 = vpop.permute.xlu0 %3031  ;;  %v8891_v13 = vpop.permute.xlu1 %2366 }
 0x306   :  { %v2022_v14 = vmul.f32 0.2, %v1894_v15  ;;  %v1533_v58 = vpack.c.bf16 %v1501_v29, %v1499_v19  ;;  %2438 = vperm.xlu1 %6182, %v11048_v27   ;;  %vm2554_vm8 = vcmp.ge.f32.partialorder %v8855_v41, 0.0  ;;  %v2618_v45 = vmul.f32 0.2, %v8855_v41 }
 0x307   :  { %v8883_v35 = vsel %vm2553_vm5, %v2489_v42, %v2617_v31  ;;  %vm1956_vm10 = vcmp.ge.f32.partialorder %v1892_v2, 0.0  ;;  %vm1958_vm11 = vcmp.ge.f32.partialorder %v1894_v15, 0.0  ;;  %vm2561_vm12 = vcmp.ge.f32.partialorder %v8867_v1, 0.0 }
 0x308   :  { %vm2562_vm13 = vcmp.ge.f32.partialorder %v8870_v60, 0.0  ;;  %v3142_v24 = vadd.f32 %v11024_v43, %v3020_v36  ;;  %1688 = vmatmul.mubr.bf16.gmra.mrb[76].mxu0 %v1533_v58  ;;  %v2675_v33 = vsel %vm2547_vm7, %v2483_v22, %v2611_v62  ;;  %v2085_v19 = vsel %vm1957_vm6, %v1893_v0, %v2021_v53 }
 0x309   :  { %v2087_v29 = vsel %vm1959_vm9, %v1895_v10, %v2023_v37  ;;  %v2612_v42 = vmul.f32 0.2, %v2484_v16  ;;  %v2149_v31 = vmul.f32 %v2085_v19, %v8804_v21  ;;  %v3130_v50 = vadd.f32 %v11024_v43, %v8753_v57  ;;  %v8912_v19 = vpop.permute.xlu1 %3011 }
 0x30a   :  { %v2151_v51 = vmul.f32 %v2087_v29, %v8807_v34  ;;  %v3143_v26 = vadd.f32 %v11025_v6, %v3020_v36  ;;  %vm2548_vm14 = vcmp.ge.f32.partialorder %v2484_v16, 0.0  ;;  %v2084_v58 = vsel %vm1956_vm10, %v1892_v2, %v2020_v17  ;;  %6183 = vset.pattern.permute.xlu1 %v10639_v47 }
 0x30b   :  { %v2086_v22 = vsel %vm1958_vm11, %v1894_v15, %v2022_v14  ;;  %v3148_v0 = vadd.f32 %v11024_v43, %v3032_v30  ;;  %v2739_v10 = vmul.f32 %v2675_v33, %v11040_v20  ;;  %v3258_v37 = vmul.f32 0.2, %v3130_v50  ;;  %3087 = vperm.xlu1 %6183, %v11048_v27  }
 0x30c   :  { %v2183_v53 = vpack.c.bf16 %v2151_v51, %v2149_v31  ;;  %v3131_v62 = vadd.f32 %v11025_v6, %v8753_v57  ;;  %vm3194_vm15 = vcmp.ge.f32.partialorder %v3130_v50, 0.0  ;;  %v2148_v36 = vmul.f32 %v2084_v58, %v8831_v9  ;;  %v11049_v31 = vld [vmem:[#allocation83_spill] sm:$0xff] }
 0x30d   :  { %v2150_v2 = vmul.f32 %v2086_v22, %v8839_v7  ;;  %v2625_v15 = vmul.f32 0.2, %v8867_v1  ;;  %v2626_v17 = vmul.f32 0.2, %v8870_v60  ;;  %v3149_v14 = vadd.f32 %v11025_v6, %v3032_v30  ;;  %v11050_v22 = vld [vmem:[#allocation85_spill] sm:$0xff] }
 0x30e   :  { %2336 = vmatprep.mubr.bf16.mxu1 %v2183_v53  ;;  %v2676_v51 = vsel %vm2548_vm14, %v2484_v16, %v2612_v42  ;;  %vm3206_vm1 = vcmp.ge.f32.partialorder %v3142_v24, 0.0  ;;  %vm3207_vm0 = vcmp.ge.f32.partialorder %v3143_v26, 0.0  ;;  %v3270_v20 = vmul.f32 0.2, %v3142_v24 }
 0x30f   :  { %v2182_v33 = vpack.c.bf16 %v2150_v2, %v2148_v36  ;;  %v3271_v57 = vmul.f32 0.2, %v3143_v26  ;;  %v3322_v29 = vsel %vm3194_vm15, %v3130_v50, %v3258_v37  ;;  %v2738_v58 = vmul.f32 %v8654_v61, %v11049_v31  ;;  %6185 = vset.pattern.permute.xlu1 %v10637_v32  ;;  %v11051_v37 = vld [vmem:[#allocation44_spill] sm:$0xff] }
 0x310   :  { %v2740_v7 = vmul.f32 %v2676_v51, %v11050_v22  ;;  %v3276_v9 = vmul.f32 0.2, %v3148_v0  ;;  %v2801_v30 = vpack.c.bf16 %v2739_v10, %v8681_v52  ;;  %v3259_v53 = vmul.f32 0.2, %v3131_v62  ;;  %2446 = vperm.xlu1 %6185, %v11051_v37   ;;  %v8951_v51 = vpop.permute.xlu1 %2370 }
 0x311   :  { %2337 = vmatmul.mubr.bf16.gmra.mrb[108].mxu1 %v2182_v33  ;;  %v2486_v16 = vadd.f32 %v11046_v48, %v8794_v8  ;;  %v3277_v42 = vmul.f32 0.2, %v3149_v14  ;;  %vm3195_vm2 = vcmp.ge.f32.partialorder %v3131_v62, 0.0  ;;  %v2488_v50 = vadd.f32 %v11046_v48, %v8826_v4 }
 0x312   :  { %v2802_v36 = vpack.c.bf16 %v2740_v7, %v2738_v58  ;;  %v8927_v61 = vsel %vm2554_vm8, %v8855_v41, %v2618_v45  ;;  %vm3212_vm3 = vcmp.ge.f32.partialorder %v3148_v0, 0.0  ;;  %vm3213_vm4 = vcmp.ge.f32.partialorder %v3149_v14, 0.0 }
 0x313   :  { %v3386_v52 = vmul.f32 %v3322_v29, %v11020_v11  ;;  %v8933_v10 = vsel %vm2561_vm12, %v8867_v1, %v2625_v15  ;;  %v8938_v7 = vsel %vm2562_vm13, %v8870_v60, %v2626_v17  ;;  %v2485_v2 = vadd.f32 %v11044_v49, %v8794_v8 }
 0x314   :  { %2865 = vmatprep.mubr.bf16.mxu0 %v2802_v36  ;;  %v2487_v41 = vadd.f32 %v11044_v49, %v8826_v4  ;;  %v8945_v45 = vsel %vm3206_vm1, %v3142_v24, %v3270_v20  ;;  %v8948_v11 = vsel %vm3207_vm0, %v3143_v26, %v3271_v57  ;;  %v2614_v1 = vmul.f32 0.2, %v2486_v16  ;;  %6186 = vset.pattern.permute.xlu1 %v10639_v47  ;;  %v8958_v4 = vpop.permute.xlu0 %3035  ;;  %v11052_v20 = vld [vmem:[#allocation42_spill] sm:$0xff]  ;;  %v2375_v36 = vpop.permute.xlu1 %2374 }
 0x315   :  { %2866 = vmatmul.mubr.bf16.vlgmr.msra.gmra.mrb[80].mxu0 %v2801_v30  ;;  %v3323_v15 = vsel %vm3195_vm2, %v3131_v62, %v3259_v53  ;;  %v8953_v60 = vsel %vm3212_vm3, %v3148_v0, %v3276_v9  ;;  %v8955_v17 = vsel %vm3213_vm4, %v3149_v14, %v3277_v42  ;;  %vm2550_vm5 = vcmp.ge.f32.partialorder %v2486_v16, 0.0  ;;  %3091 = vperm.xlu1 %6186, %v11052_v20   ;;  %v11054_v53 = vld [vmem:[#allocation110_spill] sm:$0xff]  ;;  %v11057_v20 = vld [vmem:[#allocation41_spill] sm:$0xff] }
 0x316   :  { %v2616_v8 = vmul.f32 0.2, %v2488_v50  ;;  %v3450_v24 = vpack.c.bf16 %v8810_v56, %v3386_v52  ;;  %vm2552_vm6 = vcmp.ge.f32.partialorder %v2488_v50, 0.0  ;;  %v3387_v26 = vmul.f32 %v3323_v15, %v11049_v31  ;;  %v11055_v15 = vld [vmem:[#allocation167_spill] sm:$0xff] }
 0x317   :  { %v3389_v62 = vmul.f32 %v8780_v63, %v11050_v22  ;;  %vm2549_vm9 = vcmp.ge.f32.partialorder %v2485_v2, 0.0  ;;  %v2613_v9 = vmul.f32 0.2, %v2485_v2  ;;  %v2615_v0 = vmul.f32 0.2, %v2487_v41  ;;  %v11053_v22 = vld [vmem:[#allocation106_spill] sm:$0xff] }
 0x318   :  { %v3136_v14 = vadd.f32 %v11024_v43, %v8864_v18  ;;  %vm2551_vm7 = vcmp.ge.f32.partialorder %v2487_v41, 0.0  ;;  %v3137_v57 = vadd.f32 %v11025_v6, %v8864_v18  ;;  %v2678_v56 = vsel %vm2550_vm5, %v2486_v16, %v2614_v1 }
 0x319   :  { %v3451_v33 = vpack.c.bf16 %v3389_v62, %v3387_v26  ;;  %v8972_v29 = vadd.f32 %v11024_v43, %v8958_v4  ;;  %v2680_v31 = vsel %vm2552_vm6, %v2488_v50, %v2616_v8  ;;  %v2742_v30 = vmul.f32 %v2678_v56, %v11053_v22  ;;  %6187 = vset.pattern.permute.xlu1 %v10637_v32  ;;  %v11056_v26 = vld [vmem:[#allocation93_spill] sm:$0xff] }
 0x31a   :  { %vm3200_vm8 = vcmp.ge.f32.partialorder %v3136_v14, 0.0  ;;  %v3264_v63 = vmul.f32 0.2, %v3136_v14  ;;  %vm3201_vm10 = vcmp.ge.f32.partialorder %v3137_v57, 0.0  ;;  %v3265_v58 = vmul.f32 0.2, %v3137_v57  ;;  %2450 = vperm.xlu1 %6187, %v11057_v20  }
 0x31b   :  { %3514 = vmatprep.mubr.bf16.mxu1 %v3451_v33  ;;  %v2744_v42 = vmul.f32 %v2680_v31, %v11054_v53  ;;  %v2491_v18 = vadd.f32 %v11044_v49, %v8891_v13  ;;  %v2492_v16 = vadd.f32 %v11046_v48, %v8891_v13  ;;  %v2677_v52 = vsel %vm2549_vm9, %v2485_v2, %v2613_v9  ;;  %v11062_v20 = vld [vmem:[#allocation94_spill] sm:$0xff] }
 0x31c   :  { %3515 = vmatmul.mubr.bf16.vlgmr.msra.gmra.mrb[112].mxu1 %v3450_v24  ;;  %v2679_v50 = vsel %vm2551_vm7, %v2487_v41, %v2615_v0  ;;  %v2741_v8 = vmul.f32 %v2677_v52, %v11055_v15  ;;  %v3329_v33 = vsel %vm3201_vm10, %v3137_v57, %v3265_v58  ;;  %v3391_v13 = vmul.f32 %v8850_v38, %v11053_v22  ;;  %v11058_v22 = vld [vmem:[#allocation43_spill] sm:$0xff] }
 0x31d   :  { %v2804_v1 = vpack.c.bf16 %v2744_v42, %v2742_v30  ;;  %v2743_v62 = vmul.f32 %v2679_v50, %v11056_v26  ;;  %vm2555_vm11 = vcmp.ge.f32.partialorder %v2491_v18, 0.0  ;;  %vm2556_vm12 = vcmp.ge.f32.partialorder %v2492_v16, 0.0  ;;  %v11059_v50 = vld [vmem:[#allocation111_spill] sm:$0xff] }
 0x31e   :  { %v2619_v24 = vmul.f32 0.2, %v2491_v18  ;;  %v2620_v56 = vmul.f32 0.2, %v2492_v16  ;;  %v3393_v2 = vmul.f32 %v3329_v33, %v11054_v53  ;;  %v3138_v41 = vadd.f32 %v11024_v43, %v8912_v19  ;;  %2454 = vperm.xlu1 %6187, %v11058_v22   ;;  %v3024_v53 = vpop.permute.xlu1 %3023 }
 0x31f   :  { %2873 = vmatprep.mubr.bf16.mxu0 %v2804_v1  ;;  %v2803_v31 = vpack.c.bf16 %v2743_v62, %v2741_v8  ;;  %v3139_v9 = vadd.f32 %v11025_v6, %v8912_v19  ;;  %v3328_v0 = vsel %vm3200_vm8, %v3136_v14, %v3264_v63  ;;  %v3390_v57 = vmul.f32 %v8836_v39, %v11055_v15  ;;  %v11060_v1 = vld [vmem:[#allocation112_spill] sm:$0xff] }
 0x320   :  { %v2684_v58 = vsel %vm2556_vm12, %v2492_v16, %v2620_v56  ;;  %v3453_v30 = vpack.c.bf16 %v3393_v2, %v3391_v13  ;;  %vm3202_vm13 = vcmp.ge.f32.partialorder %v3138_v41, 0.0  ;;  %v3266_v42 = vmul.f32 0.2, %v3138_v41 }
 0x321   :  { %2874 = vmatmul.mubr.bf16.gmra.mrb[84].mxu0 %v2803_v31  ;;  %v3392_v38 = vmul.f32 %v3328_v0, %v11056_v26  ;;  %vm3203_vm14 = vcmp.ge.f32.partialorder %v3139_v9, 0.0  ;;  %v3267_v52 = vmul.f32 0.2, %v3139_v9  ;;  %v2746_v19 = vmul.f32 %v8927_v61, %v11059_v50  ;;  %v11061_v26 = vld [vmem:[#allocation18_spill] sm:$0xff] }
 0x322   :  { %v2748_v14 = vmul.f32 %v2684_v58, %v11060_v1  ;;  %3522 = vmatprep.mubr.bf16.mxu1 %v3453_v30  ;;  %v2493_v39 = vadd.f32 %v11044_v49, %v8951_v51  ;;  %v2494_v16 = vadd.f32 %v11046_v48, %v8951_v51  ;;  %v2683_v15 = vsel %vm2555_vm11, %v2491_v18, %v2619_v24 }
 0x323   :  { %v3452_v63 = vpack.c.bf16 %v3392_v38, %v3390_v57  ;;  %v2745_v62 = vmul.f32 %v8883_v35, %v11061_v26  ;;  %v2747_v33 = vmul.f32 %v2683_v15, %v11062_v20  ;;  %v2495_v61 = vadd.f32 %v11044_v49, %v2375_v36  ;;  %6188 = vset.pattern.permute.xlu1 %v10639_v47  ;;  %v2383_v57 = vpop.permute.xlu1 %2382 }
 0x324   :  { %v2806_v8 = vpack.c.bf16 %v2748_v14, %v2746_v19  ;;  %vm2557_vm15 = vcmp.ge.f32.partialorder %v2493_v39, 0.0  ;;  %vm2558_vm1 = vcmp.ge.f32.partialorder %v2494_v16, 0.0  ;;  %v2621_v56 = vmul.f32 0.2, %v2493_v39  ;;  %3103 = vperm.xlu1 %6188, %v11058_v22  }
 0x325   :  { %3523 = vmatmul.mubr.bf16.gmra.mrb[116].mxu1 %v3452_v63  ;;  %v2622_v31 = vmul.f32 0.2, %v2494_v16  ;;  %v2805_v13 = vpack.c.bf16 %v2747_v33, %v2745_v62  ;;  %v2496_v51 = vadd.f32 %v11046_v48, %v2375_v36  ;;  %vm2559_vm0 = vcmp.ge.f32.partialorder %v2495_v61, 0.0  ;;  %v11066_v33 = vld [vmem:[#allocation144_spill] sm:$0xff] }
 0x326   :  { %2881 = vmatprep.mubr.bf16.mxu0 %v2806_v8  ;;  %v2623_v18 = vmul.f32 0.2, %v2495_v61  ;;  %v2685_v35 = vsel %vm2557_vm15, %v2493_v39, %v2621_v56  ;;  %v3331_v2 = vsel %vm3203_vm14, %v3139_v9, %v3267_v52  ;;  %v3397_v0 = vmul.f32 %v8877_v3, %v11060_v1  ;;  %v11063_v1 = vld [vmem:[#allocation113_spill] sm:$0xff] }
 0x327   :  { %v2686_v24 = vsel %vm2558_vm1, %v2494_v16, %v2622_v31  ;;  %vm2560_vm2 = vcmp.ge.f32.partialorder %v2496_v51, 0.0  ;;  %v2624_v58 = vmul.f32 0.2, %v2496_v51  ;;  %v3395_v38 = vmul.f32 %v3331_v2, %v11059_v50  ;;  %v11064_v16 = vld [vmem:[#allocation56_spill] sm:$0xff]  ;;  %v11065_v50 = vld [vmem:[#allocation117_spill] sm:$0xff]  ;;  %v3028_v31 = vpop.permute.xlu1 %3027 }
 0x328   :  { %v2687_v30 = vsel %vm2559_vm0, %v2495_v61, %v2623_v18  ;;  %v3330_v19 = vsel %vm3202_vm13, %v3138_v41, %v3266_v42  ;;  %v3396_v36 = vmul.f32 %v8852_v55, %v11062_v20  ;;  %v3144_v14 = vadd.f32 %v11024_v43, %v3024_v53  ;;  %6190 = vset.pattern.permute.xlu1 %v10637_v32  ;;  %v11067_v61 = vld [vmem:[#allocation138_spill] sm:$0xff] }
 0x329   :  { %2882 = vmatmul.mubr.bf16.gmra.mrb[88].mxu0 %v2805_v13  ;;  %v3145_v63 = vadd.f32 %v11025_v6, %v3024_v53  ;;  %v2688_v9 = vsel %vm2560_vm2, %v2496_v51, %v2624_v58  ;;  %v3455_v52 = vpack.c.bf16 %v3397_v0, %v3395_v38  ;;  %v3394_v3 = vmul.f32 %v3330_v19, %v11061_v26 }
 0x32a   :  { %v2750_v39 = vmul.f32 %v2686_v24, %v11063_v1  ;;  %2462 = vperm.xlu1 %6190, %v11064_v16   ;;  %vm3208_vm3 = vcmp.ge.f32.partialorder %v3144_v14, 0.0  ;;  %v3272_v41 = vmul.f32 0.2, %v3144_v14  ;;  %v2752_v15 = vmul.f32 %v2688_v9, %v11065_v50 }
 0x32b   :  { %vm3209_vm4 = vcmp.ge.f32.partialorder %v3145_v63, 0.0  ;;  %v3273_v42 = vmul.f32 0.2, %v3145_v63  ;;  %3530 = vmatprep.mubr.bf16.mxu1 %v3455_v52  ;;  %v3454_v55 = vpack.c.bf16 %v3396_v36, %v3394_v3  ;;  %v2499_v53 = vadd.f32 %v11044_v49, %v2383_v57  ;;  %v9043_v52 = vpop.permute.xlu0 %3047 }
 0x32c   :  { %v2500_v8 = vadd.f32 %v11046_v48, %v2383_v57  ;;  %v3336_v62 = vsel %vm3208_vm3, %v3144_v14, %v3272_v41  ;;  %v2749_v26 = vmul.f32 %v2685_v35, %v11066_v33  ;;  %v2751_v56 = vmul.f32 %v2687_v30, %v11067_v61  ;;  %v11068_v57 = vld [vmem:[#allocation46_spill] sm:$0xff]  ;;  %v11070_v41 = vld [vmem:[#allocation119_spill] sm:$0xff] }
 0x32d   :  { %v3337_v20 = vsel %vm3209_vm4, %v3145_v63, %v3273_v42  ;;  %3531 = vmatmul.mubr.bf16.gmra.mrb[120].mxu1 %v3454_v55  ;;  %v2808_v13 = vpack.c.bf16 %v2752_v15, %v2750_v39  ;;  %vm2563_vm5 = vcmp.ge.f32.partialorder %v2499_v53, 0.0  ;;  %v2627_v51 = vmul.f32 0.2, %v2499_v53  ;;  %v11071_v15 = vld [vmem:[#allocation157_spill] sm:$0xff] }
 0x32e   :  { %vm2564_vm6 = vcmp.ge.f32.partialorder %v2500_v8, 0.0  ;;  %6191 = vset.pattern.permute.xlu1 %v10639_v47  ;;  %v2628_v18 = vmul.f32 0.2, %v2500_v8  ;;  %v2807_v24 = vpack.c.bf16 %v2751_v56, %v2749_v26  ;;  %v3399_v2 = vmul.f32 %v8948_v11, %v11063_v1  ;;  %v11069_v1 = vld [vmem:[#allocation118_spill] sm:$0xff] }
 0x32f   :  { %v3401_v0 = vmul.f32 %v3337_v20, %v11065_v50  ;;  %3107 = vperm.xlu1 %6191, %v11068_v57   ;;  %2889 = vmatprep.mubr.bf16.mxu0 %v2808_v13  ;;  %v2691_v35 = vsel %vm2563_vm5, %v2499_v53, %v2627_v51  ;;  %v3146_v58 = vadd.f32 %v11024_v43, %v3028_v31  ;;  %v2387_v50 = vpop.permute.xlu1 %2386  ;;  %vm3214_vm8 = vcmp.ge.f32.partialorder %v8972_v29, 0.0  ;;  %v11074_v57 = vld [vmem:[#allocation47_spill] sm:$0xff] }
 0x330   :  { %v3147_v30 = vadd.f32 %v11025_v6, %v3028_v31  ;;  %v2692_v38 = vsel %vm2564_vm6, %v2500_v8, %v2628_v18  ;;  %v3398_v36 = vmul.f32 %v8945_v45, %v11066_v33  ;;  %v3400_v14 = vmul.f32 %v3336_v62, %v11067_v61  ;;  %v11072_v8 = vld [vmem:[#allocation17_spill] sm:$0xff] }
 0x331   :  { %2890 = vmatmul.mubr.bf16.gmra.mrb[92].mxu0 %v2807_v24  ;;  %v3457_v19 = vpack.c.bf16 %v3401_v0, %v3399_v2  ;;  %vm3210_vm9 = vcmp.ge.f32.partialorder %v3146_v58, 0.0  ;;  %v3274_v11 = vmul.f32 0.2, %v3146_v58  ;;  %v3151_v9 = vadd.f32 %v11025_v6, %v8958_v4  ;;  %v11073_v4 = vld [vmem:[#allocation45_spill] sm:$0xff]  ;;  %v2395_v0 = vpop.permute.xlu0 %2394 }
 0x332   :  { %vm3211_vm7 = vcmp.ge.f32.partialorder %v3147_v30, 0.0  ;;  %v3275_v63 = vmul.f32 0.2, %v3147_v30  ;;  %v3456_v3 = vpack.c.bf16 %v3400_v14, %v3398_v36  ;;  %v2754_v39 = vmul.f32 %v8938_v7, %v11069_v1 }
 0x333   :  { %3538 = vmatprep.mubr.bf16.mxu1 %v3457_v19  ;;  %v2756_v42 = vmul.f32 %v2692_v38, %v11070_v41  ;;  %6193 = vset.pattern.permute.xlu1 %v10637_v32  ;;  %v3338_v45 = vsel %vm3210_vm9, %v3146_v58, %v3274_v11  ;;  %v2753_v53 = vmul.f32 %v8933_v10, %v11071_v15  ;;  %v3278_v10 = vmul.f32 0.2, %v8972_v29  ;;  %v2391_v51 = vpop.permute.xlu1 %2390 }
 0x334   :  { %v3339_v55 = vsel %vm3211_vm7, %v3147_v30, %v3275_v63  ;;  %v2755_v62 = vmul.f32 %v2691_v35, %v11072_v8  ;;  %2466 = vperm.xlu1 %6193, %v11073_v4   ;;  %v2501_v33 = vadd.f32 %v11044_v49, %v2387_v50  ;;  %v2502_v26 = vadd.f32 %v11046_v48, %v2387_v50 }
 0x335   :  { %v2810_v20 = vpack.c.bf16 %v2756_v42, %v2754_v39  ;;  %v3403_v7 = vmul.f32 %v3339_v55, %v11069_v1  ;;  %3539 = vmatmul.mubr.bf16.gmra.mrb[124].mxu1 %v3456_v3  ;;  %v3405_v32 = vmul.f32 %v8955_v17, %v11070_v41  ;;  %v3402_v56 = vmul.f32 %v3338_v45, %v11071_v15  ;;  %v2411_v45 = vpop.permute.xlu0 %2410  ;;  %v11075_v55 = vld [vmem:[#allocation120_spill] sm:$0xff] }
 0x336   :  { %v2809_v61 = vpack.c.bf16 %v2755_v62, %v2753_v53  ;;  %v2629_v31 = vmul.f32 0.2, %v2501_v33  ;;  %v2630_v13 = vmul.f32 0.2, %v2502_v26  ;;  %v3404_v24 = vmul.f32 %v8953_v60, %v11072_v8  ;;  %v11077_v53 = vld [vmem:[#allocation96_spill] sm:$0xff]  ;;  %v11078_v62 = vld [vmem:[#allocation97_spill] sm:$0xff] }
 0x337   :  { %2897 = vmatprep.mubr.bf16.mxu0 %v2810_v20  ;;  %v3459_v18 = vpack.c.bf16 %v3405_v32, %v3403_v7  ;;  %v3279_v2 = vmul.f32 0.2, %v3151_v9  ;;  %vm2565_vm10 = vcmp.ge.f32.partialorder %v2501_v33, 0.0  ;;  %vm2566_vm11 = vcmp.ge.f32.partialorder %v2502_v26, 0.0  ;;  %v3040_v39 = vpop.permute.xlu1 %3039  ;;  %v11079_v32 = vld [vmem:[#allocation20_spill] sm:$0xff] }
 0x338   :  { %2470 = vperm.xlu1 %6193, %v11074_v57   ;;  %v2503_v17 = vadd.f32 %v11044_v49, %v2391_v51  ;;  %vm3215_vm12 = vcmp.ge.f32.partialorder %v3151_v9, 0.0  ;;  %v2504_v35 = vadd.f32 %v11046_v48, %v2391_v51  ;;  %v3458_v58 = vpack.c.bf16 %v3404_v24, %v3402_v56 }
 0x339   :  { %2898 = vmatmul.mubr.bf16.gmra.mrb[96].mxu0 %v2809_v61  ;;  %3546 = vmatprep.mubr.bf16.mxu1 %v3459_v18  ;;  %v3342_v30 = vsel %vm3214_vm8, %v8972_v29, %v3278_v10  ;;  %v9071_v60 = vadd.f32 %v11024_v43, %v9043_v52  ;;  %v2693_v19 = vsel %vm2565_vm10, %v2501_v33, %v2629_v31 }
 0x33a   :  { %vm2567_vm13 = vcmp.ge.f32.partialorder %v2503_v17, 0.0  ;;  %v2631_v38 = vmul.f32 0.2, %v2503_v17  ;;  %v2694_v36 = vsel %vm2566_vm11, %v2502_v26, %v2630_v13  ;;  %vm2568_vm14 = vcmp.ge.f32.partialorder %v2504_v35, 0.0 }
 0x33b   :  { %v2632_v14 = vmul.f32 0.2, %v2504_v35  ;;  %v3343_v11 = vsel %vm3215_vm12, %v3151_v9, %v3279_v2  ;;  %v2505_v63 = vadd.f32 %v11044_v49, %v2395_v0  ;;  %v2506_v3 = vadd.f32 %v11046_v48, %v2395_v0  ;;  %v11076_v9 = vld [vmem:[#allocation124_spill] sm:$0xff]  ;;  %v3052_v0 = vpop.permute.xlu0 %3051 }
 0x33c   :  { %6194 = vset.pattern.permute.xlu1 %v10639_v47  ;;  %v2695_v1 = vsel %vm2567_vm13, %v2503_v17, %v2631_v38  ;;  %v3152_v41 = vadd.f32 %v11024_v43, %v3040_v39  ;;  %v3153_v42 = vadd.f32 %v11025_v6, %v3040_v39  ;;  %v2758_v50 = vmul.f32 %v2694_v36, %v11075_v55 }
 0x33d   :  { %3119 = vperm.xlu1 %6194, %v11074_v57   ;;  %v2696_v29 = vsel %vm2568_vm14, %v2504_v35, %v2632_v14  ;;  %3547 = vmatmul.mubr.bf16.gmra.mrb[128].mxu1 %v3458_v58  ;;  %v2757_v8 = vmul.f32 %v2693_v19, %v11077_v53  ;;  %v2759_v4 = vmul.f32 %v2695_v1, %v11078_v62  ;;  %v3284_v61 = vmul.f32 0.2, %v9071_v60 }
 0x33e   :  { %v2760_v15 = vmul.f32 %v2696_v29, %v11076_v9  ;;  %vm3216_vm15 = vcmp.ge.f32.partialorder %v3152_v41, 0.0  ;;  %vm3217_vm1 = vcmp.ge.f32.partialorder %v3153_v42, 0.0  ;;  %v3280_v47 = vmul.f32 0.2, %v3152_v41  ;;  %v2399_v2 = vpop.permute.xlu1 %2398 }
 0x33f   :  { %v3281_v20 = vmul.f32 0.2, %v3153_v42  ;;  %v2811_v26 = vpack.c.bf16 %v2759_v4, %v2757_v8  ;;  %v3157_v7 = vadd.f32 %v11025_v6, %v9043_v52  ;;  %v3407_v31 = vmul.f32 %v3343_v11, %v11075_v55  ;;  %v11081_v55 = vld [vmem:[#allocation24_spill] sm:$0xff]  ;;  %v11083_v8 = vld [vmem:[#allocation146_spill] sm:$0xff]  ;;  %v3064_v4 = vpop.permute.xlu0 %3063 }
 0x340   :  { %v2812_v33 = vpack.c.bf16 %v2760_v15, %v2758_v50  ;;  %v3344_v56 = vsel %vm3216_vm15, %v3152_v41, %v3280_v47  ;;  %v3406_v51 = vmul.f32 %v3342_v30, %v11077_v53  ;;  %vm2569_vm0 = vcmp.ge.f32.partialorder %v2505_v63, 0.0  ;;  %v11080_v30 = vld [vmem:[#allocation19_spill] sm:$0xff]  ;;  %v11082_v15 = vld [vmem:[#allocation126_spill] sm:$0xff]  ;;  %v11084_v47 = vld [vmem:[#allocation125_spill] sm:$0xff] }
 0x341   :  { %4756 = vrot.lane.b32.xlu1 %v11079_v32, %s6302_s1  ;;  %v3345_v10 = vsel %vm3217_vm1, %v3153_v42, %v3281_v20  ;;  %v3408_v18 = vmul.f32 %v3344_v56, %v11078_v62  ;;  %vm2570_vm2 = vcmp.ge.f32.partialorder %v2506_v3, 0.0  ;;  %v2633_v24 = vmul.f32 0.2, %v2505_v63  ;;  %v11085_v20 = vld [vmem:[#allocation145_spill] sm:$0xff] }
 0x342   :  { %2905 = vmatprep.mubr.bf16.mxu0 %v2812_v33  ;;  %v3409_v13 = vmul.f32 %v3345_v10, %v11076_v9  ;;  %v2634_v52 = vmul.f32 0.2, %v2506_v3  ;;  %v2507_v17 = vadd.f32 %v11044_v49, %v2399_v2  ;;  %v2508_v35 = vadd.f32 %v11046_v48, %v2399_v2 }
 0x343   :  { %2906 = vmatmul.mubr.bf16.gmra.mrb[100].mxu0 %v2811_v26  ;;  %v3460_v38 = vpack.c.bf16 %v3408_v18, %v3406_v51  ;;  %vm3220_vm3 = vcmp.ge.f32.partialorder %v9071_v60, 0.0  ;;  %v3285_v19 = vmul.f32 0.2, %v3157_v7  ;;  %vm3221_vm6 = vcmp.ge.f32.partialorder %v3157_v7, 0.0  ;;  %v3044_v42 = vpop.permute.xlu1 %3043  ;;  %v11086_v51 = vld [vmem:[#allocation23_spill] sm:$0xff] }
 0x344   :  { %v3461_v58 = vpack.c.bf16 %v3409_v13, %v3407_v31  ;;  %vm2571_vm4 = vcmp.ge.f32.partialorder %v2507_v17, 0.0  ;;  %vm2572_vm5 = vcmp.ge.f32.partialorder %v2508_v35, 0.0  ;;  %v2635_v36 = vmul.f32 0.2, %v2507_v17 }
 0x345   :  { %4760 = vrot.lane.b32.xlu1 %v11080_v30, %s6302_s1  ;;  %v2636_v14 = vmul.f32 0.2, %v2508_v35  ;;  %v2697_v11 = vsel %vm2569_vm0, %v2505_v63, %v2633_v24  ;;  %v2698_v1 = vsel %vm2570_vm2, %v2506_v3, %v2634_v52  ;;  %v3348_v39 = vsel %vm3220_vm3, %v9071_v60, %v3284_v61 }
 0x346   :  { %3554 = vmatprep.mubr.bf16.mxu1 %v3461_v58  ;;  %v2699_v29 = vsel %vm2571_vm4, %v2507_v17, %v2635_v36  ;;  %v3154_v50 = vadd.f32 %v11024_v43, %v3044_v42  ;;  %v3155_v9 = vadd.f32 %v11025_v6, %v3044_v42  ;;  %v3349_v63 = vsel %vm3221_vm6, %v3157_v7, %v3285_v19  ;;  %v3068_v42 = vpop.permute.xlu0 %3067 }
 0x347   :  { %3555 = vmatmul.mubr.bf16.gmra.mrb[132].mxu1 %v3460_v38  ;;  %v2700_v41 = vsel %vm2572_vm5, %v2508_v35, %v2636_v14  ;;  %v2763_v62 = vmul.f32 %v2699_v29, %v11083_v8  ;;  %v2513_v3 = vadd.f32 %v11044_v49, %v2411_v45  ;;  %v2762_v60 = vmul.f32 %v2698_v1, %v11084_v47  ;;  %v11087_v14 = vld [vmem:[#allocation28_spill] sm:$0xff] }
 0x348   :  { %v2764_v53 = vmul.f32 %v2700_v41, %v11082_v15  ;;  %v2761_v33 = vmul.f32 %v2697_v11, %v11085_v20  ;;  %vm3218_vm9 = vcmp.ge.f32.partialorder %v3154_v50, 0.0  ;;  %vm3219_vm7 = vcmp.ge.f32.partialorder %v3155_v9, 0.0 }
 0x349   :  { %4764 = vrot.lane.b32.xlu1 %v11081_v55, %s6302_s1  ;;  %v3282_v26 = vmul.f32 0.2, %v3154_v50  ;;  %v3283_v61 = vmul.f32 0.2, %v3155_v9  ;;  %v2514_v32 = vadd.f32 %v11046_v48, %v2411_v45  ;;  %v3158_v56 = vadd.f32 %v11024_v43, %v3052_v0  ;;  %v2403_v52 = vpop.permute.xlu1 %2402 }
 0x34a   :  { %v2814_v10 = vpack.c.bf16 %v2764_v53, %v2762_v60  ;;  %v2813_v31 = vpack.c.bf16 %v2763_v62, %v2761_v33  ;;  %v3159_v13 = vadd.f32 %v11025_v6, %v3052_v0  ;;  %v3164_v7 = vadd.f32 %v11024_v43, %v3064_v4 }
 0x34b   :  { %v3346_v18 = vsel %vm3218_vm9, %v3154_v50, %v3282_v26  ;;  %v3347_v24 = vsel %vm3219_vm7, %v3155_v9, %v3283_v61  ;;  %v2509_v2 = vadd.f32 %v11044_v49, %v2403_v52  ;;  %v2510_v17 = vadd.f32 %v11046_v48, %v2403_v52  ;;  %v11090_v52 = vld [vmem:[#allocation98_spill] sm:$0xff] }
 0x34c   :  { %2913 = vmatprep.mubr.bf16.mxu0 %v2814_v10  ;;  %v3411_v45 = vmul.f32 %v3347_v24, %v11084_v47  ;;  %v3410_v35 = vmul.f32 %v3346_v18, %v11085_v20  ;;  %vm2577_vm8 = vcmp.ge.f32.partialorder %v2513_v3, 0.0  ;;  %v2641_v58 = vmul.f32 0.2, %v2513_v3  ;;  %v3080_v10 = vpop.permute.xlu0 %3079  ;;  %v11089_v18 = vld [vmem:[#allocation128_spill] sm:$0xff] }
 0x34d   :  { %4768 = vrot.lane.b32.xlu1 %v11086_v51, %s6302_s1  ;;  %2914 = vmatmul.mubr.bf16.gmra.mrb[104].mxu0 %v2813_v31  ;;  %v3413_v0 = vmul.f32 %v3349_v63, %v11082_v15  ;;  %v3412_v38 = vmul.f32 %v3348_v39, %v11083_v8  ;;  %vm2578_vm10 = vcmp.ge.f32.partialorder %v2514_v32, 0.0  ;;  %v2642_v19 = vmul.f32 0.2, %v2514_v32  ;;  %v11088_v63 = vld [vmem:[#allocation27_spill] sm:$0xff] }
 0x34e   :  { %vm3222_vm11 = vcmp.ge.f32.partialorder %v3158_v56, 0.0  ;;  %v3286_v30 = vmul.f32 0.2, %v3158_v56  ;;  %vm3223_vm12 = vcmp.ge.f32.partialorder %v3159_v13, 0.0  ;;  %v3287_v36 = vmul.f32 0.2, %v3159_v13 }
 0x34f   :  { %v3463_v11 = vpack.c.bf16 %v3413_v0, %v3411_v45  ;;  %v3462_v1 = vpack.c.bf16 %v3412_v38, %v3410_v35  ;;  %v3165_v29 = vadd.f32 %v11025_v6, %v3064_v4  ;;  %v3292_v41 = vmul.f32 0.2, %v3164_v7 }
 0x350   :  { %v2637_v55 = vmul.f32 0.2, %v2509_v2  ;;  %v2638_v50 = vmul.f32 0.2, %v2510_v17  ;;  %vm2573_vm13 = vcmp.ge.f32.partialorder %v2509_v2, 0.0  ;;  %vm2574_vm14 = vcmp.ge.f32.partialorder %v2510_v17, 0.0 }
 0x351   :  { %4772 = vrot.lane.b32.xlu1 %v11087_v14, %s6302_s1  ;;  %3562 = vmatprep.mubr.bf16.mxu1 %v3463_v11  ;;  %v9127_v53 = vsel %vm2577_vm8, %v2513_v3, %v2641_v58  ;;  %v9130_v8 = vsel %vm2578_vm10, %v2514_v32, %v2642_v19  ;;  %v3350_v62 = vsel %vm3222_vm11, %v3158_v56, %v3286_v30  ;;  %vm3228_vm15 = vcmp.ge.f32.partialorder %v3164_v7, 0.0  ;;  %v11093_v58 = vld [vmem:[#allocation159_spill] sm:$0xff] }
 0x352   :  { %v2407_v9 = vpop.permute.xlu1 %2406  ;;  %3563 = vmatmul.mubr.bf16.gmra.mrb[136].mxu1 %v3462_v1  ;;  %v3351_v60 = vsel %vm3223_vm12, %v3159_v13, %v3287_v36  ;;  %vm3229_vm2 = vcmp.ge.f32.partialorder %v3165_v29, 0.0  ;;  %v2701_v3 = vsel %vm2573_vm13, %v2509_v2, %v2637_v55  ;;  %v2702_v20 = vsel %vm2574_vm14, %v2510_v17, %v2638_v50  ;;  %v11092_v17 = vld [vmem:[#allocation127_spill] sm:$0xff] }
 0x353   :  { %v2511_v39 = vadd.f32 %v11044_v49, %v2407_v9  ;;  %v2512_v15 = vadd.f32 %v11046_v48, %v2407_v9  ;;  %v3293_v33 = vmul.f32 0.2, %v3165_v29  ;;  %v9138_v26 = vsel %vm3228_vm15, %v3164_v7, %v3292_v41  ;;  %v11091_v7 = vld [vmem:[#allocation32_spill] sm:$0xff]  ;;  %v5339_v41 = vpop.f32.mrb[16].mxu0 }
 0x354   :  { %v9145_v45 = vadd.f32 %v11024_v43, %v3068_v42  ;;  %v9148_v2 = vadd.f32 %v11025_v6, %v3068_v42  ;;  %v2766_v35 = vmul.f32 %v2702_v20, %v11092_v17  ;;  %v2765_v0 = vmul.f32 %v2701_v3, %v11093_v58  ;;  %v2427_v20 = vpop.permute.xlu0 %2426 }
 0x355   :  { %4776 = vrot.lane.b32.xlu1 %v11088_v63, %s6302_s1  ;;  %vm2575_vm1 = vcmp.ge.f32.partialorder %v2511_v39, 0.0  ;;  %vm2576_vm0 = vcmp.ge.f32.partialorder %v2512_v15, 0.0  ;;  %v2639_v4 = vmul.f32 0.2, %v2511_v39  ;;  %v2640_v47 = vmul.f32 0.2, %v2512_v15 }
 0x356   :  { %v9155_v30 = vsel %vm3229_vm2, %v3165_v29, %v3293_v33  ;;  %v9158_v36 = vadd.f32 %v11024_v43, %v3080_v10  ;;  %v9161_v1 = vadd.f32 %v11025_v6, %v3080_v10  ;;  %v3415_v9 = vmul.f32 %v3351_v60, %v11092_v17  ;;  %v11094_v29 = vld [vmem:[#allocation31_spill] sm:$0xff]  ;;  %v11095_v17 = vld [vmem:[#allocation102_spill] sm:$0xff] }
 0x357   :  { %v2703_v61 = vsel %vm2575_vm1, %v2511_v39, %v2639_v4  ;;  %v2704_v32 = vsel %vm2576_vm0, %v2512_v15, %v2640_v47  ;;  %v3056_v56 = vpop.permute.xlu1 %3055  ;;  %v9165_v39 = vmul.f32 0.2, %v9145_v45  ;;  %v5340_v15 = vpop.f32.mrb[17].mxu0  ;;  %v9173_v3 = vmul.f32 0.2, %v9148_v2 }
 0x358   :  { %v3160_v31 = vadd.f32 %v11024_v43, %v3056_v56  ;;  %v3161_v51 = vadd.f32 %v11025_v6, %v3056_v56  ;;  %v2768_v24 = vmul.f32 %v2704_v32, %v11089_v18  ;;  %v2767_v13 = vmul.f32 %v2703_v61, %v11090_v52  ;;  %v5342_v60 = vpop.f32.mrb[18].mxu0 }
 0x359   :  { %4780 = vrot.lane.b32.xlu1 %v11091_v7, %s6302_s1  ;;  %v5341_v33 = vadd.f32 %v5340_v15, %v5339_v41  ;;  %v3414_v61 = vmul.f32 %v3350_v62, %v11093_v58  ;;  %v5343_v56 = vpop.f32.mrb[19].mxu0  ;;  %vm3230_vm9 = vcmp.ge.f32.partialorder %v9145_v45, 0.0  ;;  %vm3231_vm7 = vcmp.ge.f32.partialorder %v9148_v2, 0.0 }
 0x35a   :  { %vm3224_vm3 = vcmp.ge.f32.partialorder %v3160_v31, 0.0  ;;  %vm3225_vm4 = vcmp.ge.f32.partialorder %v3161_v51, 0.0  ;;  %v3288_v38 = vmul.f32 0.2, %v3160_v31  ;;  %v3289_v19 = vmul.f32 0.2, %v3161_v51 }
 0x35b   :  { %v2816_v14 = vpack.c.bf16 %v2768_v24, %v2766_v35  ;;  %v2815_v11 = vpack.c.bf16 %v2767_v13, %v2765_v0  ;;  %vm3236_vm8 = vcmp.ge.f32.partialorder %v9158_v36, 0.0  ;;  %vm3237_vm10 = vcmp.ge.f32.partialorder %v9161_v1, 0.0  ;;  %v5451_v41 = vpop.f32.mrb[48].mxu1 }
 0x35c   :  { %v3352_v42 = vsel %vm3224_vm3, %v3160_v31, %v3288_v38  ;;  %v3353_v55 = vsel %vm3225_vm4, %v3161_v51, %v3289_v19  ;;  %v2415_v50 = vpop.permute.xlu1 %2414  ;;  %v5344_v51 = vadd.f32 %v5343_v56, %v5342_v60  ;;  %v3300_v62 = vmul.f32 0.2, %v9158_v36  ;;  %v11096_v19 = vld [vmem:[#allocation150_spill] sm:$0xff] }
 0x35d   :  { %4784 = vrot.lane.b32.xlu1 %v11094_v29, %s6302_s1  ;;  %2921 = vmatprep.mubr.bf16.mxu0 %v2816_v14  ;;  %v2515_v63 = vadd.f32 %v11044_v49, %v2415_v50  ;;  %v2516_v4 = vadd.f32 %v11046_v48, %v2415_v50  ;;  %v3417_v47 = vmul.f32 %v3353_v55, %v11089_v18  ;;  %vm3643_vm11 = vcmask 64512   ;;  %v11098_v55 = vld [vmem:[#allocation130_spill] sm:$0xff] }
 0x35e   :  { %2922 = vmatmul.mubr.bf16.gmra.mrb[108].mxu0 %v2815_v11  ;;  %v3416_v32 = vmul.f32 %v3352_v42, %v11090_v52  ;;  %v2521_v52 = vadd.f32 %v11044_v49, %v2427_v20  ;;  %v2769_v35 = vmul.f32 %v9127_v53, %v11095_v17  ;;  %v3301_v11 = vmul.f32 0.2, %v9161_v1 }
 0x35f   :  { %vm2579_vm5 = vcmp.ge.f32.partialorder %v2515_v63, 0.0  ;;  %vm2580_vm6 = vcmp.ge.f32.partialorder %v2516_v4, 0.0  ;;  %v2643_v10 = vmul.f32 0.2, %v2515_v63  ;;  %v3465_v31 = vpack.c.bf16 %v3417_v47, %v3415_v9  ;;  %v5452_v9 = vpop.f32.mrb[49].mxu1 }
 0x360   :  { %v2644_v18 = vmul.f32 0.2, %v2516_v4  ;;  %v3464_v24 = vpack.c.bf16 %v3416_v32, %v3414_v61  ;;  %v2522_v29 = vadd.f32 %v11046_v48, %v2427_v20  ;;  %vm2585_vm14 = vcmp.ge.f32.partialorder %v2521_v52, 0.0 }
 0x361   :  { %4788 = vrot.lane.b32.xlu1 %v11015_v46, %s6302_s1  ;;  %v2707_v13 = vsel %vm2579_vm5, %v2515_v63, %v2643_v10  ;;  %3570 = vmatprep.mubr.bf16.mxu1 %v3465_v31  ;;  %v3060_v7 = vpop.permute.xlu1 %3059  ;;  %v11097_v46 = vld [vmem:[#allocation129_spill] sm:$0xff]  ;;  %v5453_v63 = vadd.f32 %v5452_v9, %v5451_v41  ;;  %v2649_v61 = vmul.f32 0.2, %v2521_v52  ;;  %v3421_v10 = vmul.f32 %v9155_v30, %v11098_v55 }
 0x362   :  { %v2708_v58 = vsel %vm2580_vm6, %v2516_v4, %v2644_v18  ;;  %v3162_v0 = vadd.f32 %v11024_v43, %v3060_v7  ;;  %v3163_v38 = vadd.f32 %v11025_v6, %v3060_v7  ;;  %3571 = vmatmul.mubr.bf16.gmra.mrb[140].mxu1 %v3464_v24  ;;  %v2771_v14 = vmul.f32 %v2707_v13, %v11096_v19  ;;  %v5454_v4 = vpop.f32.mrb[50].mxu1 }
 0x363   :  { %v2770_v42 = vmul.f32 %v9130_v8, %v11097_v46  ;;  %v2772_v50 = vmul.f32 %v2708_v58, %v11098_v55  ;;  %v5455_v32 = vpop.f32.mrb[51].mxu1  ;;  %v9201_v31 = vsel %vm3643_vm11, %v5341_v33, %v5453_v63  ;;  %v2650_v30 = vmul.f32 0.2, %v2522_v29 }
 0x364   :  { %vm3226_vm12 = vcmp.ge.f32.partialorder %v3162_v0, 0.0  ;;  %vm3227_vm13 = vcmp.ge.f32.partialorder %v3163_v38, 0.0  ;;  %v3290_v53 = vmul.f32 0.2, %v3162_v0  ;;  %v2817_v15 = vpack.c.bf16 %v2771_v14, %v2769_v35 }
 0x365   :  { %4792 = vrot.lane.b32.xlu1 %v11035_v40, %s6302_s1  ;;  %v3291_v47 = vmul.f32 0.2, %v3163_v38  ;;  %v2818_v60 = vpack.c.bf16 %v2772_v50, %v2770_v42  ;;  %v5456_v18 = vadd.f32 %v5455_v32, %v5454_v4  ;;  %v3420_v35 = vmul.f32 %v9138_v26, %v11096_v19  ;;  %v11099_v32 = vld [vmem:[#allocation131_spill] sm:$0xff] }
 0x366   :  { %v3354_v8 = vsel %vm3226_vm12, %v3162_v0, %v3290_v53  ;;  %v2419_v56 = vpop.permute.xlu1 %2418  ;;  %v9225_v26 = vsel %vm3231_vm7, %v9148_v2, %v9173_v3  ;;  %vm2586_vm0 = vcmp.ge.f32.partialorder %v2522_v29, 0.0  ;;  %v9235_v41 = vsel %vm3237_vm10, %v9161_v1, %v3301_v11 }
 0x367   :  { %v3355_v20 = vsel %vm3227_vm13, %v3163_v38, %v3291_v47  ;;  %2929 = vmatprep.mubr.bf16.mxu0 %v2818_v60  ;;  %v2517_v24 = vadd.f32 %v11044_v49, %v2419_v56  ;;  %v2518_v40 = vadd.f32 %v11046_v48, %v2419_v56  ;;  %v3418_v7 = vmul.f32 %v3354_v8, %v11095_v17  ;;  %v11100_v56 = vld [vmem:[#allocation50_spill] sm:$0xff] }
 0x368   :  { %2930 = vmatmul.mubr.bf16.gmra.mrb[112].mxu0 %v2817_v15  ;;  %v3419_v13 = vmul.f32 %v3355_v20, %v11097_v46  ;;  %v9211_v33 = vsel %vm3643_vm11, %v5344_v51, %v5456_v18  ;;  %v9219_v17 = vsel %vm3230_vm9, %v9145_v45, %v9165_v39  ;;  %v5345_v51 = vpop.f32.mrb[20].mxu0  ;;  %v9238_v45 = vsel %vm2585_vm14, %v2521_v52, %v2649_v61  ;;  %v2443_v39 = vpop.permute.xlu0 %2442 }
 0x369   :  { %4796 = vrot.lane.b32.xlu1 %v11039_v59, %s6302_s1  ;;  %vm2581_vm15 = vcmp.ge.f32.partialorder %v2517_v24, 0.0  ;;  %v2645_v58 = vmul.f32 0.2, %v2517_v24  ;;  %vm2582_vm1 = vcmp.ge.f32.partialorder %v2518_v40, 0.0  ;;  %v2646_v0 = vmul.f32 0.2, %v2518_v40 }
 0x36a   :  { %v3467_v38 = vpack.c.bf16 %v3421_v10, %v3419_v13  ;;  %v3466_v14 = vpack.c.bf16 %v3420_v35, %v3418_v7  ;;  %v9230_v59 = vsel %vm3236_vm8, %v9158_v36, %v3300_v62  ;;  %v2423_v19 = vpop.permute.xlu1 %2422  ;;  %v5346_v46 = vpop.f32.mrb[21].mxu0  ;;  %v9247_v1 = vsel %vm2586_vm0, %v2522_v29, %v2650_v30  ;;  %v3743_v29 = vld [vmem:[%s10222_s6 + $0x8] sm:$0xff] }
 0x36b   :  { %v2519_v2 = vadd.f32 %v11044_v49, %v2423_v19  ;;  %v2520_v3 = vadd.f32 %v11046_v48, %v2423_v19  ;;  %v5457_v36 = vpop.f32.mrb[52].mxu1  ;;  %v5347_v62 = vadd.f32 %v5346_v46, %v5345_v51  ;;  %v5348_v42 = vpop.f32.mrb[22].mxu0  ;;  %v2709_v55 = vsel %vm2581_vm15, %v2517_v24, %v2645_v58  ;;  %v11101_v7 = vld [vmem:[#allocation107_spill] sm:$0xff] }
 0x36c   :  { %3578 = vmatprep.mubr.bf16.mxu1 %v3467_v38  ;;  %v2710_v50 = vsel %vm2582_vm1, %v2518_v40, %v2646_v0  ;;  %v5458_v52 = vpop.f32.mrb[53].mxu1  ;;  %v5349_v11 = vpop.f32.mrb[23].mxu0  ;;  %v9250_v53 = vadd.f32 %v11044_v49, %v2443_v39  ;;  %v2773_v10 = vmul.f32 %v2709_v55, %v11100_v56  ;;  %v11102_v38 = vld [vmem:[#allocation134_spill] sm:$0xff]  ;;  %v9271_v51 = vadd.f32 %v11046_v48, %v2443_v39 }
 0x36d   :  { %4800 = vrot.lane.b32.xlu1 %v11048_v27, %s6302_s1  ;;  %3579 = vmatmul.mubr.bf16.gmra.mrb[144].mxu1 %v3466_v14  ;;  %vm2583_vm2 = vcmp.ge.f32.partialorder %v2519_v2, 0.0  ;;  %vm2584_vm3 = vcmp.ge.f32.partialorder %v2520_v3, 0.0  ;;  %v2647_v9 = vmul.f32 0.2, %v2519_v2  ;;  %v5459_v15 = vadd.f32 %v5458_v52, %v5457_v36  ;;  %v5460_v63 = vpop.f32.mrb[54].mxu1  ;;  %v3742_v27 = vld [vmem:[%s10222_s6] sm:$0xff]  ;;  %v3084_v30 = vpop.permute.xlu0 %3083 }
 0x36e   :  { %v5350_v4 = vadd.f32 %v5349_v11, %v5348_v42  ;;  %v2648_v47 = vmul.f32 0.2, %v2520_v3  ;;  %v5461_v60 = vpop.f32.mrb[55].mxu1  ;;  %v2774_v8 = vmul.f32 %v2710_v50, %v11099_v32  ;;  %v6081_v18 = vpack.c.bf16 %v3743_v29, %v3742_v27  ;;  %v5351_v46 = vpop.f32.mrb[24].mxu0  ;;  %v3744_v11 = vld [vmem:[%s10222_s6 + $0x10] sm:$0xff] }
 0x36f   :  { %v2711_v61 = vsel %vm2583_vm2, %v2519_v2, %v2647_v9  ;;  %v9261_v20 = vsel %vm3643_vm11, %v5347_v62, %v5459_v15  ;;  %v5462_v24 = vadd.f32 %v5461_v60, %v5460_v63  ;;  %v3072_v13 = vpop.permute.xlu1 %3071  ;;  %v5352_v2 = vpop.f32.mrb[25].mxu0  ;;  %v9277_v62 = vadd.f32 %v11024_v43, %v3084_v30  ;;  %v3745_v9 = vld [vmem:[%s10222_s6 + $0x18] sm:$0xff] }
 0x370   :  { %v2712_v40 = vsel %vm2584_vm3, %v2520_v3, %v2648_v47  ;;  %v2775_v35 = vmul.f32 %v2711_v61, %v11101_v7  ;;  %v3168_v58 = vadd.f32 %v11024_v43, %v3072_v13  ;;  %v3169_v0 = vadd.f32 %v11025_v6, %v3072_v13  ;;  %6082 = vmatprep.subr.bf16.mxu0 %v6081_v18  ;;  %v5463_v39 = vpop.f32.mrb[56].mxu1  ;;  %v5354_v50 = vpop.f32.mrb[26].mxu0 }
 0x371   :  { %4804 = vrot.lane.b32.xlu1 %v11051_v37, %s6302_s1  ;;  %v2776_v14 = vmul.f32 %v2712_v40, %v11102_v38  ;;  %6090 = vmatprep.subr.bf16.mxu1 %v6081_v18  ;;  %v9274_v19 = vsel %vm3643_vm11, %v5350_v4, %v5462_v24  ;;  %v9280_v42 = vadd.f32 %v11025_v6, %v3084_v30  ;;  %v5464_v15 = vpop.f32.mrb[57].mxu1  ;;  %v5355_v63 = vpop.f32.mrb[27].mxu0  ;;  %v9297_v24 = vmul.f32 0.2, %v9250_v53 }
 0x372   :  { %v2819_v37 = vpack.c.bf16 %v2775_v35, %v2773_v10  ;;  %6084 = vmatpush3.bf16.msra.mxu0 %v6081_v18  ;;  %6092 = vmatpush3.bf16.msra.mxu1 %v6081_v18  ;;  %vm3232_vm4 = vcmp.ge.f32.partialorder %v3168_v58, 0.0  ;;  %vm3233_vm5 = vcmp.ge.f32.partialorder %v3169_v0, 0.0  ;;  %v3296_v3 = vmul.f32 0.2, %v3168_v58  ;;  %v5466_v60 = vpop.f32.mrb[58].mxu1 }
 0x373   :  { %v2820_v36 = vpack.c.bf16 %v2776_v14, %v2774_v8  ;;  %v5353_v55 = vadd.f32 %v5352_v2, %v5351_v46  ;;  %v3297_v52 = vmul.f32 0.2, %v3169_v0  ;;  %v3423_v47 = vmul.f32 %v9225_v26, %v11099_v32  ;;  %v5467_v40 = vpop.f32.mrb[59].mxu1 }
 0x374   :  { %v3360_v4 = vsel %vm3232_vm4, %v3168_v58, %v3296_v3  ;;  %v3422_v27 = vmul.f32 %v9219_v17, %v11100_v56  ;;  %v6085_v29 = vpack.c.bf16 %v3745_v9, %v3744_v11  ;;  %v5356_v61 = vadd.f32 %v5355_v63, %v5354_v50  ;;  %v2431_v10 = vpop.permute.xlu1 %2430  ;;  %v3096_v3 = vpop.permute.xlu0 %3095  ;;  %v11104_v63 = vld [vmem:[#allocation136_spill] sm:$0xff] }
 0x375   :  { %4808 = vrot.lane.b32.xlu1 %v11058_v22, %s6302_s1  ;;  %2937 = vmatprep.mubr.bf16.mxu0 %v2820_v36  ;;  %v5465_v22 = vadd.f32 %v5464_v15, %v5463_v39  ;;  %v3361_v8 = vsel %vm3233_vm5, %v3169_v0, %v3297_v52  ;;  %v3424_v18 = vmul.f32 %v3360_v4, %v11101_v7  ;;  %vm2593_vm6 = vcmp.ge.f32.partialorder %v9250_v53, 0.0 }
 0x376   :  { %2938 = vmatmul.mubr.bf16.gmra.mrb[116].mxu0 %v2819_v37  ;;  %v2523_v13 = vadd.f32 %v11044_v49, %v2431_v10  ;;  %v2524_v26 = vadd.f32 %v11046_v48, %v2431_v10  ;;  %v3425_v17 = vmul.f32 %v3361_v8, %v11102_v38  ;;  %6086 = vmatprep.subr.bf16.mxu0 %v6085_v29  ;;  %vm2594_vm9 = vcmp.ge.f32.partialorder %v9271_v51, 0.0  ;;  %v5357_v38 = vpop.f32.mrb[28].mxu0  ;;  %v11103_v37 = vld [vmem:[#allocation135_spill] sm:$0xff]  ;;  %v5469_v11 = vpop.f32.mrb[60].mxu1 }
 0x377   :  { %6094 = vmatprep.subr.bf16.mxu1 %v6085_v29  ;;  %v9305_v32 = vmul.f32 0.2, %v9271_v51  ;;  %v9308_v56 = vsel %vm3643_vm11, %v5353_v55, %v5465_v22  ;;  %v5468_v7 = vadd.f32 %v5467_v40, %v5466_v60  ;;  %v3468_v35 = vpack.c.bf16 %v3424_v18, %v3422_v27  ;;  %6088 = vmatpush3.bf16.msra.mxu0 %v6085_v29  ;;  %v5470_v27 = vpop.f32.mrb[61].mxu1  ;;  %v11106_v60 = vld [vmem:[#allocation22_spill] sm:$0xff] }
 0x378   :  { %vm2587_vm7 = vcmp.ge.f32.partialorder %v2523_v13, 0.0  ;;  %vm2588_vm8 = vcmp.ge.f32.partialorder %v2524_v26, 0.0  ;;  %v2651_v30 = vmul.f32 0.2, %v2523_v13  ;;  %v2652_v58 = vmul.f32 0.2, %v2524_v26  ;;  %6096 = vmatpush3.bf16.msra.mxu1 %v6085_v29 }
 0x379   :  { %4812 = vrot.lane.b32.xlu1 %v11064_v16, %s6302_s1  ;;  %vm3238_vm10 = vcmp.ge.f32.partialorder %v9277_v62, 0.0  ;;  %v9314_v0 = vsel %vm3643_vm11, %v5356_v61, %v5468_v7  ;;  %v3469_v14 = vpack.c.bf16 %v3425_v17, %v3423_v47  ;;  %v3076_v46 = vpop.permute.xlu1 %3075  ;;  %v2778_v2 = vmul.f32 %v9247_v1, %v11103_v37  ;;  %v5358_v16 = vpop.f32.mrb[29].mxu0  ;;  %v11105_v1 = vld [vmem:[#allocation108_spill] sm:$0xff] }
 0x37a   :  { %v2715_v36 = vsel %vm2587_vm7, %v2523_v13, %v2651_v30  ;;  %v2716_v39 = vsel %vm2588_vm8, %v2524_v26, %v2652_v58  ;;  %v3170_v55 = vadd.f32 %v11024_v43, %v3076_v46  ;;  %v3171_v50 = vadd.f32 %v11025_v6, %v3076_v46  ;;  %v5360_v15 = vpop.f32.mrb[30].mxu0  ;;  %v5472_v10 = vpop.f32.mrb[62].mxu1 }
 0x37b   :  { %v3302_v52 = vmul.f32 0.2, %v9277_v62  ;;  %v5359_v9 = vadd.f32 %v5358_v16, %v5357_v38  ;;  %3586 = vmatprep.mubr.bf16.mxu1 %v3469_v14  ;;  %v2780_v4 = vmul.f32 %v2716_v39, %v11104_v63  ;;  %v2779_v47 = vmul.f32 %v2715_v36, %v11105_v1  ;;  %v5361_v29 = vpop.f32.mrb[31].mxu0  ;;  %v5473_v26 = vpop.f32.mrb[63].mxu1 }
 0x37c   :  { %vm3234_vm12 = vcmp.ge.f32.partialorder %v3170_v55, 0.0  ;;  %vm3235_vm13 = vcmp.ge.f32.partialorder %v3171_v50, 0.0  ;;  %v3298_v22 = vmul.f32 0.2, %v3170_v55  ;;  %3587 = vmatmul.mubr.bf16.gmra.mrb[148].mxu1 %v3468_v35  ;;  %v2777_v61 = vmul.f32 %v9238_v45, %v11106_v60  ;;  %v3100_v36 = vpop.permute.xlu0 %3099 }
 0x37d   :  { %4816 = vrot.lane.b32.xlu1 %v11074_v57, %s6302_s1  ;;  %v5471_v8 = vadd.f32 %v5470_v27, %v5469_v11  ;;  %v5362_v18 = vadd.f32 %v5361_v29, %v5360_v15  ;;  %v3299_v40 = vmul.f32 0.2, %v3171_v50  ;;  %v2822_v13 = vpack.c.bf16 %v2780_v4, %v2778_v2 }
 0x37e   :  { %v3303_v57 = vmul.f32 0.2, %v9280_v42  ;;  %v3362_v17 = vsel %vm3234_vm12, %v3170_v55, %v3298_v22  ;;  %v2821_v7 = vpack.c.bf16 %v2779_v47, %v2777_v61  ;;  %v3428_v30 = vmul.f32 %v9230_v59, %v11105_v1  ;;  %v5363_v55 = vpop.f32.mrb[32].mxu0 }
 0x37f   :  { %v9331_v58 = vsel %vm3643_vm11, %v5359_v9, %v5471_v8  ;;  %v5474_v35 = vadd.f32 %v5473_v26, %v5472_v10  ;;  %v3363_v38 = vsel %vm3235_vm13, %v3171_v50, %v3299_v40  ;;  %2945 = vmatprep.mubr.bf16.mxu0 %v2822_v13  ;;  %v3426_v14 = vmul.f32 %v3362_v17, %v11106_v60  ;;  %v5475_v1 = vpop.f32.mrb[64].mxu1 }
 0x380   :  { %v3180_v46 = vadd.f32 %v11024_v43, %v3096_v3  ;;  %2946 = vmatmul.mubr.bf16.gmra.mrb[120].mxu0 %v2821_v7  ;;  %v3427_v16 = vmul.f32 %v3363_v38, %v11103_v37  ;;  %v3429_v59 = vmul.f32 %v9235_v41, %v11104_v63  ;;  %vm3239_vm14 = vcmp.ge.f32.partialorder %v9280_v42, 0.0  ;;  %v5364_v37 = vpop.f32.mrb[33].mxu0 }
 0x381   :  { %v2435_v45 = vpop.permute.xlu1 %2434  ;;  %v9342_v39 = vsel %vm3643_vm11, %v5362_v18, %v5474_v35  ;;  %v3470_v11 = vpack.c.bf16 %v3428_v30, %v3426_v14  ;;  %v9349_v9 = vsel %vm2593_vm6, %v9250_v53, %v9297_v24  ;;  %v9355_v41 = vsel %vm2594_vm9, %v9271_v51, %v9305_v32  ;;  %v5366_v53 = vpop.f32.mrb[34].mxu0 }
 0x382   :  { %v2526_v2 = vadd.f32 %v11046_v48, %v2435_v45  ;;  %v2525_v50 = vadd.f32 %v11044_v49, %v2435_v45  ;;  %v3471_v15 = vpack.c.bf16 %v3429_v59, %v3427_v16  ;;  %v9360_v63 = vsel %vm3238_vm10, %v9277_v62, %v3302_v52  ;;  %v5476_v32 = vpop.f32.mrb[65].mxu1  ;;  %v5367_v29 = vpop.f32.mrb[35].mxu0 }
 0x383   :  { %v9363_v4 = vadd.f32 %v11025_v6, %v3096_v3  ;;  %v5365_v47 = vadd.f32 %v5364_v37, %v5363_v55  ;;  %v3367_v27 = vsel %vm3239_vm14, %v9280_v42, %v3303_v57  ;;  %vm3244_vm15 = vcmp.ge.f32.partialorder %v3180_v46, 0.0  ;;  %v5478_v3 = vpop.f32.mrb[66].mxu1 }
 0x384   :  { %v2654_v24 = vmul.f32 0.2, %v2526_v2  ;;  %v9369_v51 = vadd.f32 %v11024_v43, %v3100_v36  ;;  %vm2590_vm1 = vcmp.ge.f32.partialorder %v2526_v2, 0.0  ;;  %3594 = vmatprep.mubr.bf16.mxu1 %v3471_v15  ;;  %v3308_v62 = vmul.f32 0.2, %v3180_v46  ;;  %v5479_v10 = vpop.f32.mrb[67].mxu1 }
 0x385   :  { %v5477_v52 = vadd.f32 %v5476_v32, %v5475_v1  ;;  %v5368_v22 = vadd.f32 %v5367_v29, %v5366_v53  ;;  %v2653_v60 = vmul.f32 0.2, %v2525_v50  ;;  %v2439_v61 = vpop.permute.xlu1 %2438  ;;  %3595 = vmatmul.mubr.bf16.gmra.mrb[152].mxu1 %v3470_v11  ;;  %v9372_v8 = vadd.f32 %v11025_v6, %v3100_v36  ;;  %v5369_v45 = vpop.f32.mrb[36].mxu0  ;;  %v11107_v1 = vld [vmem:[#allocation161_spill] sm:$0xff] }
 0x386   :  { %vm2589_vm0 = vcmp.ge.f32.partialorder %v2525_v50, 0.0  ;;  %v2527_v42 = vadd.f32 %v11044_v49, %v2439_v61  ;;  %v2528_v18 = vadd.f32 %v11046_v48, %v2439_v61  ;;  %v9377_v40 = vmul.f32 0.2, %v9363_v4  ;;  %v11108_v53 = vld [vmem:[#allocation149_spill] sm:$0xff] }
 0x387   :  { %v9380_v13 = vsel %vm3643_vm11, %v5365_v47, %v5477_v52  ;;  %v5480_v57 = vadd.f32 %v5479_v10, %v5478_v3  ;;  %v2718_v26 = vsel %vm2590_vm1, %v2526_v2, %v2654_v24  ;;  %vm3245_vm2 = vcmp.ge.f32.partialorder %v9363_v4, 0.0  ;;  %v5370_v2 = vpop.f32.mrb[37].mxu0 }
 0x388   :  { %vm2591_vm3 = vcmp.ge.f32.partialorder %v2527_v42, 0.0  ;;  %vm2592_vm4 = vcmp.ge.f32.partialorder %v2528_v18, 0.0  ;;  %v2655_v17 = vmul.f32 0.2, %v2527_v42  ;;  %v2656_v7 = vmul.f32 0.2, %v2528_v18 }
 0x389   :  { %v9385_v30 = vsel %vm3244_vm15, %v3180_v46, %v3308_v62  ;;  %v9388_v35 = vmul.f32 0.2, %v9369_v51  ;;  %v9391_v38 = vsel %vm3643_vm11, %v5368_v22, %v5480_v57  ;;  %v2717_v14 = vsel %vm2589_vm0, %v2525_v50, %v2653_v60  ;;  %v5481_v46 = vpop.f32.mrb[68].mxu1  ;;  %v5372_v15 = vpop.f32.mrb[38].mxu0 }
 0x38a   :  { %v3088_v16 = vpop.permute.xlu1 %3087  ;;  %v2719_v59 = vsel %vm2591_vm3, %v2527_v42, %v2655_v17  ;;  %v2720_v36 = vsel %vm2592_vm4, %v2528_v18, %v2656_v7  ;;  %vm3246_vm5 = vcmp.ge.f32.partialorder %v9369_v51, 0.0  ;;  %v5371_v37 = vadd.f32 %v5370_v2, %v5369_v45  ;;  %v5482_v50 = vpop.f32.mrb[69].mxu1 }
 0x38b   :  { %v3176_v55 = vadd.f32 %v11024_v43, %v3088_v16  ;;  %v3177_v11 = vadd.f32 %v11025_v6, %v3088_v16  ;;  %v2782_v47 = vmul.f32 %v2718_v26, %v11107_v1  ;;  %v2784_v24 = vmul.f32 %v2720_v36, %v11108_v53  ;;  %v5373_v29 = vpop.f32.mrb[39].mxu0  ;;  %v5484_v22 = vpop.f32.mrb[70].mxu1 }
 0x38c   :  { %v2783_v32 = vmul.f32 %v2719_v59, %v11021_v5  ;;  %v2781_v52 = vmul.f32 %v2717_v14, %v11030_v23  ;;  %v5483_v3 = vadd.f32 %v5482_v50, %v5481_v46  ;;  %v5374_v60 = vadd.f32 %v5373_v29, %v5372_v15  ;;  %v5485_v42 = vpop.f32.mrb[71].mxu1  ;;  %v2459_v2 = vpop.permute.xlu0 %2458 }
 0x38d   :  { %vm3240_vm6 = vcmp.ge.f32.partialorder %v3176_v55, 0.0  ;;  %vm3241_vm9 = vcmp.ge.f32.partialorder %v3177_v11, 0.0  ;;  %v3304_v62 = vmul.f32 0.2, %v3176_v55  ;;  %v3305_v61 = vmul.f32 0.2, %v3177_v11 }
 0x38e   :  { %v2824_v10 = vpack.c.bf16 %v2784_v24, %v2782_v47  ;;  %vm3247_vm7 = vcmp.ge.f32.partialorder %v9372_v8, 0.0  ;;  %v2823_v26 = vpack.c.bf16 %v2783_v32, %v2781_v52  ;;  %v3431_v17 = vmul.f32 %v3367_v27, %v11107_v1 }
 0x38f   :  { %v3368_v18 = vsel %vm3240_vm6, %v3176_v55, %v3304_v62  ;;  %v2447_v57 = vpop.permute.xlu1 %2446  ;;  %v9404_v7 = vsel %vm3643_vm11, %v5371_v37, %v5483_v3  ;;  %v5486_v45 = vadd.f32 %v5485_v42, %v5484_v22  ;;  %v3369_v16 = vsel %vm3241_vm9, %v3177_v11, %v3305_v61  ;;  %v5375_v11 = vpop.f32.mrb[40].mxu0 }
 0x390   :  { %2953 = vmatprep.mubr.bf16.mxu0 %v2824_v10  ;;  %v2531_v14 = vadd.f32 %v11044_v49, %v2447_v57  ;;  %v2532_v59 = vadd.f32 %v11046_v48, %v2447_v57  ;;  %v3433_v36 = vmul.f32 %v3369_v16, %v11108_v53  ;;  %v3430_v55 = vmul.f32 %v9360_v63, %v11030_v23  ;;  %v5376_v1 = vpop.f32.mrb[41].mxu0 }
 0x391   :  { %2954 = vmatmul.mubr.bf16.gmra.mrb[124].mxu0 %v2823_v26  ;;  %v3432_v27 = vmul.f32 %v3368_v18, %v11021_v5  ;;  %v3311_v46 = vmul.f32 0.2, %v9372_v8  ;;  %v9415_v37 = vsel %vm3643_vm11, %v5374_v60, %v5486_v45  ;;  %v3373_v23 = vsel %vm3245_vm2, %v9363_v4, %v9377_v40  ;;  %v5487_v63 = vpop.f32.mrb[72].mxu1  ;;  %v5378_v50 = vpop.f32.mrb[42].mxu0  ;;  %v11109_v18 = vld [vmem:[#allocation54_spill] sm:$0xff] }
 0x392   :  { %vm2595_vm8 = vcmp.ge.f32.partialorder %v2531_v14, 0.0  ;;  %v2659_v15 = vmul.f32 0.2, %v2531_v14  ;;  %vm2596_vm10 = vcmp.ge.f32.partialorder %v2532_v59, 0.0  ;;  %v2660_v47 = vmul.f32 0.2, %v2532_v59 }
 0x393   :  { %v3473_v24 = vpack.c.bf16 %v3433_v36, %v3431_v17  ;;  %v3472_v32 = vpack.c.bf16 %v3432_v27, %v3430_v55  ;;  %v9422_v5 = vadd.f32 %v11044_v49, %v2459_v2  ;;  %v5377_v53 = vadd.f32 %v5376_v1, %v5375_v11  ;;  %v5488_v52 = vpop.f32.mrb[73].mxu1  ;;  %v5379_v3 = vpop.f32.mrb[43].mxu0  ;;  %v11110_v26 = vld [vmem:[#allocation162_spill] sm:$0xff] }
 0x394   :  { %v2723_v29 = vsel %vm2595_vm8, %v2531_v14, %v2659_v15  ;;  %v9425_v62 = vadd.f32 %v11046_v48, %v2459_v2  ;;  %v2724_v22 = vsel %vm2596_vm10, %v2532_v59, %v2660_v47  ;;  %v2785_v60 = vmul.f32 %v9349_v9, %v8496_v28  ;;  %v5490_v40 = vpop.f32.mrb[74].mxu1  ;;  %v3092_v42 = vpop.permute.xlu1 %3091 }
 0x395   :  { %3602 = vmatprep.mubr.bf16.mxu1 %v3473_v24  ;;  %v2787_v61 = vmul.f32 %v2723_v29, %v11034_v25  ;;  %v5489_v4 = vadd.f32 %v5488_v52, %v5487_v63  ;;  %v5380_v10 = vadd.f32 %v5379_v3, %v5378_v50  ;;  %v2786_v57 = vmul.f32 %v9355_v41, %v11109_v18  ;;  %v5491_v16 = vpop.f32.mrb[75].mxu1  ;;  %v3112_v27 = vpop.permute.xlu0 %3111 }
 0x396   :  { %3603 = vmatmul.mubr.bf16.gmra.mrb[156].mxu1 %v3472_v32  ;;  %v2788_v17 = vmul.f32 %v2724_v22, %v11110_v26  ;;  %v9437_v45 = vsel %vm3246_vm5, %v9369_v51, %v9388_v35  ;;  %v3178_v9 = vadd.f32 %v11024_v43, %v3092_v42  ;;  %v3179_v14 = vadd.f32 %v11025_v6, %v3092_v42 }
 0x397   :  { %v2825_v2 = vpack.c.bf16 %v2787_v61, %v2785_v60  ;;  %v9444_v59 = vsel %vm3247_vm7, %v9372_v8, %v3311_v46  ;;  %v9447_v41 = vsel %vm3643_vm11, %v5377_v53, %v5489_v4  ;;  %v5492_v36 = vadd.f32 %v5491_v16, %v5490_v40 }
 0x398   :  { %v2826_v55 = vpack.c.bf16 %v2788_v17, %v2786_v57  ;;  %vm3242_vm12 = vcmp.ge.f32.partialorder %v3178_v9, 0.0  ;;  %vm3243_vm13 = vcmp.ge.f32.partialorder %v3179_v14, 0.0  ;;  %v3306_v51 = vmul.f32 0.2, %v3178_v9  ;;  %v5381_v8 = vpop.f32.mrb[44].mxu0 }
 0x399   :  { %v3307_v35 = vmul.f32 0.2, %v3179_v14  ;;  %vm2601_vm14 = vcmp.ge.f32.partialorder %v9422_v5, 0.0  ;;  %v2665_v11 = vmul.f32 0.2, %v9422_v5  ;;  %v9453_v1 = vsel %vm3643_vm11, %v5380_v10, %v5492_v36  ;;  %v2451_v46 = vpop.permute.xlu1 %2450  ;;  %v5382_v47 = vpop.f32.mrb[45].mxu0 }
 0x39a   :  { %v2666_v15 = vmul.f32 0.2, %v9425_v62  ;;  %2961 = vmatprep.mubr.bf16.mxu0 %v2826_v55  ;;  %v3370_v24 = vsel %vm3242_vm12, %v3178_v9, %v3306_v51  ;;  %v2533_v63 = vadd.f32 %v11044_v49, %v2451_v46  ;;  %v2534_v53 = vadd.f32 %v11046_v48, %v2451_v46  ;;  %v5493_v50 = vpop.f32.mrb[76].mxu1  ;;  %v5384_v52 = vpop.f32.mrb[46].mxu0 }
 0x39b   :  { %v3371_v32 = vsel %vm3243_vm13, %v3179_v14, %v3307_v35  ;;  %2962 = vmatmul.mubr.bf16.gmra.mrb[128].mxu0 %v2825_v2  ;;  %v5383_v29 = vadd.f32 %v5382_v47, %v5381_v8  ;;  %v3437_v22 = vmul.f32 %v3373_v23, %v11110_v26  ;;  %v3434_v60 = vmul.f32 %v3370_v24, %v8496_v28  ;;  %v5494_v61 = vpop.f32.mrb[77].mxu1  ;;  %v5385_v4 = vpop.f32.mrb[47].mxu0 }
 0x39c   :  { %v3435_v3 = vmul.f32 %v3371_v32, %v11109_v18  ;;  %vm2602_vm15 = vcmp.ge.f32.partialorder %v9425_v62, 0.0  ;;  %vm2597_vm1 = vcmp.ge.f32.partialorder %v2533_v63, 0.0  ;;  %v2661_v40 = vmul.f32 0.2, %v2533_v63  ;;  %v5496_v57 = vpop.f32.mrb[78].mxu1 }
 0x39d   :  { %v3436_v10 = vmul.f32 %v9385_v30, %v11034_v25  ;;  %v5495_v42 = vadd.f32 %v5494_v61, %v5493_v50  ;;  %v5386_v17 = vadd.f32 %v5385_v4, %v5384_v52  ;;  %v2662_v16 = vmul.f32 0.2, %v2534_v53  ;;  %v2455_v9 = vpop.permute.xlu1 %2454  ;;  %v5497_v18 = vpop.f32.mrb[79].mxu1 }
 0x39e   :  { %v3475_v14 = vpack.c.bf16 %v3437_v22, %v3435_v3  ;;  %vm2598_vm0 = vcmp.ge.f32.partialorder %v2534_v53, 0.0  ;;  %v2535_v23 = vadd.f32 %v11044_v49, %v2455_v9  ;;  %v2536_v28 = vadd.f32 %v11046_v48, %v2455_v9  ;;  %v3116_v30 = vpop.permute.xlu0 %3115 }
 0x39f   :  { %v3474_v26 = vpack.c.bf16 %v3436_v10, %v3434_v60  ;;  %v9468_v2 = vsel %vm2601_vm14, %v9422_v5, %v2665_v11  ;;  %v9473_v25 = vsel %vm2602_vm15, %v9425_v62, %v2666_v15  ;;  %v9476_v36 = vsel %vm3643_vm11, %v5383_v29, %v5495_v42  ;;  %v11111_v42 = vld [vmem:[#allocation68_spill] sm:$0xff] }
 0x3a0   :  { %v5498_v55 = vadd.f32 %v5497_v18, %v5496_v57  ;;  %3610 = vmatprep.mubr.bf16.mxu1 %v3475_v14  ;;  %vm2599_vm2 = vcmp.ge.f32.partialorder %v2535_v23, 0.0  ;;  %vm2600_vm3 = vcmp.ge.f32.partialorder %v2536_v28, 0.0  ;;  %v2663_v51 = vmul.f32 0.2, %v2535_v23 }
 0x3a1   :  { %v2664_v35 = vmul.f32 0.2, %v2536_v28  ;;  %3611 = vmatmul.mubr.bf16.gmra.mrb[160].mxu1 %v3474_v26  ;;  %v9479_v8 = vadd.f32 %v11024_v43, %v3112_v27  ;;  %v5387_v11 = vpop.f32.mrb[48].mxu0  ;;  %v2725_v62 = vsel %vm2597_vm1, %v2533_v63, %v2661_v40  ;;  %v2726_v15 = vsel %vm2598_vm0, %v2534_v53, %v2662_v16 }
 0x3a2   :  { %v9482_v5 = vsel %vm3643_vm11, %v5386_v17, %v5498_v55  ;;  %v9487_v46 = vadd.f32 %v11025_v6, %v3112_v27  ;;  %v9490_v47 = vadd.f32 %v11024_v43, %v3116_v30  ;;  %v5388_v24 = vpop.f32.mrb[49].mxu0  ;;  %v2727_v32 = vsel %vm2599_vm2, %v2535_v23, %v2663_v51 }
 0x3a3   :  { %v2728_v50 = vsel %vm2600_vm3, %v2536_v28, %v2664_v35  ;;  %v3104_v29 = vpop.permute.xlu1 %3103  ;;  %v5499_v52 = vpop.f32.mrb[80].mxu1  ;;  %v5389_v3 = vadd.f32 %v5388_v24, %v5387_v11  ;;  %v9496_v53 = vadd.f32 %v11025_v6, %v3116_v30  ;;  %v2790_v40 = vmul.f32 %v2726_v15, %v8506_v54 }
 0x3a4   :  { %v5390_v22 = vpop.f32.mrb[50].mxu0  ;;  %v3184_v60 = vadd.f32 %v11024_v43, %v3104_v29  ;;  %v3185_v61 = vadd.f32 %v11025_v6, %v3104_v29  ;;  %v2792_v63 = vmul.f32 %v2728_v50, %v8508_v12  ;;  %v5500_v27 = vpop.f32.mrb[81].mxu1  ;;  %v2789_v10 = vmul.f32 %v2725_v62, %v8524_v44 }
 0x3a5   :  { %v5391_v4 = vpop.f32.mrb[51].mxu0  ;;  %v2791_v57 = vmul.f32 %v2727_v32, %v11111_v42  ;;  %v5501_v17 = vadd.f32 %v5500_v27, %v5499_v52  ;;  %v5502_v16 = vpop.f32.mrb[82].mxu1  ;;  %v3317_v30 = vmul.f32 0.2, %v9487_v46  ;;  %v3439_v11 = vmul.f32 %v9444_v59, %v8506_v54 }
 0x3a6   :  { %v5392_v9 = vadd.f32 %v5391_v4, %v5390_v22  ;;  %vm3248_vm4 = vcmp.ge.f32.partialorder %v3184_v60, 0.0  ;;  %vm3249_vm5 = vcmp.ge.f32.partialorder %v3185_v61, 0.0  ;;  %v5503_v14 = vpop.f32.mrb[83].mxu1  ;;  %v3312_v18 = vmul.f32 0.2, %v3184_v60 }
 0x3a7   :  { %v3313_v23 = vmul.f32 0.2, %v3185_v61  ;;  %v2828_v28 = vpack.c.bf16 %v2792_v63, %v2790_v40  ;;  %v2827_v26 = vpack.c.bf16 %v2791_v57, %v2789_v10  ;;  %v9503_v55 = vsel %vm3643_vm11, %v5389_v3, %v5501_v17 }
 0x3a8   :  { %v5504_v51 = vadd.f32 %v5503_v14, %v5502_v16  ;;  %v3376_v62 = vsel %vm3248_vm4, %v3184_v60, %v3312_v18  ;;  %v3438_v3 = vmul.f32 %v9437_v45, %v8524_v44  ;;  %vm3253_vm6 = vcmp.ge.f32.partialorder %v9487_v46, 0.0 }
 0x3a9   :  { %v2463_v35 = vpop.permute.xlu1 %2462  ;;  %v3377_v15 = vsel %vm3249_vm5, %v3185_v61, %v3313_v23  ;;  %2969 = vmatprep.mubr.bf16.mxu0 %v2828_v28  ;;  %v3440_v22 = vmul.f32 %v3376_v62, %v11111_v42  ;;  %vm3252_vm8 = vcmp.ge.f32.partialorder %v9479_v8, 0.0  ;;  %v11112_v42 = vld [vmem:[#allocation61_spill] sm:$0xff]  ;;  %v11113_v23 = vld [vmem:[#allocation60_spill] sm:$0xff]  ;;  %vm3254_vm15 = vcmp.ge.f32.partialorder %v9490_v47, 0.0 }
 0x3aa   :  { %v2539_v24 = vadd.f32 %v11044_v49, %v2463_v35  ;;  %v2540_v32 = vadd.f32 %v11046_v48, %v2463_v35  ;;  %v9510_v50 = vsel %vm3643_vm11, %v5392_v9, %v5504_v51  ;;  %v5393_v29 = vpop.f32.mrb[52].mxu0  ;;  %2970 = vmatmul.mubr.bf16.gmra.mrb[132].mxu0 %v2827_v26  ;;  %v3441_v52 = vmul.f32 %v3377_v15, %v8508_v12 }
 0x3ab   :  { %v5394_v54 = vpop.f32.mrb[53].mxu0  ;;  %v3476_v40 = vpack.c.bf16 %v3440_v22, %v3438_v3  ;;  %v3316_v12 = vmul.f32 0.2, %v9479_v8  ;;  %v2793_v57 = vmul.f32 %v9468_v2, %v11112_v42  ;;  %v3381_v26 = vsel %vm3253_vm6, %v9487_v46, %v3317_v30  ;;  %v11114_v2 = vld [vmem:[#allocation26_spill] sm:$0xff] }
 0x3ac   :  { %vm2603_vm9 = vcmp.ge.f32.partialorder %v2539_v24, 0.0  ;;  %vm2604_vm7 = vcmp.ge.f32.partialorder %v2540_v32, 0.0  ;;  %v2667_v59 = vmul.f32 0.2, %v2539_v24  ;;  %v5505_v60 = vpop.f32.mrb[84].mxu1  ;;  %v5395_v61 = vadd.f32 %v5394_v54, %v5393_v29  ;;  %v5396_v63 = vpop.f32.mrb[54].mxu0 }
 0x3ad   :  { %v2668_v27 = vmul.f32 0.2, %v2540_v32  ;;  %v3477_v4 = vpack.c.bf16 %v3441_v52, %v3439_v11  ;;  %v5506_v10 = vpop.f32.mrb[85].mxu1  ;;  %v5397_v44 = vpop.f32.mrb[55].mxu0  ;;  %v3380_v30 = vsel %vm3252_vm8, %v9479_v8, %v3316_v12  ;;  %v3318_v22 = vmul.f32 0.2, %v9490_v47 }
 0x3ae   :  { %v2731_v45 = vsel %vm2603_vm9, %v2539_v24, %v2667_v59  ;;  %v5507_v17 = vadd.f32 %v5506_v10, %v5505_v60  ;;  %v5508_v16 = vpop.f32.mrb[86].mxu1  ;;  %v5398_v9 = vadd.f32 %v5397_v44, %v5396_v63  ;;  %v3108_v18 = vpop.permute.xlu1 %3107  ;;  %v3445_v12 = vmul.f32 %v3381_v26, %v11114_v2 }
 0x3af   :  { %v2732_v14 = vsel %vm2604_vm7, %v2540_v32, %v2668_v27  ;;  %3618 = vmatprep.mubr.bf16.mxu1 %v3477_v4  ;;  %v2795_v28 = vmul.f32 %v2731_v45, %v11113_v23  ;;  %v5509_v51 = vpop.f32.mrb[87].mxu1  ;;  %v3186_v35 = vadd.f32 %v11024_v43, %v3108_v18  ;;  %v3187_v11 = vadd.f32 %v11025_v6, %v3108_v18  ;;  %v11115_v32 = vld [vmem:[#allocation7_spill] sm:$0xff] }
 0x3b0   :  { %3619 = vmatmul.mubr.bf16.gmra.mrb[164].mxu1 %v3476_v40  ;;  %v2796_v62 = vmul.f32 %v2732_v14, %v11114_v2  ;;  %v9530_v15 = vsel %vm3643_vm11, %v5395_v61, %v5507_v17  ;;  %v5510_v24 = vadd.f32 %v5509_v51, %v5508_v16  ;;  %v2794_v29 = vmul.f32 %v9473_v25, %v11115_v32 }
 0x3b1   :  { %v2829_v52 = vpack.c.bf16 %v2795_v28, %v2793_v57  ;;  %vm3250_vm10 = vcmp.ge.f32.partialorder %v3186_v35, 0.0  ;;  %vm3251_vm12 = vcmp.ge.f32.partialorder %v3187_v11, 0.0  ;;  %v3314_v3 = vmul.f32 0.2, %v3186_v35 }
 0x3b2   :  { %v3315_v46 = vmul.f32 0.2, %v3187_v11  ;;  %v9539_v54 = vsel %vm3643_vm11, %v5398_v9, %v5510_v24  ;;  %v2830_v60 = vpack.c.bf16 %v2796_v62, %v2794_v29  ;;  %v3444_v14 = vmul.f32 %v3380_v30, %v11113_v23 }
 0x3b3   :  { %v5399_v59 = vpop.f32.mrb[56].mxu0  ;;  %v2467_v61 = vpop.permute.xlu1 %2466  ;;  %v3378_v27 = vsel %vm3250_vm10, %v3186_v35, %v3314_v3  ;;  %v3319_v2 = vmul.f32 0.2, %v9496_v53  ;;  %vm3255_vm2 = vcmp.ge.f32.partialorder %v9496_v53, 0.0  ;;  %vm3676_vm5 = vcmask 130048  }
 0x3b4   :  { %v5400_v63 = vpop.f32.mrb[57].mxu0  ;;  %v3379_v25 = vsel %vm3251_vm12, %v3187_v11, %v3315_v46  ;;  %v2541_v4 = vadd.f32 %v11044_v49, %v2467_v61  ;;  %v2542_v40 = vadd.f32 %v11046_v48, %v2467_v61  ;;  %2977 = vmatprep.mubr.bf16.mxu0 %v2830_v60  ;;  %v3442_v57 = vmul.f32 %v3378_v27, %v11112_v42 }
 0x3b5   :  { %v5511_v10 = vpop.f32.mrb[88].mxu1  ;;  %v5401_v44 = vadd.f32 %v5400_v63, %v5399_v59  ;;  %v5402_v45 = vpop.f32.mrb[58].mxu0  ;;  %v3443_v8 = vmul.f32 %v3379_v25, %v11115_v32  ;;  %2978 = vmatmul.mubr.bf16.gmra.mrb[136].mxu0 %v2829_v52  ;;  %v3382_v59 = vsel %vm3254_vm15, %v9490_v47, %v3318_v22  ;;  %v11116_v22 = vld [vmem:[#allocation8_spill] sm:$0xff]  ;;  %vm3709_vm6 = vcmask 195584  }
 0x3b6   :  { %v5512_v17 = vpop.f32.mrb[89].mxu1  ;;  %v5403_v16 = vpop.f32.mrb[59].mxu0  ;;  %vm2605_vm13 = vcmp.ge.f32.partialorder %v2541_v4, 0.0  ;;  %v2669_v9 = vmul.f32 0.2, %v2541_v4  ;;  %vm2606_vm14 = vcmp.ge.f32.partialorder %v2542_v40, 0.0  ;;  %v3478_v42 = vpack.c.bf16 %v3444_v14, %v3442_v57 }
 0x3b7   :  { %v5513_v18 = vadd.f32 %v5512_v17, %v5511_v10  ;;  %v5514_v28 = vpop.f32.mrb[90].mxu1  ;;  %v5404_v51 = vadd.f32 %v5403_v16, %v5402_v45  ;;  %v2670_v35 = vmul.f32 0.2, %v2542_v40  ;;  %v2471_v11 = vpop.permute.xlu1 %2470  ;;  %v3479_v62 = vpack.c.bf16 %v3445_v12, %v3443_v8  ;;  %v11117_v16 = vld [vmem:[#allocation170_spill] sm:$0xff] }
 0x3b8   :  { %v5515_v24 = vpop.f32.mrb[91].mxu1  ;;  %v2543_v32 = vadd.f32 %v11044_v49, %v2471_v11  ;;  %v2544_v26 = vadd.f32 %v11046_v48, %v2471_v11  ;;  %v2733_v46 = vsel %vm2605_vm13, %v2541_v4, %v2669_v9  ;;  %v3383_v4 = vsel %vm3255_vm2, %v9496_v53, %v3319_v2 }
 0x3b9   :  { %v9552_v29 = vsel %vm3643_vm11, %v5401_v44, %v5513_v18  ;;  %v5516_v23 = vadd.f32 %v5515_v24, %v5514_v28  ;;  %3626 = vmatprep.mubr.bf16.mxu1 %v3479_v62  ;;  %v2734_v30 = vsel %vm2606_vm14, %v2542_v40, %v2670_v35  ;;  %v2797_v17 = vmul.f32 %v2733_v46, %v11116_v22 }
 0x3ba   :  { %vm2607_vm1 = vcmp.ge.f32.partialorder %v2543_v32, 0.0  ;;  %vm2608_vm0 = vcmp.ge.f32.partialorder %v2544_v26, 0.0  ;;  %v2671_v52 = vmul.f32 0.2, %v2543_v32  ;;  %v2672_v3 = vmul.f32 0.2, %v2544_v26  ;;  %3627 = vmatmul.mubr.bf16.gmra.mrb[168].mxu1 %v3478_v42 }
 0x3bb   :  { %v9556_v49 = vsel %vm3643_vm11, %v5404_v51, %v5516_v23  ;;  %v5405_v48 = vpop.f32.mrb[60].mxu0  ;;  %v2798_v47 = vmul.f32 %v2734_v30, %v8804_v21 }
 0x3bc   :  { %v5406_v60 = vpop.f32.mrb[61].mxu0  ;;  %v2735_v61 = vsel %vm2607_vm1, %v2543_v32, %v2671_v52  ;;  %v2736_v63 = vsel %vm2608_vm0, %v2544_v26, %v2672_v3  ;;  %v3120_v27 = vpop.permute.xlu1 %3119  ;;  %v3447_v26 = vmul.f32 %v3383_v4, %v8804_v21  ;;  %v3446_v52 = vmul.f32 %v3382_v59, %v11116_v22 }
 0x3bd   :  { %v5517_v25 = vpop.f32.mrb[92].mxu1  ;;  %v5407_v10 = vadd.f32 %v5406_v60, %v5405_v48  ;;  %v5408_v44 = vpop.f32.mrb[62].mxu0  ;;  %v3192_v45 = vadd.f32 %v11024_v43, %v3120_v27  ;;  %v3193_v8 = vadd.f32 %v11025_v6, %v3120_v27  ;;  %v2800_v12 = vmul.f32 %v2736_v63, %v8807_v34 }
 0x3be   :  { %v5518_v40 = vpop.f32.mrb[93].mxu1  ;;  %v5409_v57 = vpop.f32.mrb[63].mxu0  ;;  %v2799_v9 = vmul.f32 %v2735_v61, %v11117_v16 }
 0x3bf   :  { %v5519_v14 = vadd.f32 %v5518_v40, %v5517_v25  ;;  %v5520_v18 = vpop.f32.mrb[94].mxu1  ;;  %v5410_v28 = vadd.f32 %v5409_v57, %v5408_v44  ;;  %vm3256_vm3 = vcmp.ge.f32.partialorder %v3192_v45, 0.0  ;;  %vm3257_vm4 = vcmp.ge.f32.partialorder %v3193_v8, 0.0 }
 0x3c0   :  { %v5521_v43 = vpop.f32.mrb[95].mxu1  ;;  %v3320_v6 = vmul.f32 0.2, %v3192_v45  ;;  %v3321_v51 = vmul.f32 0.2, %v3193_v8  ;;  %v2832_v35 = vpack.c.bf16 %v2800_v12, %v2798_v47  ;;  %v2831_v11 = vpack.c.bf16 %v2799_v9, %v2797_v17 }
 0x3c1   :  { %v9571_v53 = vsel %vm3643_vm11, %v5407_v10, %v5519_v14  ;;  %v5522_v62 = vadd.f32 %v5521_v43, %v5520_v18 }
 0x3c2   :  { %v3384_v24 = vsel %vm3256_vm3, %v3192_v45, %v3320_v6  ;;  %v3385_v32 = vsel %vm3257_vm4, %v3193_v8, %v3321_v51  ;;  %2985 = vmatprep.mubr.bf16.mxu0 %v2832_v35 }
 0x3c3   :  { %v9575_v42 = vsel %vm3643_vm11, %v5410_v28, %v5522_v62  ;;  %v5411_v2 = vpop.f32.mrb[64].mxu0  ;;  %2986 = vmatmul.mubr.bf16.gmra.mrb[140].mxu0 %v2831_v11  ;;  %v3449_v23 = vmul.f32 %v3385_v32, %v8807_v34  ;;  %v3448_v3 = vmul.f32 %v3384_v24, %v11117_v16 }
 0x3c4   :  { %v5412_v48 = vpop.f32.mrb[65].mxu0 }
 0x3c5   :  { %v5523_v46 = vpop.f32.mrb[96].mxu1  ;;  %v5413_v30 = vadd.f32 %v5412_v48, %v5411_v2  ;;  %v5414_v60 = vpop.f32.mrb[66].mxu0  ;;  %v3481_v61 = vpack.c.bf16 %v3449_v23, %v3447_v26  ;;  %v3480_v63 = vpack.c.bf16 %v3448_v3, %v3446_v52 }
 0x3c6   :  { %v5524_v27 = vpop.f32.mrb[97].mxu1  ;;  %v5415_v25 = vpop.f32.mrb[67].mxu0 }
 0x3c7   :  { %v5525_v21 = vadd.f32 %v5524_v27, %v5523_v46  ;;  %v5526_v10 = vpop.f32.mrb[98].mxu1  ;;  %v5416_v44 = vadd.f32 %v5415_v25, %v5414_v60  ;;  %3634 = vmatprep.mubr.bf16.mxu1 %v3481_v61 }
 0x3c8   :  { %v5527_v45 = vpop.f32.mrb[99].mxu1  ;;  %3635 = vmatmul.mubr.bf16.gmra.mrb[172].mxu1 %v3480_v63 }
 0x3c9   :  { %v9581_v34 = vsel %vm3643_vm11, %v5413_v30, %v5525_v21  ;;  %v5528_v59 = vadd.f32 %v5527_v45, %v5526_v10 }
 0x3cb   :  { %v9584_v8 = vsel %vm3643_vm11, %v5416_v44, %v5528_v59  ;;  %v5417_v12 = vpop.f32.mrb[68].mxu0 }
 0x3cc   :  { %v5418_v4 = vpop.f32.mrb[69].mxu0 }
 0x3cd   :  { %v5529_v40 = vpop.f32.mrb[100].mxu1  ;;  %v5419_v57 = vadd.f32 %v5418_v4, %v5417_v12  ;;  %v5420_v47 = vpop.f32.mrb[70].mxu0 }
 0x3ce   :  { %v5530_v22 = vpop.f32.mrb[101].mxu1  ;;  %v5421_v17 = vpop.f32.mrb[71].mxu0 }
 0x3cf   :  { %v5531_v16 = vadd.f32 %v5530_v22, %v5529_v40  ;;  %v5532_v9 = vpop.f32.mrb[102].mxu1  ;;  %v5422_v14 = vadd.f32 %v5421_v17, %v5420_v47 }
 0x3d0   :  { %v5533_v18 = vpop.f32.mrb[103].mxu1 }
 0x3d1   :  { %v9587_v28 = vsel %vm3643_vm11, %v5419_v57, %v5531_v16  ;;  %v5534_v43 = vadd.f32 %v5533_v18, %v5532_v9 }
 0x3d3   :  { %v9590_v6 = vsel %vm3643_vm11, %v5422_v14, %v5534_v43  ;;  %v5423_v51 = vpop.f32.mrb[72].mxu0 }
 0x3d4   :  { %v5424_v35 = vpop.f32.mrb[73].mxu0 }
 0x3d5   :  { %v5425_v11 = vadd.f32 %v5424_v35, %v5423_v51  ;;  %v5535_v62 = vpop.f32.mrb[104].mxu1  ;;  %v5426_v24 = vpop.f32.mrb[74].mxu0 }
 0x3d6   :  { %v5536_v32 = vpop.f32.mrb[105].mxu1  ;;  %v5427_v26 = vpop.f32.mrb[75].mxu0 }
 0x3d7   :  { %v5537_v2 = vadd.f32 %v5536_v32, %v5535_v62  ;;  %v5428_v23 = vadd.f32 %v5427_v26, %v5426_v24  ;;  %v5538_v52 = vpop.f32.mrb[106].mxu1 }
 0x3d8   :  { %v5539_v3 = vpop.f32.mrb[107].mxu1 }
 0x3d9   :  { %v9593_v48 = vsel %vm3643_vm11, %v5425_v11, %v5537_v2  ;;  %v5540_v46 = vadd.f32 %v5539_v3, %v5538_v52 }
 0x3db   :  { %v9596_v30 = vsel %vm3643_vm11, %v5428_v23, %v5540_v46  ;;  %v5429_v60 = vpop.f32.mrb[76].mxu0 }
 0x3dc   :  { %v5430_v61 = vpop.f32.mrb[77].mxu0 }
 0x3dd   :  { %v5431_v63 = vadd.f32 %v5430_v61, %v5429_v60  ;;  %v5432_v27 = vpop.f32.mrb[78].mxu0 }
 0x3de   :  { %v5433_v25 = vpop.f32.mrb[79].mxu0 }
 0x3df   :  { %v5434_v21 = vadd.f32 %v5433_v25, %v5432_v27 }
 0x3e4   :  { %v5541_v10 = vpop.f32.mrb[108].mxu1 }
 0x3e5   :  { %v5542_v44 = vpop.f32.mrb[109].mxu1 }
 0x3e6   :  { %v5543_v45 = vadd.f32 %v5542_v44, %v5541_v10  ;;  %v5544_v59 = vpop.f32.mrb[110].mxu1 }
 0x3e7   :  { %v5545_v12 = vpop.f32.mrb[111].mxu1 }
 0x3e8   :  { %v9599_v4 = vsel %vm3643_vm11, %v5431_v63, %v5543_v45  ;;  %v5546_v40 = vadd.f32 %v5545_v12, %v5544_v59  ;;  %v5563_v57 = vpop.f32.mrb[80].mxu0 }
 0x3e9   :  { %v5564_v47 = vpop.f32.mrb[81].mxu0 }
 0x3ea   :  { %v9602_v22 = vsel %vm3643_vm11, %v5434_v21, %v5546_v40  ;;  %v5565_v17 = vadd.f32 %v5564_v47, %v5563_v57  ;;  %v5566_v16 = vpop.f32.mrb[82].mxu0  ;;  %vm11118_vm11 = vcmask 261120  }
 0x3eb   :  { %v5567_v9 = vpop.f32.mrb[83].mxu0  ;;  %vm11119_vm9 = vmmov %vm11118_vm11 }
 0x3ec   :  { %v3677_v14 = vsel %vm3676_vm5, %v9201_v31, %v5565_v17  ;;  %v5568_v18 = vadd.f32 %v5567_v9, %v5566_v16  ;;  %vm11120_vm7 = vmmov %vm11119_vm9 }
 0x3ed   :  { %vm11121_vm8 = vmmov %vm11120_vm7 }
 0x3ee   :  { %v3678_v43 = vsel %vm3676_vm5, %v9211_v33, %v5568_v18  ;;  %vm11122_vm10 = vmmov %vm11120_vm7 }
 0x3ef   :  { %v5675_v51 = vpop.f32.mrb[112].mxu1  ;;  %vm11123_vm12 = vmmov %vm11120_vm7 }
 0x3f0   :  { %v5676_v35 = vpop.f32.mrb[113].mxu1  ;;  %vm11124_vm13 = vmmov %vm11120_vm7 }
 0x3f1   :  { %v5677_v11 = vadd.f32 %v5676_v35, %v5675_v51  ;;  %v5678_v62 = vpop.f32.mrb[114].mxu1  ;;  %vm11125_vm14 = vmmov %vm11120_vm7 }
 0x3f2   :  { %v5679_v24 = vpop.f32.mrb[115].mxu1  ;;  %vm11126_vm15 = vmmov %vm11120_vm7 }
 0x3f3   :  { %v5680_v32 = vadd.f32 %v5679_v24, %v5678_v62  ;;  %v9609_v26 = vsel %vm3709_vm6, %v3677_v14, %v5677_v11  ;;  %vm11127_vm1 = vmmov %vm11120_vm7 }
 0x3f4   :  { %5941 = vmatprep.mubr.msk.f32.mxu0 %vm11118_vm11, %v9609_v26  ;;  %v4067_v31 = vmul.f32 %v9609_v26, %v9609_v26  ;;  %v5569_v2 = vpop.f32.mrb[84].mxu0  ;;  %vm11128_vm0 = vmmov %vm11127_vm1 }
 0x3f5   :  { %v9616_v23 = vsel %vm3709_vm6, %v3678_v43, %v5680_v32  ;;  %v5570_v33 = vpop.f32.mrb[85].mxu0  ;;  %vm11129_vm2 = vmmov %vm11128_vm0 }
 0x3f6   :  { %v4068_v52 = vmul.f32 %v9616_v23, %v9616_v23  ;;  %5942 = vmatmul.mubr.msk.f32.vlgmr.msra.gmra.mrb[144].mxu0 %vm11119_vm9, %v9616_v23  ;;  %5997 = vmatprep.mubr.msk.f32.mxu1 %vm11120_vm7, %v4067_v31  ;;  %v5571_v3 = vadd.f32 %v5570_v33, %v5569_v2  ;;  %v5572_v46 = vpop.f32.mrb[86].mxu0  ;;  %vm11130_vm3 = vmmov %vm11128_vm0 }
 0x3f7   :  { %v5573_v60 = vpop.f32.mrb[87].mxu0  ;;  %vm11131_vm4 = vmmov %vm11128_vm0 }
 0x3f8   :  { %5998 = vmatmul.mubr.msk.f32.vlgmr.msra.gmra.mrb[176].mxu1 %vm11121_vm8, %v4068_v52  ;;  %v3679_v61 = vsel %vm3676_vm5, %v9261_v20, %v5571_v3  ;;  %v5574_v63 = vadd.f32 %v5573_v60, %v5572_v46  ;;  %v5681_v27 = vpop.f32.mrb[116].mxu1  ;;  %vm11132_vm11 = vmmov %vm11128_vm0 }
 0x3f9   :  { %v5682_v25 = vpop.f32.mrb[117].mxu1  ;;  %vm11133_vm9 = vmmov %vm11128_vm0 }
 0x3fa   :  { %v3680_v21 = vsel %vm3676_vm5, %v9274_v19, %v5574_v63  ;;  %v5683_v10 = vadd.f32 %v5682_v25, %v5681_v27  ;;  %v5684_v44 = vpop.f32.mrb[118].mxu1  ;;  %vm11134_vm7 = vmmov %vm11128_vm0 }
 0x3fb   :  { %v5685_v45 = vpop.f32.mrb[119].mxu1  ;;  %vm11135_vm8 = vmmov %vm11128_vm0 }
 0x3fc   :  { %v5686_v59 = vadd.f32 %v5685_v45, %v5684_v44  ;;  %v5575_v12 = vpop.f32.mrb[88].mxu0  ;;  %v9629_v40 = vsel %vm3709_vm6, %v3679_v61, %v5683_v10 }
 0x3fd   :  { %5944 = vmatprep.mubr.msk.f32.mxu0 %vm11122_vm10, %v9629_v40  ;;  %v4069_v20 = vmul.f32 %v9629_v40, %v9629_v40  ;;  %v5576_v57 = vpop.f32.mrb[89].mxu0  ;;  %vm11136_vm10 = vmmov %vm11128_vm0 }
 0x3fe   :  { %v5577_v47 = vadd.f32 %v5576_v57, %v5575_v12  ;;  %v5578_v17 = vpop.f32.mrb[90].mxu0  ;;  %v9636_v16 = vsel %vm3709_vm6, %v3680_v21, %v5686_v59 }
 0x3ff   :  { %5945 = vmatmul.mubr.msk.f32.gmra.mrb[146].mxu0 %vm11123_vm12, %v9636_v16  ;;  %v4070_v19 = vmul.f32 %v9636_v16, %v9636_v16  ;;  %6000 = vmatprep.mubr.msk.f32.mxu1 %vm11124_vm13, %v4069_v20  ;;  %v5579_v9 = vpop.f32.mrb[91].mxu0  ;;  %vm11137_vm12 = vmmov %vm11128_vm0 }
 0x400   :  { %v3681_v14 = vsel %vm3676_vm5, %v9308_v56, %v5577_v47  ;;  %v5580_v18 = vadd.f32 %v5579_v9, %v5578_v17  ;;  %v5687_v43 = vpop.f32.mrb[120].mxu1  ;;  %vm11138_vm13 = vmmov %vm11128_vm0 }
 0x401   :  { %6001 = vmatmul.mubr.msk.f32.gmra.mrb[178].mxu1 %vm11125_vm14, %v4070_v19  ;;  %v5688_v35 = vpop.f32.mrb[121].mxu1  ;;  %vm11139_vm14 = vmmov %vm11128_vm0 }
 0x402   :  { %v3682_v51 = vsel %vm3676_vm5, %v9314_v0, %v5580_v18  ;;  %v5689_v11 = vadd.f32 %v5688_v35, %v5687_v43  ;;  %v5690_v62 = vpop.f32.mrb[122].mxu1 }
 0x403   :  { %v5691_v24 = vpop.f32.mrb[123].mxu1 }
 0x404   :  { %v5581_v32 = vpop.f32.mrb[92].mxu0  ;;  %v5692_v31 = vadd.f32 %v5691_v24, %v5690_v62  ;;  %v9649_v2 = vsel %vm3709_vm6, %v3681_v14, %v5689_v11 }
 0x405   :  { %v5582_v33 = vpop.f32.mrb[93].mxu0  ;;  %5947 = vmatprep.mubr.msk.f32.mxu0 %vm11126_vm15, %v9649_v2  ;;  %v4071_v56 = vmul.f32 %v9649_v2, %v9649_v2  ;;  %vm11140_vm15 = vmmov %vm11128_vm0 }
 0x406   :  { %v5583_v52 = vadd.f32 %v5582_v33, %v5581_v32  ;;  %v5584_v3 = vpop.f32.mrb[94].mxu0  ;;  %v9656_v0 = vsel %vm3709_vm6, %v3682_v51, %v5692_v31 }
 0x407   :  { %v5585_v46 = vpop.f32.mrb[95].mxu0  ;;  %5948 = vmatmul.mubr.msk.f32.gmra.mrb[148].mxu0 %vm11127_vm1, %v9656_v0  ;;  %v4072_v60 = vmul.f32 %v9656_v0, %v9656_v0  ;;  %6003 = vmatprep.mubr.msk.f32.mxu1 %vm11128_vm0, %v4071_v56  ;;  %vm11141_vm1 = vmmov %vm11128_vm0 }
 0x408   :  { %v3683_v61 = vsel %vm3676_vm5, %v9331_v58, %v5583_v52  ;;  %v5586_v63 = vadd.f32 %v5585_v46, %v5584_v3  ;;  %v5693_v27 = vpop.f32.mrb[124].mxu1 }
 0x409   :  { %6004 = vmatmul.mubr.msk.f32.gmra.mrb[180].mxu1 %vm11129_vm2, %v4072_v60  ;;  %v5694_v21 = vpop.f32.mrb[125].mxu1  ;;  %vm11142_vm2 = vmmov %vm11128_vm0 }
 0x40a   :  { %v3684_v25 = vsel %vm3676_vm5, %v9342_v39, %v5586_v63  ;;  %v5695_v10 = vadd.f32 %v5694_v21, %v5693_v27  ;;  %v5696_v44 = vpop.f32.mrb[126].mxu1 }
 0x40b   :  { %v5697_v45 = vpop.f32.mrb[127].mxu1 }
 0x40c   :  { %v5587_v59 = vpop.f32.mrb[96].mxu0  ;;  %v5698_v12 = vadd.f32 %v5697_v45, %v5696_v44  ;;  %v9669_v20 = vsel %vm3709_vm6, %v3683_v61, %v5695_v10 }
 0x40d   :  { %v5588_v57 = vpop.f32.mrb[97].mxu0  ;;  %5950 = vmatprep.mubr.msk.f32.mxu0 %vm11130_vm3, %v9669_v20  ;;  %v4073_v58 = vmul.f32 %v9669_v20, %v9669_v20  ;;  %vm11143_vm3 = vmmov %vm11128_vm0 }
 0x40e   :  { %v5589_v47 = vadd.f32 %v5588_v57, %v5587_v59  ;;  %v5590_v17 = vpop.f32.mrb[98].mxu0  ;;  %v9676_v39 = vsel %vm3709_vm6, %v3684_v25, %v5698_v12 }
 0x40f   :  { %v5591_v19 = vpop.f32.mrb[99].mxu0  ;;  %5951 = vmatmul.mubr.msk.f32.gmra.mrb[150].mxu0 %vm11131_vm4, %v9676_v39  ;;  %v4074_v14 = vmul.f32 %v9676_v39, %v9676_v39  ;;  %6006 = vmatprep.mubr.msk.f32.mxu1 %vm11132_vm11, %v4073_v58  ;;  %vm11144_vm4 = vmmov %vm11128_vm0 }
 0x410   :  { %v3685_v9 = vsel %vm3676_vm5, %v9380_v13, %v5589_v47  ;;  %v5592_v18 = vadd.f32 %v5591_v19, %v5590_v17  ;;  %v5699_v43 = vpop.f32.mrb[128].mxu1  ;;  %vm11145_vm11 = vmmov %vm11128_vm0 }
 0x411   :  { %6007 = vmatmul.mubr.msk.f32.gmra.mrb[182].mxu1 %vm11133_vm9, %v4074_v14  ;;  %v5700_v35 = vpop.f32.mrb[129].mxu1  ;;  %vm11146_vm9 = vmmov %vm11128_vm0 }
 0x412   :  { %v3686_v51 = vsel %vm3676_vm5, %v9391_v38, %v5592_v18  ;;  %v5701_v11 = vadd.f32 %v5700_v35, %v5699_v43  ;;  %v5702_v62 = vpop.f32.mrb[130].mxu1 }
 0x413   :  { %v5703_v24 = vpop.f32.mrb[131].mxu1 }
 0x414   :  { %v5704_v13 = vadd.f32 %v5703_v24, %v5702_v62  ;;  %v9689_v32 = vsel %vm3709_vm6, %v3685_v9, %v5701_v11 }
 0x415   :  { %5953 = vmatprep.mubr.msk.f32.mxu0 %vm11134_vm7, %v9689_v32  ;;  %v4075_v31 = vmul.f32 %v9689_v32, %v9689_v32  ;;  %vm11147_vm7 = vmmov %vm11128_vm0 }
 0x416   :  { %v9696_v33 = vsel %vm3709_vm6, %v3686_v51, %v5704_v13  ;;  %v5593_v38 = vpop.f32.mrb[100].mxu0 }
 0x417   :  { %5954 = vmatmul.mubr.msk.f32.gmra.mrb[152].mxu0 %vm11135_vm8, %v9696_v33  ;;  %v4076_v56 = vmul.f32 %v9696_v33, %v9696_v33  ;;  %6009 = vmatprep.mubr.msk.f32.mxu1 %vm11136_vm10, %v4075_v31  ;;  %v5594_v52 = vpop.f32.mrb[101].mxu0  ;;  %vm11148_vm8 = vmmov %vm11128_vm0 }
 0x418   :  { %v5595_v3 = vadd.f32 %v5594_v52, %v5593_v38  ;;  %v5596_v46 = vpop.f32.mrb[102].mxu0  ;;  %vm11149_vm10 = vmmov %vm11128_vm0 }
 0x419   :  { %6010 = vmatmul.mubr.msk.f32.gmra.mrb[184].mxu1 %vm11137_vm12, %v4076_v56  ;;  %v5597_v60 = vpop.f32.mrb[103].mxu0  ;;  %vm11150_vm12 = vmmov %vm11128_vm0 }
 0x41a   :  { %v3687_v61 = vsel %vm3676_vm5, %v9404_v7, %v5595_v3  ;;  %v5598_v63 = vadd.f32 %v5597_v60, %v5596_v46  ;;  %v5705_v27 = vpop.f32.mrb[132].mxu1 }
 0x41b   :  { %v5706_v25 = vpop.f32.mrb[133].mxu1 }
 0x41c   :  { %v3688_v21 = vsel %vm3676_vm5, %v9415_v37, %v5598_v63  ;;  %v5707_v10 = vadd.f32 %v5706_v25, %v5705_v27  ;;  %v5708_v44 = vpop.f32.mrb[134].mxu1 }
 0x41d   :  { %v5709_v45 = vpop.f32.mrb[135].mxu1 }
 0x41e   :  { %v5710_v59 = vadd.f32 %v5709_v45, %v5708_v44  ;;  %v9709_v12 = vsel %vm3709_vm6, %v3687_v61, %v5707_v10 }
 0x41f   :  { %5956 = vmatprep.mubr.msk.f32.mxu0 %vm11138_vm13, %v9709_v12  ;;  %v4077_v57 = vmul.f32 %v9709_v12, %v9709_v12  ;;  %vm11151_vm13 = vmmov %vm11128_vm0 }
 0x420   :  { %v9716_v7 = vsel %vm3709_vm6, %v3688_v21, %v5710_v59  ;;  %v5599_v58 = vpop.f32.mrb[104].mxu0 }
 0x421   :  { %5957 = vmatmul.mubr.msk.f32.gmra.mrb[154].mxu0 %vm11139_vm14, %v9716_v7  ;;  %v4078_v37 = vmul.f32 %v9716_v7, %v9716_v7  ;;  %6012 = vmatprep.mubr.msk.f32.mxu1 %vm11140_vm15, %v4077_v57  ;;  %v5600_v47 = vpop.f32.mrb[105].mxu0  ;;  %vm11152_vm14 = vmmov %vm11128_vm0 }
 0x422   :  { %v5601_v17 = vadd.f32 %v5600_v47, %v5599_v58  ;;  %v5602_v19 = vpop.f32.mrb[106].mxu0  ;;  %vm11153_vm15 = vmmov %vm11128_vm0 }
 0x423   :  { %6013 = vmatmul.mubr.msk.f32.gmra.mrb[186].mxu1 %vm11141_vm1, %v4078_v37  ;;  %v5603_v9 = vpop.f32.mrb[107].mxu0  ;;  %vm11154_vm1 = vmmov %vm11128_vm0 }
 0x424   :  { %v3689_v14 = vsel %vm3676_vm5, %v9447_v41, %v5601_v17  ;;  %v5604_v18 = vadd.f32 %v5603_v9, %v5602_v19 }
 0x425   :  { %v5711_v43 = vpop.f32.mrb[136].mxu1 }
 0x426   :  { %v3690_v51 = vsel %vm3676_vm5, %v9453_v1, %v5604_v18  ;;  %v5712_v35 = vpop.f32.mrb[137].mxu1 }
 0x427   :  { %v5713_v11 = vadd.f32 %v5712_v35, %v5711_v43  ;;  %v5714_v62 = vpop.f32.mrb[138].mxu1 }
 0x428   :  { %v5715_v24 = vpop.f32.mrb[139].mxu1 }
 0x429   :  { %v5716_v13 = vadd.f32 %v5715_v24, %v5714_v62  ;;  %v9729_v31 = vsel %vm3709_vm6, %v3689_v14, %v5713_v11 }
 0x42a   :  { %5959 = vmatprep.mubr.msk.f32.mxu0 %vm11128_vm0, %v9729_v31  ;;  %v4079_v38 = vmul.f32 %v9729_v31, %v9729_v31 }
 0x42b   :  { %v9736_v41 = vsel %vm3709_vm6, %v3690_v51, %v5716_v13 }
 0x42c   :  { %5960 = vmatmul.mubr.msk.f32.gmra.mrb[156].mxu0 %vm11142_vm2, %v9736_v41  ;;  %v4080_v1 = vmul.f32 %v9736_v41, %v9736_v41  ;;  %6015 = vmatprep.mubr.msk.f32.mxu1 %vm11143_vm3, %v4079_v38  ;;  %vm11155_vm2 = vmmov %vm11128_vm0 }
 0x42d   :  { %vm11156_vm3 = vmmov %vm11128_vm0 }
 0x42e   :  { %6016 = vmatmul.mubr.msk.f32.gmra.mrb[188].mxu1 %vm11144_vm4, %v4080_v1  ;;  %vm11157_vm4 = vmmov %vm11128_vm0 }
 0x431   :  { %v5605_v56 = vpop.f32.mrb[108].mxu0 }
 0x432   :  { %v5606_v52 = vpop.f32.mrb[109].mxu0 }
 0x433   :  { %v5607_v3 = vadd.f32 %v5606_v52, %v5605_v56  ;;  %v5608_v46 = vpop.f32.mrb[110].mxu0 }
 0x434   :  { %v5609_v60 = vpop.f32.mrb[111].mxu0 }
 0x435   :  { %v3691_v61 = vsel %vm3676_vm5, %v9476_v36, %v5607_v3  ;;  %v5610_v63 = vadd.f32 %v5609_v60, %v5608_v46  ;;  %v5717_v27 = vpop.f32.mrb[140].mxu1 }
 0x436   :  { %v5718_v25 = vpop.f32.mrb[141].mxu1 }
 0x437   :  { %v3692_v21 = vsel %vm3676_vm5, %v9482_v5, %v5610_v63  ;;  %v5719_v10 = vadd.f32 %v5718_v25, %v5717_v27  ;;  %v5720_v44 = vpop.f32.mrb[142].mxu1 }
 0x438   :  { %v5721_v45 = vpop.f32.mrb[143].mxu1 }
 0x439   :  { %v5722_v59 = vadd.f32 %v5721_v45, %v5720_v44  ;;  %v9749_v57 = vsel %vm3709_vm6, %v3691_v61, %v5719_v10 }
 0x43a   :  { %5962 = vmatprep.mubr.msk.f32.mxu0 %vm11145_vm11, %v9749_v57  ;;  %v4081_v37 = vmul.f32 %v9749_v57, %v9749_v57  ;;  %vm11158_vm11 = vmmov %vm11128_vm0 }
 0x43b   :  { %v5611_v36 = vpop.f32.mrb[112].mxu0  ;;  %v9756_v58 = vsel %vm3709_vm6, %v3692_v21, %v5722_v59 }
 0x43c   :  { %v5612_v47 = vpop.f32.mrb[113].mxu0  ;;  %5963 = vmatmul.mubr.msk.f32.gmra.mrb[158].mxu0 %vm11146_vm9, %v9756_v58  ;;  %v4082_v5 = vmul.f32 %v9756_v58, %v9756_v58  ;;  %6018 = vmatprep.mubr.msk.f32.mxu1 %vm11147_vm7, %v4081_v37  ;;  %vm11159_vm9 = vmmov %vm11128_vm0 }
 0x43d   :  { %v5613_v17 = vadd.f32 %v5612_v47, %v5611_v36  ;;  %v5614_v19 = vpop.f32.mrb[114].mxu0  ;;  %vm11160_vm7 = vmmov %vm11128_vm0 }
 0x43e   :  { %v5615_v9 = vpop.f32.mrb[115].mxu0  ;;  %6019 = vmatmul.mubr.msk.f32.gmra.mrb[190].mxu1 %vm11148_vm8, %v4082_v5  ;;  %vm11161_vm8 = vmmov %vm11128_vm0 }
 0x43f   :  { %v3693_v14 = vsel %vm3676_vm5, %v9503_v55, %v5613_v17  ;;  %v5616_v18 = vadd.f32 %v5615_v9, %v5614_v19 }
 0x440   :  { %v5723_v43 = vpop.f32.mrb[144].mxu1 }
 0x441   :  { %v3694_v51 = vsel %vm3676_vm5, %v9510_v50, %v5616_v18  ;;  %v5724_v35 = vpop.f32.mrb[145].mxu1 }
 0x442   :  { %v5725_v11 = vadd.f32 %v5724_v35, %v5723_v43  ;;  %v5726_v62 = vpop.f32.mrb[146].mxu1 }
 0x443   :  { %v5727_v24 = vpop.f32.mrb[147].mxu1 }
 0x444   :  { %v5728_v13 = vadd.f32 %v5727_v24, %v5726_v62  ;;  %v9769_v38 = vsel %vm3709_vm6, %v3693_v14, %v5725_v11 }
 0x445   :  { %5965 = vmatprep.mubr.msk.f32.mxu0 %vm11149_vm10, %v9769_v38  ;;  %v4083_v1 = vmul.f32 %v9769_v38, %v9769_v38  ;;  %vm11162_vm10 = vmmov %vm11128_vm0 }
 0x446   :  { %v9776_v55 = vsel %vm3709_vm6, %v3694_v51, %v5728_v13 }
 0x447   :  { %5966 = vmatmul.mubr.msk.f32.gmra.mrb[160].mxu0 %vm11150_vm12, %v9776_v55  ;;  %v4084_v50 = vmul.f32 %v9776_v55, %v9776_v55  ;;  %6021 = vmatprep.mubr.msk.f32.mxu1 %vm11151_vm13, %v4083_v1  ;;  %vm11163_vm12 = vmmov %vm11128_vm0 }
 0x448   :  { %vm11164_vm13 = vmmov %vm11128_vm0 }
 0x449   :  { %6022 = vmatmul.mubr.msk.f32.gmra.mrb[192].mxu1 %vm11152_vm14, %v4084_v50  ;;  %v5617_v56 = vpop.f32.mrb[116].mxu0  ;;  %vm11165_vm14 = vmmov %vm11128_vm0 }
 0x44a   :  { %v5618_v52 = vpop.f32.mrb[117].mxu0 }
 0x44b   :  { %v5619_v3 = vadd.f32 %v5618_v52, %v5617_v56  ;;  %v5620_v46 = vpop.f32.mrb[118].mxu0 }
 0x44c   :  { %v5621_v60 = vpop.f32.mrb[119].mxu0 }
 0x44d   :  { %v3695_v61 = vsel %vm3676_vm5, %v9530_v15, %v5619_v3  ;;  %v5622_v63 = vadd.f32 %v5621_v60, %v5620_v46 }
 0x44f   :  { %v3696_v27 = vsel %vm3676_vm5, %v9539_v54, %v5622_v63  ;;  %v5729_v25 = vpop.f32.mrb[148].mxu1 }
 0x450   :  { %v5730_v21 = vpop.f32.mrb[149].mxu1 }
 0x451   :  { %v5731_v10 = vadd.f32 %v5730_v21, %v5729_v25  ;;  %v5732_v44 = vpop.f32.mrb[150].mxu1 }
 0x452   :  { %v5733_v45 = vpop.f32.mrb[151].mxu1 }
 0x453   :  { %v5734_v59 = vadd.f32 %v5733_v45, %v5732_v44  ;;  %v5623_v37 = vpop.f32.mrb[120].mxu0  ;;  %v9789_v36 = vsel %vm3709_vm6, %v3695_v61, %v5731_v10  ;;  %v6231_v10 = vld [vmem:[%s10223_s5] sm:$0xff]  }
 0x454   :  { %5968 = vmatprep.mubr.msk.f32.mxu0 %vm11153_vm15, %v9789_v36  ;;  %v4085_v15 = vmul.f32 %v9789_v36, %v9789_v36  ;;  %v5624_v47 = vpop.f32.mrb[121].mxu0  ;;  %6045 = vmatprep.subr.bf16.mxu0 %v6231_v10  ;;  %vm11166_vm15 = vmmov %vm11128_vm0 }
 0x455   :  { %v5625_v5 = vadd.f32 %v5624_v47, %v5623_v37  ;;  %v5626_v17 = vpop.f32.mrb[122].mxu0  ;;  %v9796_v54 = vsel %vm3709_vm6, %v3696_v27, %v5734_v59  ;;  %v6232_v59 = vld [vmem:[%s10223_s5 + $0x8] sm:$0xff]   ;;  %6046 = vmatpush3.bf16.msra.mxu0 %v6231_v10 }
 0x456   :  { %5969 = vmatmul.mubr.msk.f32.gmra.mrb[162].mxu0 %vm11154_vm1, %v9796_v54  ;;  %v4086_v19 = vmul.f32 %v9796_v54, %v9796_v54  ;;  %6024 = vmatprep.mubr.msk.f32.mxu1 %vm11128_vm0, %v4085_v15  ;;  %v5627_v9 = vpop.f32.mrb[123].mxu0  ;;  %vm11167_vm1 = vmmov %vm11128_vm0 }
 0x457   :  { %v3697_v14 = vsel %vm3676_vm5, %v9552_v29, %v5625_v5  ;;  %v5628_v18 = vadd.f32 %v5627_v9, %v5626_v17  ;;  %6047 = vmatprep.subr.bf16.mxu0 %v6232_v59 }
 0x458   :  { %6025 = vmatmul.mubr.msk.f32.gmra.mrb[194].mxu1 %vm11155_vm2, %v4086_v19  ;;  %v5735_v43 = vpop.f32.mrb[152].mxu1  ;;  %vm11168_vm2 = vmmov %vm11128_vm0 }
 0x459   :  { %v3698_v51 = vsel %vm3676_vm5, %v9556_v49, %v5628_v18  ;;  %v5736_v35 = vpop.f32.mrb[153].mxu1  ;;  %6048 = vmatpush3.bf16.msra.mxu0 %v6232_v59 }
 0x45a   :  { %v5737_v11 = vadd.f32 %v5736_v35, %v5735_v43  ;;  %v5738_v62 = vpop.f32.mrb[154].mxu1 }
 0x45b   :  { %v5739_v24 = vpop.f32.mrb[155].mxu1 }
 0x45c   :  { %v5740_v13 = vadd.f32 %v5739_v24, %v5738_v62  ;;  %v9809_v1 = vsel %vm3709_vm6, %v3697_v14, %v5737_v11 }
 0x45d   :  { %5971 = vmatprep.mubr.msk.f32.mxu0 %vm11156_vm3, %v9809_v1  ;;  %v4087_v29 = vmul.f32 %v9809_v1, %v9809_v1  ;;  %vm11169_vm3 = vmmov %vm11128_vm0 }
 0x45e   :  { %v9816_v50 = vsel %vm3709_vm6, %v3698_v51, %v5740_v13 }
 0x45f   :  { %5972 = vmatmul.mubr.msk.f32.gmra.mrb[164].mxu0 %vm11157_vm4, %v9816_v50  ;;  %v4088_v49 = vmul.f32 %v9816_v50, %v9816_v50  ;;  %6027 = vmatprep.mubr.msk.f32.mxu1 %vm11158_vm11, %v4087_v29  ;;  %vm11170_vm4 = vmmov %vm11128_vm0 }
 0x460   :  { %vm11171_vm11 = vmmov %vm11128_vm0 }
 0x461   :  { %6028 = vmatmul.mubr.msk.f32.gmra.mrb[196].mxu1 %vm11159_vm9, %v4088_v49  ;;  %vm11172_vm9 = vmmov %vm11128_vm0 }
 0x464   :  { %v5629_v56 = vpop.f32.mrb[124].mxu0 }
 0x465   :  { %v5630_v52 = vpop.f32.mrb[125].mxu0 }
 0x466   :  { %v5631_v3 = vadd.f32 %v5630_v52, %v5629_v56  ;;  %v5632_v46 = vpop.f32.mrb[126].mxu0 }
 0x467   :  { %v5633_v60 = vpop.f32.mrb[127].mxu0 }
 0x468   :  { %v3699_v61 = vsel %vm3676_vm5, %v9571_v53, %v5631_v3  ;;  %v5634_v63 = vadd.f32 %v5633_v60, %v5632_v46 }
 0x469   :  { %v5741_v27 = vpop.f32.mrb[156].mxu1 }
 0x46a   :  { %v3700_v25 = vsel %vm3676_vm5, %v9575_v42, %v5634_v63  ;;  %v5742_v21 = vpop.f32.mrb[157].mxu1 }
 0x46b   :  { %v5743_v44 = vadd.f32 %v5742_v21, %v5741_v27  ;;  %v5744_v45 = vpop.f32.mrb[158].mxu1 }
 0x46c   :  { %v5745_v37 = vpop.f32.mrb[159].mxu1 }
 0x46d   :  { %v5746_v15 = vadd.f32 %v5745_v37, %v5744_v45  ;;  %v9835_v53 = vsel %vm3709_vm6, %v3699_v61, %v5743_v44 }
 0x46e   :  { %v5635_v47 = vpop.f32.mrb[128].mxu0  ;;  %5974 = vmatprep.mubr.msk.f32.mxu0 %vm11160_vm7, %v9835_v53  ;;  %v4089_v42 = vmul.f32 %v9835_v53, %v9835_v53  ;;  %vm11173_vm7 = vmmov %vm11128_vm0 }
 0x46f   :  { %v5636_v5 = vpop.f32.mrb[129].mxu0  ;;  %v9842_v17 = vsel %vm3709_vm6, %v3700_v25, %v5746_v15 }
 0x470   :  { %v5637_v19 = vadd.f32 %v5636_v5, %v5635_v47  ;;  %v5638_v9 = vpop.f32.mrb[130].mxu0  ;;  %5975 = vmatmul.mubr.msk.f32.gmra.mrb[166].mxu0 %vm11161_vm8, %v9842_v17  ;;  %v4090_v14 = vmul.f32 %v9842_v17, %v9842_v17  ;;  %6030 = vmatprep.mubr.msk.f32.mxu1 %vm11162_vm10, %v4089_v42  ;;  %vm11174_vm8 = vmmov %vm11128_vm0 }
 0x471   :  { %v5639_v18 = vpop.f32.mrb[131].mxu0  ;;  %vm11175_vm10 = vmmov %vm11128_vm0 }
 0x472   :  { %v3701_v43 = vsel %vm3676_vm5, %v9581_v34, %v5637_v19  ;;  %v5640_v51 = vadd.f32 %v5639_v18, %v5638_v9  ;;  %6031 = vmatmul.mubr.msk.f32.gmra.mrb[198].mxu1 %vm11163_vm12, %v4090_v14  ;;  %vm11176_vm12 = vmmov %vm11128_vm0 }
 0x474   :  { %v3702_v35 = vsel %vm3676_vm5, %v9584_v8, %v5640_v51  ;;  %v5747_v11 = vpop.f32.mrb[160].mxu1 }
 0x475   :  { %v5748_v62 = vpop.f32.mrb[161].mxu1 }
 0x476   :  { %v5749_v24 = vadd.f32 %v5748_v62, %v5747_v11  ;;  %v5750_v13 = vpop.f32.mrb[162].mxu1 }
 0x477   :  { %v5751_v29 = vpop.f32.mrb[163].mxu1 }
 0x478   :  { %v5752_v49 = vadd.f32 %v5751_v29, %v5750_v13  ;;  %v9855_v56 = vsel %vm3709_vm6, %v3701_v43, %v5749_v24 }
 0x479   :  { %5977 = vmatprep.mubr.msk.f32.mxu0 %vm11164_vm13, %v9855_v56  ;;  %v4091_v34 = vmul.f32 %v9855_v56, %v9855_v56  ;;  %vm11178_vm13 = vmmov %vm11128_vm0 }
 0x47a   :  { %v9862_v52 = vsel %vm3709_vm6, %v3702_v35, %v5752_v49 }
 0x47b   :  { %5978 = vmatmul.mubr.msk.f32.gmra.mrb[168].mxu0 %vm11165_vm14, %v9862_v52  ;;  %v4092_v8 = vmul.f32 %v9862_v52, %v9862_v52  ;;  %6033 = vmatprep.mubr.msk.f32.mxu1 %vm11166_vm15, %v4091_v34  ;;  %vm11180_vm14 = vmmov %vm11128_vm0 }
 0x47c   :  { %vm11181_vm15 = vmmov %vm11128_vm0 }
 0x47d   :  { %v5641_v3 = vpop.f32.mrb[132].mxu0  ;;  %6034 = vmatmul.mubr.msk.f32.gmra.mrb[200].mxu1 %vm11167_vm1, %v4092_v8  ;;  %vm11182_vm1 = vmmov %vm11128_vm0 }
 0x47e   :  { %v5642_v46 = vpop.f32.mrb[133].mxu0 }
 0x47f   :  { %v5643_v60 = vadd.f32 %v5642_v46, %v5641_v3  ;;  %v5644_v61 = vpop.f32.mrb[134].mxu0 }
 0x480   :  { %v5645_v63 = vpop.f32.mrb[135].mxu0 }
 0x481   :  { %v3703_v27 = vsel %vm3676_vm5, %v9587_v28, %v5643_v60  ;;  %v5646_v25 = vadd.f32 %v5645_v63, %v5644_v61 }
 0x483   :  { %v5753_v21 = vpop.f32.mrb[164].mxu1  ;;  %v3704_v10 = vsel %vm3676_vm5, %v9590_v6, %v5646_v25 }
 0x484   :  { %v5754_v44 = vpop.f32.mrb[165].mxu1 }
 0x485   :  { %v5755_v45 = vadd.f32 %v5754_v44, %v5753_v21  ;;  %v5756_v59 = vpop.f32.mrb[166].mxu1 }
 0x486   :  { %v5757_v37 = vpop.f32.mrb[167].mxu1 }
 0x487   :  { %v5758_v15 = vadd.f32 %v5757_v37, %v5756_v59  ;;  %v9875_v47 = vsel %vm3709_vm6, %v3703_v27, %v5755_v45 }
 0x488   :  { %5980 = vmatprep.mubr.msk.f32.mxu0 %vm11128_vm0, %v9875_v47  ;;  %v4093_v42 = vmul.f32 %v9875_v47, %v9875_v47  ;;  %v5647_v28 = vpop.f32.mrb[136].mxu0 }
 0x489   :  { %v9882_v5 = vsel %vm3709_vm6, %v3704_v10, %v5758_v15  ;;  %v5648_v19 = vpop.f32.mrb[137].mxu0 }
 0x48a   :  { %5981 = vmatmul.mubr.msk.f32.gmra.mrb[170].mxu0 %vm11168_vm2, %v9882_v5  ;;  %v4094_v6 = vmul.f32 %v9882_v5, %v9882_v5  ;;  %6036 = vmatprep.mubr.msk.f32.mxu1 %vm11169_vm3, %v4093_v42  ;;  %v5649_v9 = vadd.f32 %v5648_v19, %v5647_v28  ;;  %v5650_v14 = vpop.f32.mrb[138].mxu0  ;;  %vm11183_vm2 = vmmov %vm11128_vm0 }
 0x48b   :  { %v5651_v18 = vpop.f32.mrb[139].mxu0  ;;  %vm11184_vm3 = vmmov %vm11128_vm0 }
 0x48c   :  { %6037 = vmatmul.mubr.msk.f32.gmra.mrb[202].mxu1 %vm11170_vm4, %v4094_v6  ;;  %v3705_v43 = vsel %vm3676_vm5, %v9593_v48, %v5649_v9  ;;  %v5652_v51 = vadd.f32 %v5651_v18, %v5650_v14  ;;  %vm11185_vm4 = vmmov %vm11128_vm0 }
 0x48d   :  { %v5759_v35 = vpop.f32.mrb[168].mxu1 }
 0x48e   :  { %v5760_v11 = vpop.f32.mrb[169].mxu1  ;;  %v3706_v62 = vsel %vm3676_vm5, %v9596_v30, %v5652_v51 }
 0x48f   :  { %v5761_v24 = vadd.f32 %v5760_v11, %v5759_v35  ;;  %v5762_v13 = vpop.f32.mrb[170].mxu1 }
 0x490   :  { %v5763_v29 = vpop.f32.mrb[171].mxu1 }
 0x491   :  { %v5764_v49 = vadd.f32 %v5763_v29, %v5762_v13  ;;  %v9895_v34 = vsel %vm3709_vm6, %v3705_v43, %v5761_v24 }
 0x492   :  { %5983 = vmatprep.mubr.msk.f32.mxu0 %vm11171_vm11, %v9895_v34  ;;  %v4095_v8 = vmul.f32 %v9895_v34, %v9895_v34  ;;  %vm11186_vm11 = vmmov %vm11128_vm0 }
 0x493   :  { %v9902_v48 = vsel %vm3709_vm6, %v3706_v62, %v5764_v49 }
 0x494   :  { %5984 = vmatmul.mubr.msk.f32.gmra.mrb[172].mxu0 %vm11172_vm9, %v9902_v48  ;;  %v4096_v30 = vmul.f32 %v9902_v48, %v9902_v48  ;;  %6039 = vmatprep.mubr.msk.f32.mxu1 %vm11173_vm7, %v4095_v8  ;;  %vm11187_vm9 = vmmov %vm11128_vm0 }
 0x495   :  { %vm11188_vm7 = vmmov %vm11128_vm0 }
 0x496   :  { %v5653_v3 = vpop.f32.mrb[140].mxu0  ;;  %6040 = vmatmul.mubr.msk.f32.gmra.mrb[204].mxu1 %vm11174_vm8, %v4096_v30  ;;  %vm11189_vm8 = vmmov %vm11128_vm0 }
 0x497   :  { %v5654_v46 = vpop.f32.mrb[141].mxu0 }
 0x498   :  { %v5655_v60 = vadd.f32 %v5654_v46, %v5653_v3  ;;  %v5656_v61 = vpop.f32.mrb[142].mxu0 }
 0x499   :  { %v5657_v63 = vpop.f32.mrb[143].mxu0 }
 0x49a   :  { %v3707_v27 = vsel %vm3676_vm5, %v9599_v4, %v5655_v60  ;;  %v5658_v25 = vadd.f32 %v5657_v63, %v5656_v61 }
 0x49b   :  { %v5765_v21 = vpop.f32.mrb[172].mxu1 }
 0x49c   :  { %v3708_v10 = vsel %vm3676_vm5, %v9602_v22, %v5658_v25  ;;  %v5766_v44 = vpop.f32.mrb[173].mxu1  ;;  %vm11177_vm5 = vmmov %vm11128_vm0  ;;  %v9934_v25 = vld [vmem:[%s10224_s7] ss:$0 sm:$0xff] }
 0x49d   :  { %v5767_v45 = vadd.f32 %v5766_v44, %v5765_v21  ;;  %v5768_v59 = vpop.f32.mrb[174].mxu1 }
 0x49e   :  { %v5769_v37 = vpop.f32.mrb[175].mxu1 }
 0x49f   :  { %v5770_v15 = vadd.f32 %v5769_v37, %v5768_v59  ;;  %v9915_v42 = vsel %vm3709_vm6, %v3707_v27, %v5767_v45 }
 0x4a0   :  { %5986 = vmatprep.mubr.msk.f32.mxu0 %vm11175_vm10, %v9915_v42  ;;  %v4097_v28 = vmul.f32 %v9915_v42, %v9915_v42  ;;  %vm11190_vm10 = vmmov %vm11128_vm0 }
 0x4a1   :  { %v9922_v4 = vsel %vm3709_vm6, %v3708_v10, %v5770_v15  ;;  %vm11179_vm6 = vmmov %vm11128_vm0 }
 0x4a2   :  { %5987 = vmatmul.mubr.msk.f32.gmra.mrb[174].mxu0 %vm11176_vm12, %v9922_v4  ;;  %v4098_v22 = vmul.f32 %v9922_v4, %v9922_v4  ;;  %6042 = vmatprep.mubr.msk.f32.mxu1 %vm11177_vm5, %v4097_v28  ;;  %vm11191_vm12 = vmmov %vm11128_vm0 }
 0x4a3   :  { %vm11192_vm5 = vmmov %vm11128_vm0 }
 0x4a4   :  { %6043 = vmatmul.mubr.msk.f32.gmra.mrb[206].mxu1 %vm11178_vm13, %v4098_v22  ;;  %vm11193_vm13 = vmmov %vm11128_vm0 }
 0x4c9   :  { %v5943_v19 = vpop.f32.mrb[144].mxu0 }
 0x4ca   :  { %v4421_v6 = vmul.f32 %v5943_v19, %v5943_v19  ;;  %v3908_v9 = vpop.f32.mrb[145].mxu0  ;;  %v4549_v63 = vsub.f32 %v9616_v23, %v5943_v19  ;;  %v9942_v23 = vld [vmem:[%s10225_s8] ss:$0 sm:$0xff] }
 0x4cb   :  { %v4420_v14 = vmul.f32 %v3908_v9, %v3908_v9  ;;  %v5999_v18 = vpop.f32.mrb[176].mxu1  ;;  %v4548_v21 = vsub.f32 %v9609_v26, %v3908_v9 }
 0x4cc   :  { %v4453_v43 = vsub.f32 %v5999_v18, %v4421_v6  ;;  %v4261_v51 = vpop.f32.mrb[177].mxu1  ;;  %v4588_v59 = vmul.f32 %v9934_v25, %v4549_v63 }
 0x4cd   :  { %v4452_v35 = vsub.f32 %v4261_v51, %v4420_v14  ;;  %v4587_v28 = vmul.f32 %v9934_v25, %v4548_v21 }
 0x4ce   :  { %v4485_v11 = vmax.f32 %v4453_v43, 0.0 }
 0x4cf   :  { %v4484_v62 = vmax.f32 %v4452_v35, 0.0 }
 0x4d0   :  { %v4517_v24 = vadd.f32 1e-09, %v4485_v11 }
 0x4d1   :  { %v4516_v13 = vadd.f32 1e-09, %v4484_v62 }
 0x4d2   :  { %6233 = vrsqrt.f32 %v4517_v24  ;;  %v5946_v29 = vpop.f32.mrb[146].mxu0 }
 0x4d3   :  { %6235 = vrsqrt.f32 %v4516_v13  ;;  %v4423_v49 = vmul.f32 %v5946_v29, %v5946_v29  ;;  %v3918_v8 = vpop.f32.mrb[147].mxu0  ;;  %v4551_v62 = vsub.f32 %v9636_v16, %v5946_v29 }
 0x4d4   :  { %v4422_v30 = vmul.f32 %v3918_v8, %v3918_v8  ;;  %v6002_v3 = vpop.f32.mrb[178].mxu1 }
 0x4d5   :  { %v4455_v46 = vsub.f32 %v6002_v3, %v4423_v49  ;;  %v4271_v60 = vpop.f32.mrb[179].mxu1  ;;  %v4550_v49 = vsub.f32 %v9629_v40, %v3918_v8  ;;  %v4590_v63 = vmul.f32 %v9934_v25, %v4551_v62 }
 0x4d6   :  { %v4454_v61 = vsub.f32 %v4271_v60, %v4422_v30 }
 0x4d7   :  { %v4487_v27 = vmax.f32 %v4455_v46, 0.0  ;;  %v4589_v16 = vmul.f32 %v9934_v25, %v4550_v49 }
 0x4d8   :  { %v4486_v10 = vmax.f32 %v4454_v61, 0.0 }
 0x4d9   :  { %v4519_v44 = vadd.f32 1e-09, %v4487_v27 }
 0x4da   :  { %v4518_v45 = vadd.f32 1e-09, %v4486_v10  ;;  %v5949_v37 = vpop.f32.mrb[148].mxu0 }
 0x4db   :  { %6237 = vrsqrt.f32 %v4519_v44  ;;  %v4425_v22 = vmul.f32 %v5949_v37, %v5949_v37  ;;  %v3928_v19 = vpop.f32.mrb[149].mxu0 }
 0x4dc   :  { %v6234_v15 = vpop.eup %6233  ;;  %6239 = vrsqrt.f32 %v4518_v45  ;;  %v4424_v26 = vmul.f32 %v3928_v19, %v3928_v19  ;;  %v6005_v9 = vpop.f32.mrb[180].mxu1 }
 0x4dd   :  { %v6236_v6 = vpop.eup %6235  ;;  %v4652_v14 = vmul.f32 %v6234_v15, %v4588_v59  ;;  %v4457_v18 = vsub.f32 %v6005_v9, %v4425_v22  ;;  %v4281_v43 = vpop.f32.mrb[181].mxu1  ;;  %v4553_v9 = vsub.f32 %v9656_v0, %v5949_v37 }
 0x4de   :  { %v4651_v51 = vmul.f32 %v6236_v6, %v4587_v28  ;;  %v4456_v35 = vsub.f32 %v4281_v43, %v4424_v26 }
 0x4df   :  { %v4691_v11 = vadd.f32 %v9942_v23, %v4652_v14  ;;  %v4489_v24 = vmax.f32 %v4457_v18, 0.0  ;;  %v4552_v18 = vsub.f32 %v9649_v2, %v3928_v19 }
 0x4e0   :  { %v4690_v13 = vadd.f32 %v9942_v23, %v4651_v51  ;;  %v4488_v30 = vmax.f32 %v4456_v35, 0.0 }
 0x4e1   :  { %v4521_v3 = vadd.f32 1e-09, %v4489_v24  ;;  %v4591_v0 = vmul.f32 %v9934_v25, %v4552_v18 }
 0x4e2   :  { %v4722_v46 = vpack.c.bf16 %v4691_v11, %v4690_v13  ;;  %v4520_v60 = vadd.f32 1e-09, %v4488_v30  ;;  %v5952_v61 = vpop.f32.mrb[150].mxu0  ;;  %v4592_v13 = vmul.f32 %v9934_v25, %v4553_v9 }
 0x4e3   :  { %6241 = vrsqrt.f32 %v4521_v3  ;;  %v4427_v27 = vmul.f32 %v5952_v61, %v5952_v61  ;;  %v3938_v21 = vpop.f32.mrb[151].mxu0 }
 0x4e4   :  { %6049 = vmatprep.mubr.msk.bf16.mxu0 %vm11179_vm6, %v4722_v46  ;;  %6243 = vrsqrt.f32 %v4520_v60  ;;  %v4426_v29 = vmul.f32 %v3938_v21, %v3938_v21  ;;  %v6008_v44 = vpop.f32.mrb[182].mxu1  ;;  %vm11194_vm6 = vmmov %vm11128_vm0 }
 0x4e5   :  { %v6238_v10 = vpop.eup %6237  ;;  %v4459_v8 = vsub.f32 %v6008_v44, %v4427_v27  ;;  %v4291_v59 = vpop.f32.mrb[183].mxu1  ;;  %v4554_v44 = vsub.f32 %v9669_v20, %v3938_v21 }
 0x4e6   :  { %v6240_v45 = vpop.eup %6239  ;;  %v4654_v40 = vmul.f32 %v6238_v10, %v4590_v63  ;;  %v4458_v28 = vsub.f32 %v4291_v59, %v4426_v29  ;;  %v4555_v10 = vsub.f32 %v9676_v39, %v5952_v61 }
 0x4e7   :  { %v4653_v15 = vmul.f32 %v6240_v45, %v4589_v16  ;;  %v4491_v6 = vmax.f32 %v4459_v8, 0.0 }
 0x4e8   :  { %v4693_v22 = vadd.f32 %v9942_v23, %v4654_v40  ;;  %v4490_v14 = vmax.f32 %v4458_v28, 0.0 }
 0x4e9   :  { %v4692_v26 = vadd.f32 %v9942_v23, %v4653_v15  ;;  %v4523_v43 = vadd.f32 1e-09, %v4491_v6  ;;  %v4594_v15 = vmul.f32 %v9934_v25, %v4555_v10  ;;  %v4593_v6 = vmul.f32 %v9934_v25, %v4554_v44 }
 0x4ea   :  { %v4522_v35 = vadd.f32 1e-09, %v4490_v14  ;;  %v5955_v11 = vpop.f32.mrb[152].mxu0 }
 0x4eb   :  { %v4723_v51 = vpack.c.bf16 %v4693_v22, %v4692_v26  ;;  %6245 = vrsqrt.f32 %v4523_v43  ;;  %v4429_v62 = vmul.f32 %v5955_v11, %v5955_v11  ;;  %v3948_v24 = vpop.f32.mrb[153].mxu0 }
 0x4ec   :  { %6247 = vrsqrt.f32 %v4522_v35  ;;  %v4428_v49 = vmul.f32 %v3948_v24, %v3948_v24  ;;  %v6011_v30 = vpop.f32.mrb[184].mxu1 }
 0x4ed   :  { %6050 = vmatmul.mubr.msk.bf16.vlgmr.msra.gmra.mrb[176].mxu0 %vm11180_vm14, %v4723_v51  ;;  %v6242_v3 = vpop.eup %6241  ;;  %v4461_v37 = vsub.f32 %v6011_v30, %v4429_v62  ;;  %v4301_v46 = vpop.f32.mrb[185].mxu1  ;;  %v4557_v51 = vsub.f32 %v9696_v33, %v5955_v11  ;;  %vm11195_vm14 = vmmov %vm11128_vm0 }
 0x4ee   :  { %v6244_v2 = vpop.eup %6243  ;;  %v4460_v19 = vsub.f32 %v4301_v46, %v4428_v49  ;;  %v4656_v60 = vmul.f32 %v6242_v3, %v4592_v13  ;;  %v4556_v13 = vsub.f32 %v9689_v32, %v3948_v24 }
 0x4ef   :  { %v4493_v63 = vmax.f32 %v4461_v37, 0.0  ;;  %v4655_v27 = vmul.f32 %v6244_v2, %v4591_v0  ;;  %v4596_v46 = vmul.f32 %v9934_v25, %v4557_v51 }
 0x4f0   :  { %v4492_v16 = vmax.f32 %v4460_v19, 0.0  ;;  %v4695_v29 = vadd.f32 %v9942_v23, %v4656_v60  ;;  %v4595_v60 = vmul.f32 %v9934_v25, %v4556_v13 }
 0x4f1   :  { %v4525_v45 = vadd.f32 1e-09, %v4493_v63  ;;  %v4694_v40 = vadd.f32 %v9942_v23, %v4655_v27 }
 0x4f2   :  { %v4524_v8 = vadd.f32 1e-09, %v4492_v16 }
 0x4f3   :  { %6249 = vrsqrt.f32 %v4525_v45  ;;  %v4724_v59 = vpack.c.bf16 %v4695_v29, %v4694_v40 }
 0x4f4   :  { %6251 = vrsqrt.f32 %v4524_v8  ;;  %v5958_v28 = vpop.f32.mrb[154].mxu0 }
 0x4f5   :  { %v6246_v22 = vpop.eup %6245  ;;  %6053 = vmatprep.mubr.msk.bf16.mxu0 %vm11181_vm15, %v4724_v59  ;;  %v4431_v39 = vmul.f32 %v5958_v28, %v5958_v28  ;;  %v3958_v61 = vpop.f32.mrb[155].mxu0  ;;  %v4559_v10 = vsub.f32 %v9716_v7, %v5958_v28  ;;  %vm11196_vm15 = vmmov %vm11128_vm0 }
 0x4f6   :  { %v6248_v26 = vpop.eup %6247  ;;  %v4430_v9 = vmul.f32 %v3958_v61, %v3958_v61  ;;  %v6014_v20 = vpop.f32.mrb[186].mxu1  ;;  %v4658_v21 = vmul.f32 %v6246_v22, %v4594_v15  ;;  %v4558_v44 = vsub.f32 %v9709_v12, %v3958_v61 }
 0x4f7   :  { %v4463_v14 = vsub.f32 %v6014_v20, %v4431_v39  ;;  %v4311_v18 = vpop.f32.mrb[187].mxu1  ;;  %v4657_v43 = vmul.f32 %v6248_v26, %v4593_v6  ;;  %v4598_v6 = vmul.f32 %v9934_v25, %v4559_v10 }
 0x4f8   :  { %v4462_v35 = vsub.f32 %v4311_v18, %v4430_v9  ;;  %v4697_v62 = vadd.f32 %v9942_v23, %v4658_v21  ;;  %v4597_v9 = vmul.f32 %v9934_v25, %v4558_v44 }
 0x4f9   :  { %v4495_v49 = vmax.f32 %v4463_v14, 0.0  ;;  %v4696_v30 = vadd.f32 %v9942_v23, %v4657_v43 }
 0x4fa   :  { %v4494_v3 = vmax.f32 %v4462_v35, 0.0 }
 0x4fb   :  { %v4527_v0 = vadd.f32 1e-09, %v4495_v49  ;;  %v4725_v37 = vpack.c.bf16 %v4697_v62, %v4696_v30 }
 0x4fc   :  { %v4526_v2 = vadd.f32 1e-09, %v4494_v3 }
 0x4fd   :  { %v6250_v19 = vpop.eup %6249  ;;  %6253 = vrsqrt.f32 %v4527_v0  ;;  %6054 = vmatmul.mubr.msk.bf16.gmra.mrb[180].mxu0 %vm11182_vm1, %v4725_v37  ;;  %vm11197_vm1 = vmmov %vm11128_vm0 }
 0x4fe   :  { %v6252_v33 = vpop.eup %6251  ;;  %6255 = vrsqrt.f32 %v4526_v2  ;;  %v4660_v11 = vmul.f32 %v6250_v19, %v4596_v46 }
 0x4ff   :  { %v4659_v63 = vmul.f32 %v6252_v33, %v4595_v60  ;;  %v5961_v24 = vpop.f32.mrb[156].mxu0 }
 0x500   :  { %v4699_v32 = vadd.f32 %v9942_v23, %v4660_v11  ;;  %v4433_v16 = vmul.f32 %v5961_v24, %v5961_v24  ;;  %v3968_v29 = vpop.f32.mrb[157].mxu0  ;;  %v4561_v51 = vsub.f32 %v9736_v41, %v5961_v24 }
 0x501   :  { %v4698_v27 = vadd.f32 %v9942_v23, %v4659_v63  ;;  %v4432_v45 = vmul.f32 %v3968_v29, %v3968_v29  ;;  %v6017_v40 = vpop.f32.mrb[188].mxu1  ;;  %v4560_v62 = vsub.f32 %v9729_v31, %v3968_v29 }
 0x502   :  { %v4465_v59 = vsub.f32 %v6017_v40, %v4433_v16  ;;  %v4321_v15 = vpop.f32.mrb[189].mxu1  ;;  %v4600_v46 = vmul.f32 %v9934_v25, %v4561_v51 }
 0x503   :  { %v4726_v8 = vpack.c.bf16 %v4699_v32, %v4698_v27  ;;  %v4464_v22 = vsub.f32 %v4321_v15, %v4432_v45  ;;  %v4599_v60 = vmul.f32 %v9934_v25, %v4560_v62 }
 0x504   :  { %v4497_v39 = vmax.f32 %v4465_v59, 0.0 }
 0x505   :  { %6057 = vmatprep.mubr.msk.bf16.mxu0 %vm11128_vm0, %v4726_v8  ;;  %v4496_v20 = vmax.f32 %v4464_v22, 0.0 }
 0x506   :  { %v4529_v28 = vadd.f32 1e-09, %v4497_v39 }
 0x507   :  { %v6254_v26 = vpop.eup %6253  ;;  %v4528_v14 = vadd.f32 1e-09, %v4496_v20 }
 0x508   :  { %v6256_v7 = vpop.eup %6255  ;;  %v4662_v21 = vmul.f32 %v6254_v26, %v4598_v6  ;;  %6257 = vrsqrt.f32 %v4529_v28 }
 0x509   :  { %v4661_v12 = vmul.f32 %v6256_v7, %v4597_v9  ;;  %6259 = vrsqrt.f32 %v4528_v14 }
 0x50a   :  { %v4701_v61 = vadd.f32 %v9942_v23, %v4662_v21 }
 0x50b   :  { %v4700_v18 = vadd.f32 %v9942_v23, %v4661_v12 }
 0x50d   :  { %v4727_v43 = vpack.c.bf16 %v4701_v61, %v4700_v18 }
 0x50f   :  { %v5964_v35 = vpop.f32.mrb[158].mxu0  ;;  %6058 = vmatmul.mubr.msk.bf16.gmra.mrb[184].mxu0 %vm11183_vm2, %v4727_v43  ;;  %vm11198_vm2 = vmmov %vm11128_vm0 }
 0x510   :  { %v4435_v13 = vmul.f32 %v5964_v35, %v5964_v35  ;;  %v3978_v49 = vpop.f32.mrb[159].mxu0  ;;  %v4563_v59 = vsub.f32 %v9756_v58, %v5964_v35 }
 0x511   :  { %v4434_v30 = vmul.f32 %v3978_v49, %v3978_v49  ;;  %v6020_v3 = vpop.f32.mrb[190].mxu1  ;;  %v4562_v6 = vsub.f32 %v9749_v57, %v3978_v49 }
 0x512   :  { %v4467_v0 = vsub.f32 %v6020_v3, %v4435_v13  ;;  %v4331_v37 = vpop.f32.mrb[191].mxu1  ;;  %v6258_v19 = vpop.eup %6257  ;;  %v4602_v20 = vmul.f32 %v9934_v25, %v4563_v59 }
 0x513   :  { %v4466_v2 = vsub.f32 %v4331_v37, %v4434_v30  ;;  %v6260_v11 = vpop.eup %6259  ;;  %v4664_v63 = vmul.f32 %v6258_v19, %v4600_v46  ;;  %v4601_v21 = vmul.f32 %v9934_v25, %v4562_v6 }
 0x514   :  { %v4499_v33 = vmax.f32 %v4467_v0, 0.0  ;;  %v4663_v24 = vmul.f32 %v6260_v11, %v4599_v60 }
 0x515   :  { %v4498_v41 = vmax.f32 %v4466_v2, 0.0  ;;  %v4703_v31 = vadd.f32 %v9942_v23, %v4664_v63 }
 0x516   :  { %v4531_v32 = vadd.f32 1e-09, %v4499_v33  ;;  %v4702_v10 = vadd.f32 %v9942_v23, %v4663_v24 }
 0x517   :  { %v4530_v27 = vadd.f32 1e-09, %v4498_v41 }
 0x518   :  { %6261 = vrsqrt.f32 %v4531_v32  ;;  %v4728_v29 = vpack.c.bf16 %v4703_v31, %v4702_v10 }
 0x519   :  { %6263 = vrsqrt.f32 %v4530_v27 }
 0x51a   :  { %v5967_v16 = vpop.f32.mrb[160].mxu0  ;;  %6061 = vmatprep.mubr.msk.bf16.mxu0 %vm11184_vm3, %v4728_v29  ;;  %vm11199_vm3 = vmmov %vm11128_vm0 }
 0x51b   :  { %v4437_v44 = vmul.f32 %v5967_v16, %v5967_v16  ;;  %v3988_v45 = vpop.f32.mrb[161].mxu0  ;;  %v4565_v57 = vsub.f32 %v9776_v55, %v5967_v16 }
 0x51c   :  { %v4436_v40 = vmul.f32 %v3988_v45, %v3988_v45  ;;  %v6023_v8 = vpop.f32.mrb[192].mxu1  ;;  %v4564_v35 = vsub.f32 %v9769_v38, %v3988_v45 }
 0x51d   :  { %v4469_v15 = vsub.f32 %v6023_v8, %v4437_v44  ;;  %v4341_v22 = vpop.f32.mrb[193].mxu1  ;;  %v4604_v13 = vmul.f32 %v9934_v25, %v4565_v57 }
 0x51e   :  { %v4468_v39 = vsub.f32 %v4341_v22, %v4436_v40  ;;  %v4603_v0 = vmul.f32 %v9934_v25, %v4564_v35 }
 0x51f   :  { %v4501_v26 = vmax.f32 %v4469_v15, 0.0 }
 0x520   :  { %v4500_v9 = vmax.f32 %v4468_v39, 0.0 }
 0x521   :  { %v4533_v7 = vadd.f32 1e-09, %v4501_v26 }
 0x522   :  { %v6262_v28 = vpop.eup %6261  ;;  %v4532_v14 = vadd.f32 1e-09, %v4500_v9 }
 0x523   :  { %v6264_v12 = vpop.eup %6263  ;;  %6265 = vrsqrt.f32 %v4533_v7  ;;  %v4666_v61 = vmul.f32 %v6262_v28, %v4602_v20 }
 0x524   :  { %6267 = vrsqrt.f32 %v4532_v14  ;;  %v4665_v18 = vmul.f32 %v6264_v12, %v4601_v21 }
 0x525   :  { %v4705_v58 = vadd.f32 %v9942_v23, %v4666_v61 }
 0x526   :  { %v4704_v43 = vadd.f32 %v9942_v23, %v4665_v18 }
 0x528   :  { %v4729_v51 = vpack.c.bf16 %v4705_v58, %v4704_v43 }
 0x529   :  { %v5970_v62 = vpop.f32.mrb[162].mxu0 }
 0x52a   :  { %6062 = vmatmul.mubr.msk.bf16.gmra.mrb[188].mxu0 %vm11185_vm4, %v4729_v51  ;;  %v4439_v49 = vmul.f32 %v5970_v62, %v5970_v62  ;;  %v3998_v30 = vpop.f32.mrb[163].mxu0  ;;  %v4567_v15 = vsub.f32 %v9796_v54, %v5970_v62  ;;  %vm11200_vm4 = vmmov %vm11128_vm0 }
 0x52b   :  { %v4438_v37 = vmul.f32 %v3998_v30, %v3998_v30  ;;  %v6026_v46 = vpop.f32.mrb[194].mxu1  ;;  %v4566_v6 = vsub.f32 %v9789_v36, %v3998_v30 }
 0x52c   :  { %v4471_v19 = vsub.f32 %v6026_v46, %v4439_v49  ;;  %v4351_v60 = vpop.f32.mrb[195].mxu1  ;;  %v4606_v20 = vmul.f32 %v9934_v25, %v4567_v15 }
 0x52d   :  { %v6266_v3 = vpop.eup %6265  ;;  %v4470_v55 = vsub.f32 %v4351_v60, %v4438_v37  ;;  %v4605_v28 = vmul.f32 %v9934_v25, %v4566_v6 }
 0x52e   :  { %v6268_v2 = vpop.eup %6267  ;;  %v4668_v33 = vmul.f32 %v6266_v3, %v4604_v13  ;;  %v4503_v41 = vmax.f32 %v4471_v19, 0.0 }
 0x52f   :  { %v4667_v11 = vmul.f32 %v6268_v2, %v4603_v0  ;;  %v4502_v63 = vmax.f32 %v4470_v55, 0.0 }
 0x530   :  { %v4707_v38 = vadd.f32 %v9942_v23, %v4668_v33  ;;  %v4535_v24 = vadd.f32 1e-09, %v4503_v41 }
 0x531   :  { %v4706_v32 = vadd.f32 %v9942_v23, %v4667_v11  ;;  %v4534_v27 = vadd.f32 1e-09, %v4502_v63 }
 0x532   :  { %6269 = vrsqrt.f32 %v4535_v24  ;;  %v5973_v10 = vpop.f32.mrb[164].mxu0 }
 0x533   :  { %v4730_v31 = vpack.c.bf16 %v4707_v38, %v4706_v32  ;;  %6271 = vrsqrt.f32 %v4534_v27  ;;  %v4441_v16 = vmul.f32 %v5973_v10, %v5973_v10  ;;  %v4008_v29 = vpop.f32.mrb[165].mxu0  ;;  %v4569_v54 = vsub.f32 %v9816_v50, %v5973_v10 }
 0x534   :  { %v4440_v44 = vmul.f32 %v4008_v29, %v4008_v29  ;;  %v6029_v45 = vpop.f32.mrb[196].mxu1  ;;  %v4568_v36 = vsub.f32 %v9809_v1, %v4008_v29 }
 0x535   :  { %6065 = vmatprep.mubr.msk.bf16.mxu0 %vm11186_vm11, %v4730_v31  ;;  %v4473_v40 = vsub.f32 %v6029_v45, %v4441_v16  ;;  %v4361_v8 = vpop.f32.mrb[197].mxu1  ;;  %v4608_v35 = vmul.f32 %v9934_v25, %v4569_v54  ;;  %vm11201_vm11 = vmmov %vm11128_vm0 }
 0x536   :  { %v4472_v59 = vsub.f32 %v4361_v8, %v4440_v44  ;;  %v4607_v30 = vmul.f32 %v9934_v25, %v4568_v36 }
 0x537   :  { %v4505_v22 = vmax.f32 %v4473_v40, 0.0 }
 0x538   :  { %v4504_v39 = vmax.f32 %v4472_v59, 0.0 }
 0x539   :  { %v4537_v26 = vadd.f32 1e-09, %v4505_v22 }
 0x53a   :  { %v4536_v9 = vadd.f32 1e-09, %v4504_v39 }
 0x53b   :  { %6273 = vrsqrt.f32 %v4537_v26 }
 0x53c   :  { %v6270_v7 = vpop.eup %6269  ;;  %6275 = vrsqrt.f32 %v4536_v9 }
 0x53d   :  { %v6272_v21 = vpop.eup %6271  ;;  %v4670_v14 = vmul.f32 %v6270_v7, %v4606_v20 }
 0x53e   :  { %v4669_v12 = vmul.f32 %v6272_v21, %v4605_v28 }
 0x53f   :  { %v4709_v61 = vadd.f32 %v9942_v23, %v4670_v14 }
 0x540   :  { %v4708_v18 = vadd.f32 %v9942_v23, %v4669_v12 }
 0x542   :  { %v4731_v43 = vpack.c.bf16 %v4709_v61, %v4708_v18 }
 0x543   :  { %v5976_v58 = vpop.f32.mrb[166].mxu0 }
 0x544   :  { %v4443_v57 = vmul.f32 %v5976_v58, %v5976_v58  ;;  %v4018_v51 = vpop.f32.mrb[167].mxu0  ;;  %6066 = vmatmul.mubr.msk.bf16.gmra.mrb[192].mxu0 %vm11187_vm9, %v4731_v43  ;;  %v4571_v31 = vsub.f32 %v9842_v17, %v5976_v58  ;;  %vm11202_vm9 = vmmov %vm11128_vm0 }
 0x545   :  { %v4442_v62 = vmul.f32 %v4018_v51, %v4018_v51  ;;  %v6032_v13 = vpop.f32.mrb[198].mxu1  ;;  %v6274_v49 = vpop.eup %6273  ;;  %v4570_v29 = vsub.f32 %v9835_v53, %v4018_v51 }
 0x546   :  { %v4475_v3 = vsub.f32 %v6032_v13, %v4443_v57  ;;  %v4371_v0 = vpop.f32.mrb[199].mxu1  ;;  %v6276_v50 = vpop.eup %6275  ;;  %v4672_v46 = vmul.f32 %v6274_v49, %v4608_v35  ;;  %v4610_v8 = vmul.f32 %v9934_v25, %v4571_v31 }
 0x547   :  { %v4474_v37 = vsub.f32 %v4371_v0, %v4442_v62  ;;  %v4671_v1 = vmul.f32 %v6276_v50, %v4607_v30  ;;  %v4609_v22 = vmul.f32 %v9934_v25, %v4570_v29 }
 0x548   :  { %v4507_v2 = vmax.f32 %v4475_v3, 0.0  ;;  %v4711_v60 = vadd.f32 %v9942_v23, %v4672_v46 }
 0x549   :  { %v4506_v19 = vmax.f32 %v4474_v37, 0.0  ;;  %v4710_v55 = vadd.f32 %v9942_v23, %v4671_v1 }
 0x54a   :  { %v4539_v33 = vadd.f32 1e-09, %v4507_v2 }
 0x54b   :  { %v4538_v11 = vadd.f32 1e-09, %v4506_v19  ;;  %v4732_v41 = vpack.c.bf16 %v4711_v60, %v4710_v55 }
 0x54c   :  { %6277 = vrsqrt.f32 %v4539_v33 }
 0x54d   :  { %6279 = vrsqrt.f32 %v4538_v11  ;;  %6069 = vmatprep.mubr.msk.bf16.mxu0 %vm11188_vm7, %v4732_v41  ;;  %vm11203_vm7 = vmmov %vm11128_vm0 }
 0x54e   :  { %v5979_v38 = vpop.f32.mrb[168].mxu0 }
 0x54f   :  { %v4445_v63 = vmul.f32 %v5979_v38, %v5979_v38  ;;  %v4028_v32 = vpop.f32.mrb[169].mxu0  ;;  %v4573_v53 = vsub.f32 %v9862_v52, %v5979_v38 }
 0x550   :  { %v4444_v24 = vmul.f32 %v4028_v32, %v4028_v32  ;;  %v6035_v27 = vpop.f32.mrb[200].mxu1  ;;  %v4572_v21 = vsub.f32 %v9855_v56, %v4028_v32 }
 0x551   :  { %v4477_v10 = vsub.f32 %v6035_v27, %v4445_v63  ;;  %v4381_v16 = vpop.f32.mrb[201].mxu1  ;;  %v4612_v58 = vmul.f32 %v9934_v25, %v4573_v53 }
 0x552   :  { %v4476_v44 = vsub.f32 %v4381_v16, %v4444_v24  ;;  %v4611_v51 = vmul.f32 %v9934_v25, %v4572_v21 }
 0x553   :  { %v4509_v45 = vmax.f32 %v4477_v10, 0.0 }
 0x554   :  { %v4508_v40 = vmax.f32 %v4476_v44, 0.0 }
 0x555   :  { %v4541_v59 = vadd.f32 1e-09, %v4509_v45 }
 0x556   :  { %v6278_v15 = vpop.eup %6277  ;;  %v4540_v6 = vadd.f32 1e-09, %v4508_v40 }
 0x557   :  { %v6280_v39 = vpop.eup %6279  ;;  %6281 = vrsqrt.f32 %v4541_v59  ;;  %v4674_v26 = vmul.f32 %v6278_v15, %v4610_v8 }
 0x558   :  { %6283 = vrsqrt.f32 %v4540_v6  ;;  %v4673_v9 = vmul.f32 %v6280_v39, %v4609_v22 }
 0x559   :  { %v4713_v17 = vadd.f32 %v9942_v23, %v4674_v26 }
 0x55a   :  { %v4712_v20 = vadd.f32 %v9942_v23, %v4673_v9 }
 0x55c   :  { %v4733_v28 = vpack.c.bf16 %v4713_v17, %v4712_v20 }
 0x55d   :  { %v5982_v7 = vpop.f32.mrb[170].mxu0 }
 0x55e   :  { %v4447_v14 = vmul.f32 %v5982_v7, %v5982_v7  ;;  %v4038_v12 = vpop.f32.mrb[171].mxu0  ;;  %6070 = vmatmul.mubr.msk.bf16.gmra.mrb[196].mxu0 %vm11189_vm8, %v4733_v28  ;;  %v4575_v55 = vsub.f32 %v9882_v5, %v5982_v7  ;;  %vm11204_vm8 = vmmov %vm11128_vm0 }
 0x55f   :  { %v4446_v61 = vmul.f32 %v4038_v12, %v4038_v12  ;;  %v6038_v54 = vpop.f32.mrb[202].mxu1  ;;  %v4574_v41 = vsub.f32 %v9875_v47, %v4038_v12 }
 0x560   :  { %v4479_v18 = vsub.f32 %v6038_v54, %v4447_v14  ;;  %v4391_v36 = vpop.f32.mrb[203].mxu1  ;;  %v4614_v24 = vmul.f32 %v9934_v25, %v4575_v55 }
 0x561   :  { %v4478_v43 = vsub.f32 %v4391_v36, %v4446_v61  ;;  %v6282_v57 = vpop.eup %6281  ;;  %v4613_v10 = vmul.f32 %v9934_v25, %v4574_v41 }
 0x562   :  { %v4511_v35 = vmax.f32 %v4479_v18, 0.0  ;;  %v6284_v52 = vpop.eup %6283  ;;  %v4676_v13 = vmul.f32 %v6282_v57, %v4612_v58 }
 0x563   :  { %v4510_v62 = vmax.f32 %v4478_v43, 0.0  ;;  %v4675_v56 = vmul.f32 %v6284_v52, %v4611_v51 }
 0x564   :  { %v4543_v49 = vadd.f32 1e-09, %v4511_v35  ;;  %v4715_v3 = vadd.f32 %v9942_v23, %v4676_v13 }
 0x565   :  { %v4542_v30 = vadd.f32 1e-09, %v4510_v62  ;;  %v4714_v0 = vadd.f32 %v9942_v23, %v4675_v56 }
 0x566   :  { %6285 = vrsqrt.f32 %v4543_v49 }
 0x567   :  { %6287 = vrsqrt.f32 %v4542_v30  ;;  %v5985_v50 = vpop.f32.mrb[172].mxu0  ;;  %v4734_v2 = vpack.c.bf16 %v4715_v3, %v4714_v0  ;;  %v4755_v3 = vpop.permute.xlu0 %4754 }
 0x568   :  { %v4449_v37 = vmul.f32 %v5985_v50, %v5985_v50  ;;  %v4048_v46 = vpop.f32.mrb[173].mxu0  ;;  %v4577_v47 = vsub.f32 %v9902_v48, %v5985_v50  ;;  %v4757_v0 = vpop.permute.xlu1 %4756 }
 0x569   :  { %v4448_v1 = vmul.f32 %v4048_v46, %v4048_v46  ;;  %v6041_v19 = vpop.f32.mrb[204].mxu1  ;;  %6073 = vmatprep.mubr.msk.bf16.mxu0 %vm11190_vm10, %v4734_v2  ;;  %v4576_v8 = vsub.f32 %v9895_v34, %v4048_v46  ;;  %vm11205_vm10 = vmmov %vm11128_vm0 }
 0x56a   :  { %v4481_v60 = vsub.f32 %v6041_v19, %v4449_v37  ;;  %v4401_v33 = vpop.f32.mrb[205].mxu1  ;;  %v4616_v17 = vmul.f32 %v9934_v25, %v4577_v47 }
 0x56b   :  { %v4480_v11 = vsub.f32 %v4401_v33, %v4448_v1  ;;  %v4615_v7 = vmul.f32 %v9934_v25, %v4576_v8 }
 0x56c   :  { %v4513_v38 = vmax.f32 %v4481_v60, 0.0  ;;  %v4761_v46 = vpop.permute.xlu1 %4760 }
 0x56d   :  { %v4512_v63 = vmax.f32 %v4480_v11, 0.0 }
 0x56e   :  { %v4545_v32 = vadd.f32 1e-09, %v4513_v38 }
 0x56f   :  { %v4544_v27 = vadd.f32 1e-09, %v4512_v63 }
 0x570   :  { %v6286_v31 = vpop.eup %6285  ;;  %6289 = vrsqrt.f32 %v4545_v32  ;;  %v4765_v63 = vpop.permute.xlu1 %4764 }
 0x571   :  { %v6288_v16 = vpop.eup %6287  ;;  %6291 = vrsqrt.f32 %v4544_v27  ;;  %v4678_v29 = vmul.f32 %v6286_v31, %v4614_v24 }
 0x572   :  { %v4677_v44 = vmul.f32 %v6288_v16, %v4613_v10 }
 0x573   :  { %v4717_v45 = vadd.f32 %v9942_v23, %v4678_v29 }
 0x574   :  { %v4716_v5 = vadd.f32 %v9942_v23, %v4677_v44  ;;  %v4769_v10 = vpop.permute.xlu1 %4768 }
 0x575   :  { %v5988_v40 = vpop.f32.mrb[174].mxu0 }
 0x576   :  { %v4451_v59 = vmul.f32 %v5988_v40, %v5988_v40  ;;  %v4058_v15 = vpop.f32.mrb[175].mxu0  ;;  %v4735_v22 = vpack.c.bf16 %v4717_v45, %v4716_v5  ;;  %v4579_v58 = vsub.f32 %v9922_v4, %v5988_v40  ;;  %v4759_v4 = vpop.permute.xlu0 %4758 }
 0x577   :  { %v4450_v6 = vmul.f32 %v4058_v15, %v4058_v15  ;;  %v6044_v39 = vpop.f32.mrb[206].mxu1  ;;  %v4578_v43 = vsub.f32 %v9915_v42, %v4058_v15  ;;  %v10055_v42 = vld [vmem:[%s10226_s9] ss:$0 sm:$0xff] }
 0x578   :  { %v4483_v26 = vsub.f32 %v6044_v39, %v4451_v59  ;;  %v4411_v9 = vpop.f32.mrb[207].mxu1  ;;  %6074 = vmatmul.mubr.msk.bf16.gmra.mrb[200].mxu0 %vm11191_vm12, %v4735_v22  ;;  %v4618_v57 = vmul.f32 %v9934_v25, %v4579_v58  ;;  %v4773_v22 = vpop.permute.xlu1 %4772  ;;  %vm11206_vm12 = vmmov %vm11128_vm0 }
 0x579   :  { %v4482_v20 = vsub.f32 %v4411_v9, %v4450_v6  ;;  %v4617_v35 = vmul.f32 %v9934_v25, %v4578_v43 }
 0x57a   :  { %v6290_v53 = vpop.eup %6289  ;;  %v4515_v28 = vmax.f32 %v4483_v26, 0.0  ;;  %v4763_v38 = vpop.permute.xlu0 %4762 }
 0x57b   :  { %v6292_v48 = vpop.eup %6291  ;;  %v4514_v21 = vmax.f32 %v4482_v20, 0.0  ;;  %v4680_v14 = vmul.f32 %v6290_v53, %v4616_v17 }
 0x57c   :  { %v4547_v34 = vadd.f32 1e-09, %v4515_v28  ;;  %v4679_v12 = vmul.f32 %v6292_v48, %v4615_v7  ;;  %v4777_v17 = vpop.permute.xlu1 %4776 }
 0x57d   :  { %v4546_v61 = vadd.f32 1e-09, %v4514_v21  ;;  %v4719_v54 = vadd.f32 %v9942_v23, %v4680_v14 }
 0x57e   :  { %6293 = vrsqrt.f32 %v4547_v34  ;;  %v4718_v18 = vadd.f32 %v9942_v23, %v4679_v12  ;;  %v4767_v32 = vpop.permute.xlu0 %4766 }
 0x57f   :  { %6295 = vrsqrt.f32 %v4546_v61 }
 0x580   :  { %v4736_v36 = vpack.c.bf16 %v4719_v54, %v4718_v18  ;;  %v4781_v54 = vpop.permute.xlu1 %4780 }
 0x582   :  { %6077 = vmatprep.mubr.msk.bf16.mxu0 %vm11192_vm5, %v4736_v36  ;;  %v4771_v15 = vpop.permute.xlu0 %4770  ;;  %vm11207_vm5 = vmmov %vm11128_vm0 }
 0x586   :  { %v4775_v6 = vpop.permute.xlu0 %4774 }
 0x588   :  { %v6294_v51 = vpop.eup %6293 }
 0x589   :  { %v6296_v52 = vpop.eup %6295  ;;  %v4682_v62 = vmul.f32 %v6294_v51, %v4618_v57  ;;  %v4785_v57 = vpop.permute.xlu1 %4784 }
 0x58a   :  { %v4681_v13 = vmul.f32 %v6296_v52, %v4617_v35  ;;  %v4779_v61 = vpop.permute.xlu0 %4778 }
 0x58b   :  { %v4721_v49 = vadd.f32 %v9942_v23, %v4682_v62 }
 0x58c   :  { %v4720_v56 = vadd.f32 %v9942_v23, %v4681_v13 }
 0x58e   :  { %v4737_v30 = vpack.c.bf16 %v4721_v49, %v4720_v56  ;;  %v4783_v18 = vpop.permute.xlu0 %4782 }
 0x590   :  { %6078 = vmatmul.mubr.msk.bf16.gmra.mrb[204].mxu0 %vm11193_vm13, %v4737_v30  ;;  %vm11208_vm13 = vmmov %vm11128_vm0 }
 0x5c0   :  { %v6051_v50 = vpop.f32.mrb[176].mxu0 }
 0x5c1   :  { %v4941_v25 = vadd.f32 %v6051_v50, %v4759_v4  ;;  %v4932_v37 = vpop.f32.mrb[177].mxu0  ;;  %v4789_v4 = vpop.permute.xlu1 %4788 }
 0x5c2   :  { %v4933_v2 = vadd.f32 %v4932_v37, %v4755_v3  ;;  %v6052_v1 = vpop.f32.mrb[178].mxu0 }
 0x5c3   :  { %v5068_v19 = vadd.f32 %v10055_v42, %v4941_v25  ;;  %v4944_v23 = vadd.f32 %v6052_v1, %v4761_v46  ;;  %v4935_v60 = vpop.f32.mrb[179].mxu0 }
 0x5c4   :  { %v5066_v33 = vadd.f32 %v10055_v42, %v4933_v2  ;;  %v4936_v55 = vadd.f32 %v4935_v60, %v4757_v0  ;;  %v4787_v0 = vpop.permute.xlu0 %4786 }
 0x5c5   :  { %5100 = vst.msk [vmem:[%s10227_s10 + $0x10] sm:$0xff] %vm11194_vm6, %v5068_v19  ;;  %v5069_v11 = vadd.f32 %v10055_v42, %v4944_v23  ;;  %v4793_v2 = vpop.permute.xlu1 %4792  ;;  %vm11209_vm6 = vmmov %vm11128_vm0 }
 0x5c6   :  { %5098 = vst.msk [vmem:[%s10227_s10] sm:$0xff] %vm11195_vm14, %v5066_v33  ;;  %v5067_v41 = vadd.f32 %v10055_v42, %v4936_v55  ;;  %vm11210_vm14 = vmmov %vm11128_vm0 }
 0x5c7   :  { %5101 = vst.msk [vmem:[%s10227_s10 + $0x18] sm:$0xff] %vm11196_vm15, %v5069_v11  ;;  %vm11211_vm15 = vmmov %vm11128_vm0 }
 0x5c8   :  { %5099 = vst.msk [vmem:[%s10227_s10 + $0x8] sm:$0xff] %vm11197_vm1, %v5067_v41  ;;  %v4791_v50 = vpop.permute.xlu0 %4790  ;;  %vm11212_vm1 = vmmov %vm11128_vm0 }
 0x5d0   :  { %v6055_v24 = vpop.f32.mrb[180].mxu0 }
 0x5d1   :  { %v4957_v27 = vadd.f32 %v6055_v24, %v4767_v32  ;;  %v4948_v31 = vpop.f32.mrb[181].mxu0  ;;  %v4797_v32 = vpop.permute.xlu1 %4796 }
 0x5d2   :  { %v4949_v16 = vadd.f32 %v4948_v31, %v4763_v38  ;;  %v6056_v29 = vpop.f32.mrb[182].mxu0 }
 0x5d3   :  { %v5072_v44 = vadd.f32 %v10055_v42, %v4957_v27  ;;  %v4960_v45 = vadd.f32 %v6056_v29, %v4769_v10  ;;  %v4951_v5 = vpop.f32.mrb[183].mxu0 }
 0x5d4   :  { %v5070_v47 = vadd.f32 %v10055_v42, %v4949_v16  ;;  %v4952_v40 = vadd.f32 %v4951_v5, %v4765_v63  ;;  %v4795_v63 = vpop.permute.xlu0 %4794 }
 0x5d5   :  { %5104 = vst.msk [vmem:[%s10227_s10 + $0x30] sm:$0xff] %vm11128_vm0, %v5072_v44  ;;  %v5073_v8 = vadd.f32 %v10055_v42, %v4960_v45  ;;  %v4801_v16 = vpop.permute.xlu1 %4800 }
 0x5d6   :  { %5102 = vst.msk [vmem:[%s10227_s10 + $0x20] sm:$0xff] %vm11198_vm2, %v5070_v47  ;;  %v5071_v59 = vadd.f32 %v10055_v42, %v4952_v40  ;;  %vm11213_vm2 = vmmov %vm11128_vm0 }
 0x5d7   :  { %5105 = vst.msk [vmem:[%s10227_s10 + $0x38] sm:$0xff] %vm11199_vm3, %v5073_v8  ;;  %vm11214_vm3 = vmmov %vm11128_vm0 }
 0x5d8   :  { %5103 = vst.msk [vmem:[%s10227_s10 + $0x28] sm:$0xff] %vm11200_vm4, %v5071_v59  ;;  %v4799_v24 = vpop.permute.xlu0 %4798  ;;  %vm11215_vm4 = vmmov %vm11128_vm0 }
 0x5e2   :  { %v6059_v39 = vpop.f32.mrb[184].mxu0 }
 0x5e3   :  { %v4973_v26 = vadd.f32 %v6059_v39, %v4775_v6  ;;  %v4964_v9 = vpop.f32.mrb[185].mxu0  ;;  %v4805_v6 = vpop.permute.xlu1 %4804 }
 0x5e4   :  { %v4965_v20 = vadd.f32 %v4964_v9, %v4771_v15  ;;  %v6060_v53 = vpop.f32.mrb[186].mxu0 }
 0x5e5   :  { %v5076_v7 = vadd.f32 %v10055_v42, %v4973_v26  ;;  %v4976_v28 = vadd.f32 %v6060_v53, %v4777_v17  ;;  %v4967_v48 = vpop.f32.mrb[187].mxu0 }
 0x5e6   :  { %v5074_v21 = vadd.f32 %v10055_v42, %v4965_v20  ;;  %v4968_v14 = vadd.f32 %v4967_v48, %v4773_v22  ;;  %v4803_v22 = vpop.permute.xlu0 %4802 }
 0x5e7   :  { %5108 = vst.msk [vmem:[%s10227_s10 + $0x50] sm:$0xff] %vm11201_vm11, %v5076_v7  ;;  %v5077_v34 = vadd.f32 %v10055_v42, %v4976_v28  ;;  %v4809_v20 = vpop.permute.xlu1 %4808  ;;  %vm11216_vm11 = vmmov %vm11128_vm0 }
 0x5e8   :  { %5106 = vst.msk [vmem:[%s10227_s10 + $0x40] sm:$0xff] %vm11202_vm9, %v5074_v21  ;;  %v5075_v12 = vadd.f32 %v10055_v42, %v4968_v14  ;;  %vm11217_vm9 = vmmov %vm11128_vm0 }
 0x5e9   :  { %5109 = vst.msk [vmem:[%s10227_s10 + $0x58] sm:$0xff] %vm11203_vm7, %v5077_v34  ;;  %vm11218_vm7 = vmmov %vm11128_vm0 }
 0x5ea   :  { %5107 = vst.msk [vmem:[%s10227_s10 + $0x48] sm:$0xff] %vm11204_vm8, %v5075_v12  ;;  %v4807_v39 = vpop.permute.xlu0 %4806  ;;  %vm11219_vm8 = vmmov %vm11128_vm0 }
 0x5fd   :  { %v6063_v36 = vpop.f32.mrb[188].mxu0 }
 0x5fe   :  { %v4989_v58 = vadd.f32 %v6063_v36, %v4783_v18  ;;  %v4980_v43 = vpop.f32.mrb[189].mxu0  ;;  %v4813_v18 = vpop.permute.xlu1 %4812 }
 0x5ff   :  { %v4981_v51 = vadd.f32 %v4980_v43, %v4779_v61  ;;  %v6064_v35 = vpop.f32.mrb[190].mxu0 }
 0x600   :  { %v5080_v52 = vadd.f32 %v10055_v42, %v4989_v58  ;;  %v4992_v62 = vadd.f32 %v6064_v35, %v4785_v57  ;;  %v4983_v13 = vpop.f32.mrb[191].mxu0 }
 0x601   :  { %v5078_v49 = vadd.f32 %v10055_v42, %v4981_v51  ;;  %v4984_v56 = vadd.f32 %v4983_v13, %v4781_v54  ;;  %v4811_v54 = vpop.permute.xlu0 %4810 }
 0x602   :  { %5112 = vst.msk [vmem:[%s10227_s10 + $0x70] sm:$0xff] %vm11205_vm10, %v5080_v52  ;;  %v5081_v30 = vadd.f32 %v10055_v42, %v4992_v62  ;;  %v4817_v51 = vpop.permute.xlu1 %4816  ;;  %vm11220_vm10 = vmmov %vm11128_vm0 }
 0x603   :  { %5110 = vst.msk [vmem:[%s10227_s10 + $0x60] sm:$0xff] %vm11206_vm12, %v5078_v49  ;;  %v5079_v3 = vadd.f32 %v10055_v42, %v4984_v56  ;;  %vm11221_vm12 = vmmov %vm11128_vm0 }
 0x604   :  { %5113 = vst.msk [vmem:[%s10227_s10 + $0x78] sm:$0xff] %vm11207_vm5, %v5081_v30  ;;  %vm11222_vm5 = vmmov %vm11128_vm0 }
 0x605   :  { %5111 = vst.msk [vmem:[%s10227_s10 + $0x68] sm:$0xff] %vm11208_vm13, %v5079_v3  ;;  %v4815_v36 = vpop.permute.xlu0 %4814  ;;  %vm11223_vm13 = vmmov %vm11128_vm0 }
 0x617   :  { %v6067_v25 = vpop.f32.mrb[192].mxu0 }
 0x618   :  { %v5005_v37 = vadd.f32 %v6067_v25, %v4791_v50  ;;  %v4996_v46 = vpop.f32.mrb[193].mxu0 }
 0x619   :  { %v4997_v1 = vadd.f32 %v4996_v46, %v4787_v0  ;;  %v6068_v19 = vpop.f32.mrb[194].mxu0 }
 0x61a   :  { %v5084_v23 = vadd.f32 %v10055_v42, %v5005_v37  ;;  %v5008_v60 = vadd.f32 %v6068_v19, %v4793_v2  ;;  %v4999_v33 = vpop.f32.mrb[195].mxu0 }
 0x61b   :  { %v5082_v55 = vadd.f32 %v10055_v42, %v4997_v1  ;;  %v5000_v11 = vadd.f32 %v4999_v33, %v4789_v4 }
 0x61c   :  { %5116 = vst.msk [vmem:[%s10227_s10 + $0x90] sm:$0xff] %vm11209_vm6, %v5084_v23  ;;  %v5085_v41 = vadd.f32 %v10055_v42, %v5008_v60 }
 0x61d   :  { %5114 = vst.msk [vmem:[%s10227_s10 + $0x80] sm:$0xff] %vm11210_vm14, %v5082_v55  ;;  %v5083_v38 = vadd.f32 %v10055_v42, %v5000_v11 }
 0x61e   :  { %5117 = vst.msk [vmem:[%s10227_s10 + $0x98] sm:$0xff] %vm11211_vm15, %v5085_v41 }
 0x61f   :  { %5115 = vst.msk [vmem:[%s10227_s10 + $0x88] sm:$0xff] %vm11212_vm1, %v5083_v38 }
 0x631   :  { %v6071_v27 = vpop.f32.mrb[196].mxu0 }
 0x632   :  { %v5021_v31 = vadd.f32 %v6071_v27, %v4799_v24  ;;  %v5012_v10 = vpop.f32.mrb[197].mxu0 }
 0x633   :  { %v5013_v29 = vadd.f32 %v5012_v10, %v4795_v63  ;;  %v6072_v44 = vpop.f32.mrb[198].mxu0 }
 0x634   :  { %v5088_v45 = vadd.f32 %v10055_v42, %v5021_v31  ;;  %v5024_v5 = vadd.f32 %v6072_v44, %v4801_v16  ;;  %v5015_v47 = vpop.f32.mrb[199].mxu0 }
 0x635   :  { %v5086_v40 = vadd.f32 %v10055_v42, %v5013_v29  ;;  %v5016_v8 = vadd.f32 %v5015_v47, %v4797_v32 }
 0x636   :  { %5120 = vst.msk [vmem:[%s10227_s10 + $0xb0] sm:$0xff] %vm11128_vm0, %v5088_v45  ;;  %v5089_v59 = vadd.f32 %v10055_v42, %v5024_v5 }
 0x637   :  { %5118 = vst.msk [vmem:[%s10227_s10 + $0xa0] sm:$0xff] %vm11213_vm2, %v5086_v40  ;;  %v5087_v15 = vadd.f32 %v10055_v42, %v5016_v8 }
 0x638   :  { %5121 = vst.msk [vmem:[%s10227_s10 + $0xb8] sm:$0xff] %vm11214_vm3, %v5089_v59 }
 0x639   :  { %5119 = vst.msk [vmem:[%s10227_s10 + $0xa8] sm:$0xff] %vm11215_vm4, %v5087_v15 }
 0x64b   :  { %v6075_v26 = vpop.f32.mrb[200].mxu0 }
 0x64c   :  { %v5037_v9 = vadd.f32 %v6075_v26, %v4807_v39  ;;  %v5028_v17 = vpop.f32.mrb[201].mxu0 }
 0x64d   :  { %v5029_v53 = vadd.f32 %v5028_v17, %v4803_v22  ;;  %v6076_v7 = vpop.f32.mrb[202].mxu0 }
 0x64e   :  { %v5092_v28 = vadd.f32 %v10055_v42, %v5037_v9  ;;  %v5040_v48 = vadd.f32 %v6076_v7, %v4809_v20  ;;  %v5031_v21 = vpop.f32.mrb[203].mxu0 }
 0x64f   :  { %v5090_v14 = vadd.f32 %v10055_v42, %v5029_v53  ;;  %v5032_v34 = vadd.f32 %v5031_v21, %v4805_v6 }
 0x650   :  { %5124 = vst.msk [vmem:[%s10227_s10 + $0xd0] sm:$0xff] %vm11216_vm11, %v5092_v28  ;;  %v5093_v12 = vadd.f32 %v10055_v42, %v5040_v48 }
 0x651   :  { %5122 = vst.msk [vmem:[%s10227_s10 + $0xc0] sm:$0xff] %vm11217_vm9, %v5090_v14  ;;  %v5091_v61 = vadd.f32 %v10055_v42, %v5032_v34 }
 0x652   :  { %5125 = vst.msk [vmem:[%s10227_s10 + $0xd8] sm:$0xff] %vm11218_vm7, %v5093_v12 }
 0x653   :  { %5123 = vst.msk [vmem:[%s10227_s10 + $0xc8] sm:$0xff] %vm11219_vm8, %v5091_v61 }
 0x663   :  { %v6079_v58 = vpop.f32.mrb[204].mxu0 }
 0x664   :  { %v5053_v43 = vadd.f32 %v6079_v58, %v4815_v36  ;;  %v5044_v57 = vpop.f32.mrb[205].mxu0 }
 0x665   :  { %v5045_v35 = vadd.f32 %v5044_v57, %v4811_v54  ;;  %v6080_v52 = vpop.f32.mrb[206].mxu0 }
 0x666   :  { %v5096_v62 = vadd.f32 %v10055_v42, %v5053_v43  ;;  %v5056_v13 = vadd.f32 %v6080_v52, %v4817_v51  ;;  %v5047_v49 = vpop.f32.mrb[207].mxu0 }
 0x667   :  { %v5094_v56 = vadd.f32 %v10055_v42, %v5045_v35  ;;  %v5048_v30 = vadd.f32 %v5047_v49, %v4813_v18 }
 0x668   :  { %5128 = vst.msk [vmem:[%s10227_s10 + $0xf0] sm:$0xff] %vm11220_vm10, %v5096_v62  ;;  %v5097_v3 = vadd.f32 %v10055_v42, %v5056_v13 }
 0x669   :  { %5126 = vst.msk [vmem:[%s10227_s10 + $0xe0] sm:$0xff] %vm11221_vm12, %v5094_v56  ;;  %v5095_v0 = vadd.f32 %v10055_v42, %v5048_v30 }
 0x66a   :  { %5129 = vst.msk [vmem:[%s10227_s10 + $0xf8] sm:$0xff] %vm11222_vm5, %v5097_v3 }
 0x66b   :  { %5127 = vst.msk [vmem:[%s10227_s10 + $0xe8] sm:$0xff] %vm11223_vm13, %v5095_v0 }

</bundles_post_ra>
